<compile_context>
chip_gen: v5e
topology: v5e:2x2
jax: 0.10.0
libtpu: 0.0.40
codegen_flags: <defaults>
</compile_context>

<pallas_src>
import functools
import math

import jax
import jax.numpy as jnp
from jax.experimental import pallas as pl
from jax.experimental.pallas import tpu as pltpu

MATMUL_DTYPE = jnp.bfloat16                       # MXU operand dtype
NEG_MAX_F32 = -float(jnp.finfo(jnp.float32).max)  # torch masked_fill(-finfo.max)

# Preferred tile sizes (re-sweep per generation; chosen so double-buffered
# weight tiles fit v7x's 64 MiB VMEM as well as v5e/v6e's 128 MiB).
_TQ_PREF = 128      # sequence (row) tile
_TK_PREF = 128      # kv tile in flash attention
_TF_PREF = 256      # GEGLU hidden tile (reduction of the 2nd FFN matmul)
_TV_PREF = 512      # vocab tile for the logits projection


# ----------------------------------------------------------------------------
# small helpers
# ----------------------------------------------------------------------------
def _vmem_limit_bytes():
    """~7/8 of physical VMEM (v5e/v6e: 128 MiB, v7x: 64 MiB); safe fallback."""
    try:
        cap = pltpu.get_tpu_info().vmem_capacity_bytes
        return int(cap * 7 // 8)
    except Exception:
        return 64 * 1024 * 1024


def _compiler_params(dim_sem):
    return pltpu.CompilerParams(dimension_semantics=dim_sem,
                                vmem_limit_bytes=_vmem_limit_bytes())


def _pick_tile(total, preferred, align):
    """Largest divisor of `total` <= preferred that is a multiple of `align`
    (falls back to the full extent, which is always a legal block)."""
    if total <= preferred:
        return total
    if total % align:
        return total
    t = (min(preferred, total) // align) * align
    while t >= align:
        if total % t == 0:
            return t
        t -= align
    return total


def _erf(x):
    # Abramowitz & Stegun 7.1.26, |err| < 1.5e-7 — matches F.gelu's exact erf
    # to f32 precision (lax.erf has no guaranteed Mosaic lowering).
    a1, a2, a3, a4, a5 = (0.254829592, -0.284496736, 1.421413741,
                          -1.453152027, 1.061405429)
    p = 0.3275911
    ax = jnp.abs(x)
    t = 1.0 / (1.0 + p * ax)
    poly = ((((a5 * t + a4) * t + a3) * t + a2) * t + a1) * t
    y = 1.0 - poly * jnp.exp(-ax * ax)
    return jnp.where(x < 0, -y, y)


def _gelu_exact(x):
    return 0.5 * x * (1.0 + _erf(x * (1.0 / math.sqrt(2.0))))


def _rotate_half_matrix(d):
    """(d, d) matrix R with t @ R == rotate_half(t) = cat(-x2, x1)."""
    half = d // 2
    eye = jnp.eye(half, dtype=jnp.float32)
    zeros = jnp.zeros((half, half), dtype=jnp.float32)
    top = jnp.concatenate([zeros, eye], axis=1)    # x1 -> second half
    bot = jnp.concatenate([-eye, zeros], axis=1)   # x2 -> -(first half)
    return jnp.concatenate([top, bot], axis=0)


# ----------------------------------------------------------------------------
# kernels
# ----------------------------------------------------------------------------
def _qkv_rope_kernel(x_ref, cos_ref, sin_ref, rot_ref,
                     wq_ref, bq_ref, wk_ref, bk_ref, wv_ref, bv_ref,
                     q_ref, k_ref, v_ref, *, scale):
    """Per-(batch, row-tile, head) Q/K/V projection with rotary embedding."""
    x = x_ref[0].astype(MATMUL_DTYPE)         # (tq, dim) bf16
    cos = cos_ref[...]                        # (tq, d) f32
    sin = sin_ref[...]
    rot = rot_ref[...]                        # (d, d) f32

    def proj(w_ref, b_ref):
        y = jnp.dot(x, w_ref[0], preferred_element_type=jnp.float32)
        return y + b_ref[0]                   # (tq, d) f32

    def rope(t):                              # rotary = elementwise + tiny matmul
        return t * cos + jnp.dot(t, rot,
                                 preferred_element_type=jnp.float32) * sin

    q = proj(wq_ref, bq_ref) * scale          # scale then rope (matches torch)
    k = proj(wk_ref, bk_ref)
    v = proj(wv_ref, bv_ref)

    q_ref[0, 0] = rope(q).astype(q_ref.dtype)
    k_ref[0, 0] = rope(k).astype(k_ref.dtype)
    v_ref[0, 0] = v.astype(v_ref.dtype)


def _flash_attn_kernel(q_ref, k_ref, v_ref, o_ref, m_sc, l_sc, acc_sc,
                       *, tq, tk):
    """Causal flash attention for one (batch, head); online softmax over kv."""
    qi = pl.program_id(2)
    ki = pl.program_id(3)

    @pl.when(ki == 0)
    def _init():
        m_sc[...] = jnp.full(m_sc.shape, -jnp.inf, dtype=jnp.float32)
        l_sc[...] = jnp.zeros(l_sc.shape, dtype=jnp.float32)
        acc_sc[...] = jnp.zeros(acc_sc.shape, dtype=jnp.float32)

    # skip kv tiles entirely above the causal diagonal
    @pl.when(ki * tk <= qi * tq + (tq - 1))
    def _compute():
        q = q_ref[0, 0]                                          # (tq, d) bf16
        k = k_ref[0, 0]                                          # (tk, d) bf16
        v = v_ref[0, 0]
        s = jax.lax.dot_general(q, k, (((1,), (1,)), ((), ())),
                                preferred_element_type=jnp.float32)  # (tq, tk)
        row = qi * tq + jax.lax.broadcasted_iota(jnp.int32, (tq, tk), 0)
        col = ki * tk + jax.lax.broadcasted_iota(jnp.int32, (tq, tk), 1)
        s = jnp.where(col > row, NEG_MAX_F32, s)                 # triu(1) mask
        m_prev = m_sc[...]
        m_new = jnp.maximum(m_prev, jnp.max(s, axis=-1, keepdims=True))
        corr = jnp.exp(m_prev - m_new)
        p = jnp.exp(s - m_new)
        l_sc[...] = corr * l_sc[...] + jnp.sum(p, axis=-1, keepdims=True)
        acc_sc[...] = corr * acc_sc[...] + jnp.dot(
            p.astype(v.dtype), v, preferred_element_type=jnp.float32)
        m_sc[...] = m_new

    @pl.when(ki == pl.num_programs(3) - 1)
    def _finalize():
        inv_l = pl.reciprocal(l_sc[...], approx=True)            # EUP slot
        o_ref[0, 0] = (acc_sc[...] * inv_l).astype(o_ref.dtype)


def _ffn_combine_kernel(x_ref, ctx_ref, wo_ref, bo_ref,
                        w1a_ref, b1a_ref, w1g_ref, b1g_ref, w2_ref, b2_ref,
                        gamma_ref, beta_ref, o_ref, acc_ref,
                        *, heads, scale_residual, eps):
    """GEGLU FFN (hidden dim tiled as a reduction) + attention output
    projection + parallel-block combine + DeepNorm residual + post-LayerNorm."""
    f = pl.program_id(2)

    @pl.when(f == 0)
    def _init():
        acc_ref[...] = jnp.zeros(acc_ref.shape, dtype=jnp.float32)

    xb = x_ref[0].astype(MATMUL_DTYPE)                           # (tq, dim)
    a = jnp.dot(xb, w1a_ref[...],
                preferred_element_type=jnp.float32) + b1a_ref[...]
    g = jnp.dot(xb, w1g_ref[...],
                preferred_element_type=jnp.float32) + b1g_ref[...]
    hidden = (a * _gelu_exact(g)).astype(MATMUL_DTYPE)           # (tq, tf)
    acc_ref[...] += jnp.dot(hidden, w2_ref[...],
                            preferred_element_type=jnp.float32)

    @pl.when(f == pl.num_programs(2) - 1)
    def _finalize():
        # attention output projection: sum_h ctx_h @ wo_h (no lane concatenate)
        attn = jnp.dot(ctx_ref[0, 0], wo_ref[0],
                       preferred_element_type=jnp.float32)
        for h in range(1, heads):
            attn = attn + jnp.dot(ctx_ref[0, h], wo_ref[h],
                                  preferred_element_type=jnp.float32)
        attn = attn + bo_ref[...]

        x_res = x_ref[0]                                         # f32
        out = acc_ref[...] + b2_ref[...] + attn + x_res * scale_residual
        mu = jnp.mean(out, axis=-1, keepdims=True)
        var = jnp.mean(jnp.square(out - mu), axis=-1, keepdims=True)
        y = (out - mu) * jax.lax.rsqrt(var + eps)
        o_ref[0] = y * gamma_ref[...] + beta_ref[...]


def _logits_kernel(x_ref, w_ref, b_ref, o_ref):
    """Tied-weight output projection against a (dim, vocab_tile) weight slab."""
    x = x_ref[0].astype(MATMUL_DTYPE)
    o_ref[0] = jnp.dot(x, w_ref[...],
                       preferred_element_type=jnp.float32) + b_ref[...]


# ----------------------------------------------------------------------------
# pallas_call wrappers
# ----------------------------------------------------------------------------
def qkv_rope(x, cos, sin, rot, lp, *, heads, dim_head, scale, tq):
    B, n, dim = x.shape
    grid = (B, n // tq, heads)                 # heads innermost -> x tile reused
    kernel = functools.partial(_qkv_rope_kernel, scale=scale)
    out_sds = jax.ShapeDtypeStruct((B, heads, n, dim_head), MATMUL_DTYPE)
    w_spec = pl.BlockSpec((1, dim, dim_head), lambda b, q, h: (h, 0, 0))
    b_spec = pl.BlockSpec((1, 1, dim_head), lambda b, q, h: (h, 0, 0))
    out_spec = pl.BlockSpec((1, 1, tq, dim_head), lambda b, q, h: (b, h, q, 0))
    return pl.pallas_call(
        kernel,
        out_shape=(out_sds, out_sds, out_sds),
        grid=grid,
        in_specs=[
            pl.BlockSpec((1, tq, dim), lambda b, q, h: (b, q, 0)),
            pl.BlockSpec((tq, dim_head), lambda b, q, h: (q, 0)),
            pl.BlockSpec((tq, dim_head), lambda b, q, h: (q, 0)),
            pl.BlockSpec((dim_head, dim_head), lambda b, q, h: (0, 0)),
            w_spec, b_spec, w_spec, b_spec, w_spec, b_spec,
        ],
        out_specs=(out_spec, out_spec, out_spec),
        compiler_params=_compiler_params(("parallel", "parallel", "parallel")),
    )(x, cos, sin, rot, lp['wq3'], lp['bq3'], lp['wk3'], lp['bk3'],
      lp['wv3'], lp['bv3'])


def flash_attention(q, k, v, *, tq, tk):
    B, H, n, d = q.shape
    grid = (B, H, n // tq, n // tk)
    kernel = functools.partial(_flash_attn_kernel, tq=tq, tk=tk)
    return pl.pallas_call(
        kernel,
        out_shape=jax.ShapeDtypeStruct((B, H, n, d), MATMUL_DTYPE),
        grid=grid,
        in_specs=[
            pl.BlockSpec((1, 1, tq, d), lambda b, h, qi, ki: (b, h, qi, 0)),
            pl.BlockSpec((1, 1, tk, d), lambda b, h, qi, ki: (b, h, ki, 0)),
            pl.BlockSpec((1, 1, tk, d), lambda b, h, qi, ki: (b, h, ki, 0)),
        ],
        out_specs=pl.BlockSpec((1, 1, tq, d),
                               lambda b, h, qi, ki: (b, h, qi, 0)),
        scratch_shapes=[pltpu.VMEM((tq, 1), jnp.float32),
                        pltpu.VMEM((tq, 1), jnp.float32),
                        pltpu.VMEM((tq, d), jnp.float32)],
        compiler_params=_compiler_params(
            ("parallel", "parallel", "parallel", "arbitrary")),
    )(q, k, v)


def ffn_attnout_norm(x, ctx, lp, *, heads, scale_residual, tq, tf):
    B, n, dim = x.shape
    _, H, _, d = ctx.shape
    ff_inner = lp['w1a'].shape[1]
    grid = (B, n // tq, ff_inner // tf)
    kernel = functools.partial(_ffn_combine_kernel, heads=heads,
                               scale_residual=scale_residual, eps=1e-5)
    return pl.pallas_call(
        kernel,
        out_shape=jax.ShapeDtypeStruct((B, n, dim), jnp.float32),
        grid=grid,
        in_specs=[
            pl.BlockSpec((1, tq, dim), lambda b, q, f: (b, q, 0)),
            pl.BlockSpec((1, H, tq, d), lambda b, q, f: (b, 0, q, 0)),
            pl.BlockSpec((H, d, dim), lambda b, q, f: (0, 0, 0)),
            pl.BlockSpec((1, dim), lambda b, q, f: (0, 0)),
            pl.BlockSpec((dim, tf), lambda b, q, f: (0, f)),
            pl.BlockSpec((1, tf), lambda b, q, f: (0, f)),
            pl.BlockSpec((dim, tf), lambda b, q, f: (0, f)),
            pl.BlockSpec((1, tf), lambda b, q, f: (0, f)),
            pl.BlockSpec((tf, dim), lambda b, q, f: (f, 0)),
            pl.BlockSpec((1, dim), lambda b, q, f: (0, 0)),
            pl.BlockSpec((1, dim), lambda b, q, f: (0, 0)),
            pl.BlockSpec((1, dim), lambda b, q, f: (0, 0)),
        ],
        out_specs=pl.BlockSpec((1, tq, dim), lambda b, q, f: (b, q, 0)),
        scratch_shapes=[pltpu.VMEM((tq, dim), jnp.float32)],
        compiler_params=_compiler_params(("parallel", "parallel", "arbitrary")),
    )(x, ctx, lp['wo3'], lp['bo'], lp['w1a'], lp['b1a'], lp['w1g'], lp['b1g'],
      lp['w2'], lp['b2'], lp['gamma'], lp['beta'])


def glm_logits(x, w_t, bias, *, tq, tv):
    B, n, dim = x.shape
    V = w_t.shape[1]
    grid = (B, n // tq, V // tv)
    return pl.pallas_call(
        _logits_kernel,
        out_shape=jax.ShapeDtypeStruct((B, n, V), jnp.float32),
        grid=grid,
        in_specs=[
            pl.BlockSpec((1, tq, dim), lambda b, q, v: (b, q, 0)),
            pl.BlockSpec((dim, tv), lambda b, q, v: (0, v)),
            pl.BlockSpec((1, tv), lambda b, q, v: (0, v)),
        ],
        out_specs=pl.BlockSpec((1, tq, tv), lambda b, q, v: (b, q, v)),
        compiler_params=_compiler_params(("parallel", "parallel", "parallel")),
    )(x, w_t, bias)


# ----------------------------------------------------------------------------
# forward pass
# ----------------------------------------------------------------------------
@functools.partial(jax.jit, static_argnames=("alpha", "heads", "dim_head",
                                             "scale_residual"))
def glm_forward(tokens, prepared, *, alpha, heads, dim_head, scale_residual):
    B, n = tokens.shape

    # Embedding lookup + gradient-shrink trick (forward-identity).
    e = prepared['emb'][tokens]
    x = (e * alpha + jax.lax.stop_gradient(e) * (1.0 - alpha)).astype(jnp.float32)

    # Rotary tables (tiny; plain JAX glue).
    inv_freq = 1.0 / (10000.0 ** (jnp.arange(0, dim_head, 2,
                                             dtype=jnp.float32) / dim_head))
    freqs = jnp.arange(n, dtype=jnp.float32)[:, None] * inv_freq[None, :]
    pos = jnp.concatenate([freqs, freqs], axis=-1)       # (n, dim_head)
    cos, sin = jnp.cos(pos), jnp.sin(pos)
    rot = _rotate_half_matrix(dim_head)

    tq = _pick_tile(n, _TQ_PREF, 8)
    tk = _pick_tile(n, _TK_PREF, 8)
    scale = dim_head ** -0.5

    # TODO(synk): cross-layer weight prefetch (P10 futures / weight-stationary
    # depth grid) is not implemented; each layer is an independent pallas_call.
    for lp in prepared['layers']:
        q, k, v = qkv_rope(x, cos, sin, rot, lp, heads=heads,
                           dim_head=dim_head, scale=scale, tq=tq)
        ctx = flash_attention(q, k, v, tq=tq, tk=tk)
        tf = _pick_tile(lp['w1a'].shape[1], _TF_PREF, 128)
        x = ffn_attnout_norm(x, ctx, lp, heads=heads,
                             scale_residual=scale_residual, tq=tq, tf=tf)

    tv = _pick_tile(prepared['w_logits'].shape[1], _TV_PREF, 128)
    return glm_logits(x, prepared['w_logits'], prepared['b_logits'],
                      tq=tq, tv=tv)


# ----------------------------------------------------------------------------
# parameter init (PyTorch-layout, f32) and one-time repack into kernel layouts
# ----------------------------------------------------------------------------
def init_glm_params(key, *, dim, num_tokens, depth, dim_head, heads, ff_mult):
    inner = dim_head * heads
    ff_inner = int(dim * ff_mult)
    beta_gain = (2 * depth) ** (-0.25)          # deepnorm_init beta

    def xavier(k, fan_in, fan_out, gain):
        std = gain * math.sqrt(2.0 / (fan_in + fan_out))
        return jax.random.normal(k, (fan_in, fan_out), jnp.float32) * std

    key, ek, bk = jax.random.split(key, 3)
    emb = jax.random.normal(ek, (num_tokens, dim), jnp.float32) * 0.02
    bound = 1.0 / math.sqrt(dim)
    logits_bias = jax.random.uniform(bk, (1, num_tokens), jnp.float32,
                                     -bound, bound)

    layers = []
    for _ in range(depth):
        key, *ks = jax.random.split(key, 7)
        layers.append(dict(
            wq=xavier(ks[0], dim, inner, 1.0), bq=jnp.zeros((1, inner), jnp.float32),
            wk=xavier(ks[1], dim, inner, 1.0), bk=jnp.zeros((1, inner), jnp.float32),
            wv=xavier(ks[2], dim, inner, 1.0), bv=jnp.zeros((1, inner), jnp.float32),
            wo=xavier(ks[3], inner, dim, beta_gain), bo=jnp.zeros((1, dim), jnp.float32),
            wf1=xavier(ks[4], dim, 2 * ff_inner, beta_gain),
            bf1=jnp.zeros((1, 2 * ff_inner), jnp.float32),
            wf2=xavier(ks[5], ff_inner, dim, beta_gain),
            bf2=jnp.zeros((1, dim), jnp.float32),
            gamma=jnp.ones((1, dim), jnp.float32),
            beta=jnp.zeros((1, dim), jnp.float32),
        ))
    return dict(emb=emb, logits_bias=logits_bias, layers=layers)


def prepare_params(params, *, heads, dim_head, matmul_dtype=MATMUL_DTYPE):
    """One-time repack: per-head QKV weights (H, dim, d), per-head attn-out
    (H, d, dim), GEGLU first linear split into value/gate halves, tied
    embedding pre-transposed to (dim, V); matmul weights cast to bf16."""
    dim = params['emb'].shape[1]
    layers = []
    for p in params['layers']:
        def split_heads_w(w):       # (dim, H*d) -> (H, dim, d)
            return jnp.transpose(w.reshape(dim, heads, dim_head),
                                 (1, 0, 2)).astype(matmul_dtype)

        def split_heads_b(b):       # (1, H*d) -> (H, 1, d)
            return b.reshape(heads, 1, dim_head).astype(jnp.float32)

        ff_inner = p['wf1'].shape[1] // 2
        layers.append(dict(
            wq3=split_heads_w(p['wq']), bq3=split_heads_b(p['bq']),
            wk3=split_heads_w(p['wk']), bk3=split_heads_b(p['bk']),
            wv3=split_heads_w(p['wv']), bv3=split_heads_b(p['bv']),
            wo3=p['wo'].reshape(heads, dim_head, dim).astype(matmul_dtype),
            bo=p['bo'].astype(jnp.float32),
            w1a=p['wf1'][:, :ff_inner].astype(matmul_dtype),
            b1a=p['bf1'][:, :ff_inner].astype(jnp.float32),
            w1g=p['wf1'][:, ff_inner:].astype(matmul_dtype),
            b1g=p['bf1'][:, ff_inner:].astype(jnp.float32),
            w2=p['wf2'].astype(matmul_dtype),
            b2=p['bf2'].astype(jnp.float32),
            gamma=p['gamma'].astype(jnp.float32),
            beta=p['beta'].astype(jnp.float32),
        ))
    return dict(
        emb=params['emb'].astype(jnp.float32),            # lookup table (f32)
        w_logits=params['emb'].T.astype(matmul_dtype),    # tied, (dim, V)
        b_logits=params['logits_bias'].astype(jnp.float32),
        layers=layers,
    )


# ----------------------------------------------------------------------------
if __name__ == "__main__":
    dim, num_tokens, depth = 128, 1024, 2
    dim_head, heads, ff_mult = 128, 2, 4
    batch, seq = 2, 256
    alpha = 0.1
    scale_residual = (3 * depth) ** 0.25        # DeepNorm default

    key = jax.random.PRNGKey(0)
    pkey, tkey = jax.random.split(key)
    params = init_glm_params(pkey, dim=dim, num_tokens=num_tokens, depth=depth,
                             dim_head=dim_head, heads=heads, ff_mult=ff_mult)
    prepared = prepare_params(params, heads=heads, dim_head=dim_head)
    tokens = jax.random.randint(tkey, (batch, seq), 0, num_tokens,
                                dtype=jnp.int32)

    logits = glm_forward(tokens, prepared, alpha=alpha, heads=heads,
                         dim_head=dim_head, scale_residual=scale_residual)
    jax.block_until_ready(logits)
    assert logits.shape == (batch, seq, num_tokens)
    assert bool(jnp.all(jnp.isfinite(logits)))
    print("KERNEL_OK")
</pallas_src>

<mosaic_0001>
module attributes {stable_mosaic.version = 11 : i64} {
  func.func @_qkv_rope_kernel(%arg0: i32, %arg1: i32, %arg2: i32, %arg3: memref<1x128x128xf32, #tpu.memory_space<vmem>>, %arg4: memref<128x128xf32, #tpu.memory_space<vmem>>, %arg5: memref<128x128xf32, #tpu.memory_space<vmem>>, %arg6: memref<128x128xf32, #tpu.memory_space<vmem>>, %arg7: memref<1x128x128xbf16, #tpu.memory_space<vmem>>, %arg8: memref<1x1x128xf32, #tpu.memory_space<vmem>>, %arg9: memref<1x128x128xbf16, #tpu.memory_space<vmem>>, %arg10: memref<1x1x128xf32, #tpu.memory_space<vmem>>, %arg11: memref<1x128x128xbf16, #tpu.memory_space<vmem>>, %arg12: memref<1x1x128xf32, #tpu.memory_space<vmem>>, %arg13: memref<1x1x128x128xbf16, #tpu.memory_space<vmem>>, %arg14: memref<1x1x128x128xbf16, #tpu.memory_space<vmem>>, %arg15: memref<1x1x128x128xbf16, #tpu.memory_space<vmem>>) attributes {dimension_semantics = [#tpu.dimension_semantics<parallel>, #tpu.dimension_semantics<parallel>, #tpu.dimension_semantics<parallel>], iteration_bounds = array<i64: 2, 2, 2>, scalar_prefetch = 0 : i64, scratch_operands = 0 : i64, tpu.core_type = #tpu.core_type<tc>, window_params = [{transform_indices = @transform_0, window_bounds = array<i64: 1, 128, 128>}, {transform_indices = @transform_1, window_bounds = array<i64: 128, 128>}, {transform_indices = @transform_2, window_bounds = array<i64: 128, 128>}, {pipeline_mode = #tpu.pipeline_mode<synchronous>, transform_indices = @transform_3, window_bounds = array<i64: 128, 128>}, {transform_indices = @transform_4, window_bounds = array<i64: 1, 128, 128>}, {transform_indices = @transform_5, window_bounds = array<i64: 1, 1, 128>}, {transform_indices = @transform_6, window_bounds = array<i64: 1, 128, 128>}, {transform_indices = @transform_7, window_bounds = array<i64: 1, 1, 128>}, {transform_indices = @transform_8, window_bounds = array<i64: 1, 128, 128>}, {transform_indices = @transform_9, window_bounds = array<i64: 1, 1, 128>}, {transform_indices = @transform_10, window_bounds = array<i64: 1, 1, 128, 128>}, {transform_indices = @transform_11, window_bounds = array<i64: 1, 1, 128, 128>}, {transform_indices = @transform_12, window_bounds = array<i64: 1, 1, 128, 128>}]} {
    %c0 = arith.constant 0 : index
    %c0_0 = arith.constant 0 : index
    %c0_1 = arith.constant 0 : index
    %0 = vector.load %arg3[%c0, %c0_0, %c0_1] : memref<1x128x128xf32, #tpu.memory_space<vmem>>, vector<1x128x128xf32>
    %1 = vector.shape_cast %0 : vector<1x128x128xf32> to vector<128x128xf32>
    %2 = arith.truncf %1 : vector<128x128xf32> to vector<128x128xbf16>
    %c0_2 = arith.constant 0 : index
    %c0_3 = arith.constant 0 : index
    %3 = vector.load %arg4[%c0_2, %c0_3] : memref<128x128xf32, #tpu.memory_space<vmem>>, vector<128x128xf32>
    %c0_4 = arith.constant 0 : index
    %c0_5 = arith.constant 0 : index
    %4 = vector.load %arg5[%c0_4, %c0_5] : memref<128x128xf32, #tpu.memory_space<vmem>>, vector<128x128xf32>
    %c0_6 = arith.constant 0 : index
    %c0_7 = arith.constant 0 : index
    %5 = vector.load %arg6[%c0_6, %c0_7] : memref<128x128xf32, #tpu.memory_space<vmem>>, vector<128x128xf32>
    %c0_8 = arith.constant 0 : index
    %c0_9 = arith.constant 0 : index
    %c0_10 = arith.constant 0 : index
    %6 = vector.load %arg7[%c0_8, %c0_9, %c0_10] : memref<1x128x128xbf16, #tpu.memory_space<vmem>>, vector<1x128x128xbf16>
    %7 = vector.shape_cast %6 : vector<1x128x128xbf16> to vector<128x128xbf16>
    %cst = arith.constant dense<0.000000e+00> : vector<128x128xf32>
    %8 = tpu.matmul %2, %7, %cst {dimension_numbers = #tpu.dot_dimension_numbers<[1], [0], [0], [1], [0, 0, 1, 1], [], []>} : vector<128x128xbf16>, vector<128x128xbf16>, vector<128x128xf32> -> vector<128x128xf32>
    %c0_11 = arith.constant 0 : index
    %c0_12 = arith.constant 0 : index
    %c0_13 = arith.constant 0 : index
    %9 = vector.load %arg8[%c0_11, %c0_12, %c0_13] : memref<1x1x128xf32, #tpu.memory_space<vmem>>, vector<1x1x128xf32>
    %10 = vector.shape_cast %9 : vector<1x1x128xf32> to vector<1x128xf32>
    %11 = vector.broadcast %10 : vector<1x128xf32> to vector<128x128xf32>
    %12 = arith.addf %8, %11 : vector<128x128xf32>
    %cst_14 = arith.constant 0.0883883461 : f32
    %13 = vector.broadcast %cst_14 : f32 to vector<128x128xf32>
    %14 = arith.mulf %12, %13 : vector<128x128xf32>
    %c0_15 = arith.constant 0 : index
    %c0_16 = arith.constant 0 : index
    %c0_17 = arith.constant 0 : index
    %15 = vector.load %arg9[%c0_15, %c0_16, %c0_17] : memref<1x128x128xbf16, #tpu.memory_space<vmem>>, vector<1x128x128xbf16>
    %16 = vector.shape_cast %15 : vector<1x128x128xbf16> to vector<128x128xbf16>
    %cst_18 = arith.constant dense<0.000000e+00> : vector<128x128xf32>
    %17 = tpu.matmul %2, %16, %cst_18 {dimension_numbers = #tpu.dot_dimension_numbers<[1], [0], [0], [1], [0, 0, 1, 1], [], []>} : vector<128x128xbf16>, vector<128x128xbf16>, vector<128x128xf32> -> vector<128x128xf32>
    %c0_19 = arith.constant 0 : index
    %c0_20 = arith.constant 0 : index
    %c0_21 = arith.constant 0 : index
    %18 = vector.load %arg10[%c0_19, %c0_20, %c0_21] : memref<1x1x128xf32, #tpu.memory_space<vmem>>, vector<1x1x128xf32>
    %19 = vector.shape_cast %18 : vector<1x1x128xf32> to vector<1x128xf32>
    %20 = vector.broadcast %19 : vector<1x128xf32> to vector<128x128xf32>
    %21 = arith.addf %17, %20 : vector<128x128xf32>
    %c0_22 = arith.constant 0 : index
    %c0_23 = arith.constant 0 : index
    %c0_24 = arith.constant 0 : index
    %22 = vector.load %arg11[%c0_22, %c0_23, %c0_24] : memref<1x128x128xbf16, #tpu.memory_space<vmem>>, vector<1x128x128xbf16>
    %23 = vector.shape_cast %22 : vector<1x128x128xbf16> to vector<128x128xbf16>
    %cst_25 = arith.constant dense<0.000000e+00> : vector<128x128xf32>
    %24 = tpu.matmul %2, %23, %cst_25 {dimension_numbers = #tpu.dot_dimension_numbers<[1], [0], [0], [1], [0, 0, 1, 1], [], []>} : vector<128x128xbf16>, vector<128x128xbf16>, vector<128x128xf32> -> vector<128x128xf32>
    %c0_26 = arith.constant 0 : index
    %c0_27 = arith.constant 0 : index
    %c0_28 = arith.constant 0 : index
    %25 = vector.load %arg12[%c0_26, %c0_27, %c0_28] : memref<1x1x128xf32, #tpu.memory_space<vmem>>, vector<1x1x128xf32>
    %26 = vector.shape_cast %25 : vector<1x1x128xf32> to vector<1x128xf32>
    %27 = vector.broadcast %26 : vector<1x128xf32> to vector<128x128xf32>
    %28 = arith.addf %24, %27 : vector<128x128xf32>
    %29 = arith.mulf %14, %3 : vector<128x128xf32>
    %cst_29 = arith.constant dense<0.000000e+00> : vector<128x128xf32>
    %30 = tpu.matmul %14, %5, %cst_29 {dimension_numbers = #tpu.dot_dimension_numbers<[1], [0], [0], [1], [0, 0, 1, 1], [], []>} : vector<128x128xf32>, vector<128x128xf32>, vector<128x128xf32> -> vector<128x128xf32>
    %31 = arith.mulf %30, %4 : vector<128x128xf32>
    %32 = arith.addf %29, %31 : vector<128x128xf32>
    %33 = arith.truncf %32 : vector<128x128xf32> to vector<128x128xbf16>
    %c0_30 = arith.constant 0 : index
    %c0_31 = arith.constant 0 : index
    %c0_32 = arith.constant 0 : index
    %c0_33 = arith.constant 0 : index
    %34 = vector.load %arg13[%c0_30, %c0_31, %c0_32, %c0_33] : memref<1x1x128x128xbf16, #tpu.memory_space<vmem>>, vector<1x1x128x128xbf16>
    %35 = vector.shape_cast %34 : vector<1x1x128x128xbf16> to vector<128x128xbf16>
    %36 = vector.shape_cast %33 : vector<128x128xbf16> to vector<1x1x128x128xbf16>
    tpu.vector_store %arg13[%c0_30, %c0_31, %c0_32, %c0_33], %36 {strides = array<i32>} : memref<1x1x128x128xbf16, #tpu.memory_space<vmem>>, vector<1x1x128x128xbf16>,
    %37 = arith.mulf %21, %3 : vector<128x128xf32>
    %cst_34 = arith.constant dense<0.000000e+00> : vector<128x128xf32>
    %38 = tpu.matmul %21, %5, %cst_34 {dimension_numbers = #tpu.dot_dimension_numbers<[1], [0], [0], [1], [0, 0, 1, 1], [], []>} : vector<128x128xf32>, vector<128x128xf32>, vector<128x128xf32> -> vector<128x128xf32>
    %39 = arith.mulf %38, %4 : vector<128x128xf32>
    %40 = arith.addf %37, %39 : vector<128x128xf32>
    %41 = arith.truncf %40 : vector<128x128xf32> to vector<128x128xbf16>
    %c0_35 = arith.constant 0 : index
    %c0_36 = arith.constant 0 : index
    %c0_37 = arith.constant 0 : index
    %c0_38 = arith.constant 0 : index
    %42 = vector.load %arg14[%c0_35, %c0_36, %c0_37, %c0_38] : memref<1x1x128x128xbf16, #tpu.memory_space<vmem>>, vector<1x1x128x128xbf16>
    %43 = vector.shape_cast %42 : vector<1x1x128x128xbf16> to vector<128x128xbf16>
    %44 = vector.shape_cast %41 : vector<128x128xbf16> to vector<1x1x128x128xbf16>
    tpu.vector_store %arg14[%c0_35, %c0_36, %c0_37, %c0_38], %44 {strides = array<i32>} : memref<1x1x128x128xbf16, #tpu.memory_space<vmem>>, vector<1x1x128x128xbf16>,
    %45 = arith.truncf %28 : vector<128x128xf32> to vector<128x128xbf16>
    %c0_39 = arith.constant 0 : index
    %c0_40 = arith.constant 0 : index
    %c0_41 = arith.constant 0 : index
    %c0_42 = arith.constant 0 : index
    %46 = vector.load %arg15[%c0_39, %c0_40, %c0_41, %c0_42] : memref<1x1x128x128xbf16, #tpu.memory_space<vmem>>, vector<1x1x128x128xbf16>
    %47 = vector.shape_cast %46 : vector<1x1x128x128xbf16> to vector<128x128xbf16>
    %48 = vector.shape_cast %45 : vector<128x128xbf16> to vector<1x1x128x128xbf16>
    tpu.vector_store %arg15[%c0_39, %c0_40, %c0_41, %c0_42], %48 {strides = array<i32>} : memref<1x1x128x128xbf16, #tpu.memory_space<vmem>>, vector<1x1x128x128xbf16>,
    return
  }
  func.func @transform_0(%arg0: i32, %arg1: i32, %arg2: i32) -> (i32, i32, i32) {
    %c0_i32 = arith.constant 0 : i32
    %c0_i32_0 = arith.constant 0 : i32
    return %arg0, %arg1, %c0_i32 : i32, i32, i32
  }
  func.func @transform_1(%arg0: i32, %arg1: i32, %arg2: i32) -> (i32, i32) {
    %c0_i32 = arith.constant 0 : i32
    %c0_i32_0 = arith.constant 0 : i32
    return %arg1, %c0_i32 : i32, i32
  }
  func.func @transform_2(%arg0: i32, %arg1: i32, %arg2: i32) -> (i32, i32) {
    %c0_i32 = arith.constant 0 : i32
    %c0_i32_0 = arith.constant 0 : i32
    return %arg1, %c0_i32 : i32, i32
  }
  func.func @transform_3(%arg0: i32, %arg1: i32, %arg2: i32) -> (i32, i32) {
    %c0_i32 = arith.constant 0 : i32
    %c0_i32_0 = arith.constant 0 : i32
    %c0_i32_1 = arith.constant 0 : i32
    return %c0_i32, %c0_i32_0 : i32, i32
  }
  func.func @transform_4(%arg0: i32, %arg1: i32, %arg2: i32) -> (i32, i32, i32) {
    %c0_i32 = arith.constant 0 : i32
    %c0_i32_0 = arith.constant 0 : i32
    %c0_i32_1 = arith.constant 0 : i32
    return %arg2, %c0_i32, %c0_i32_0 : i32, i32, i32
  }
  func.func @transform_5(%arg0: i32, %arg1: i32, %arg2: i32) -> (i32, i32, i32) {
    %c0_i32 = arith.constant 0 : i32
    %c0_i32_0 = arith.constant 0 : i32
    %c0_i32_1 = arith.constant 0 : i32
    return %arg2, %c0_i32, %c0_i32_0 : i32, i32, i32
  }
  func.func @transform_6(%arg0: i32, %arg1: i32, %arg2: i32) -> (i32, i32, i32) {
    %c0_i32 = arith.constant 0 : i32
    %c0_i32_0 = arith.constant 0 : i32
    %c0_i32_1 = arith.constant 0 : i32
    return %arg2, %c0_i32, %c0_i32_0 : i32, i32, i32
  }
  func.func @transform_7(%arg0: i32, %arg1: i32, %arg2: i32) -> (i32, i32, i32) {
    %c0_i32 = arith.constant 0 : i32
    %c0_i32_0 = arith.constant 0 : i32
    %c0_i32_1 = arith.constant 0 : i32
    return %arg2, %c0_i32, %c0_i32_0 : i32, i32, i32
  }
  func.func @transform_8(%arg0: i32, %arg1: i32, %arg2: i32) -> (i32, i32, i32) {
    %c0_i32 = arith.constant 0 : i32
    %c0_i32_0 = arith.constant 0 : i32
    %c0_i32_1 = arith.constant 0 : i32
    return %arg2, %c0_i32, %c0_i32_0 : i32, i32, i32
  }
  func.func @transform_9(%arg0: i32, %arg1: i32, %arg2: i32) -> (i32, i32, i32) {
    %c0_i32 = arith.constant 0 : i32
    %c0_i32_0 = arith.constant 0 : i32
    %c0_i32_1 = arith.constant 0 : i32
    return %arg2, %c0_i32, %c0_i32_0 : i32, i32, i32
  }
  func.func @transform_10(%arg0: i32, %arg1: i32, %arg2: i32) -> (i32, i32, i32, i32) {
    %c0_i32 = arith.constant 0 : i32
    %c0_i32_0 = arith.constant 0 : i32
    return %arg0, %arg2, %arg1, %c0_i32 : i32, i32, i32, i32
  }
  func.func @transform_11(%arg0: i32, %arg1: i32, %arg2: i32) -> (i32, i32, i32, i32) {
    %c0_i32 = arith.constant 0 : i32
    %c0_i32_0 = arith.constant 0 : i32
    return %arg0, %arg2, %arg1, %c0_i32 : i32, i32, i32, i32
  }
  func.func @transform_12(%arg0: i32, %arg1: i32, %arg2: i32) -> (i32, i32, i32, i32) {
    %c0_i32 = arith.constant 0 : i32
    %c0_i32_0 = arith.constant 0 : i32
    return %arg0, %arg2, %arg1, %c0_i32 : i32, i32, i32, i32
  }
}

module attributes {stable_mosaic.version = 11 : i64} {
  func.func @_flash_attn_kernel(%arg0: i32, %arg1: i32, %arg2: i32, %arg3: i32, %arg4: memref<1x1x128x128xbf16, #tpu.memory_space<vmem>>, %arg5: memref<1x1x128x128xbf16, #tpu.memory_space<vmem>>, %arg6: memref<1x1x128x128xbf16, #tpu.memory_space<vmem>>, %arg7: memref<1x1x128x128xbf16, #tpu.memory_space<vmem>>, %arg8: memref<128x1xf32, #tpu.memory_space<vmem>>, %arg9: memref<128x1xf32, #tpu.memory_space<vmem>>, %arg10: memref<128x128xf32, #tpu.memory_space<vmem>>) attributes {dimension_semantics = [#tpu.dimension_semantics<parallel>, #tpu.dimension_semantics<parallel>, #tpu.dimension_semantics<parallel>, #tpu.dimension_semantics<arbitrary>], iteration_bounds = array<i64: 2, 2, 2, 2>, scalar_prefetch = 0 : i64, scratch_operands = 3 : i64, tpu.core_type = #tpu.core_type<tc>, window_params = [{transform_indices = @transform_0, window_bounds = array<i64: 1, 1, 128, 128>}, {transform_indices = @transform_1, window_bounds = array<i64: 1, 1, 128, 128>}, {transform_indices = @transform_2, window_bounds = array<i64: 1, 1, 128, 128>}, {transform_indices = @transform_3, window_bounds = array<i64: 1, 1, 128, 128>}]} {
    %c0_i32 = arith.constant 0 : i32
    %0 = arith.cmpi eq, %arg3, %c0_i32 : i32
    %1 = arith.extui %0 : i1 to i32
    %c0_i32_0 = arith.constant 0 : i32
    %2 = arith.cmpi ne, %1, %c0_i32_0 : i32
    scf.if %2 {
      %cst = arith.constant 0xFF800000 : f32
      %12 = vector.broadcast %cst : f32 to vector<128x1xf32>
      %c0 = arith.constant 0 : index
      %c0_4 = arith.constant 0 : index
      %13 = vector.load %arg8[%c0, %c0_4] : memref<128x1xf32, #tpu.memory_space<vmem>>, vector<128x1xf32>
      tpu.vector_store %arg8[%c0, %c0_4], %12 {strides = array<i32>} : memref<128x1xf32, #tpu.memory_space<vmem>>, vector<128x1xf32>,
      %cst_5 = arith.constant 0.000000e+00 : f32
      %14 = vector.broadcast %cst_5 : f32 to vector<128x1xf32>
      %c0_6 = arith.constant 0 : index
      %c0_7 = arith.constant 0 : index
      %15 = vector.load %arg9[%c0_6, %c0_7] : memref<128x1xf32, #tpu.memory_space<vmem>>, vector<128x1xf32>
      tpu.vector_store %arg9[%c0_6, %c0_7], %14 {strides = array<i32>} : memref<128x1xf32, #tpu.memory_space<vmem>>, vector<128x1xf32>,
      %cst_8 = arith.constant 0.000000e+00 : f32
      %16 = vector.broadcast %cst_8 : f32 to vector<128x128xf32>
      %c0_9 = arith.constant 0 : index
      %c0_10 = arith.constant 0 : index
      %17 = vector.load %arg10[%c0_9, %c0_10] : memref<128x128xf32, #tpu.memory_space<vmem>>, vector<128x128xf32>
      tpu.vector_store %arg10[%c0_9, %c0_10], %16 {strides = array<i32>} : memref<128x128xf32, #tpu.memory_space<vmem>>, vector<128x128xf32>,
    } else {
    }
    %c128_i32 = arith.constant 128 : i32
    %3 = arith.muli %arg3, %c128_i32 : i32
    %c128_i32_1 = arith.constant 128 : i32
    %4 = arith.muli %arg2, %c128_i32_1 : i32
    %c127_i32 = arith.constant 127 : i32
    %5 = arith.addi %4, %c127_i32 : i32
    %6 = arith.cmpi sle, %3, %5 : i32
    %7 = arith.extui %6 : i1 to i32
    %c0_i32_2 = arith.constant 0 : i32
    %8 = arith.cmpi ne, %7, %c0_i32_2 : i32
    scf.if %8 {
      %c0 = arith.constant 0 : index
      %c0_4 = arith.constant 0 : index
      %c0_5 = arith.constant 0 : index
      %c0_6 = arith.constant 0 : index
      %12 = vector.load %arg4[%c0, %c0_4, %c0_5, %c0_6] : memref<1x1x128x128xbf16, #tpu.memory_space<vmem>>, vector<1x1x128x128xbf16>
      %13 = vector.shape_cast %12 : vector<1x1x128x128xbf16> to vector<128x128xbf16>
      %c0_7 = arith.constant 0 : index
      %c0_8 = arith.constant 0 : index
      %c0_9 = arith.constant 0 : index
      %c0_10 = arith.constant 0 : index
      %14 = vector.load %arg5[%c0_7, %c0_8, %c0_9, %c0_10] : memref<1x1x128x128xbf16, #tpu.memory_space<vmem>>, vector<1x1x128x128xbf16>
      %15 = vector.shape_cast %14 : vector<1x1x128x128xbf16> to vector<128x128xbf16>
      %c0_11 = arith.constant 0 : index
      %c0_12 = arith.constant 0 : index
      %c0_13 = arith.constant 0 : index
      %c0_14 = arith.constant 0 : index
      %16 = vector.load %arg6[%c0_11, %c0_12, %c0_13, %c0_14] : memref<1x1x128x128xbf16, #tpu.memory_space<vmem>>, vector<1x1x128x128xbf16>
      %17 = vector.shape_cast %16 : vector<1x1x128x128xbf16> to vector<128x128xbf16>
      %cst = arith.constant dense<0.000000e+00> : vector<128x128xf32>
      %18 = tpu.matmul %13, %15, %cst {dimension_numbers = #tpu.dot_dimension_numbers<[1], [1], [0], [0], [0, 0, 1, 0], [], []>} : vector<128x128xbf16>, vector<128x128xbf16>, vector<128x128xf32> -> vector<128x128xf32>
      %c128_i32_15 = arith.constant 128 : i32
      %19 = arith.muli %arg2, %c128_i32_15 : i32
      %20 = tpu.iota {dimensions = array<i32: 0>} : vector<128x128xi32>
      %21 = vector.broadcast %19 : i32 to vector<128x128xi32>
      %22 = arith.addi %21, %20 : vector<128x128xi32>
      %c128_i32_16 = arith.constant 128 : i32
      %23 = arith.muli %arg3, %c128_i32_16 : i32
      %24 = tpu.iota {dimensions = array<i32: 1>} : vector<128x128xi32>
      %25 = vector.broadcast %23 : i32 to vector<128x128xi32>
      %26 = arith.addi %25, %24 : vector<128x128xi32>
      %27 = arith.cmpi sgt, %26, %22 : vector<128x128xi32>
      %cst_17 = arith.constant -3.40282347E+38 : f32
      %28 = vector.broadcast %cst_17 : f32 to vector<128x128xf32>
      %29 = arith.select %27, %28, %18 : vector<128x128xi1>, vector<128x128xf32>
      %c0_18 = arith.constant 0 : index
      %c0_19 = arith.constant 0 : index
      %30 = vector.load %arg8[%c0_18, %c0_19] : memref<128x1xf32, #tpu.memory_space<vmem>>, vector<128x1xf32>
      %cst_20 = arith.constant dense<0xFF800000> : vector<128xf32>
      %31 = vector.multi_reduction <maximumf>, %29, %cst_20 [1] : vector<128x128xf32> to vector<128xf32>
      %32 = vector.shape_cast %31 : vector<128xf32> to vector<128x1xf32>
      %33 = arith.maximumf %30, %32 : vector<128x1xf32>
      %34 = arith.subf %30, %33 : vector<128x1xf32>
      %35 = math.exp %34 : vector<128x1xf32>
      %36 = vector.broadcast %33 : vector<128x1xf32> to vector<128x128xf32>
      %37 = arith.subf %29, %36 : vector<128x128xf32>
      %38 = math.exp %37 : vector<128x128xf32>
      %c0_21 = arith.constant 0 : index
      %c0_22 = arith.constant 0 : index
      %39 = vector.load %arg9[%c0_21, %c0_22] : memref<128x1xf32, #tpu.memory_space<vmem>>, vector<128x1xf32>
      %40 = arith.mulf %35, %39 : vector<128x1xf32>
      %cst_23 = arith.constant dense<0.000000e+00> : vector<128xf32>
      %41 = vector.multi_reduction <add>, %38, %cst_23 [1] : vector<128x128xf32> to vector<128xf32>
      %42 = vector.shape_cast %41 : vector<128xf32> to vector<128x1xf32>
      %43 = arith.addf %40, %42 : vector<128x1xf32>
      %c0_24 = arith.constant 0 : index
      %c0_25 = arith.constant 0 : index
      %44 = vector.load %arg9[%c0_24, %c0_25] : memref<128x1xf32, #tpu.memory_space<vmem>>, vector<128x1xf32>
      tpu.vector_store %arg9[%c0_24, %c0_25], %43 {strides = array<i32>} : memref<128x1xf32, #tpu.memory_space<vmem>>, vector<128x1xf32>,
      %c0_26 = arith.constant 0 : index
      %c0_27 = arith.constant 0 : index
      %45 = vector.load %arg10[%c0_26, %c0_27] : memref<128x128xf32, #tpu.memory_space<vmem>>, vector<128x128xf32>
      %46 = vector.broadcast %35 : vector<128x1xf32> to vector<128x128xf32>
      %47 = arith.mulf %46, %45 : vector<128x128xf32>
      %48 = arith.truncf %38 : vector<128x128xf32> to vector<128x128xbf16>
      %cst_28 = arith.constant dense<0.000000e+00> : vector<128x128xf32>
      %49 = tpu.matmul %48, %17, %cst_28 {dimension_numbers = #tpu.dot_dimension_numbers<[1], [0], [0], [1], [0, 0, 1, 1], [], []>} : vector<128x128xbf16>, vector<128x128xbf16>, vector<128x128xf32> -> vector<128x128xf32>
      %50 = arith.addf %47, %49 : vector<128x128xf32>
      %c0_29 = arith.constant 0 : index
      %c0_30 = arith.constant 0 : index
      %51 = vector.load %arg10[%c0_29, %c0_30] : memref<128x128xf32, #tpu.memory_space<vmem>>, vector<128x128xf32>
      tpu.vector_store %arg10[%c0_29, %c0_30], %50 {strides = array<i32>} : memref<128x128xf32, #tpu.memory_space<vmem>>, vector<128x128xf32>,
      %c0_31 = arith.constant 0 : index
      %c0_32 = arith.constant 0 : index
      %52 = vector.load %arg8[%c0_31, %c0_32] : memref<128x1xf32, #tpu.memory_space<vmem>>, vector<128x1xf32>
      tpu.vector_store %arg8[%c0_31, %c0_32], %33 {strides = array<i32>} : memref<128x1xf32, #tpu.memory_space<vmem>>, vector<128x1xf32>,
    } else {
    }
    %c1_i32 = arith.constant 1 : i32
    %9 = arith.cmpi eq, %arg3, %c1_i32 : i32
    %10 = arith.extui %9 : i1 to i32
    %c0_i32_3 = arith.constant 0 : i32
    %11 = arith.cmpi ne, %10, %c0_i32_3 : i32
    scf.if %11 {
      %c0 = arith.constant 0 : index
      %c0_4 = arith.constant 0 : index
      %12 = vector.load %arg9[%c0, %c0_4] : memref<128x1xf32, #tpu.memory_space<vmem>>, vector<128x1xf32>
      %13 = tpu.reciprocal %12 {approx = true} : vector<128x1xf32> -> vector<128x1xf32>
      %c0_5 = arith.constant 0 : index
      %c0_6 = arith.constant 0 : index
      %14 = vector.load %arg10[%c0_5, %c0_6] : memref<128x128xf32, #tpu.memory_space<vmem>>, vector<128x128xf32>
      %15 = vector.broadcast %13 : vector<128x1xf32> to vector<128x128xf32>
      %16 = arith.mulf %14, %15 : vector<128x128xf32>
      %17 = arith.truncf %16 : vector<128x128xf32> to vector<128x128xbf16>
      %c0_7 = arith.constant 0 : index
      %c0_8 = arith.constant 0 : index
      %c0_9 = arith.constant 0 : index
      %c0_10 = arith.constant 0 : index
      %18 = vector.load %arg7[%c0_7, %c0_8, %c0_9, %c0_10] : memref<1x1x128x128xbf16, #tpu.memory_space<vmem>>, vector<1x1x128x128xbf16>
      %19 = vector.shape_cast %18 : vector<1x1x128x128xbf16> to vector<128x128xbf16>
      %20 = vector.shape_cast %17 : vector<128x128xbf16> to vector<1x1x128x128xbf16>
      tpu.vector_store %arg7[%c0_7, %c0_8, %c0_9, %c0_10], %20 {strides = array<i32>} : memref<1x1x128x128xbf16, #tpu.memory_space<vmem>>, vector<1x1x128x128xbf16>,
    } else {
    }
    return
  }
  func.func @transform_0(%arg0: i32, %arg1: i32, %arg2: i32, %arg3: i32) -> (i32, i32, i32, i32) {
    %c0_i32 = arith.constant 0 : i32
    %c0_i32_0 = arith.constant 0 : i32
    return %arg0, %arg1, %arg2, %c0_i32 : i32, i32, i32, i32
  }
  func.func @transform_1(%arg0: i32, %arg1: i32, %arg2: i32, %arg3: i32) -> (i32, i32, i32, i32) {
    %c0_i32 = arith.constant 0 : i32
    %c0_i32_0 = arith.constant 0 : i32
    return %arg0, %arg1, %arg3, %c0_i32 : i32, i32, i32, i32
  }
  func.func @transform_2(%arg0: i32, %arg1: i32, %arg2: i32, %arg3: i32) -> (i32, i32, i32, i32) {
    %c0_i32 = arith.constant 0 : i32
    %c0_i32_0 = arith.constant 0 : i32
    return %arg0, %arg1, %arg3, %c0_i32 : i32, i32, i32, i32
  }
  func.func @transform_3(%arg0: i32, %arg1: i32, %arg2: i32, %arg3: i32) -> (i32, i32, i32, i32) {
    %c0_i32 = arith.constant 0 : i32
    %c0_i32_0 = arith.constant 0 : i32
    return %arg0, %arg1, %arg2, %c0_i32 : i32, i32, i32, i32
  }
}

module attributes {stable_mosaic.version = 11 : i64} {
  func.func @_ffn_combine_kernel(%arg0: i32, %arg1: i32, %arg2: i32, %arg3: memref<1x128x128xf32, #tpu.memory_space<vmem>>, %arg4: memref<1x2x128x128xbf16, #tpu.memory_space<vmem>>, %arg5: memref<2x128x128xbf16, #tpu.memory_space<vmem>>, %arg6: memref<1x128xf32, #tpu.memory_space<vmem>>, %arg7: memref<128x256xbf16, #tpu.memory_space<vmem>>, %arg8: memref<1x256xf32, #tpu.memory_space<vmem>>, %arg9: memref<128x256xbf16, #tpu.memory_space<vmem>>, %arg10: memref<1x256xf32, #tpu.memory_space<vmem>>, %arg11: memref<256x128xbf16, #tpu.memory_space<vmem>>, %arg12: memref<1x128xf32, #tpu.memory_space<vmem>>, %arg13: memref<1x128xf32, #tpu.memory_space<vmem>>, %arg14: memref<1x128xf32, #tpu.memory_space<vmem>>, %arg15: memref<1x128x128xf32, #tpu.memory_space<vmem>>, %arg16: memref<128x128xf32, #tpu.memory_space<vmem>>) attributes {dimension_semantics = [#tpu.dimension_semantics<parallel>, #tpu.dimension_semantics<parallel>, #tpu.dimension_semantics<arbitrary>], iteration_bounds = array<i64: 2, 2, 2>, scalar_prefetch = 0 : i64, scratch_operands = 1 : i64, tpu.core_type = #tpu.core_type<tc>, window_params = [{transform_indices = @transform_0, window_bounds = array<i64: 1, 128, 128>}, {transform_indices = @transform_1, window_bounds = array<i64: 1, 2, 128, 128>}, {pipeline_mode = #tpu.pipeline_mode<synchronous>, transform_indices = @transform_2, window_bounds = array<i64: 2, 128, 128>}, {pipeline_mode = #tpu.pipeline_mode<synchronous>, transform_indices = @transform_3, window_bounds = array<i64: 1, 128>}, {transform_indices = @transform_4, window_bounds = array<i64: 128, 256>}, {transform_indices = @transform_5, window_bounds = array<i64: 1, 256>}, {transform_indices = @transform_6, window_bounds = array<i64: 128, 256>}, {transform_indices = @transform_7, window_bounds = array<i64: 1, 256>}, {transform_indices = @transform_8, window_bounds = array<i64: 256, 128>}, {pipeline_mode = #tpu.pipeline_mode<synchronous>, transform_indices = @transform_9, window_bounds = array<i64: 1, 128>}, {pipeline_mode = #tpu.pipeline_mode<synchronous>, transform_indices = @transform_10, window_bounds = array<i64: 1, 128>}, {pipeline_mode = #tpu.pipeline_mode<synchronous>, transform_indices = @transform_11, window_bounds = array<i64: 1, 128>}, {transform_indices = @transform_12, window_bounds = array<i64: 1, 128, 128>}]} {
    %c0_i32 = arith.constant 0 : i32
    %0 = arith.cmpi eq, %arg2, %c0_i32 : i32
    %1 = arith.extui %0 : i1 to i32
    %c0_i32_0 = arith.constant 0 : i32
    %2 = arith.cmpi ne, %1, %c0_i32_0 : i32
    scf.if %2 {
      %cst_35 = arith.constant 0.000000e+00 : f32
      %66 = vector.broadcast %cst_35 : f32 to vector<128x128xf32>
      %c0_36 = arith.constant 0 : index
      %c0_37 = arith.constant 0 : index
      %67 = vector.load %arg16[%c0_36, %c0_37] : memref<128x128xf32, #tpu.memory_space<vmem>>, vector<128x128xf32>
      tpu.vector_store %arg16[%c0_36, %c0_37], %66 {strides = array<i32>} : memref<128x128xf32, #tpu.memory_space<vmem>>, vector<128x128xf32>,
    } else {
    }
    %c0 = arith.constant 0 : index
    %c0_1 = arith.constant 0 : index
    %c0_2 = arith.constant 0 : index
    %3 = vector.load %arg3[%c0, %c0_1, %c0_2] : memref<1x128x128xf32, #tpu.memory_space<vmem>>, vector<1x128x128xf32>
    %4 = vector.shape_cast %3 : vector<1x128x128xf32> to vector<128x128xf32>
    %5 = arith.truncf %4 : vector<128x128xf32> to vector<128x128xbf16>
    %c0_3 = arith.constant 0 : index
    %c0_4 = arith.constant 0 : index
    %6 = vector.load %arg7[%c0_3, %c0_4] : memref<128x256xbf16, #tpu.memory_space<vmem>>, vector<128x256xbf16>
    %cst = arith.constant dense<0.000000e+00> : vector<128x256xf32>
    %7 = tpu.matmul %5, %6, %cst {dimension_numbers = #tpu.dot_dimension_numbers<[1], [0], [0], [1], [0, 0, 1, 1], [], []>} : vector<128x128xbf16>, vector<128x256xbf16>, vector<128x256xf32> -> vector<128x256xf32>
    %c0_5 = arith.constant 0 : index
    %c0_6 = arith.constant 0 : index
    %8 = vector.load %arg8[%c0_5, %c0_6] : memref<1x256xf32, #tpu.memory_space<vmem>>, vector<1x256xf32>
    %9 = vector.broadcast %8 : vector<1x256xf32> to vector<128x256xf32>
    %10 = arith.addf %7, %9 : vector<128x256xf32>
    %c0_7 = arith.constant 0 : index
    %c0_8 = arith.constant 0 : index
    %11 = vector.load %arg9[%c0_7, %c0_8] : memref<128x256xbf16, #tpu.memory_space<vmem>>, vector<128x256xbf16>
    %cst_9 = arith.constant dense<0.000000e+00> : vector<128x256xf32>
    %12 = tpu.matmul %5, %11, %cst_9 {dimension_numbers = #tpu.dot_dimension_numbers<[1], [0], [0], [1], [0, 0, 1, 1], [], []>} : vector<128x128xbf16>, vector<128x256xbf16>, vector<128x256xf32> -> vector<128x256xf32>
    %c0_10 = arith.constant 0 : index
    %c0_11 = arith.constant 0 : index
    %13 = vector.load %arg10[%c0_10, %c0_11] : memref<1x256xf32, #tpu.memory_space<vmem>>, vector<1x256xf32>
    %14 = vector.broadcast %13 : vector<1x256xf32> to vector<128x256xf32>
    %15 = arith.addf %12, %14 : vector<128x256xf32>
    %cst_12 = arith.constant 5.000000e-01 : f32
    %16 = vector.broadcast %cst_12 : f32 to vector<128x256xf32>
    %17 = arith.mulf %16, %15 : vector<128x256xf32>
    %cst_13 = arith.constant 0.707106769 : f32
    %18 = vector.broadcast %cst_13 : f32 to vector<128x256xf32>
    %19 = arith.mulf %15, %18 : vector<128x256xf32>
    %20 = math.absf %19 : vector<128x256xf32>
    %cst_14 = arith.constant 0.327591091 : f32
    %21 = vector.broadcast %cst_14 : f32 to vector<128x256xf32>
    %22 = arith.mulf %21, %20 : vector<128x256xf32>
    %cst_15 = arith.constant 1.000000e+00 : f32
    %23 = vector.broadcast %cst_15 : f32 to vector<128x256xf32>
    %24 = arith.addf %23, %22 : vector<128x256xf32>
    %cst_16 = arith.constant 1.000000e+00 : f32
    %25 = vector.broadcast %cst_16 : f32 to vector<128x256xf32>
    %26 = arith.divf %25, %24 : vector<128x256xf32>
    %cst_17 = arith.constant 1.06140542 : f32
    %27 = vector.broadcast %cst_17 : f32 to vector<128x256xf32>
    %28 = arith.mulf %27, %26 : vector<128x256xf32>
    %cst_18 = arith.constant -1.45315206 : f32
    %29 = vector.broadcast %cst_18 : f32 to vector<128x256xf32>
    %30 = arith.addf %28, %29 : vector<128x256xf32>
    %31 = arith.mulf %30, %26 : vector<128x256xf32>
    %cst_19 = arith.constant 1.42141378 : f32
    %32 = vector.broadcast %cst_19 : f32 to vector<128x256xf32>
    %33 = arith.addf %31, %32 : vector<128x256xf32>
    %34 = arith.mulf %33, %26 : vector<128x256xf32>
    %cst_20 = arith.constant -0.284496725 : f32
    %35 = vector.broadcast %cst_20 : f32 to vector<128x256xf32>
    %36 = arith.addf %34, %35 : vector<128x256xf32>
    %37 = arith.mulf %36, %26 : vector<128x256xf32>
    %cst_21 = arith.constant 0.254829586 : f32
    %38 = vector.broadcast %cst_21 : f32 to vector<128x256xf32>
    %39 = arith.addf %37, %38 : vector<128x256xf32>
    %40 = arith.mulf %39, %26 : vector<128x256xf32>
    %cst_22 = arith.constant 0.000000e+00 : f32
    %41 = vector.broadcast %cst_22 : f32 to vector<128x256xf32>
    %42 = arith.subf %41, %20 : vector<128x256xf32>
    %43 = arith.mulf %42, %20 : vector<128x256xf32>
    %44 = math.exp %43 : vector<128x256xf32>
    %45 = arith.mulf %40, %44 : vector<128x256xf32>
    %cst_23 = arith.constant 1.000000e+00 : f32
    %46 = vector.broadcast %cst_23 : f32 to vector<128x256xf32>
    %47 = arith.subf %46, %45 : vector<128x256xf32>
    %cst_24 = arith.constant 0.000000e+00 : f32
    %48 = vector.broadcast %cst_24 : f32 to vector<128x256xf32>
    %49 = arith.cmpf olt, %19, %48 : vector<128x256xf32>
    %cst_25 = arith.constant 0.000000e+00 : f32
    %50 = vector.broadcast %cst_25 : f32 to vector<128x256xf32>
    %51 = arith.subf %50, %47 : vector<128x256xf32>
    %52 = arith.select %49, %51, %47 : vector<128x256xi1>, vector<128x256xf32>
    %cst_26 = arith.constant 1.000000e+00 : f32
    %53 = vector.broadcast %cst_26 : f32 to vector<128x256xf32>
    %54 = arith.addf %53, %52 : vector<128x256xf32>
    %55 = arith.mulf %17, %54 : vector<128x256xf32>
    %56 = arith.mulf %10, %55 : vector<128x256xf32>
    %57 = arith.truncf %56 : vector<128x256xf32> to vector<128x256xbf16>
    %c0_27 = arith.constant 0 : index
    %c0_28 = arith.constant 0 : index
    %58 = vector.load %arg16[%c0_27, %c0_28] : memref<128x128xf32, #tpu.memory_space<vmem>>, vector<128x128xf32>
    %c0_29 = arith.constant 0 : index
    %c0_30 = arith.constant 0 : index
    %59 = vector.load %arg11[%c0_29, %c0_30] : memref<256x128xbf16, #tpu.memory_space<vmem>>, vector<256x128xbf16>
    %cst_31 = arith.constant dense<0.000000e+00> : vector<128x128xf32>
    %60 = tpu.matmul %57, %59, %cst_31 {dimension_numbers = #tpu.dot_dimension_numbers<[1], [0], [0], [1], [0, 0, 1, 1], [], []>} : vector<128x256xbf16>, vector<256x128xbf16>, vector<128x128xf32> -> vector<128x128xf32>
    %61 = arith.addf %58, %60 : vector<128x128xf32>
    %c0_32 = arith.constant 0 : index
    %c0_33 = arith.constant 0 : index
    %62 = vector.load %arg16[%c0_32, %c0_33] : memref<128x128xf32, #tpu.memory_space<vmem>>, vector<128x128xf32>
    tpu.vector_store %arg16[%c0_32, %c0_33], %61 {strides = array<i32>} : memref<128x128xf32, #tpu.memory_space<vmem>>, vector<128x128xf32>,
    %c1_i32 = arith.constant 1 : i32
    %63 = arith.cmpi eq, %arg2, %c1_i32 : i32
    %64 = arith.extui %63 : i1 to i32
    %c0_i32_34 = arith.constant 0 : i32
    %65 = arith.cmpi ne, %64, %c0_i32_34 : i32
    scf.if %65 {
      %c0_35 = arith.constant 0 : index
      %c0_36 = arith.constant 0 : index
      %c0_37 = arith.constant 0 : index
      %c0_38 = arith.constant 0 : index
      %66 = vector.load %arg4[%c0_35, %c0_36, %c0_37, %c0_38] : memref<1x2x128x128xbf16, #tpu.memory_space<vmem>>, vector<1x1x128x128xbf16>
      %67 = vector.shape_cast %66 : vector<1x1x128x128xbf16> to vector<128x128xbf16>
      %c0_39 = arith.constant 0 : index
      %c0_40 = arith.constant 0 : index
      %c0_41 = arith.constant 0 : index
      %68 = vector.load %arg5[%c0_39, %c0_40, %c0_41] : memref<2x128x128xbf16, #tpu.memory_space<vmem>>, vector<1x128x128xbf16>
      %69 = vector.shape_cast %68 : vector<1x128x128xbf16> to vector<128x128xbf16>
      %cst_42 = arith.constant dense<0.000000e+00> : vector<128x128xf32>
      %70 = tpu.matmul %67, %69, %cst_42 {dimension_numbers = #tpu.dot_dimension_numbers<[1], [0], [0], [1], [0, 0, 1, 1], [], []>} : vector<128x128xbf16>, vector<128x128xbf16>, vector<128x128xf32> -> vector<128x128xf32>
      %c0_43 = arith.constant 0 : index
      %c1 = arith.constant 1 : index
      %c0_44 = arith.constant 0 : index
      %c0_45 = arith.constant 0 : index
      %71 = vector.load %arg4[%c0_43, %c1, %c0_44, %c0_45] : memref<1x2x128x128xbf16, #tpu.memory_space<vmem>>, vector<1x1x128x128xbf16>
      %72 = vector.shape_cast %71 : vector<1x1x128x128xbf16> to vector<128x128xbf16>
      %c1_46 = arith.constant 1 : index
      %c0_47 = arith.constant 0 : index
      %c0_48 = arith.constant 0 : index
      %73 = vector.load %arg5[%c1_46, %c0_47, %c0_48] : memref<2x128x128xbf16, #tpu.memory_space<vmem>>, vector<1x128x128xbf16>
      %74 = vector.shape_cast %73 : vector<1x128x128xbf16> to vector<128x128xbf16>
      %cst_49 = arith.constant dense<0.000000e+00> : vector<128x128xf32>
      %75 = tpu.matmul %72, %74, %cst_49 {dimension_numbers = #tpu.dot_dimension_numbers<[1], [0], [0], [1], [0, 0, 1, 1], [], []>} : vector<128x128xbf16>, vector<128x128xbf16>, vector<128x128xf32> -> vector<128x128xf32>
      %76 = arith.addf %70, %75 : vector<128x128xf32>
      %c0_50 = arith.constant 0 : index
      %c0_51 = arith.constant 0 : index
      %77 = vector.load %arg6[%c0_50, %c0_51] : memref<1x128xf32, #tpu.memory_space<vmem>>, vector<1x128xf32>
      %78 = vector.broadcast %77 : vector<1x128xf32> to vector<128x128xf32>
      %79 = arith.addf %76, %78 : vector<128x128xf32>
      %c0_52 = arith.constant 0 : index
      %c0_53 = arith.constant 0 : index
      %c0_54 = arith.constant 0 : index
      %80 = vector.load %arg3[%c0_52, %c0_53, %c0_54] : memref<1x128x128xf32, #tpu.memory_space<vmem>>, vector<1x128x128xf32>
      %81 = vector.shape_cast %80 : vector<1x128x128xf32> to vector<128x128xf32>
      %c0_55 = arith.constant 0 : index
      %c0_56 = arith.constant 0 : index
      %82 = vector.load %arg16[%c0_55, %c0_56] : memref<128x128xf32, #tpu.memory_space<vmem>>, vector<128x128xf32>
      %c0_57 = arith.constant 0 : index
      %c0_58 = arith.constant 0 : index
      %83 = vector.load %arg12[%c0_57, %c0_58] : memref<1x128xf32, #tpu.memory_space<vmem>>, vector<1x128xf32>
      %84 = vector.broadcast %83 : vector<1x128xf32> to vector<128x128xf32>
      %85 = arith.addf %82, %84 : vector<128x128xf32>
      %86 = arith.addf %85, %79 : vector<128x128xf32>
      %cst_59 = arith.constant 1.56508458 : f32
      %87 = vector.broadcast %cst_59 : f32 to vector<128x128xf32>
      %88 = arith.mulf %81, %87 : vector<128x128xf32>
      %89 = arith.addf %86, %88 : vector<128x128xf32>
      %cst_60 = arith.constant dense<0.000000e+00> : vector<128xf32>
      %90 = vector.multi_reduction <add>, %89, %cst_60 [1] : vector<128x128xf32> to vector<128xf32>
      %91 = vector.shape_cast %90 : vector<128xf32> to vector<128x1xf32>
      %cst_61 = arith.constant 1.280000e+02 : f32
      %92 = vector.broadcast %cst_61 : f32 to vector<128x1xf32>
      %93 = arith.divf %91, %92 : vector<128x1xf32>
      %94 = vector.broadcast %93 : vector<128x1xf32> to vector<128x128xf32>
      %95 = arith.subf %89, %94 : vector<128x128xf32>
      %96 = arith.mulf %95, %95 : vector<128x128xf32>
      %cst_62 = arith.constant dense<0.000000e+00> : vector<128xf32>
      %97 = vector.multi_reduction <add>, %96, %cst_62 [1] : vector<128x128xf32> to vector<128xf32>
      %98 = vector.shape_cast %97 : vector<128xf32> to vector<128x1xf32>
      %cst_63 = arith.constant 1.280000e+02 : f32
      %99 = vector.broadcast %cst_63 : f32 to vector<128x1xf32>
      %100 = arith.divf %98, %99 : vector<128x1xf32>
      %101 = vector.broadcast %93 : vector<128x1xf32> to vector<128x128xf32>
      %102 = arith.subf %89, %101 : vector<128x128xf32>
      %cst_64 = arith.constant 9.99999974E-6 : f32
      %103 = vector.broadcast %cst_64 : f32 to vector<128x1xf32>
      %104 = arith.addf %100, %103 : vector<128x1xf32>
      %105 = math.rsqrt %104 : vector<128x1xf32>
      %106 = vector.broadcast %105 : vector<128x1xf32> to vector<128x128xf32>
      %107 = arith.mulf %102, %106 : vector<128x128xf32>
      %c0_65 = arith.constant 0 : index
      %c0_66 = arith.constant 0 : index
      %108 = vector.load %arg13[%c0_65, %c0_66] : memref<1x128xf32, #tpu.memory_space<vmem>>, vector<1x128xf32>
      %109 = vector.broadcast %108 : vector<1x128xf32> to vector<128x128xf32>
      %110 = arith.mulf %107, %109 : vector<128x128xf32>
      %c0_67 = arith.constant 0 : index
      %c0_68 = arith.constant 0 : index
      %111 = vector.load %arg14[%c0_67, %c0_68] : memref<1x128xf32, #tpu.memory_space<vmem>>, vector<1x128xf32>
      %112 = vector.broadcast %111 : vector<1x128xf32> to vector<128x128xf32>
      %113 = arith.addf %110, %112 : vector<128x128xf32>
      %c0_69 = arith.constant 0 : index
      %c0_70 = arith.constant 0 : index
      %c0_71 = arith.constant 0 : index
      %114 = vector.load %arg15[%c0_69, %c0_70, %c0_71] : memref<1x128x128xf32, #tpu.memory_space<vmem>>, vector<1x128x128xf32>
      %115 = vector.shape_cast %114 : vector<1x128x128xf32> to vector<128x128xf32>
      %116 = vector.shape_cast %113 : vector<128x128xf32> to vector<1x128x128xf32>
      tpu.vector_store %arg15[%c0_69, %c0_70, %c0_71], %116 {strides = array<i32>} : memref<1x128x128xf32, #tpu.memory_space<vmem>>, vector<1x128x128xf32>,
    } else {
    }
    return
  }
  func.func @transform_0(%arg0: i32, %arg1: i32, %arg2: i32) -> (i32, i32, i32) {
    %c0_i32 = arith.constant 0 : i32
    %c0_i32_0 = arith.constant 0 : i32
    return %arg0, %arg1, %c0_i32 : i32, i32, i32
  }
  func.func @transform_1(%arg0: i32, %arg1: i32, %arg2: i32) -> (i32, i32, i32, i32) {
    %c0_i32 = arith.constant 0 : i32
    %c0_i32_0 = arith.constant 0 : i32
    %c0_i32_1 = arith.constant 0 : i32
    return %arg0, %c0_i32, %arg1, %c0_i32_0 : i32, i32, i32, i32
  }
  func.func @transform_2(%arg0: i32, %arg1: i32, %arg2: i32) -> (i32, i32, i32) {
    %c0_i32 = arith.constant 0 : i32
    %c0_i32_0 = arith.constant 0 : i32
    %c0_i32_1 = arith.constant 0 : i32
    %c0_i32_2 = arith.constant 0 : i32
    return %c0_i32, %c0_i32_0, %c0_i32_1 : i32, i32, i32
  }
  func.func @transform_3(%arg0: i32, %arg1: i32, %arg2: i32) -> (i32, i32) {
    %c0_i32 = arith.constant 0 : i32
    %c0_i32_0 = arith.constant 0 : i32
    %c0_i32_1 = arith.constant 0 : i32
    return %c0_i32, %c0_i32_0 : i32, i32
  }
  func.func @transform_4(%arg0: i32, %arg1: i32, %arg2: i32) -> (i32, i32) {
    %c0_i32 = arith.constant 0 : i32
    %c0_i32_0 = arith.constant 0 : i32
    return %c0_i32, %arg2 : i32, i32
  }
  func.func @transform_5(%arg0: i32, %arg1: i32, %arg2: i32) -> (i32, i32) {
    %c0_i32 = arith.constant 0 : i32
    %c0_i32_0 = arith.constant 0 : i32
    return %c0_i32, %arg2 : i32, i32
  }
  func.func @transform_6(%arg0: i32, %arg1: i32, %arg2: i32) -> (i32, i32) {
    %c0_i32 = arith.constant 0 : i32
    %c0_i32_0 = arith.constant 0 : i32
    return %c0_i32, %arg2 : i32, i32
  }
  func.func @transform_7(%arg0: i32, %arg1: i32, %arg2: i32) -> (i32, i32) {
    %c0_i32 = arith.constant 0 : i32
    %c0_i32_0 = arith.constant 0 : i32
    return %c0_i32, %arg2 : i32, i32
  }
  func.func @transform_8(%arg0: i32, %arg1: i32, %arg2: i32) -> (i32, i32) {
    %c0_i32 = arith.constant 0 : i32
    %c0_i32_0 = arith.constant 0 : i32
    return %arg2, %c0_i32 : i32, i32
  }
  func.func @transform_9(%arg0: i32, %arg1: i32, %arg2: i32) -> (i32, i32) {
    %c0_i32 = arith.constant 0 : i32
    %c0_i32_0 = arith.constant 0 : i32
    %c0_i32_1 = arith.constant 0 : i32
    return %c0_i32, %c0_i32_0 : i32, i32
  }
  func.func @transform_10(%arg0: i32, %arg1: i32, %arg2: i32) -> (i32, i32) {
    %c0_i32 = arith.constant 0 : i32
    %c0_i32_0 = arith.constant 0 : i32
    %c0_i32_1 = arith.constant 0 : i32
    return %c0_i32, %c0_i32_0 : i32, i32
  }
  func.func @transform_11(%arg0: i32, %arg1: i32, %arg2: i32) -> (i32, i32) {
    %c0_i32 = arith.constant 0 : i32
    %c0_i32_0 = arith.constant 0 : i32
    %c0_i32_1 = arith.constant 0 : i32
    return %c0_i32, %c0_i32_0 : i32, i32
  }
  func.func @transform_12(%arg0: i32, %arg1: i32, %arg2: i32) -> (i32, i32, i32) {
    %c0_i32 = arith.constant 0 : i32
    %c0_i32_0 = arith.constant 0 : i32
    return %arg0, %arg1, %c0_i32 : i32, i32, i32
  }
}

module attributes {stable_mosaic.version = 11 : i64} {
  func.func @_logits_kernel(%arg0: i32, %arg1: i32, %arg2: i32, %arg3: memref<1x128x128xf32, #tpu.memory_space<vmem>>, %arg4: memref<128x512xbf16, #tpu.memory_space<vmem>>, %arg5: memref<1x512xf32, #tpu.memory_space<vmem>>, %arg6: memref<1x128x512xf32, #tpu.memory_space<vmem>>) attributes {dimension_semantics = [#tpu.dimension_semantics<parallel>, #tpu.dimension_semantics<parallel>, #tpu.dimension_semantics<parallel>], iteration_bounds = array<i64: 2, 2, 2>, scalar_prefetch = 0 : i64, scratch_operands = 0 : i64, tpu.core_type = #tpu.core_type<tc>, window_params = [{transform_indices = @transform_0, window_bounds = array<i64: 1, 128, 128>}, {transform_indices = @transform_1, window_bounds = array<i64: 128, 512>}, {transform_indices = @transform_2, window_bounds = array<i64: 1, 512>}, {transform_indices = @transform_3, window_bounds = array<i64: 1, 128, 512>}]} {
    %c0 = arith.constant 0 : index
    %c0_0 = arith.constant 0 : index
    %c0_1 = arith.constant 0 : index
    %0 = vector.load %arg3[%c0, %c0_0, %c0_1] : memref<1x128x128xf32, #tpu.memory_space<vmem>>, vector<1x128x128xf32>
    %1 = vector.shape_cast %0 : vector<1x128x128xf32> to vector<128x128xf32>
    %2 = arith.truncf %1 : vector<128x128xf32> to vector<128x128xbf16>
    %c0_2 = arith.constant 0 : index
    %c0_3 = arith.constant 0 : index
    %3 = vector.load %arg4[%c0_2, %c0_3] : memref<128x512xbf16, #tpu.memory_space<vmem>>, vector<128x512xbf16>
    %cst = arith.constant dense<0.000000e+00> : vector<128x512xf32>
    %4 = tpu.matmul %2, %3, %cst {dimension_numbers = #tpu.dot_dimension_numbers<[1], [0], [0], [1], [0, 0, 1, 1], [], []>} : vector<128x128xbf16>, vector<128x512xbf16>, vector<128x512xf32> -> vector<128x512xf32>
    %c0_4 = arith.constant 0 : index
    %c0_5 = arith.constant 0 : index
    %5 = vector.load %arg5[%c0_4, %c0_5] : memref<1x512xf32, #tpu.memory_space<vmem>>, vector<1x512xf32>
    %6 = vector.broadcast %5 : vector<1x512xf32> to vector<128x512xf32>
    %7 = arith.addf %4, %6 : vector<128x512xf32>
    %c0_6 = arith.constant 0 : index
    %c0_7 = arith.constant 0 : index
    %c0_8 = arith.constant 0 : index
    %8 = vector.load %arg6[%c0_6, %c0_7, %c0_8] : memref<1x128x512xf32, #tpu.memory_space<vmem>>, vector<1x128x512xf32>
    %9 = vector.shape_cast %8 : vector<1x128x512xf32> to vector<128x512xf32>
    %10 = vector.shape_cast %7 : vector<128x512xf32> to vector<1x128x512xf32>
    tpu.vector_store %arg6[%c0_6, %c0_7, %c0_8], %10 {strides = array<i32>} : memref<1x128x512xf32, #tpu.memory_space<vmem>>, vector<1x128x512xf32>,
    return
  }
  func.func @transform_0(%arg0: i32, %arg1: i32, %arg2: i32) -> (i32, i32, i32) {
    %c0_i32 = arith.constant 0 : i32
    %c0_i32_0 = arith.constant 0 : i32
    return %arg0, %arg1, %c0_i32 : i32, i32, i32
  }
  func.func @transform_1(%arg0: i32, %arg1: i32, %arg2: i32) -> (i32, i32) {
    %c0_i32 = arith.constant 0 : i32
    %c0_i32_0 = arith.constant 0 : i32
    return %c0_i32, %arg2 : i32, i32
  }
  func.func @transform_2(%arg0: i32, %arg1: i32, %arg2: i32) -> (i32, i32) {
    %c0_i32 = arith.constant 0 : i32
    %c0_i32_0 = arith.constant 0 : i32
    return %c0_i32, %arg2 : i32, i32
  }
  func.func @transform_3(%arg0: i32, %arg1: i32, %arg2: i32) -> (i32, i32, i32) {
    %c0_i32 = arith.constant 0 : i32
    return %arg0, %arg1, %arg2 : i32, i32, i32
  }
}

</mosaic_0001>

<bundles_post_ra>
// kernel: glm_forward.7
= control target key start
LH: loop header
LB: loop body
LE: loop exit
PB: predicated region body
PF: predicated region fallthrough
CT: control target
= control target key end

     0   :  { %s2275_s21 = smov 0   ;;  %s2277_s22 = smov 0   ;;  %s2806_s0 = inlined_call_operand.vmem [shape: f32[2,256,128], index: 0, kind: input, shape index: {}]   ;;  %s2807_s1 = inlined_call_operand.vmem [shape: f32[256,128], index: 1, kind: input, shape index: {}]   ;;  %s2808_s2 = inlined_call_operand.vmem [shape: f32[256,128], index: 2, kind: input, shape index: {}]   ;;  %s2809_s3 = inlined_call_operand.vmem [shape: f32[128,128], index: 3, kind: input, shape index: {}]   ;;  %s2810_s4 = inlined_call_operand.vmem [shape: bf16[2,128,128], index: 4, kind: input, shape index: {}]   ;;  %s2811_s5 = inlined_call_operand.vmem [shape: f32[2,1,128], index: 5, kind: input, shape index: {}]   ;;  %s2812_s6 = inlined_call_operand.vmem [shape: bf16[2,128,128], index: 6, kind: input, shape index: {}]   ;;  %s2813_s7 = inlined_call_operand.vmem [shape: f32[2,1,128], index: 7, kind: input, shape index: {}]   ;;  %s2814_s8 = inlined_call_operand.vmem [shape: bf16[2,128,128], index: 8, kind: input, shape index: {}]   ;;  %s2815_s9 = inlined_call_operand.vmem [shape: f32[2,1,128], index: 9, kind: input, shape index: {}]   ;;  %s2816_s10 = inlined_call_operand.vmem [shape: bf16[2,2,256,128], index: 10, kind: output, shape index: {0}]   ;;  %s2817_s11 = inlined_call_operand.vmem [shape: bf16[2,2,256,128], index: 11, kind: output, shape index: {1}]   ;;  %s2818_s12 = inlined_call_operand.vmem [shape: bf16[2,2,256,128], index: 12, kind: output, shape index: {2}]  }
   0x1   :  { %2819 = sst [smem:[#allocation4_spill]] %s2810_s4  ;;  %s2279_s23 = smov 0  }
   0x2   :  { %s2281_s24 = smov 0   ;;  %s2283_s25 = smov 0  }
   0x3   :  { %s2285_s26 = smov 0   ;;  %s2287_s27 = smov 0  }
   0x4 LB: > { %s35_s28 = sadd.s32 1, %s2196_s24  ;;  %s38_s29 = sadd.s32 1, %s2200_s25  ;;  %s2208_s27 = sphi %s2287_s27, %s23_s27   ;;  %s2204_s26 = sphi %s2285_s26, %s2830_s26   ;;  %s2200_s25 = sphi %s2283_s25, %s2829_s25   ;;  %s2196_s24 = sphi %s2281_s24, %s2828_s24   ;;  %s2192_s23 = sphi %s2279_s23, %s2827_s23   ;;  %s2188_s22 = sphi %s2277_s22, %s2826_s22   ;;  %s2184_s21 = sphi %s2275_s21, %s2825_s21  }
   0x5   : > { %p36_p0 = scmp.ge.s32.totalorder %s35_s28, 2  ;;  %p1779_p1 = scmp.ge.s32.totalorder %s2208_s27, 1 }
   0x6   : > { %p481_p2 = scmp.lt.s32.totalorder %s2208_s27, 9  ;;  %s42_s30 = sadd.s32 1, %s2204_s26 }
   0x7   : > { %s2832_s28 = smov (%p36_p0, %s35_s28), 0  ;;  %s2834_s29 = smov (!%p36_p0, %s38_s29), %s2200_s25 }
   0x8   : > { %p482_p3 = pnand %p1779_p1, %p481_p2  ;;  %p40_p4 = scmp.ge.s32.totalorder %s2834_s29, 2 }
   0x9   : > { %p617_p6 = scmp.lt.s32.totalorder (!%p482_p3), %s2184_s21, 1  ;;  %s2822_s4 = sld [smem:[#allocation4_spill]] (!%p482_p3) }
   0xa   : > { %s2836_s29 = smov (%p40_p4, %s2834_s29), 0  ;;  %s2838_s30 = smov (!%p40_p4, %s42_s30), %s2204_s26 }
   0xb   : > { %2820 = sst [smem:[#allocation2_spill]] %s2836_s29  ;;  %p44_p5 = scmp.ge.s32.totalorder %s2838_s30, 2 }
   0xc   : > { %485 = sbr.rel (%p482_p3) target bundleno = 465 (0x1d1), region = 60  ;;  %s1780_s17 = sshll.u32 (!%p482_p3), %s2188_s22, 4 }
   0xd   : > { %s2840_s30 = smov (%p44_p5, %s2838_s30), 0  ;;  %p596_p7 = scmp.lt.s32.totalorder (!%p482_p3), %s2192_s23, 1 }
   0xe   : > { %2821 = sst [smem:[#allocation3_spill]] %s2840_s30  ;;  %p598_p8 = scmp.lt.s32.totalorder (!%p482_p3), %s1780_s17, 31 }
  0x11   : > { %s2842_s21 = smov (!%p617_p6, %s2184_s21), 1  ;;  %s2844_s23 = smov (!%p596_p7, %s2192_s23), 1  ;;  %v754_v37 = vld [vmem:[%s2809_s3 + $0x78] sm:$0xff]  ;;  %v753_v38 = vld [vmem:[%s2809_s3 + $0x70] sm:$0xff]  ;;  %v752_v41 = vld [vmem:[%s2809_s3 + $0x68] sm:$0xff] }
  0x12   : > { %s2324_s13 = sshll.u32 %s2842_s21, 6  ;;  %s2846_s17 = smov (!%p598_p8, %s1780_s17), 31  ;;  %v751_v43 = vld [vmem:[%s2809_s3 + $0x60] sm:$0xff]  ;;  %v750_v44 = vld [vmem:[%s2809_s3 + $0x58] sm:$0xff]  ;;  %v749_v45 = vld [vmem:[%s2809_s3 + $0x50] sm:$0xff] }
  0x13   : > { %s2330_s16 = scalar_lea.vmem %s2822_s4, %s2324_s13  ;;  %s1781_s18 = sshll.u32 %s2844_s23, 5  ;;  %v748_v46 = vld [vmem:[%s2809_s3 + $0x48] sm:$0xff]  ;;  %v747_v47 = vld [vmem:[%s2809_s3 + $0x40] sm:$0xff]  ;;  %v746_v48 = vld [vmem:[%s2809_s3 + $0x38] sm:$0xff] }
  0x14   : > { %v1913_v0 = vld [vmem:[%s2330_s16 + $0x38] sm:$0xff]  ;;  %v1912_v1 = vld [vmem:[%s2330_s16 + $0x30] sm:$0xff]  ;;  %v1911_v2 = vld [vmem:[%s2330_s16 + $0x28] sm:$0xff]  ;;  %s601_s19 = sadd.s32 %s1781_s18, %s2846_s17  ;;  %s624_s14 = scalar_lea.vmem %s2811_s5, %s2842_s21 }
  0x15   : > { %823 = vmatpush.bf16.msra.mxu0 %v1913_v0  ;;  %2071 = vmatpush.bf16.msra.mxu1 %v1913_v0  ;;  %v1910_v3 = vld [vmem:[%s2330_s16 + $0x20] sm:$0xff]  ;;  %v1909_v4 = vld [vmem:[%s2330_s16 + $0x18] sm:$0xff]  ;;  %v1908_v5 = vld [vmem:[%s2330_s16 + $0x10] sm:$0xff]  ;;  %s1782_s15 = sshll.u32 %s601_s19, 3  ;;  %s2361_s19 = scalar_lea.vmem %s2812_s6, %s2324_s13 }
  0x16   : > { %2072 = vmatpush.bf16.msra.mxu2 %v1913_v0  ;;  %2073 = vmatpush.bf16.msra.mxu3 %v1913_v0  ;;  %v1907_v6 = vld [vmem:[%s2330_s16 + $0x8] sm:$0xff]  ;;  %s2355_s29 = scalar_lea.vmem %s2806_s0, %s1782_s15  ;;  %v1906_v7 = vld [vmem:[%s2330_s16] sm:$0xff]  ;;  %v1921_v12 = vld [vmem:[%s2361_s19 + $0x38] sm:$0xff]  ;;  %s632_s16 = scalar_lea.vmem %s2813_s7, %s2842_s21 }
  0x17   : > { %v683_v8 = vld [vmem:[%s2355_s29] sm:$0xff]  ;;  %v684_v9 = vld [vmem:[%s2355_s29 + $0x8] sm:$0xff]  ;;  %v1920_v15 = vld [vmem:[%s2361_s19 + $0x30] sm:$0xff]  ;;  %s2444_s15 = scalar_lea.vmem %s2814_s8, %s2324_s13  ;;  %s640_s4 = scalar_lea.vmem %s2815_s9, %s2842_s21 }
  0x18   : > { %v687_v10 = vld [vmem:[%s2355_s29 + $0x20] sm:$0xff]  ;;  %v688_v11 = vld [vmem:[%s2355_s29 + $0x28] sm:$0xff]  ;;  %v2369_v13 = vpack.c.bf16 %v684_v9, %v683_v8  ;;  %v685_v18 = vld [vmem:[%s2355_s29 + $0x10] sm:$0xff] }
  0x19   : > { %824 = vmatpush.bf16.msra.mxu0 %v1912_v1  ;;  %2074 = vmatpush.bf16.msra.mxu1 %v1912_v1  ;;  %v2371_v14 = vpack.c.bf16 %v688_v11, %v687_v10  ;;  %v1919_v16 = vld [vmem:[%s2361_s19 + $0x28] sm:$0xff]  ;;  %v1918_v17 = vld [vmem:[%s2361_s19 + $0x20] sm:$0xff]  ;;  %v686_v19 = vld [vmem:[%s2355_s29 + $0x18] sm:$0xff] }
  0x1a   : > { %2075 = vmatpush.bf16.msra.mxu2 %v1912_v1  ;;  %2076 = vmatpush.bf16.msra.mxu3 %v1912_v1  ;;  %v689_v20 = vld [vmem:[%s2355_s29 + $0x30] sm:$0xff]  ;;  %v690_v21 = vld [vmem:[%s2355_s29 + $0x38] sm:$0xff]  ;;  %v2383_v23 = vpack.c.bf16 %v686_v19, %v685_v18  ;;  %v691_v26 = vld [vmem:[%s2355_s29 + $0x40] sm:$0xff] }
  0x1b   : > { %v1917_v22 = vld [vmem:[%s2361_s19 + $0x18] sm:$0xff]  ;;  %v2385_v24 = vpack.c.bf16 %v690_v21, %v689_v20  ;;  %v1916_v25 = vld [vmem:[%s2361_s19 + $0x10] sm:$0xff]  ;;  %v692_v27 = vld [vmem:[%s2355_s29 + $0x48] sm:$0xff] }
  0x1c   : > { %v2392_v28 = vpack.c.bf16 %v692_v27, %v691_v26  ;;  %v1915_v29 = vld [vmem:[%s2361_s19 + $0x8] sm:$0xff]  ;;  %v1914_v30 = vld [vmem:[%s2361_s19] sm:$0xff]  ;;  %v693_v31 = vld [vmem:[%s2355_s29 + $0x50] sm:$0xff] }
  0x1d   : > { %825 = vmatpush.bf16.msra.mxu0 %v1911_v2  ;;  %2077 = vmatpush.bf16.msra.mxu1 %v1911_v2  ;;  %v694_v32 = vld [vmem:[%s2355_s29 + $0x58] sm:$0xff]  ;;  %v695_v34 = vld [vmem:[%s2355_s29 + $0x60] sm:$0xff]  ;;  %v696_v35 = vld [vmem:[%s2355_s29 + $0x68] sm:$0xff] }
  0x1e   : > { %2078 = vmatpush.bf16.msra.mxu2 %v1911_v2  ;;  %2079 = vmatpush.bf16.msra.mxu3 %v1911_v2  ;;  %v2404_v33 = vpack.c.bf16 %v694_v32, %v693_v31  ;;  %v2410_v36 = vpack.c.bf16 %v696_v35, %v695_v34  ;;  %v697_v39 = vld [vmem:[%s2355_s29 + $0x70] sm:$0xff]  ;;  %v698_v40 = vld [vmem:[%s2355_s29 + $0x78] sm:$0xff]  ;;  %v744_v52 = vld [vmem:[%s2809_s3 + $0x28] sm:$0xff]  ;;  %s1795_s29 = sshll.u32 %s2844_s23, 6 }
  0x1f   : > { %v2425_v42 = vpack.c.bf16 %v698_v40, %v697_v39  ;;  %v1929_v49 = vld [vmem:[%s2444_s15 + $0x38] sm:$0xff]  ;;  %v745_v50 = vld [vmem:[%s2809_s3 + $0x30] sm:$0xff]  ;;  %v743_v53 = vld [vmem:[%s2809_s3 + $0x20] sm:$0xff] }
  0x20   : > { %v1928_v51 = vld [vmem:[%s2444_s15 + $0x30] sm:$0xff]  ;;  %v742_v54 = vld [vmem:[%s2809_s3 + $0x18] sm:$0xff]  ;;  %v1927_v55 = vld [vmem:[%s2444_s15 + $0x28] sm:$0xff] }
  0x21   : > { %826 = vmatpush.bf16.msra.mxu0 %v1910_v3  ;;  %2080 = vmatpush.bf16.msra.mxu1 %v1910_v3  ;;  %v741_v56 = vld [vmem:[%s2809_s3 + $0x10] sm:$0xff]  ;;  %v740_v57 = vld [vmem:[%s2809_s3 + $0x8] sm:$0xff]  ;;  %v1926_v58 = vld [vmem:[%s2444_s15 + $0x20] sm:$0xff] }
  0x22   : > { %2081 = vmatpush.bf16.msra.mxu2 %v1910_v3  ;;  %2082 = vmatpush.bf16.msra.mxu3 %v1910_v3  ;;  %v739_v59 = vld [vmem:[%s2809_s3] sm:$0xff]  ;;  %v1925_v60 = vld [vmem:[%s2444_s15 + $0x18] sm:$0xff]  ;;  %v1924_v61 = vld [vmem:[%s2444_s15 + $0x10] sm:$0xff] }
  0x23   : > { %v1923_v62 = vld [vmem:[%s2444_s15 + $0x8] sm:$0xff]  ;;  %v1922_v63 = vld [vmem:[%s2444_s15] sm:$0xff] }
  0x24   : > { %v2490_v0 = vld [vmem:[%s624_s14] ss:$0 sm:$0xff] }
  0x25   : > { %827 = vmatpush.bf16.msra.mxu0 %v1909_v4  ;;  %2083 = vmatpush.bf16.msra.mxu1 %v1909_v4  ;;  %v2521_v18 = vld [vmem:[%s632_s16] ss:$0 sm:$0xff]  ;;  %s1794_s16 = sshll.u32 %s2842_s21, 5 }
  0x26   : > { %2084 = vmatpush.bf16.msra.mxu2 %v1909_v4  ;;  %2085 = vmatpush.bf16.msra.mxu3 %v1909_v4  ;;  %s649_s22 = sadd.s32 %s1794_s16, %s2846_s17 }
  0x27   : > { %s651_s19 = sadd.s32 %s1795_s29, %s649_s22 }
  0x28   : > { %s2639_s14 = sshll.u32 %s651_s19, 2 }
  0x29   : > { %828 = vmatpush.bf16.msra.mxu0 %v1908_v5  ;;  %2086 = vmatpush.bf16.msra.mxu1 %v1908_v5  ;;  %s2646_s21 = scalar_lea.vmem %s2818_s12, %s2639_s14  ;;  %s2680_s19 = scalar_lea.vmem %s2816_s10, %s2639_s14 }
  0x2a   : > { %2087 = vmatpush.bf16.msra.mxu2 %v1908_v5  ;;  %2088 = vmatpush.bf16.msra.mxu3 %v1908_v5 }
  0x2d   : > { %829 = vmatpush.bf16.msra.mxu0 %v1907_v6  ;;  %2089 = vmatpush.bf16.msra.mxu1 %v1907_v6 }
  0x2e   : > { %2090 = vmatpush.bf16.msra.mxu2 %v1907_v6  ;;  %2091 = vmatpush.bf16.msra.mxu3 %v1907_v6 }
  0x31   : > { %830 = vmatpush.bf16.msra.mxu0 %v1906_v7  ;;  %2092 = vmatpush.bf16.msra.mxu1 %v1906_v7 }
  0x32   : > { %2093 = vmatpush.bf16.msra.mxu2 %v1906_v7  ;;  %2094 = vmatpush.bf16.msra.mxu3 %v1906_v7 }
  0x34   : > { %831 = vmatmul.bf16.vlgmr.msra.gmra.mxu0 %v2369_v13  ;;  %841 = vmatmul.bf16.vlgmr.msra.gmra.mxu1 %v2371_v14 }
  0x35   : > { %956 = vmatpush.bf16.msrb.mxu1 %v1921_v12  ;;  %851 = vmatmul.bf16.vlgmr.msra.gmra.mxu2 %v2392_v28 }
  0x36   : > { %861 = vmatmul.bf16.vlgmr.msra.gmra.mxu3 %v2410_v36  ;;  %1283 = vmatpush.msrb.mxu0 %v754_v37 }
  0x37   : > { %1138 = vmatpush.msrb.mxu3 %v754_v37  ;;  %1073 = vmatpush.bf16.msrb.mxu2 %v1929_v49 }
  0x38   : > { %1284 = vmatpush.msrb.mxu0 %v753_v38 }
  0x39   : > { %957 = vmatpush.bf16.msrb.mxu1 %v1920_v15  ;;  %1139 = vmatpush.msrb.mxu3 %v753_v38 }
  0x3a   : > { %1285 = vmatpush.msrb.mxu0 %v752_v41 }
  0x3b   : > { %1140 = vmatpush.msrb.mxu3 %v752_v41  ;;  %1074 = vmatpush.bf16.msrb.mxu2 %v1928_v51 }
  0x3c   : > { %1286 = vmatpush.msrb.mxu0 %v751_v43 }
  0x3d   : > { %958 = vmatpush.bf16.msrb.mxu1 %v1919_v16  ;;  %1141 = vmatpush.msrb.mxu3 %v751_v43 }
  0x3e   : > { %1287 = vmatpush.msrb.mxu0 %v750_v44 }
  0x3f   : > { %1142 = vmatpush.msrb.mxu3 %v750_v44  ;;  %1075 = vmatpush.bf16.msrb.mxu2 %v1927_v55 }
  0x40   : > { %1288 = vmatpush.msrb.mxu0 %v749_v45 }
  0x41   : > { %959 = vmatpush.bf16.msrb.mxu1 %v1918_v17  ;;  %1143 = vmatpush.msrb.mxu3 %v749_v45 }
  0x42   : > { %1289 = vmatpush.msrb.mxu0 %v748_v46 }
  0x43   : > { %1144 = vmatpush.msrb.mxu3 %v748_v46  ;;  %1076 = vmatpush.bf16.msrb.mxu2 %v1926_v58 }
  0x44   : > { %836 = vmatmul.bf16.gmra.mxu0 %v2383_v23  ;;  %846 = vmatmul.bf16.gmra.mxu1 %v2385_v24 }
  0x45   : > { %960 = vmatpush.bf16.msrb.mxu1 %v1917_v22  ;;  %856 = vmatmul.bf16.gmra.mxu2 %v2404_v33 }
  0x46   : > { %866 = vmatmul.bf16.gmra.mxu3 %v2425_v42  ;;  %1290 = vmatpush.msrb.mxu0 %v747_v47 }
  0x47   : > { %1145 = vmatpush.msrb.mxu3 %v747_v47  ;;  %1077 = vmatpush.bf16.msrb.mxu2 %v1925_v60 }
  0x48   : > { %1291 = vmatpush.msrb.mxu0 %v746_v48 }
  0x49   : > { %961 = vmatpush.bf16.msrb.mxu1 %v1916_v25  ;;  %1146 = vmatpush.msrb.mxu3 %v746_v48 }
  0x4a   : > { %1292 = vmatpush.msrb.mxu0 %v745_v50 }
  0x4b   : > { %1147 = vmatpush.msrb.mxu3 %v745_v50  ;;  %1078 = vmatpush.bf16.msrb.mxu2 %v1924_v61 }
  0x4c   : > { %1293 = vmatpush.msrb.mxu0 %v744_v52 }
  0x4d   : > { %962 = vmatpush.bf16.msrb.mxu1 %v1915_v29  ;;  %1148 = vmatpush.msrb.mxu3 %v744_v52 }
  0x4e   : > { %1294 = vmatpush.msrb.mxu0 %v743_v53 }
  0x4f   : > { %1149 = vmatpush.msrb.mxu3 %v743_v53  ;;  %1079 = vmatpush.bf16.msrb.mxu2 %v1923_v62 }
  0x50   : > { %1295 = vmatpush.msrb.mxu0 %v742_v54 }
  0x51   : > { %963 = vmatpush.bf16.msrb.mxu1 %v1914_v30  ;;  %1150 = vmatpush.msrb.mxu3 %v742_v54 }
  0x52   : > { %1296 = vmatpush.msrb.mxu0 %v741_v56 }
  0x53   : > { %1151 = vmatpush.msrb.mxu3 %v741_v56  ;;  %1080 = vmatpush.bf16.msrb.mxu2 %v1922_v63 }
  0x54   : > { %964 = vmatmul.bf16.vlgmr.msrb.gmra.mxu1 %v2369_v13  ;;  %1297 = vmatpush.msrb.mxu0 %v740_v57 }
  0x55   : > { %1152 = vmatpush.msrb.mxu3 %v740_v57 }
  0x56   : > { %1298 = vmatpush.msrb.mxu0 %v739_v59  ;;  %1081 = vmatmul.bf16.vlgmr.msrb.gmra.mxu2 %v2369_v13 }
  0x57   : > { %1153 = vmatpush.msrb.mxu3 %v739_v59 }
  0x64   : > { %969 = vmatmul.bf16.gmra.mxu1 %v2383_v23 }
  0x66   : > { %1086 = vmatmul.bf16.gmra.mxu2 %v2383_v23 }
  0x74   : > { %974 = vmatmul.bf16.gmra.mxu1 %v2371_v14 }
  0x76   : > { %1091 = vmatmul.bf16.gmra.mxu2 %v2371_v14 }
  0x84   : > { %979 = vmatmul.bf16.gmra.mxu1 %v2385_v24 }
  0x86   : > { %1096 = vmatmul.bf16.gmra.mxu2 %v2385_v24 }
  0x94   : > { %984 = vmatmul.bf16.gmra.mxu1 %v2392_v28 }
  0x96   : > { %1101 = vmatmul.bf16.gmra.mxu2 %v2392_v28 }
  0xa4   : > { %989 = vmatmul.bf16.gmra.mxu1 %v2404_v33 }
  0xa6   : > { %1106 = vmatmul.bf16.gmra.mxu2 %v2404_v33 }
  0xb1   : > { %v832_v1 = vpop.f32.mrf.mxu0  ;;  %v842_v2 = vpop.f32.mrf.mxu1 }
  0xb2   : > { %v833_v3 = vadd.f32 %v2490_v0, %v832_v1  ;;  %v843_v14 = vadd.f32 %v2490_v0, %v842_v2 }
  0xb4   : > { %v2493_v4 = vmul.f32 0.088388346, %v833_v3  ;;  %994 = vmatmul.bf16.gmra.mxu1 %v2410_v36  ;;  %v2527_v21 = vmul.f32 0.088388346, %v843_v14 }
  0xb6   : > { %1154 = vmatmul.f32.vlgmr.msrb.gmra.mxu3 %v2493_v4  ;;  %1111 = vmatmul.bf16.gmra.mxu2 %v2410_v36 }
  0xb8   : > { %v852_v24 = vpop.f32.mrf.mxu2 }
  0xb9   : > { %v834_v5 = vpop.f32.mrf.mxu0  ;;  %v844_v6 = vpop.f32.mrf.mxu1  ;;  %v853_v38 = vadd.f32 %v2490_v0, %v852_v24 }
  0xba   : > { %v835_v7 = vadd.f32 %v2490_v0, %v834_v5  ;;  %v845_v22 = vadd.f32 %v2490_v0, %v844_v6  ;;  %v862_v52 = vpop.f32.mrf.mxu3 }
  0xbb   : > { %v2558_v41 = vmul.f32 0.088388346, %v853_v38  ;;  %v863_v57 = vadd.f32 %v2490_v0, %v862_v52 }
  0xbc   : > { %v2499_v8 = vmul.f32 0.088388346, %v835_v7  ;;  %v2536_v26 = vmul.f32 0.088388346, %v845_v22 }
  0xbd   : > { %v2592_v60 = vmul.f32 0.088388346, %v863_v57 }
  0xbe   : > { %1157 = vmatmul.f32.gmra.mxu3 %v2499_v8 }
  0xc0   : > { %v854_v39 = vpop.f32.mrf.mxu2 }
  0xc1   : > { %v837_v9 = vpop.f32.mrf.mxu0  ;;  %v847_v10 = vpop.f32.mrf.mxu1  ;;  %v855_v28 = vadd.f32 %v2490_v0, %v854_v39 }
  0xc2   : > { %v838_v11 = vadd.f32 %v2490_v0, %v837_v9  ;;  %v848_v27 = vadd.f32 %v2490_v0, %v847_v10  ;;  %v864_v58 = vpop.f32.mrf.mxu3 }
  0xc3   : > { %v2567_v46 = vmul.f32 0.088388346, %v855_v28  ;;  %v865_v36 = vadd.f32 %v2490_v0, %v864_v58 }
  0xc4   : > { %v2503_v12 = vmul.f32 0.088388346, %v838_v11  ;;  %999 = vmatmul.bf16.gmra.mxu1 %v2425_v42  ;;  %v2544_v31 = vmul.f32 0.088388346, %v848_v27 }
  0xc5   : > { %v2601_v1 = vmul.f32 0.088388346, %v865_v36 }
  0xc6   : > { %1160 = vmatmul.f32.gmra.mxu3 %v2503_v12  ;;  %1116 = vmatmul.bf16.gmra.mxu2 %v2425_v42 }
  0xc8   : > { %v857_v45 = vpop.f32.mrf.mxu2 }
  0xc9   : > { %v839_v13 = vpop.f32.mrf.mxu0  ;;  %v849_v15 = vpop.f32.mrf.mxu1  ;;  %v858_v48 = vadd.f32 %v2490_v0, %v857_v45 }
  0xca   : > { %v840_v16 = vadd.f32 %v2490_v0, %v839_v13  ;;  %v850_v32 = vadd.f32 %v2490_v0, %v849_v15  ;;  %v867_v63 = vpop.f32.mrf.mxu3 }
  0xcb   : > { %v2575_v50 = vmul.f32 0.088388346, %v858_v48  ;;  %v868_v3 = vadd.f32 %v2490_v0, %v867_v63 }
  0xcc   : > { %v2509_v17 = vmul.f32 0.088388346, %v840_v16  ;;  %v2553_v37 = vmul.f32 0.088388346, %v850_v32 }
  0xcd   : > { %v2609_v6 = vmul.f32 0.088388346, %v868_v3 }
  0xce   : > { %1163 = vmatmul.f32.gmra.mxu3 %v2509_v17 }
  0xd0   : > { %v859_v33 = vpop.f32.mrf.mxu2 }
  0xd1   : > { %v965_v19 = vpop.f32.mrf.mxu1  ;;  %v860_v53 = vadd.f32 %v2490_v0, %v859_v33 }
  0xd2   : > { %v2525_v20 = vadd.f32 %v2521_v18, %v965_v19  ;;  %v869_v7 = vpop.f32.mrf.mxu3 }
  0xd3   : > { %v2584_v55 = vmul.f32 0.088388346, %v860_v53  ;;  %v870_v9 = vadd.f32 %v2490_v0, %v869_v7  ;;  %v2632_v0 = vld [vmem:[%s640_s4] ss:$0 sm:$0xff]  ;;  %s1784_s4 = sshll.u32 %s2846_s17, 3 }
  0xd4   : > { %1299 = vmatmul.f32.vlgmr.msrb.gmra.mxu0 %v2525_v20  ;;  %s2656_s16 = scalar_lea.vmem %s2808_s2, %s1784_s4  ;;  %s2662_s18 = scalar_lea.vmem %s2807_s1, %s1784_s4 }
  0xd5   : > { %v2617_v11 = vmul.f32 0.088388346, %v870_v9  ;;  %v723_v38 = vld [vmem:[%s2656_s16] sm:$0xff]  ;;  %v724_v28 = vld [vmem:[%s2656_s16 + $0x8] sm:$0xff]  ;;  %v725_v7 = vld [vmem:[%s2656_s16 + $0x10] sm:$0xff]  ;;  %s2705_s4 = scalar_lea.vmem %s2817_s11, %s2639_s14 }
  0xd6   : > { %1166 = vmatmul.f32.gmra.mxu3 %v2527_v21  ;;  %v707_v39 = vld [vmem:[%s2662_s18] sm:$0xff]  ;;  %v709_v9 = vld [vmem:[%s2662_s18 + $0x10] sm:$0xff] }
  0xd7   : > { %v1122_v45 = vmul.f32 %v2493_v4, %v707_v39 }
  0xd9   : > { %v967_v23 = vpop.f32.mrf.mxu1  ;;  %v1082_v15 = vpop.f32.mrf.mxu2 }
  0xda   : > { %v2534_v25 = vadd.f32 %v2521_v18, %v967_v23  ;;  %v1083_v19 = vadd.f32 %v2632_v0, %v1082_v15  ;;  %v726_v15 = vld [vmem:[%s2656_s16 + $0x18] sm:$0xff] }
  0xdc   : > { %1302 = vmatmul.f32.gmra.mxu0 %v2534_v25 }
  0xde   : > { %1169 = vmatmul.f32.gmra.mxu3 %v2536_v26 }
  0xe1   : > { %v970_v29 = vpop.f32.mrf.mxu1  ;;  %v1084_v22 = vpop.f32.mrf.mxu2 }
  0xe2   : > { %v2542_v30 = vadd.f32 %v2521_v18, %v970_v29  ;;  %v1085_v23 = vadd.f32 %v2632_v0, %v1084_v22 }
  0xe4   : > { %1305 = vmatmul.f32.gmra.mxu0 %v2542_v30  ;;  %v2013_v27 = vpack.c.bf16 %v1085_v23, %v1083_v19  ;;  %v1124_v23 = vmul.f32 %v2503_v12, %v709_v9 }
  0xe6   : > { %1172 = vmatmul.f32.gmra.mxu3 %v2544_v31  ;;  %2014 = vst [vmem:[%s2646_s21] sm:$0xff] %v2013_v27  }
  0xe9   : > { %v972_v34 = vpop.f32.mrf.mxu1 }
  0xea   : > { %v2551_v35 = vadd.f32 %v2521_v18, %v972_v34  ;;  %v1087_v34 = vpop.f32.mrf.mxu2 }
  0xec   : > { %1308 = vmatmul.f32.gmra.mxu0 %v2551_v35 }
  0xee   : > { %1175 = vmatmul.f32.gmra.mxu3 %v2553_v37 }
  0xf1   : > { %v975_v40 = vpop.f32.mrf.mxu1 }
  0xf2   : > { %v2561_v43 = vadd.f32 %v2521_v18, %v975_v40  ;;  %v708_v40 = vld [vmem:[%s2662_s18 + $0x8] sm:$0xff]  ;;  %v1089_v57 = vpop.f32.mrf.mxu2 }
  0xf3   : > { %v1123_v33 = vmul.f32 %v2499_v8, %v708_v40  ;;  %v1090_v4 = vadd.f32 %v2632_v0, %v1089_v57 }
  0xf4   : > { %1311 = vmatmul.f32.gmra.mxu0 %v2561_v43 }
  0xf6   : > { %1178 = vmatmul.f32.gmra.mxu3 %v2558_v41 }
  0xf9   : > { %v977_v44 = vpop.f32.mrf.mxu1 }
  0xfa   : > { %v2570_v47 = vadd.f32 %v2521_v18, %v977_v44 }
  0xfc   : > { %1314 = vmatmul.f32.gmra.mxu0 %v2570_v47 }
  0xfe   : > { %1181 = vmatmul.f32.gmra.mxu3 %v2567_v46 }
 0x101   : > { %v980_v49 = vpop.f32.mrf.mxu1 }
 0x102   : > { %v2578_v51 = vadd.f32 %v2521_v18, %v980_v49 }
 0x104   : > { %1317 = vmatmul.f32.gmra.mxu0 %v2578_v51 }
 0x106   : > { %1184 = vmatmul.f32.gmra.mxu3 %v2575_v50 }
 0x109   : > { %v982_v54 = vpop.f32.mrf.mxu1 }
 0x10a   : > { %v2587_v56 = vadd.f32 %v2521_v18, %v982_v54  ;;  %v1088_v54 = vadd.f32 %v2632_v0, %v1087_v34 }
 0x10c   : > { %1320 = vmatmul.f32.gmra.mxu0 %v2587_v56  ;;  %v2018_v36 = vpack.c.bf16 %v1090_v4, %v1088_v54  ;;  %v1268_v54 = vmul.f32 %v2534_v25, %v708_v40 }
 0x10e   : > { %1187 = vmatmul.f32.gmra.mxu3 %v2584_v55  ;;  %2064 = vst [vmem:[%s2646_s21 + $0x8] sm:$0xff] %v2018_v36  }
 0x111   : > { %v985_v59 = vpop.f32.mrf.mxu1 }
 0x112   : > { %v2595_v61 = vadd.f32 %v2521_v18, %v985_v59 }
 0x114   : > { %1323 = vmatmul.f32.gmra.mxu0 %v2595_v61 }
 0x116   : > { %1190 = vmatmul.f32.gmra.mxu3 %v2592_v60 }
 0x119   : > { %v987_v62 = vpop.f32.mrf.mxu1 }
 0x11a   : > { %v2604_v2 = vadd.f32 %v2521_v18, %v987_v62 }
 0x11c   : > { %1326 = vmatmul.f32.gmra.mxu0 %v2604_v2 }
 0x11e   : > { %1193 = vmatmul.f32.gmra.mxu3 %v2601_v1 }
 0x121   : > { %v990_v5 = vpop.f32.mrf.mxu1 }
 0x122   : > { %v2612_v42 = vadd.f32 %v2521_v18, %v990_v5  ;;  %v1092_v5 = vpop.f32.mrf.mxu2 }
 0x124   : > { %1329 = vmatmul.f32.gmra.mxu0 %v2612_v42 }
 0x126   : > { %1196 = vmatmul.f32.gmra.mxu3 %v2609_v6 }
 0x129   : > { %v992_v10 = vpop.f32.mrf.mxu1 }
 0x12a   : > { %v2620_v13 = vadd.f32 %v2521_v18, %v992_v10  ;;  %v710_v10 = vld [vmem:[%s2662_s18 + $0x18] sm:$0xff] }
 0x12b   : > { %v1125_v27 = vmul.f32 %v2509_v17, %v710_v10  ;;  %v1267_v17 = vmul.f32 %v2525_v20, %v707_v39 }
 0x12c   : > { %1332 = vmatmul.f32.gmra.mxu0 %v2620_v13 }
 0x12e   : > { %1199 = vmatmul.f32.gmra.mxu3 %v2617_v11 }
 0x131   : > { %v995_v16 = vpop.f32.mrf.mxu1 }
 0x132   : > { %v2635_v14 = vadd.f32 %v2521_v18, %v995_v16 }
 0x134   : > { %1335 = vmatmul.f32.gmra.mxu0 %v2635_v14 }
 0x139   : > { %v997_v29 = vpop.f32.mrf.mxu1  ;;  %v1155_v24 = vpop.f32.mrf.mxu3 }
 0x13a   : > { %v2651_v32 = vadd.f32 %v2521_v18, %v997_v29  ;;  %v1203_v44 = vmul.f32 %v1155_v24, %v723_v38  ;;  %v1094_v24 = vpop.f32.mrf.mxu2 }
 0x13c   : > { %1338 = vmatmul.f32.gmra.mxu0 %v2651_v32  ;;  %v1219_v58 = vadd.f32 %v1203_v44, %v1122_v45  ;;  %v1095_v45 = vadd.f32 %v2632_v0, %v1094_v24 }
 0x141   : > { %v1000_v48 = vpop.f32.mrf.mxu1  ;;  %v1158_v49 = vpop.f32.mrf.mxu3 }
 0x142   : > { %v2671_v52 = vadd.f32 %v2521_v18, %v1000_v48  ;;  %v1204_v53 = vmul.f32 %v1158_v49, %v724_v28 }
 0x144   : > { %v1220_v59 = vadd.f32 %v1204_v53, %v1123_v33  ;;  %1341 = vmatmul.f32.gmra.mxu0 %v2671_v52 }
 0x146   : > { %v1933_v8 = vpack.c.bf16 %v1220_v59, %v1219_v58  ;;  %v1097_v58 = vpop.f32.mrf.mxu2 }
 0x148   : > { %1934 = vst [vmem:[%s2680_s19] sm:$0xff] %v1933_v8   ;;  %v727_v8 = vld [vmem:[%s2656_s16 + $0x20] sm:$0xff] }
 0x149   : > { %v1002_v62 = vpop.f32.mrf.mxu1  ;;  %v1161_v63 = vpop.f32.mrf.mxu3 }
 0x14a   : > { %v2685_v3 = vadd.f32 %v2521_v18, %v1002_v62  ;;  %v1205_v16 = vmul.f32 %v1161_v63, %v725_v7  ;;  %v1093_v18 = vadd.f32 %v2632_v0, %v1092_v5  ;;  %v712_v62 = vld [vmem:[%s2662_s18 + $0x28] sm:$0xff] }
 0x14b   : > { %v728_v63 = vld [vmem:[%s2656_s16 + $0x28] sm:$0xff]  ;;  %v1127_v40 = vmul.f32 %v2536_v26, %v712_v62  ;;  %v1269_v26 = vmul.f32 %v2542_v30, %v709_v9 }
 0x14c   : > { %1344 = vmatmul.f32.gmra.mxu0 %v2685_v3  ;;  %v1221_v34 = vadd.f32 %v1205_v16, %v1124_v23  ;;  %v2023_v49 = vpack.c.bf16 %v1095_v45, %v1093_v18  ;;  %v1098_v16 = vadd.f32 %v2632_v0, %v1097_v58 }
 0x14e   : > { %2065 = vst [vmem:[%s2646_s21 + $0x10] sm:$0xff] %v2023_v49  }
 0x151   : > { %v1164_v19 = vpop.f32.mrf.mxu3  ;;  %v1300_v22 = vpop.f32.mrf.mxu0 }
 0x152   : > { %v1206_v29 = vmul.f32 %v1164_v19, %v726_v15  ;;  %v1348_v33 = vmul.f32 %v1300_v22, %v723_v38  ;;  %v711_v38 = vld [vmem:[%s2662_s18 + $0x20] sm:$0xff]  ;;  %v1099_v19 = vpop.f32.mrf.mxu2 }
 0x153   : > { %v1126_v39 = vmul.f32 %v2527_v21, %v711_v38 }
 0x154   : > { %v1222_v44 = vadd.f32 %v1206_v29, %v1125_v27  ;;  %v1364_v59 = vadd.f32 %v1348_v33, %v1267_v17  ;;  %v1100_v27 = vadd.f32 %v2632_v0, %v1099_v19  ;;  %v713_v17 = vld [vmem:[%s2662_s18 + $0x30] sm:$0xff] }
 0x156   : > { %v1938_v48 = vpack.c.bf16 %v1222_v44, %v1221_v34  ;;  %v2028_v18 = vpack.c.bf16 %v1100_v27, %v1098_v16  ;;  %v1270_v44 = vmul.f32 %v2551_v35, %v710_v10  ;;  %v731_v27 = vld [vmem:[%s2656_s16 + $0x40] sm:$0xff] }
 0x158   : > { %2050 = vst [vmem:[%s2680_s19 + $0x8] sm:$0xff] %v1938_v48  }
 0x159   : > { %v1167_v12 = vpop.f32.mrf.mxu3  ;;  %v1303_v53 = vpop.f32.mrf.mxu0  ;;  %2066 = vst [vmem:[%s2646_s21 + $0x18] sm:$0xff] %v2028_v18   ;;  %v715_v18 = vld [vmem:[%s2662_s18 + $0x40] sm:$0xff] }
 0x15a   : > { %v1349_v57 = vmul.f32 %v1303_v53, %v724_v28  ;;  %v1207_v5 = vmul.f32 %v1167_v12, %v727_v8  ;;  %v1102_v48 = vpop.f32.mrf.mxu2  ;;  %v729_v12 = vld [vmem:[%s2656_s16 + $0x30] sm:$0xff] }
 0x15b   : > { %v1103_v9 = vadd.f32 %v2632_v0, %v1102_v48 }
 0x15c   : > { %v1365_v4 = vadd.f32 %v1349_v57, %v1268_v54  ;;  %v1223_v22 = vadd.f32 %v1207_v5, %v1126_v39  ;;  %v714_v54 = vld [vmem:[%s2662_s18 + $0x38] sm:$0xff] }
 0x15d   : > { %v730_v57 = vld [vmem:[%s2656_s16 + $0x38] sm:$0xff]  ;;  %v1129_v30 = vmul.f32 %v2553_v37, %v714_v54  ;;  %v1271_v37 = vmul.f32 %v2561_v43, %v711_v38 }
 0x15e   : > { %v1973_v36 = vpack.c.bf16 %v1365_v4, %v1364_v59  ;;  %v1128_v4 = vmul.f32 %v2544_v31, %v713_v17 }
 0x160   : > { %1974 = vst [vmem:[%s2705_s4] sm:$0xff] %v1973_v36  }
 0x161   : > { %v1170_v20 = vpop.f32.mrf.mxu3  ;;  %v1306_v25 = vpop.f32.mrf.mxu0 }
 0x162   : > { %v1208_v28 = vmul.f32 %v1170_v20, %v728_v63  ;;  %v1350_v24 = vmul.f32 %v1306_v25, %v725_v7  ;;  %v1104_v10 = vpop.f32.mrf.mxu2 }
 0x163   : > { %v1105_v5 = vadd.f32 %v2632_v0, %v1104_v10 }
 0x164   : > { %v1224_v23 = vadd.f32 %v1208_v28, %v1127_v40  ;;  %v1366_v49 = vadd.f32 %v1350_v24, %v1269_v26  ;;  %v1272_v28 = vmul.f32 %v2570_v47, %v712_v62  ;;  %v716_v24 = vld [vmem:[%s2662_s18 + $0x48] sm:$0xff] }
 0x165   : > { %v2033_v25 = vpack.c.bf16 %v1105_v5, %v1103_v9  ;;  %v1131_v43 = vmul.f32 %v2567_v46, %v716_v24  ;;  %v1273_v46 = vmul.f32 %v2578_v51, %v713_v17  ;;  %v733_v9 = vld [vmem:[%s2656_s16 + $0x50] sm:$0xff]  ;;  %v734_v5 = vld [vmem:[%s2656_s16 + $0x58] sm:$0xff] }
 0x166   : > { %v1943_v29 = vpack.c.bf16 %v1224_v23, %v1223_v22 }
 0x167   : > { %2067 = vst [vmem:[%s2646_s21 + $0x20] sm:$0xff] %v2033_v25  }
 0x168   : > { %2051 = vst [vmem:[%s2680_s19 + $0x10] sm:$0xff] %v1943_v29  }
 0x169   : > { %v1173_v21 = vpop.f32.mrf.mxu3  ;;  %v1309_v34 = vpop.f32.mrf.mxu0 }
 0x16a   : > { %v1351_v45 = vmul.f32 %v1309_v34, %v726_v15  ;;  %v1209_v58 = vmul.f32 %v1173_v21, %v729_v12  ;;  %v1107_v19 = vpop.f32.mrf.mxu2  ;;  %v732_v21 = vld [vmem:[%s2656_s16 + $0x48] sm:$0xff] }
 0x16b   : > { %v1108_v38 = vadd.f32 %v2632_v0, %v1107_v19 }
 0x16c   : > { %v1367_v33 = vadd.f32 %v1351_v45, %v1270_v44  ;;  %v1225_v15 = vadd.f32 %v1209_v58, %v1128_v4  ;;  %v1130_v44 = vmul.f32 %v2558_v41, %v715_v18 }
 0x16e   : > { %v1978_v53 = vpack.c.bf16 %v1367_v33, %v1366_v49 }
 0x170   : > { %2057 = vst [vmem:[%s2705_s4 + $0x8] sm:$0xff] %v1978_v53  }
 0x171   : > { %v1176_v7 = vpop.f32.mrf.mxu3  ;;  %v1312_v59 = vpop.f32.mrf.mxu0 }
 0x172   : > { %v1210_v35 = vmul.f32 %v1176_v7, %v730_v57  ;;  %v1352_v39 = vmul.f32 %v1312_v59, %v727_v8  ;;  %v1109_v62 = vpop.f32.mrf.mxu2  ;;  %v1274_v7 = vmul.f32 %v2587_v56, %v714_v54 }
 0x173   : > { %v1110_v48 = vadd.f32 %v2632_v0, %v1109_v62 }
 0x174   : > { %v1226_v36 = vadd.f32 %v1210_v35, %v1129_v30  ;;  %v1368_v22 = vadd.f32 %v1352_v39, %v1271_v37 }
 0x175   : > { %v2038_v33 = vpack.c.bf16 %v1110_v48, %v1108_v38  ;;  %v736_v38 = vld [vmem:[%s2656_s16 + $0x68] sm:$0xff] }
 0x176   : > { %v1948_v20 = vpack.c.bf16 %v1226_v36, %v1225_v15  ;;  %v717_v15 = vld [vmem:[%s2662_s18 + $0x50] sm:$0xff]  ;;  %v718_v36 = vld [vmem:[%s2662_s18 + $0x58] sm:$0xff] }
 0x177   : > { %2068 = vst [vmem:[%s2646_s21 + $0x28] sm:$0xff] %v2038_v33   ;;  %v1132_v39 = vmul.f32 %v2575_v50, %v717_v15  ;;  %v1133_v51 = vmul.f32 %v2584_v55, %v718_v36  ;;  %v1275_v55 = vmul.f32 %v2595_v61, %v715_v18 }
 0x178   : > { %2052 = vst [vmem:[%s2680_s19 + $0x18] sm:$0xff] %v1948_v20  }
 0x179   : > { %v1179_v31 = vpop.f32.mrf.mxu3  ;;  %v1315_v40 = vpop.f32.mrf.mxu0 }
 0x17a   : > { %v1353_v16 = vmul.f32 %v1315_v40, %v728_v63  ;;  %v1211_v34 = vmul.f32 %v1179_v31, %v731_v27  ;;  %v1112_v4 = vpop.f32.mrf.mxu2 }
 0x17b   : > { %v1113_v17 = vadd.f32 %v2632_v0, %v1112_v4 }
 0x17c   : > { %v1369_v23 = vadd.f32 %v1353_v16, %v1272_v28  ;;  %v1227_v63 = vadd.f32 %v1211_v34, %v1130_v44 }
 0x17e   : > { %v1983_v29 = vpack.c.bf16 %v1369_v23, %v1368_v22  ;;  %v1276_v22 = vmul.f32 %v2604_v2, %v716_v24 }
 0x180   : > { %2058 = vst [vmem:[%s2705_s4 + $0x10] sm:$0xff] %v1983_v29  }
 0x181   : > { %v1182_v8 = vpop.f32.mrf.mxu3  ;;  %v1318_v26 = vpop.f32.mrf.mxu0 }
 0x182   : > { %v1212_v47 = vmul.f32 %v1182_v8, %v732_v21  ;;  %v1354_v53 = vmul.f32 %v1318_v26, %v729_v12  ;;  %v1114_v54 = vpop.f32.mrf.mxu2  ;;  %v735_v26 = vld [vmem:[%s2656_s16 + $0x60] sm:$0xff] }
 0x183   : > { %v1115_v40 = vadd.f32 %v2632_v0, %v1114_v54 }
 0x184   : > { %v1228_v45 = vadd.f32 %v1212_v47, %v1131_v43  ;;  %v1370_v30 = vadd.f32 %v1354_v53, %v1273_v46  ;;  %v719_v43 = vld [vmem:[%s2662_s18 + $0x60] sm:$0xff]  ;;  %v720_v47 = vld [vmem:[%s2662_s18 + $0x68] sm:$0xff]  ;;  %v1278_v46 = vmul.f32 %v2620_v13, %v718_v36 }
 0x185   : > { %v2043_v28 = vpack.c.bf16 %v1115_v40, %v1113_v17  ;;  %v1135_v61 = vmul.f32 %v2601_v1, %v720_v47  ;;  %v1277_v1 = vmul.f32 %v2612_v42, %v717_v15  ;;  %v1279_v17 = vmul.f32 %v2635_v14, %v719_v43 }
 0x186   : > { %v1953_v49 = vpack.c.bf16 %v1228_v45, %v1227_v63  ;;  %v1134_v45 = vmul.f32 %v2592_v60, %v719_v43  ;;  %v1280_v54 = vmul.f32 %v2651_v32, %v720_v47 }
 0x187   : > { %2069 = vst [vmem:[%s2646_s21 + $0x30] sm:$0xff] %v2043_v28  }
 0x188   : > { %2053 = vst [vmem:[%s2680_s19 + $0x20] sm:$0xff] %v1953_v49  }
 0x189   : > { %v1185_v41 = vpop.f32.mrf.mxu3  ;;  %v1321_v58 = vpop.f32.mrf.mxu0 }
 0x18a   : > { %v1355_v59 = vmul.f32 %v1321_v58, %v730_v57  ;;  %v1213_v20 = vmul.f32 %v1185_v41, %v733_v9  ;;  %v1117_v29 = vpop.f32.mrf.mxu2 }
 0x18b   : > { %v1118_v18 = vadd.f32 %v2632_v0, %v1117_v29 }
 0x18c   : > { %v1371_v35 = vadd.f32 %v1355_v59, %v1274_v7  ;;  %v1229_v57 = vadd.f32 %v1213_v20, %v1132_v39  ;;  %v738_v20 = vld [vmem:[%s2656_s16 + $0x78] sm:$0xff] }
 0x18e   : > { %v1988_v10 = vpack.c.bf16 %v1371_v35, %v1370_v30  ;;  %v737_v30 = vld [vmem:[%s2656_s16 + $0x70] sm:$0xff] }
 0x18f   : > { %v721_v35 = vld [vmem:[%s2662_s18 + $0x70] sm:$0xff] }
 0x190   : > { %2059 = vst [vmem:[%s2705_s4 + $0x18] sm:$0xff] %v1988_v10   ;;  %v722_v10 = vld [vmem:[%s2662_s18 + $0x78] sm:$0xff]  ;;  %v1136_v39 = vmul.f32 %v2609_v6, %v721_v35 }
 0x191   : > { %v1188_v12 = vpop.f32.mrf.mxu3  ;;  %v1324_v25 = vpop.f32.mrf.mxu0  ;;  %v1137_v42 = vmul.f32 %v2617_v11, %v722_v10 }
 0x192   : > { %v1214_v56 = vmul.f32 %v1188_v12, %v734_v5  ;;  %v1356_v16 = vmul.f32 %v1324_v25, %v731_v27  ;;  %v1119_v24 = vpop.f32.mrf.mxu2 }
 0x193   : > { %v1120_v49 = vadd.f32 %v2632_v0, %v1119_v24 }
 0x194   : > { %v1230_v31 = vadd.f32 %v1214_v56, %v1133_v51  ;;  %v1372_v34 = vadd.f32 %v1356_v16, %v1275_v55  ;;  %v1281_v16 = vmul.f32 %v2671_v52, %v721_v35 }
 0x195   : > { %v2048_v53 = vpack.c.bf16 %v1120_v49, %v1118_v18 }
 0x196   : > { %v1958_v37 = vpack.c.bf16 %v1230_v31, %v1229_v57 }
 0x197   : > { %2070 = vst [vmem:[%s2646_s21 + $0x38] sm:$0xff] %v2048_v53  }
 0x198   : > { %2054 = vst [vmem:[%s2680_s19 + $0x28] sm:$0xff] %v1958_v37  }
 0x199   : > { %v1191_v50 = vpop.f32.mrf.mxu3  ;;  %v1327_v19 = vpop.f32.mrf.mxu0 }
 0x19a   : > { %v1357_v23 = vmul.f32 %v1327_v19, %v732_v21  ;;  %v1215_v62 = vmul.f32 %v1191_v50, %v735_v26  ;;  %v1282_v50 = vmul.f32 %v2685_v3, %v722_v10 }
 0x19c   : > { %v1373_v8 = vadd.f32 %v1357_v23, %v1276_v22  ;;  %v1231_v21 = vadd.f32 %v1215_v62, %v1134_v45 }
 0x19e   : > { %v1993_v44 = vpack.c.bf16 %v1373_v8, %v1372_v34 }
 0x1a0   : > { %2060 = vst [vmem:[%s2705_s4 + $0x20] sm:$0xff] %v1993_v44  }
 0x1a1   : > { %v1194_v27 = vpop.f32.mrf.mxu3  ;;  %v1330_v63 = vpop.f32.mrf.mxu0 }
 0x1a2   : > { %v1216_v2 = vmul.f32 %v1194_v27, %v736_v38  ;;  %v1358_v41 = vmul.f32 %v1330_v63, %v733_v9 }
 0x1a4   : > { %v1232_v48 = vadd.f32 %v1216_v2, %v1135_v61  ;;  %v1374_v59 = vadd.f32 %v1358_v41, %v1277_v1 }
 0x1a6   : > { %v1963_v33 = vpack.c.bf16 %v1232_v48, %v1231_v21 }
 0x1a8   : > { %2055 = vst [vmem:[%s2680_s19 + $0x30] sm:$0xff] %v1963_v33  }
 0x1a9   : > { %v1197_v60 = vpop.f32.mrf.mxu3  ;;  %v1333_v58 = vpop.f32.mrf.mxu0 }
 0x1aa   : > { %v1359_v7 = vmul.f32 %v1333_v58, %v734_v5  ;;  %v1217_v12 = vmul.f32 %v1197_v60, %v737_v30 }
 0x1ac   : > { %v1375_v4 = vadd.f32 %v1359_v7, %v1278_v46  ;;  %v1233_v13 = vadd.f32 %v1217_v12, %v1136_v39 }
 0x1ae   : > { %v1998_v0 = vpack.c.bf16 %v1375_v4, %v1374_v59 }
 0x1b0   : > { %2061 = vst [vmem:[%s2705_s4 + $0x28] sm:$0xff] %v1998_v0  }
 0x1b1   : > { %v1200_v25 = vpop.f32.mrf.mxu3  ;;  %v1336_v9 = vpop.f32.mrf.mxu0 }
 0x1b2   : > { %v1218_v15 = vmul.f32 %v1200_v25, %v738_v20  ;;  %v1360_v51 = vmul.f32 %v1336_v9, %v735_v26 }
 0x1b4   : > { %v1234_v36 = vadd.f32 %v1218_v15, %v1137_v42  ;;  %v1376_v31 = vadd.f32 %v1360_v51, %v1279_v17 }
 0x1b6   : > { %v1968_v5 = vpack.c.bf16 %v1234_v36, %v1233_v13 }
 0x1b8   : > { %2056 = vst [vmem:[%s2680_s19 + $0x38] sm:$0xff] %v1968_v5  }
 0x1b9   : > { %v1339_v56 = vpop.f32.mrf.mxu0 }
 0x1ba   : > { %v1361_v57 = vmul.f32 %v1339_v56, %v736_v38 }
 0x1bc   : > { %v1377_v40 = vadd.f32 %v1361_v57, %v1280_v54 }
 0x1be   : > { %v2003_v37 = vpack.c.bf16 %v1377_v40, %v1376_v31 }
 0x1c0   : > { %2062 = vst [vmem:[%s2705_s4 + $0x30] sm:$0xff] %v2003_v37  }
 0x1c1   : > { %v1342_v6 = vpop.f32.mrf.mxu0 }
 0x1c2   : > { %v1362_v28 = vmul.f32 %v1342_v6, %v737_v30 }
 0x1c4   : > { %v1378_v55 = vadd.f32 %v1362_v28, %v1281_v16 }
 0x1c9   : > { %v1345_v11 = vpop.f32.mrf.mxu0 }
 0x1ca   : > { %v1363_v19 = vmul.f32 %v1345_v11, %v738_v20 }
 0x1cc   : > { %v1379_v22 = vadd.f32 %v1363_v19, %v1282_v50 }
 0x1ce   : > { %v2008_v23 = vpack.c.bf16 %v1379_v22, %v1378_v55 }
 0x1d0   : > { %2063 = vst [vmem:[%s2705_s4 + $0x38] sm:$0xff] %v2008_v23  }
 0x1d1 PF: > { %s23_s27 = sadd.s32 1, %s2208_s27   ;;  %s2823_s14 = sld [smem:[#allocation2_spill]] }
 0x1d2   : > { %p20_p9 = scmp.ge.s32.totalorder %s23_s27, 10   ;;  %s2824_s13 = sld [smem:[#allocation3_spill]] }
 0x1d3   : > { %s2825_s21 = smov %s2196_s24  ;;  %s2826_s22 = smov %s2200_s25 }
 0x1d4   : > { %s2827_s23 = smov %s2204_s26  ;;  %s2828_s24 = smov %s2832_s28 }
 0x1d5   :  { %22 = sbr.rel (!%p20_p9) target bundleno = 4 (0x4), region = 138 }
 0x1d7   : > { %s2829_s25 = smov %s2823_s14 }
 0x1d8   : > { %s2830_s26 = smov %s2824_s13 }

// kernel: glm_forward.8
= control target key start
LH: loop header
LB: loop body
LE: loop exit
PB: predicated region body
PF: predicated region fallthrough
CT: control target
= control target key end

     0   :  { %s2110_s12 = smov 0   ;;  %s2112_s13 = smov 0   ;;  %s2686_s0 = inlined_call_operand.vmem [shape: bf16[2,2,256,128], index: 0, kind: input, shape index: {}]   ;;  %s2687_s1 = inlined_call_operand.vmem [shape: bf16[2,2,256,128], index: 1, kind: input, shape index: {}]   ;;  %s2688_s2 = inlined_call_operand.vmem [shape: bf16[2,2,256,128], index: 2, kind: input, shape index: {}]   ;;  %s2689_s3 = inlined_call_operand.vmem [shape: bf16[2,2,256,128], index: 3, kind: output, shape index: {}]  }
   0x1   :  { %s2114_s14 = smov 0   ;;  %s2116_s15 = smov 0  }
   0x2   :  { %s2118_s16 = smov 0   ;;  %s2120_s17 = smov 0  }
   0x3   :  { %s2122_s18 = smov 0   ;;  %s2124_s19 = smov 0  }
   0x4   :  { %s2126_s20 = smov 0  }
   0x5 LB: > { %s28_s21 = sadd.s32 1, %s2068_s16  ;;  %s31_s22 = sadd.s32 1, %s2072_s17  ;;  %s2084_s20 = sphi %s2126_s20, %s13_s20   ;;  %s2080_s19 = sphi %s2124_s19, %s2701_s19   ;;  %s2076_s18 = sphi %s2122_s18, %s2700_s18   ;;  %s2072_s17 = sphi %s2120_s17, %s2699_s17   ;;  %s2068_s16 = sphi %s2118_s16, %s2698_s16   ;;  %s2064_s15 = sphi %s2116_s15, %s2697_s15   ;;  %s2060_s14 = sphi %s2114_s14, %s2696_s14   ;;  %s2056_s13 = sphi %s2112_s13, %s2695_s13   ;;  %s2052_s12 = sphi %s2110_s12, %s2694_s12  }
   0x6   : > { %p29_p0 = scmp.ge.s32.totalorder %s28_s21, 2  ;;  %p1629_p1 = scmp.ge.s32.totalorder %s2084_s20, 1 }
   0x7   : > { %p226_p2 = scmp.lt.s32.totalorder %s2084_s20, 17  ;;  %s35_s23 = sadd.s32 1, %s2076_s18 }
   0x8   : > { %s2703_s21 = smov (%p29_p0, %s28_s21), 0  ;;  %s2705_s22 = smov (!%p29_p0, %s31_s22), %s2072_s17 }
   0x9   : > { %p33_p3 = scmp.ge.s32.totalorder %s2705_s22, 2  ;;  %p227_p4 = pnand %p1629_p1, %p226_p2 }
   0xa   : > { %s39_s24 = sadd.s32 1, %s2080_s19  ;;  %s1630_s25 = sshll.u32 (!%p227_p4), %s2056_s13, 4 }
   0xb   : > { %s2707_s22 = smov (%p33_p3, %s2705_s22), 0  ;;  %s2709_s23 = smov (!%p33_p3, %s35_s23), %s2076_s18 }
   0xc   : > { %p37_p5 = scmp.ge.s32.totalorder %s2709_s23, 2  ;;  %p293_p7 = scmp.lt.s32.totalorder (!%p227_p4), %s2064_s15, 1 }
   0xd   : > { %p295_p8 = scmp.lt.s32.totalorder (!%p227_p4), %s2060_s14, 1  ;;  %p297_p9 = scmp.lt.s32.totalorder (!%p227_p4), %s1630_s25, 31 }
   0xe   : > { %s2711_s23 = smov (%p37_p5, %s2709_s23), 0  ;;  %s2713_s24 = smov (!%p37_p5, %s39_s24), %s2080_s19 }
   0xf   : > { %2690 = sst [smem:[#allocation5_spill]] %s2711_s23  ;;  %p41_p6 = scmp.ge.s32.totalorder %s2713_s24, 2 }
  0x10   : > { %230 = sbr.rel (%p227_p4) target bundleno = 936 (0x3a8), region = 32  ;;  %s1634_s29 = sshll.u32 (!%p227_p4), %s2052_s12, 4 }
  0x11   : > { %s2715_s24 = smov (%p41_p6, %s2713_s24), 0  ;;  %p311_p10 = scmp.lt.s32.totalorder (!%p227_p4), %s1634_s29, 31 }
  0x12   : > { %2691 = sst [smem:[#allocation6_spill]] %s2715_s24  ;;  %p1646_p11 = scmp.ne.s32.totalorder (!%p227_p4), %s2052_s12, 0 }
  0x15   : > { %s2717_s15 = smov (!%p293_p7, %s2064_s15), 1  ;;  %s2719_s14 = smov (!%p295_p8, %s2060_s14), 1 }
  0x16   : > { %s2721_s25 = smov (!%p297_p9, %s1630_s25), 31  ;;  %s1631_s26 = sshll.u32 %s2719_s14, 5 }
  0x17   : > { %s1632_s27 = sshll.u32 %s2717_s15, 6  ;;  %s300_s28 = sadd.s32 %s1631_s26, %s2721_s25 }
  0x18   : > { %s302_s30 = sadd.s32 %s1632_s27, %s300_s28  ;;  %s2723_s29 = smov (!%p311_p10, %s1634_s29), 31 }
  0x19   : > { %s1633_s4 = sshll.u32 %s302_s30, 2  ;;  %s314_s11 = sadd.s32 %s1631_s26, %s2723_s29 }
  0x1a   : > { %s2177_s7 = scalar_lea.vmem %s2686_s0, %s1633_s4  ;;  %s2182_s10 = scalar_lea.vmem %s2689_s3, %s1633_s4 }
  0x1b   : > { %s316_s24 = sadd.s32 %s1632_s27, %s314_s11  ;;  %351 = sbr.rel (%p1646_p11) target bundleno = 81 (0x51), region = 36 }
  0x1c   : > { %s1637_s14 = sshll.u32 %s316_s24, 2 }
  0x1d   : > { %s2187_s28 = scalar_lea.vmem %s2687_s1, %s1637_s14  ;;  %s2192_s5 = scalar_lea.vmem %s2688_s2, %s1637_s14 }
  0x20   : > { %vm352_vm0 = vcmask 7168   ;;  %v2086_v0 = vmov -inf   ;;  %v2087_v1 = vmov 0.0  }
  0x21   : > { %353 = vst.msk [vmem:[#allocation2] sm:$0xff] %vm352_vm0, %v2086_v0 }
  0x22   : > { %354 = vst.msk [vmem:[#allocation2 + $0x8] sm:$0xff] %vm352_vm0, %v2086_v0 }
  0x23   : > { %355 = vst.msk [vmem:[#allocation2 + $0x10] sm:$0xff] %vm352_vm0, %v2086_v0 }
  0x24   : > { %356 = vst.msk [vmem:[#allocation2 + $0x18] sm:$0xff] %vm352_vm0, %v2086_v0 }
  0x25   : > { %357 = vst.msk [vmem:[#allocation2 + $0x20] sm:$0xff] %vm352_vm0, %v2086_v0 }
  0x26   : > { %358 = vst.msk [vmem:[#allocation2 + $0x28] sm:$0xff] %vm352_vm0, %v2086_v0 }
  0x27   : > { %359 = vst.msk [vmem:[#allocation2 + $0x30] sm:$0xff] %vm352_vm0, %v2086_v0 }
  0x28   : > { %360 = vst.msk [vmem:[#allocation2 + $0x38] sm:$0xff] %vm352_vm0, %v2086_v0 }
  0x29   : > { %361 = vst.msk [vmem:[#allocation2 + $0x40] sm:$0xff] %vm352_vm0, %v2086_v0 }
  0x2a   : > { %362 = vst.msk [vmem:[#allocation2 + $0x48] sm:$0xff] %vm352_vm0, %v2086_v0 }
  0x2b   : > { %363 = vst.msk [vmem:[#allocation2 + $0x50] sm:$0xff] %vm352_vm0, %v2086_v0 }
  0x2c   : > { %364 = vst.msk [vmem:[#allocation2 + $0x58] sm:$0xff] %vm352_vm0, %v2086_v0 }
  0x2d   : > { %365 = vst.msk [vmem:[#allocation2 + $0x60] sm:$0xff] %vm352_vm0, %v2086_v0 }
  0x2e   : > { %366 = vst.msk [vmem:[#allocation2 + $0x68] sm:$0xff] %vm352_vm0, %v2086_v0 }
  0x2f   : > { %367 = vst.msk [vmem:[#allocation2 + $0x70] sm:$0xff] %vm352_vm0, %v2086_v0 }
  0x30   : > { %368 = vst.msk [vmem:[#allocation2 + $0x78] sm:$0xff] %vm352_vm0, %v2086_v0 }
  0x31   : > { %369 = vst.msk [vmem:[#allocation3] sm:$0xff] %vm352_vm0, %v2087_v1 }
  0x32   : > { %370 = vst.msk [vmem:[#allocation3 + $0x8] sm:$0xff] %vm352_vm0, %v2087_v1 }
  0x33   : > { %371 = vst.msk [vmem:[#allocation3 + $0x10] sm:$0xff] %vm352_vm0, %v2087_v1 }
  0x34   : > { %372 = vst.msk [vmem:[#allocation3 + $0x18] sm:$0xff] %vm352_vm0, %v2087_v1 }
  0x35   : > { %373 = vst.msk [vmem:[#allocation3 + $0x20] sm:$0xff] %vm352_vm0, %v2087_v1 }
  0x36   : > { %374 = vst.msk [vmem:[#allocation3 + $0x28] sm:$0xff] %vm352_vm0, %v2087_v1 }
  0x37   : > { %375 = vst.msk [vmem:[#allocation3 + $0x30] sm:$0xff] %vm352_vm0, %v2087_v1 }
  0x38   : > { %376 = vst.msk [vmem:[#allocation3 + $0x38] sm:$0xff] %vm352_vm0, %v2087_v1 }
  0x39   : > { %377 = vst.msk [vmem:[#allocation3 + $0x40] sm:$0xff] %vm352_vm0, %v2087_v1 }
  0x3a   : > { %378 = vst.msk [vmem:[#allocation3 + $0x48] sm:$0xff] %vm352_vm0, %v2087_v1 }
  0x3b   : > { %379 = vst.msk [vmem:[#allocation3 + $0x50] sm:$0xff] %vm352_vm0, %v2087_v1 }
  0x3c   : > { %380 = vst.msk [vmem:[#allocation3 + $0x58] sm:$0xff] %vm352_vm0, %v2087_v1 }
  0x3d   : > { %381 = vst.msk [vmem:[#allocation3 + $0x60] sm:$0xff] %vm352_vm0, %v2087_v1 }
  0x3e   : > { %382 = vst.msk [vmem:[#allocation3 + $0x68] sm:$0xff] %vm352_vm0, %v2087_v1 }
  0x3f   : > { %383 = vst.msk [vmem:[#allocation3 + $0x70] sm:$0xff] %vm352_vm0, %v2087_v1 }
  0x40   : > { %384 = vst.msk [vmem:[#allocation3 + $0x78] sm:$0xff] %vm352_vm0, %v2087_v1 }
  0x41   : > { %385 = vst [vmem:[#allocation4 + $0x30] sm:$0xff] %v2087_v1 }
  0x42   : > { %386 = vst [vmem:[#allocation4] sm:$0xff] %v2087_v1 }
  0x43   : > { %387 = vst [vmem:[#allocation4 + $0x58] sm:$0xff] %v2087_v1 }
  0x44   : > { %388 = vst [vmem:[#allocation4 + $0x18] sm:$0xff] %v2087_v1 }
  0x45   : > { %389 = vst [vmem:[#allocation4 + $0x50] sm:$0xff] %v2087_v1 }
  0x46   : > { %390 = vst [vmem:[#allocation4 + $0x68] sm:$0xff] %v2087_v1 }
  0x47   : > { %391 = vst [vmem:[#allocation4 + $0x8] sm:$0xff] %v2087_v1 }
  0x48   : > { %392 = vst [vmem:[#allocation4 + $0x48] sm:$0xff] %v2087_v1 }
  0x49   : > { %393 = vst [vmem:[#allocation4 + $0x40] sm:$0xff] %v2087_v1 }
  0x4a   : > { %394 = vst [vmem:[#allocation4 + $0x20] sm:$0xff] %v2087_v1 }
  0x4b   : > { %395 = vst [vmem:[#allocation4 + $0x10] sm:$0xff] %v2087_v1 }
  0x4c   : > { %396 = vst [vmem:[#allocation4 + $0x38] sm:$0xff] %v2087_v1 }
  0x4d   : > { %397 = vst [vmem:[#allocation4 + $0x60] sm:$0xff] %v2087_v1 }
  0x4e   : > { %398 = vst [vmem:[#allocation4 + $0x70] sm:$0xff] %v2087_v1 }
  0x4f   : > { %399 = vst [vmem:[#allocation4 + $0x78] sm:$0xff] %v2087_v1 }
  0x50   : > { %400 = vst [vmem:[#allocation4 + $0x28] sm:$0xff] %v2087_v1 }
  0x51 PF: > { %s1647_s23 = sshll.u32 %s2052_s12, 7  ;;  %s1648_s24 = sshll.u32 %s2056_s13, 7 }
  0x52   : > { %s403_s26 = sadd.s32 127, %s1648_s24 }
  0x53   : > { %p1649_p12 = scmp.gt.s32.totalorder %s1647_s23, %s403_s26 }
  0x55   : > { %407 = sbr.rel (%p1649_p12) target bundleno = 759 (0x2f7), region = 40 }
  0x5a   : > { %v1764_v2 = vld [vmem:[%s2187_s28 + $0x38] sm:$0xff]  ;;  %v1763_v3 = vld [vmem:[%s2187_s28 + $0x30] sm:$0xff]  ;;  %v1762_v4 = vld [vmem:[%s2187_s28 + $0x28] sm:$0xff]  ;;  %v601_v18 = vlaneseq  ;;  %v2253_v21 = vstv %s1648_s24 }
  0x5b   : > { %552 = vmatpush.bf16.xpose.msra.mxu0 %v1764_v2  ;;  %1820 = vmatpush.bf16.xpose.msra.mxu2 %v1764_v2  ;;  %v1761_v5 = vld [vmem:[%s2187_s28 + $0x20] sm:$0xff]  ;;  %v1760_v6 = vld [vmem:[%s2187_s28 + $0x18] sm:$0xff]  ;;  %v1759_v7 = vld [vmem:[%s2187_s28 + $0x10] sm:$0xff]  ;;  %v637_v22 = vstv %s1647_s23 }
  0x5c   : > { %v1758_v8 = vld [vmem:[%s2187_s28 + $0x8] sm:$0xff]  ;;  %v1757_v9 = vld [vmem:[%s2187_s28] sm:$0xff]  ;;  %v1752_v11 = vld [vmem:[%s2177_s7 + $0x18] sm:$0xff]  ;;  %v2249_v19 = vshrl.u32 %v601_v18, 7  ;;  %v636_v20 = vand.u32 127, %v601_v18 }
  0x5d   : > { %v1749_v10 = vld [vmem:[%s2177_s7] sm:$0xff]  ;;  %v1750_v12 = vld [vmem:[%s2177_s7 + $0x8] sm:$0xff]  ;;  %v1751_v14 = vld [vmem:[%s2177_s7 + $0x10] sm:$0xff] }
  0x5e   : > { %v1753_v13 = vld [vmem:[%s2177_s7 + $0x20] sm:$0xff]  ;;  %v1754_v15 = vld [vmem:[%s2177_s7 + $0x28] sm:$0xff]  ;;  %v1755_v16 = vld [vmem:[%s2177_s7 + $0x30] sm:$0xff]  ;;  %v619_v23 = vadd.s32 %v2253_v21, %v2249_v19  ;;  %v2259_v24 = vadd.s32 %v637_v22, %v636_v20  ;;  %v608_v25 = vadd.s32 48, %v2249_v19  ;;  %v609_v29 = vadd.s32 56, %v2249_v19 }
  0x5f   : > { %v1756_v17 = vld [vmem:[%s2177_s7 + $0x38] sm:$0xff]  ;;  %v603_v31 = vadd.s32 8, %v2249_v19  ;;  %v604_v36 = vadd.s32 16, %v2249_v19  ;;  %v610_v37 = vadd.s32 64, %v2249_v19  ;;  %v611_v44 = vadd.s32 72, %v2249_v19 }
  0x60   : > { %vm639_vm1 = vcmp.gt.s32.totalorder %v2259_v24, %v619_v23  ;;  %v625_v28 = vadd.s32 %v2253_v21, %v608_v25  ;;  %v626_v33 = vadd.s32 %v2253_v21, %v609_v29  ;;  %v605_v45 = vadd.s32 24, %v2249_v19 }
  0x61   : > { %v620_v35 = vadd.s32 %v2253_v21, %v603_v31  ;;  %v621_v39 = vadd.s32 %v2253_v21, %v604_v36  ;;  %v627_v42 = vadd.s32 %v2253_v21, %v610_v37  ;;  %v606_v48 = vadd.s32 32, %v2249_v19 }
  0x62   : > { %vm645_vm2 = vcmp.gt.s32.totalorder %v2259_v24, %v625_v28  ;;  %vm646_vm3 = vcmp.gt.s32.totalorder %v2259_v24, %v626_v33  ;;  %v628_v51 = vadd.s32 %v2253_v21, %v611_v44  ;;  %v622_v52 = vadd.s32 %v2253_v21, %v605_v45  ;;  %v2355_v28 = vld [vmem:[#allocation2] sm:$0xff] }
  0x63   : > { %553 = vmatpush.bf16.xpose.msra.mxu0 %v1763_v3  ;;  %1821 = vmatpush.bf16.xpose.msra.mxu2 %v1763_v3  ;;  %vm640_vm4 = vcmp.gt.s32.totalorder %v2259_v24, %v620_v35  ;;  %vm641_vm5 = vcmp.gt.s32.totalorder %v2259_v24, %v621_v39  ;;  %vm647_vm6 = vcmp.gt.s32.totalorder %v2259_v24, %v627_v42  ;;  %v612_v54 = vadd.s32 80, %v2249_v19  ;;  %v2374_v35 = vld [vmem:[#allocation2 + $0x8] sm:$0xff]  ;;  %v2391_v42 = vld [vmem:[#allocation2 + $0x10] sm:$0xff] }
  0x64   : > { %v623_v53 = vadd.s32 %v2253_v21, %v606_v48  ;;  %vm648_vm7 = vcmp.gt.s32.totalorder %v2259_v24, %v628_v51  ;;  %vm642_vm8 = vcmp.gt.s32.totalorder %v2259_v24, %v622_v52  ;;  %v607_v56 = vadd.s32 40, %v2249_v19  ;;  %v2406_v51 = vld [vmem:[#allocation2 + $0x48] sm:$0xff]  ;;  %v674_v52 = vld [vmem:[#allocation2 + $0x18] sm:$0xff] }
  0x65   : > { %v629_v60 = vadd.s32 %v2253_v21, %v612_v54  ;;  %v613_v0 = vadd.s32 88, %v2249_v19 }
  0x66   : > { %vm643_vm9 = vcmp.gt.s32.totalorder %v2259_v24, %v623_v53  ;;  %v624_v62 = vadd.s32 %v2253_v21, %v607_v56 }
  0x67   : > { %vm649_vm10 = vcmp.gt.s32.totalorder %v2259_v24, %v629_v60 }
  0x68   : > { %vm644_vm11 = vcmp.gt.s32.totalorder %v2259_v24, %v624_v62 }
  0x6b   : > { %554 = vmatpush.bf16.xpose.msra.mxu0 %v1762_v4  ;;  %1822 = vmatpush.bf16.xpose.msra.mxu2 %v1762_v4  ;;  %v630_v4 = vadd.s32 %v2253_v21, %v613_v0 }
  0x6d   : > { %vm650_vm12 = vcmp.gt.s32.totalorder %v2259_v24, %v630_v4 }
  0x73   : > { %555 = vmatpush.bf16.xpose.msra.mxu0 %v1761_v5  ;;  %1823 = vmatpush.bf16.xpose.msra.mxu2 %v1761_v5  ;;  %v614_v5 = vadd.s32 96, %v2249_v19 }
  0x7b   : > { %556 = vmatpush.bf16.xpose.msra.mxu0 %v1760_v6  ;;  %1824 = vmatpush.bf16.xpose.msra.mxu2 %v1760_v6 }
  0x83   : > { %557 = vmatpush.bf16.xpose.msra.mxu0 %v1759_v7  ;;  %1825 = vmatpush.bf16.xpose.msra.mxu2 %v1759_v7  ;;  %v631_v7 = vadd.s32 %v2253_v21, %v614_v5 }
  0x85   : > { %vm651_vm13 = vcmp.gt.s32.totalorder %v2259_v24, %v631_v7  ;;  %v2438_v7 = vld [vmem:[#allocation2 + $0x58] sm:$0xff] }
  0x8b   : > { %558 = vmatpush.bf16.xpose.msra.mxu0 %v1758_v8  ;;  %1826 = vmatpush.bf16.xpose.msra.mxu2 %v1758_v8 }
  0x93   : > { %559 = vmatpush.bf16.xpose.msra.mxu0 %v1757_v9  ;;  %1827 = vmatpush.bf16.xpose.msra.mxu2 %v1757_v9  ;;  %v615_v9 = vadd.s32 104, %v2249_v19 }
  0x9a   : > { %560 = vmatmul.bf16.vlgmr.msra.gmra.mxu0 %v1749_v10  ;;  %575 = vmatmul.bf16.vlgmr.msra.gmra.mxu2 %v1752_v11 }
  0xaa   : > { %565 = vmatmul.bf16.gmra.mxu0 %v1750_v12  ;;  %580 = vmatmul.bf16.gmra.mxu2 %v1753_v13  ;;  %v632_v12 = vadd.s32 %v2253_v21, %v615_v9  ;;  %v616_v13 = vadd.s32 112, %v2249_v19 }
  0xac   : > { %vm652_vm14 = vcmp.gt.s32.totalorder %v2259_v24, %v632_v12  ;;  %v2447_v12 = vld [vmem:[#allocation2 + $0x60] sm:$0xff] }
  0xba   : > { %570 = vmatmul.bf16.gmra.mxu0 %v1751_v14  ;;  %585 = vmatmul.bf16.gmra.mxu2 %v1754_v15 }
  0xca   : > { %590 = vmatmul.bf16.gmra.mxu2 %v1755_v16  ;;  %v633_v16 = vadd.s32 %v2253_v21, %v616_v13 }
  0xcc   : > { %vm653_vm15 = vcmp.gt.s32.totalorder %v2259_v24, %v633_v16 }
  0xda   : > { %595 = vmatmul.bf16.gmra.mxu2 %v1756_v17  ;;  %v617_v17 = vadd.s32 120, %v2249_v19 }
  0xdc   : > { %v634_v22 = vadd.s32 %v2253_v21, %v617_v17  ;;  %v2363_v21 = vld [vmem:[#allocation2 + $0x30] sm:$0xff]  ;;  %v2458_v17 = vld [vmem:[#allocation2 + $0x68] sm:$0xff] }
  0xde   : > { %vm654_vm0 = vcmp.gt.s32.totalorder %v2259_v24, %v634_v22 }
 0x117   : > { %v561_v26 = vpop.f32.mrf.mxu0 }
 0x118   : > { %v2263_v27 = vsel %vm639_vm1, -3.4028235e+38, %v561_v26  ;;  %v2088_v26 = vmov 0   ;;  %vm991_vm1 = vcmask 7168  }
 0x119   : > { %687 = vmax.xlane.f32.xlu0 %v2263_v27  ;;  %1912 = vset.pattern.permute.xlu1 %v2088_v26 }
 0x11a   : > { %1913 = vset.pattern.permute.xlu2 %v2088_v26  ;;  %1914 = vset.pattern.permute.xlu0 %v2088_v26 }
 0x11d   : > { %v576_v30 = vpop.f32.mrf.mxu2 }
 0x11e   : > { %v2271_v34 = vsel %vm645_vm2, -3.4028235e+38, %v576_v30 }
 0x11f   : > { %v563_v32 = vpop.f32.mrf.mxu0 }
 0x120   : > { %v2284_v43 = vsel %vm640_vm4, -3.4028235e+38, %v563_v32  ;;  %v2372_v32 = vld [vmem:[#allocation2 + $0x38] sm:$0xff] }
 0x121   : > { %699 = vmax.xlane.f32.xlu0 %v2271_v34 }
 0x125   : > { %v578_v38 = vpop.f32.mrf.mxu2 }
 0x126   : > { %v2280_v40 = vsel %vm646_vm3, -3.4028235e+38, %v578_v38 }
 0x127   : > { %701 = vmax.xlane.f32.xlu1 %v2280_v40  ;;  %v566_v41 = vpop.f32.mrf.mxu0 }
 0x128   : > { %v2291_v46 = vsel %vm641_vm5, -3.4028235e+38, %v566_v41  ;;  %v2389_v41 = vld [vmem:[#allocation2 + $0x40] sm:$0xff] }
 0x129   : > { %689 = vmax.xlane.f32.xlu0 %v2284_v43 }
 0x12d   : > { %v581_v47 = vpop.f32.mrf.mxu2 }
 0x12e   : > { %v2294_v49 = vsel %vm647_vm6, -3.4028235e+38, %v581_v47 }
 0x12f   : > { %703 = vmax.xlane.f32.xlu2 %v2294_v49  ;;  %691 = vmax.xlane.f32.xlu1 %v2291_v46  ;;  %v568_v50 = vpop.f32.mrf.mxu0 }
 0x130   : > { %v2308_v58 = vsel %vm642_vm8, -3.4028235e+38, %v568_v50 }
 0x135   : > { %v583_v55 = vpop.f32.mrf.mxu2 }
 0x136   : > { %v2306_v57 = vsel %vm648_vm7, -3.4028235e+38, %v583_v55  ;;  %v2408_v55 = vld [vmem:[#allocation2 + $0x20] sm:$0xff] }
 0x137   : > { %705 = vmax.xlane.f32.xlu0 %v2306_v57  ;;  %693 = vmax.xlane.f32.xlu1 %v2308_v58  ;;  %v571_v59 = vpop.f32.mrf.mxu0 }
 0x138   : > { %v2313_v61 = vsel %vm643_vm9, -3.4028235e+38, %v571_v59 }
 0x139   : > { %695 = vmax.xlane.f32.xlu2 %v2313_v61 }
 0x13d   : > { %v586_v63 = vpop.f32.mrf.mxu2 }
 0x13e   : > { %v2320_v1 = vsel %vm649_vm10, -3.4028235e+38, %v586_v63  ;;  %v2422_v63 = vld [vmem:[#allocation2 + $0x50] sm:$0xff] }
 0x13f   : > { %707 = vmax.xlane.f32.xlu1 %v2320_v1  ;;  %v573_v2 = vpop.f32.mrf.mxu0 }
 0x140   : > { %v2323_v3 = vsel %vm644_vm11, -3.4028235e+38, %v573_v2  ;;  %v2424_v2 = vld [vmem:[#allocation2 + $0x28] sm:$0xff] }
 0x141   : > { %697 = vmax.xlane.f32.xlu2 %v2323_v3 }
 0x145   : > { %v588_v6 = vpop.f32.mrf.mxu2 }
 0x146   : > { %v2330_v8 = vsel %vm650_vm12, -3.4028235e+38, %v588_v6 }
 0x149   : > { %709 = vmax.xlane.f32.xlu2 %v2330_v8 }
 0x14d   : > { %v591_v10 = vpop.f32.mrf.mxu2 }
 0x14e   : > { %v2335_v11 = vsel %vm651_vm13, -3.4028235e+38, %v591_v10 }
 0x14f   : > { %711 = vmax.xlane.f32.xlu0 %v2335_v11 }
 0x155   : > { %v593_v14 = vpop.f32.mrf.mxu2 }
 0x156   : > { %v2341_v15 = vsel %vm652_vm14, -3.4028235e+38, %v593_v14 }
 0x157   : > { %713 = vmax.xlane.f32.xlu1 %v2341_v15 }
 0x15d   : > { %v596_v18 = vpop.f32.mrf.mxu2 }
 0x15e   : > { %v2347_v20 = vsel %vm653_vm15, -3.4028235e+38, %v596_v18 }
 0x15f   : > { %715 = vmax.xlane.f32.xlu2 %v2347_v20 }
 0x165   : > { %v598_v23 = vpop.f32.mrf.mxu2 }
 0x166   : > { %v2352_v25 = vsel %vm654_vm0, -3.4028235e+38, %v598_v23 }
 0x167   : > { %717 = vmax.xlane.f32.xlu0 %v2352_v25 }
 0x18c   : > { %v688_v19 = vpop.xlane.xlu0 %687 }
 0x18d   : > { %v2358_v29 = vmax.f32 %v2355_v28, %v688_v19  ;;  %v1772_v19 = vld [vmem:[%s2192_s5 + $0x38] sm:$0xff] }
 0x18e   : > { %1176 = vmatpush.bf16.msra.mxu1 %v1772_v19  ;;  %1828 = vmatpush.bf16.msra.mxu3 %v1772_v19 }
 0x18f   : > { %1257 = vst.msk [vmem:[#allocation2] sm:$0xff] %vm991_vm1, %v2358_v29  ;;  %785 = vperm.xlu1 %1912, %v2358_v29   ;;  %v735_v16 = vsub.f32 %v2355_v28, %v2358_v29  ;;  %v2470_v29 = vld [vmem:[#allocation2 + $0x70] sm:$0xff] }
 0x191   : > { %v751_v23 = vmul.f32 1.442695, %v735_v16 }
 0x193   : > { %1915 = vpow2.f32 %v751_v23  ;;  %v1767_v23 = vld [vmem:[%s2192_s5 + $0x10] sm:$0xff] }
 0x194   : > { %v700_v24 = vpop.xlane.xlu0 %699 }
 0x195   : > { %v2366_v30 = vmax.f32 %v2363_v21, %v700_v24  ;;  %v1771_v24 = vld [vmem:[%s2192_s5 + $0x30] sm:$0xff] }
 0x196   : > { %1177 = vmatpush.bf16.msra.mxu1 %v1771_v24  ;;  %1829 = vmatpush.bf16.msra.mxu3 %v1771_v24 }
 0x197   : > { %v741_v31 = vsub.f32 %v2363_v21, %v2366_v30  ;;  %1263 = vst.msk [vmem:[#allocation2 + $0x30] sm:$0xff] %vm991_vm1, %v2366_v30 }
 0x19a   : > { %v702_v33 = vpop.xlane.xlu1 %701 }
 0x19b   : > { %v2377_v36 = vmax.f32 %v2372_v32, %v702_v33 }
 0x19c   : > { %v690_v37 = vpop.xlane.xlu0 %689 }
 0x19d   : > { %v742_v38 = vsub.f32 %v2372_v32, %v2377_v36  ;;  %1264 = vst.msk [vmem:[#allocation2 + $0x38] sm:$0xff] %vm991_vm1, %v2377_v36  ;;  %v2384_v39 = vmax.f32 %v2374_v35, %v690_v37 }
 0x19f   : > { %1258 = vst.msk [vmem:[#allocation2 + $0x8] sm:$0xff] %vm991_vm1, %v2384_v39  ;;  %790 = vperm.xlu2 %1913, %v2384_v39  }
 0x1a2   : > { %v704_v44 = vpop.xlane.xlu2 %703  ;;  %v692_v45 = vpop.xlane.xlu1 %691 }
 0x1a3   : > { %v2394_v47 = vmax.f32 %v2389_v41, %v704_v44  ;;  %v2397_v48 = vmax.f32 %v2391_v42, %v692_v45  ;;  %v736_v45 = vsub.f32 %v2374_v35, %v2384_v39  ;;  %v2489_v35 = vld [vmem:[#allocation2 + $0x78] sm:$0xff] }
 0x1a5   : > { %v743_v50 = vsub.f32 %v2389_v41, %v2394_v47  ;;  %1265 = vst.msk [vmem:[#allocation2 + $0x40] sm:$0xff] %vm991_vm1, %v2394_v47  ;;  %795 = vperm.xlu0 %1914, %v2397_v48   ;;  %v753_v39 = vmul.f32 1.442695, %v736_v45 }
 0x1a6   : > { %1259 = vst.msk [vmem:[#allocation2 + $0x10] sm:$0xff] %vm991_vm1, %v2397_v48 }
 0x1a7   : > { %v767_v24 = vmul.f32 1.442695, %v743_v50 }
 0x1aa   : > { %v706_v53 = vpop.xlane.xlu0 %705  ;;  %v694_v54 = vpop.xlane.xlu1 %693 }
 0x1ab   : > { %v2411_v56 = vmax.f32 %v2406_v51, %v706_v53  ;;  %v722_v59 = vmax.f32 %v674_v52, %v694_v54  ;;  %v737_v54 = vsub.f32 %v2391_v42, %v2397_v48  ;;  %v763_v42 = vmul.f32 1.442695, %v741_v31 }
 0x1ac   : > { %v696_v60 = vpop.xlane.xlu2 %695 }
 0x1ad   : > { %1266 = vst.msk [vmem:[#allocation2 + $0x48] sm:$0xff] %vm991_vm1, %v2411_v56  ;;  %v2416_v62 = vmax.f32 %v2408_v55, %v696_v60  ;;  %800 = vperm.xlu2 %1913, %v722_v59   ;;  %v738_v28 = vsub.f32 %v674_v52, %v722_v59  ;;  %v2483_v52 = vpop.eup %1915  ;;  %v755_v60 = vmul.f32 1.442695, %v737_v54  ;;  %v744_v31 = vsub.f32 %v2406_v51, %v2411_v56  ;;  %v1766_v51 = vld [vmem:[%s2192_s5 + $0x8] sm:$0xff] }
 0x1ae   : > { %1260 = vst.msk [vmem:[#allocation2 + $0x18] sm:$0xff] %vm991_vm1, %v722_v59  ;;  %v1770_v59 = vld [vmem:[%s2192_s5 + $0x28] sm:$0xff] }
 0x1af   : > { %1261 = vst.msk [vmem:[#allocation2 + $0x20] sm:$0xff] %vm991_vm1, %v2416_v62  ;;  %805 = vperm.xlu1 %1912, %v2416_v62   ;;  %v757_v44 = vmul.f32 1.442695, %v738_v28  ;;  %1178 = vmatpush.bf16.msra.mxu1 %v1770_v59  ;;  %v739_v48 = vsub.f32 %v2408_v55, %v2416_v62  ;;  %v765_v28 = vmul.f32 1.442695, %v742_v38 }
 0x1b0   : > { %1830 = vmatpush.bf16.msra.mxu3 %v1770_v59 }
 0x1b1   : > { %1917 = vpow2.f32 %v757_v44  ;;  %v759_v55 = vmul.f32 1.442695, %v739_v48  ;;  %v1765_v44 = vld [vmem:[%s2192_s5] sm:$0xff] }
 0x1b2   : > { %v708_v0 = vpop.xlane.xlu1 %707  ;;  %1919 = vpow2.f32 %v753_v39 }
 0x1b3   : > { %v2427_v4 = vmax.f32 %v2422_v63, %v708_v0  ;;  %1921 = vpow2.f32 %v755_v60 }
 0x1b4   : > { %v698_v5 = vpop.xlane.xlu2 %697  ;;  %1923 = vpow2.f32 %v763_v42 }
 0x1b5   : > { %1267 = vst.msk [vmem:[#allocation2 + $0x50] sm:$0xff] %vm991_vm1, %v2427_v4  ;;  %v2432_v6 = vmax.f32 %v2424_v2, %v698_v5  ;;  %1925 = vpow2.f32 %v759_v55 }
 0x1b7   : > { %1262 = vst.msk [vmem:[#allocation2 + $0x28] sm:$0xff] %vm991_vm1, %v2432_v6  ;;  %835 = vperm.xlu1 %1912, %v2427_v4   ;;  %810 = vperm.xlu2 %1913, %v2432_v6   ;;  %v2506_v16 = vpop.eup %1917  ;;  %v740_v21 = vsub.f32 %v2424_v2, %v2432_v6  ;;  %v769_v2 = vmul.f32 1.442695, %v744_v31 }
 0x1b9   : > { %v761_v62 = vmul.f32 1.442695, %v740_v21 }
 0x1bb   : > { %1927 = vpow2.f32 %v761_v62 }
 0x1bc   : > { %v710_v9 = vpop.xlane.xlu2 %709  ;;  %1929 = vpow2.f32 %v769_v2 }
 0x1bd   : > { %v2441_v10 = vmax.f32 %v2438_v7, %v710_v9  ;;  %v1769_v9 = vld [vmem:[%s2192_s5 + $0x20] sm:$0xff]  ;;  %1931 = vpow2.f32 %v765_v28 }
 0x1be   : > { %1179 = vmatpush.bf16.msra.mxu1 %v1769_v9  ;;  %1831 = vmatpush.bf16.msra.mxu3 %v1769_v9  ;;  %1933 = vpow2.f32 %v767_v24 }
 0x1bf   : > { %1268 = vst.msk [vmem:[#allocation2 + $0x58] sm:$0xff] %vm991_vm1, %v2441_v10  ;;  %815 = vperm.xlu1 %1912, %v2366_v30   ;;  %840 = vperm.xlu2 %1913, %v2441_v10   ;;  %v1768_v30 = vld [vmem:[%s2192_s5 + $0x18] sm:$0xff] }
 0x1c2   : > { %v712_v13 = vpop.xlane.xlu0 %711  ;;  %1180 = vmatpush.bf16.msra.mxu1 %v1768_v30  ;;  %1832 = vmatpush.bf16.msra.mxu3 %v1768_v30 }
 0x1c3   : > { %v2450_v14 = vmax.f32 %v2447_v12, %v712_v13 }
 0x1c5   : > { %1269 = vst.msk [vmem:[#allocation2 + $0x60] sm:$0xff] %vm991_vm1, %v2450_v14  ;;  %845 = vperm.xlu0 %1914, %v2450_v14  }
 0x1c6   : > { %1181 = vmatpush.bf16.msra.mxu1 %v1767_v23  ;;  %1833 = vmatpush.bf16.msra.mxu3 %v1767_v23 }
 0x1c7   : > { %820 = vperm.xlu1 %1912, %v2377_v36   ;;  %v746_v36 = vsub.f32 %v2438_v7, %v2441_v10 }
 0x1c9   : > { %v773_v41 = vmul.f32 1.442695, %v746_v36 }
 0x1ca   : > { %v714_v18 = vpop.xlane.xlu1 %713  ;;  %1182 = vmatpush.bf16.msra.mxu1 %v1766_v51  ;;  %1834 = vmatpush.bf16.msra.mxu3 %v1766_v51 }
 0x1cb   : > { %v2461_v22 = vmax.f32 %v2458_v17, %v714_v18  ;;  %v2514_v18 = vpop.eup %1919 }
 0x1cc   : > { %v2517_v19 = vpop.eup %1921 }
 0x1cd   : > { %v748_v26 = vsub.f32 %v2458_v17, %v2461_v22  ;;  %1270 = vst.msk [vmem:[#allocation2 + $0x68] sm:$0xff] %vm991_vm1, %v2461_v22  ;;  %850 = vperm.xlu2 %1913, %v2461_v22   ;;  %v2521_v6 = vpop.eup %1923 }
 0x1ce   : > { %1183 = vmatpush.bf16.msra.mxu1 %v1765_v44  ;;  %1835 = vmatpush.bf16.msra.mxu3 %v1765_v44 }
 0x1cf   : > { %825 = vperm.xlu1 %1912, %v2394_v47  }
 0x1d2   : > { %v716_v33 = vpop.xlane.xlu2 %715 }
 0x1d3   : > { %v2474_v37 = vmax.f32 %v2470_v29, %v716_v33  ;;  %v2533_v33 = vpop.eup %1925 }
 0x1d4   : > { %v2536_v45 = vpop.eup %1927 }
 0x1d5   : > { %v749_v53 = vsub.f32 %v2470_v29, %v2474_v37  ;;  %1271 = vst.msk [vmem:[#allocation2 + $0x70] sm:$0xff] %vm991_vm1, %v2474_v37  ;;  %855 = vperm.xlu0 %1914, %v2474_v37   ;;  %v2542_v32 = vpop.eup %1929 }
 0x1d6   : > { %v2547_v47 = vpop.eup %1931 }
 0x1d7   : > { %1026 = vperm.xlu1 %1912, %v2483_v52   ;;  %v2549_v50 = vpop.eup %1933 }
 0x1da   : > { %v718_v0 = vpop.xlane.xlu0 %717 }
 0x1db   : > { %v2492_v5 = vmax.f32 %v2489_v35, %v718_v0 }
 0x1dd   : > { %v750_v13 = vsub.f32 %v2489_v35, %v2492_v5  ;;  %1272 = vst.msk [vmem:[#allocation2 + $0x78] sm:$0xff] %vm991_vm1, %v2492_v5  ;;  %860 = vperm.xlu2 %1913, %v2492_v5   ;;  %830 = vperm.xlu0 %1914, %v2411_v56   ;;  %v747_v56 = vsub.f32 %v2447_v12, %v2450_v14  ;;  %v779_v35 = vmul.f32 1.442695, %v749_v53  ;;  %v1009_v53 = vld [vmem:[#allocation4] sm:$0xff] }
 0x1de   : > { %v745_v12 = vsub.f32 %v2422_v63, %v2427_v4 }
 0x1df   : > { %1041 = vperm.xlu1 %1912, %v2506_v16   ;;  %v775_v54 = vmul.f32 1.442695, %v747_v56 }
 0x1e0   : > { %v771_v38 = vmul.f32 1.442695, %v745_v12 }
 0x1e1   : > { %1935 = vpow2.f32 %v775_v54 }
 0x1e2   : > { %1937 = vpow2.f32 %v771_v38 }
 0x1e3   : > { %1939 = vpow2.f32 %v773_v41 }
 0x1e5   : > { %1031 = vperm.xlu2 %1913, %v2514_v18   ;;  %1036 = vperm.xlu0 %1914, %v2517_v19  }
 0x1e7   : > { %1056 = vperm.xlu1 %1912, %v2521_v6   ;;  %v2553_v63 = vpop.eup %1935 }
 0x1e8   : > { %v2556_v7 = vpop.eup %1937 }
 0x1e9   : > { %v2558_v10 = vpop.eup %1939 }
 0x1ed   : > { %1051 = vperm.xlu2 %1913, %v2536_v45   ;;  %1046 = vperm.xlu0 %1914, %v2533_v33  }
 0x1ef   : > { %1071 = vperm.xlu1 %1912, %v2542_v32  }
 0x1f5   : > { %1066 = vperm.xlu2 %1913, %v2549_v50   ;;  %1061 = vperm.xlu0 %1914, %v2547_v47  }
 0x1f7   : > { %1086 = vperm.xlu1 %1912, %v2553_v63  }
 0x1f9   : > { %v791_v4 = vpop.permute.xlu2 %790 }
 0x1fa   : > { %v864_v14 = vsub.f32 %v2284_v43, %v791_v4 }
 0x1fc   : > { %v881_v59 = vmul.f32 1.442695, %v864_v14 }
 0x1fd   : > { %1081 = vperm.xlu2 %1913, %v2558_v10   ;;  %1076 = vperm.xlu0 %1914, %v2556_v7  }
 0x1fe   : > { %1941 = vpow2.f32 %v881_v59 }
 0x201   : > { %v786_v39 = vpop.permute.xlu1 %785 }
 0x202   : > { %v863_v60 = vsub.f32 %v2263_v27, %v786_v39 }
 0x204   : > { %v879_v0 = vmul.f32 1.442695, %v863_v60  ;;  %v1942_v9 = vpop.eup %1941 }
 0x206   : > { %1943 = vpow2.f32 %v879_v0 }
 0x207   : > { %v801_v21 = vpop.permute.xlu2 %800 }
 0x208   : > { %v866_v30 = vsub.f32 %v2308_v58, %v801_v21 }
 0x20a   : > { %v885_v31 = vmul.f32 1.442695, %v866_v30 }
 0x20c   : > { %v1944_v42 = vpop.eup %1943  ;;  %1945 = vpow2.f32 %v885_v31 }
 0x20d   : > { %v1120_v48 = vpack.c.bf16 %v1942_v9, %v1944_v42 }
 0x20f   : > { %1184 = vmatmul.bf16.vlgmr.msra.gmra.mxu1 %v1120_v48 }
 0x211   : > { %v811_v55 = vpop.permute.xlu2 %810 }
 0x212   : > { %v2566_v2 = vpop.eup %1945  ;;  %v868_v58 = vsub.f32 %v2323_v3, %v811_v55 }
 0x217   : > { %v796_v43 = vpop.permute.xlu0 %795 }
 0x218   : > { %v865_v62 = vsub.f32 %v2291_v46, %v796_v43  ;;  %v889_v46 = vmul.f32 1.442695, %v868_v58 }
 0x219   : > { %v841_v56 = vpop.permute.xlu2 %840 }
 0x21a   : > { %v883_v23 = vmul.f32 1.442695, %v865_v62  ;;  %v874_v44 = vsub.f32 %v2330_v8, %v841_v56 }
 0x21c   : > { %1947 = vpow2.f32 %v883_v23  ;;  %v901_v12 = vmul.f32 1.442695, %v874_v44 }
 0x221   : > { %v806_v27 = vpop.permute.xlu1 %805  ;;  %945 = vadd.xlane.f32.xlu1 %v1942_v9 }
 0x222   : > { %v1948_v51 = vpop.eup %1947  ;;  %v867_v28 = vsub.f32 %v2313_v61, %v806_v27 }
 0x223   : > { %v1121_v24 = vpack.c.bf16 %v2566_v2, %v1948_v51 }
 0x224   : > { %v887_v54 = vmul.f32 1.442695, %v867_v28 }
 0x225   : > { %1189 = vmatmul.bf16.gmra.mxu1 %v1121_v24 }
 0x226   : > { %943 = vadd.xlane.f32.xlu2 %v1944_v42  ;;  %1949 = vpow2.f32 %v887_v54 }
 0x227   : > { %1951 = vpow2.f32 %v889_v46  ;;  %v851_v59 = vpop.permute.xlu2 %850 }
 0x228   : > { %1953 = vpow2.f32 %v901_v12  ;;  %v876_v9 = vsub.f32 %v2341_v15, %v851_v59 }
 0x229   : > { %v836_v36 = vpop.permute.xlu1 %835 }
 0x22a   : > { %v873_v38 = vsub.f32 %v2320_v1, %v836_v36  ;;  %v905_v21 = vmul.f32 1.442695, %v876_v9 }
 0x22c   : > { %v899_v41 = vmul.f32 1.442695, %v873_v38  ;;  %v1950_v61 = vpop.eup %1949 }
 0x22d   : > { %v1952_v14 = vpop.eup %1951 }
 0x22e   : > { %1955 = vpow2.f32 %v899_v41  ;;  %v1954_v8 = vpop.eup %1953  ;;  %v1122_v39 = vpack.c.bf16 %v1952_v14, %v1950_v61 }
 0x231   : > { %v816_v4 = vpop.permute.xlu1 %815 }
 0x232   : > { %v869_v3 = vsub.f32 %v2271_v34, %v816_v4 }
 0x234   : > { %v1956_v60 = vpop.eup %1955  ;;  %v891_v0 = vmul.f32 1.442695, %v869_v3 }
 0x235   : > { %1194 = vmatmul.bf16.gmra.mxu1 %v1122_v39  ;;  %v1125_v42 = vpack.c.bf16 %v1954_v8, %v1956_v60  ;;  %v777_v39 = vmul.f32 1.442695, %v748_v26  ;;  %v1008_v26 = vld [vmem:[#allocation4 + $0x30] sm:$0xff] }
 0x236   : > { %1957 = vpow2.f32 %v891_v0 }
 0x237   : > { %v846_v1 = vpop.permute.xlu0 %845  ;;  %1209 = vmatmul.bf16.vlgmr.msra.gmra.mxu3 %v1125_v42  ;;  %v861_v56 = vpop.permute.xlu2 %860 }
 0x238   : > { %v875_v48 = vsub.f32 %v2335_v11, %v846_v1  ;;  %v912_v1 = vld [vmem:[#allocation3 + $0x8] sm:$0xff] }
 0x239   : > { %v821_v30 = vpop.permute.xlu1 %820 }
 0x23a   : > { %v903_v31 = vmul.f32 1.442695, %v875_v48  ;;  %v870_v43 = vsub.f32 %v2280_v40, %v821_v30  ;;  %v878_v40 = vsub.f32 %v2352_v25, %v861_v56 }
 0x23c   : > { %v1958_v55 = vpop.eup %1957  ;;  %1959 = vpow2.f32 %v903_v31  ;;  %v893_v34 = vmul.f32 1.442695, %v870_v43  ;;  %v909_v46 = vmul.f32 1.442695, %v878_v40  ;;  %v928_v31 = vmul.f32 %v2514_v18, %v912_v1  ;;  %v1011_v40 = vld [vmem:[#allocation4 + $0x18] sm:$0xff] }
 0x23d   : > { %1961 = vpow2.f32 %v905_v21  ;;  %955 = vadd.xlane.f32.xlu0 %v1958_v55 }
 0x23e   : > { %1963 = vpow2.f32 %v893_v34 }
 0x241   : > { %v826_v62 = vpop.permute.xlu1 %825 }
 0x242   : > { %v1960_v15 = vpop.eup %1959  ;;  %v871_v23 = vsub.f32 %v2294_v49, %v826_v62 }
 0x243   : > { %v1962_v27 = vpop.eup %1961 }
 0x244   : > { %v1964_v28 = vpop.eup %1963  ;;  %v895_v24 = vmul.f32 1.442695, %v871_v23  ;;  %v1126_v58 = vpack.c.bf16 %v1962_v27, %v1960_v15 }
 0x245   : > { %947 = vadd.xlane.f32.xlu0 %v1948_v51  ;;  %957 = vadd.xlane.f32.xlu1 %v1964_v28  ;;  %v1123_v11 = vpack.c.bf16 %v1964_v28, %v1958_v55  ;;  %v1010_v28 = vld [vmem:[#allocation4 + $0x58] sm:$0xff] }
 0x246   : > { %1965 = vpow2.f32 %v895_v24 }
 0x247   : > { %v856_v44 = vpop.permute.xlu0 %855  ;;  %1199 = vmatmul.bf16.gmra.mxu1 %v1123_v11  ;;  %1214 = vmatmul.bf16.gmra.mxu3 %v1126_v58 }
 0x248   : > { %v877_v54 = vsub.f32 %v2347_v20, %v856_v44 }
 0x24a   : > { %v907_v12 = vmul.f32 1.442695, %v877_v54 }
 0x24c   : > { %v1966_v36 = vpop.eup %1965  ;;  %1967 = vpow2.f32 %v907_v12 }
 0x24d   : > { %959 = vadd.xlane.f32.xlu2 %v1966_v36  ;;  %951 = vadd.xlane.f32.xlu1 %v1950_v61  ;;  %1969 = vpow2.f32 %v909_v46  ;;  %v1027_v61 = vpop.permute.xlu1 %1026 }
 0x24e   : > { %v1104_v9 = vmul.f32 %v1027_v61, %v1008_v26  ;;  %v1013_v61 = vld [vmem:[#allocation4 + $0x68] sm:$0xff] }
 0x24f   : > { %v831_v49 = vpop.permute.xlu0 %830 }
 0x250   : > { %v872_v51 = vsub.f32 %v2306_v57, %v831_v49  ;;  %v781_v57 = vmul.f32 1.442695, %v750_v13  ;;  %v1012_v49 = vld [vmem:[#allocation4 + $0x50] sm:$0xff] }
 0x252   : > { %v1968_v38 = vpop.eup %1967  ;;  %v897_v41 = vmul.f32 1.442695, %v872_v51 }
 0x253   : > { %v1970_v4 = vpop.eup %1969 }
 0x254   : > { %1971 = vpow2.f32 %v897_v41  ;;  %v1127_v25 = vpack.c.bf16 %v1970_v4, %v1968_v38 }
 0x255   : > { %963 = vadd.xlane.f32.xlu1 %v1956_v60  ;;  %949 = vadd.xlane.f32.xlu2 %v2566_v2  ;;  %v1042_v3 = vpop.permute.xlu1 %1041  ;;  %1973 = vpow2.f32 %v781_v57  ;;  %v1032_v2 = vpop.permute.xlu2 %1031  ;;  %v1018_v57 = vld [vmem:[#allocation4 + $0x10] sm:$0xff] }
 0x256   : > { %1975 = vpow2.f32 %v777_v39  ;;  %v1105_v21 = vmul.f32 %v1032_v2, %v1009_v53  ;;  %v1107_v54 = vmul.f32 %v1042_v3, %v1011_v40  ;;  %v1015_v40 = vld [vmem:[#allocation4 + $0x48] sm:$0xff] }
 0x257   : > { %1219 = vmatmul.bf16.gmra.mxu3 %v1127_v25  ;;  %1977 = vpow2.f32 %v779_v35  ;;  %v1037_v0 = vpop.permute.xlu0 %1036 }
 0x258   : > { %v1106_v11 = vmul.f32 %v1037_v0, %v1010_v28 }
 0x25a   : > { %v1972_v20 = vpop.eup %1971 }
 0x25b   : > { %961 = vadd.xlane.f32.xlu0 %v1972_v20  ;;  %v1124_v59 = vpack.c.bf16 %v1972_v20, %v1966_v36  ;;  %v2588_v60 = vpop.eup %1973  ;;  %v917_v36 = vld [vmem:[#allocation3 + $0x30] sm:$0xff] }
 0x25c   : > { %v2596_v13 = vpop.eup %1975  ;;  %v913_v20 = vld [vmem:[#allocation3 + $0x10] sm:$0xff] }
 0x25d   : > { %953 = vadd.xlane.f32.xlu2 %v1952_v14  ;;  %1204 = vmatmul.bf16.gmra.mxu1 %v1124_v59  ;;  %v2591_v14 = vpop.permute.xlu1 %1056  ;;  %v1052_v5 = vpop.permute.xlu2 %1051  ;;  %v918_v59 = vld [vmem:[#allocation3 + $0x38] sm:$0xff]  ;;  %v929_v3 = vmul.f32 %v2517_v19, %v913_v20 }
 0x25e   : > { %969 = vadd.xlane.f32.xlu1 %v1962_v27  ;;  %v2601_v17 = vpop.eup %1977  ;;  %v934_v2 = vmul.f32 %v2547_v47, %v918_v59  ;;  %v1109_v26 = vmul.f32 %v1052_v5, %v1013_v61  ;;  %v1019_v19 = vld [vmem:[#allocation4 + $0x38] sm:$0xff] }
 0x25f   : > { %v1047_v30 = vpop.permute.xlu0 %1046 }
 0x263   : > { %967 = vadd.xlane.f32.xlu0 %v1960_v15  ;;  %v911_v15 = vld [vmem:[#allocation3] sm:$0xff] }
 0x264   : > { %v927_v23 = vmul.f32 %v2483_v52, %v911_v15  ;;  %v933_v52 = vmul.f32 %v2521_v6, %v917_v36 }
 0x265   : > { %965 = vadd.xlane.f32.xlu2 %v1954_v8  ;;  %v2599_v8 = vpop.permute.xlu1 %1071  ;;  %v2604_v22 = vpop.permute.xlu2 %1066 }
 0x267   : > { %v2614_v24 = vpop.permute.xlu0 %1061 }
 0x26b   : > { %973 = vadd.xlane.f32.xlu0 %v1970_v4 }
 0x26d   : > { %971 = vadd.xlane.f32.xlu2 %v1968_v38  ;;  %v2606_v42 = vpop.permute.xlu1 %1086  ;;  %v2608_v48 = vpop.permute.xlu2 %1081  ;;  %v1108_v38 = vmul.f32 %v1047_v30, %v1012_v49  ;;  %v919_v30 = vld [vmem:[#allocation3 + $0x40] sm:$0xff]  ;;  %v920_v49 = vld [vmem:[#allocation3 + $0x48] sm:$0xff] }
 0x26e   : > { %v935_v5 = vmul.f32 %v2549_v50, %v919_v30  ;;  %v1017_v30 = vld [vmem:[#allocation4 + $0x20] sm:$0xff] }
 0x26f   : > { %v1077_v44 = vpop.permute.xlu0 %1076 }
 0x270   : > { %v1114_v6 = vmul.f32 %v1077_v44, %v1018_v57 }
 0x277   : > { %1101 = vperm.xlu1 %1912, %v2588_v60  }
 0x27f   : > { %1091 = vperm.xlu0 %1914, %v2596_v13  }
 0x285   : > { %1096 = vperm.xlu2 %1913, %v2601_v17  }
 0x28c   : > { %v1185_v29 = vpop.f32.mrf.mxu1 }
 0x28d   : > { %v1225_v37 = vadd.f32 %v1185_v29, %v1104_v9 }
 0x28f   : > { %1241 = vst [vmem:[#allocation4 + $0x30] sm:$0xff] %v1225_v37 }
 0x294   : > { %v946_v43 = vpop.xlane.xlu1 %945  ;;  %v1187_v55 = vpop.f32.mrf.mxu1 }
 0x295   : > { %v976_v34 = vadd.f32 %v946_v43, %v928_v31  ;;  %v1226_v62 = vadd.f32 %v1187_v55, %v1105_v21  ;;  %v915_v21 = vld [vmem:[#allocation3 + $0x20] sm:$0xff]  ;;  %v1014_v31 = vld [vmem:[#allocation4 + $0x8] sm:$0xff] }
 0x296   : > { %v931_v47 = vmul.f32 %v2533_v33, %v915_v21  ;;  %v914_v33 = vld [vmem:[#allocation3 + $0x18] sm:$0xff]  ;;  %v925_v21 = vld [vmem:[#allocation3 + $0x70] sm:$0xff] }
 0x297   : > { %993 = vst.msk [vmem:[#allocation3 + $0x8] sm:$0xff] %vm991_vm1, %v976_v34  ;;  %v1115_v34 = vmul.f32 %v2608_v48, %v1019_v19  ;;  %v930_v48 = vmul.f32 %v2506_v16, %v914_v33 }
 0x298   : > { %1242 = vst [vmem:[#allocation4] sm:$0xff] %v1226_v62 }
 0x299   : > { %v944_v27 = vpop.xlane.xlu2 %943 }
 0x29a   : > { %v975_v56 = vadd.f32 %v944_v27, %v927_v23  ;;  %v1110_v27 = vmul.f32 %v2591_v14, %v1014_v31 }
 0x29c   : > { %992 = vst.msk [vmem:[#allocation3] sm:$0xff] %vm991_vm1, %v975_v56 }
 0x2a2   : > { %v1190_v58 = vpop.f32.mrf.mxu1 }
 0x2a3   : > { %v1227_v18 = vadd.f32 %v1190_v58, %v1106_v11  ;;  %v921_v11 = vld [vmem:[#allocation3 + $0x50] sm:$0xff]  ;;  %v1020_v58 = vld [vmem:[#allocation4 + $0x60] sm:$0xff] }
 0x2a4   : > { %v1116_v14 = vmul.f32 %v2606_v42, %v1020_v58 }
 0x2a5   : > { %1243 = vst [vmem:[#allocation4 + $0x58] sm:$0xff] %v1227_v18  ;;  %v937_v18 = vmul.f32 %v2556_v7, %v921_v11  ;;  %v916_v7 = vld [vmem:[#allocation3 + $0x28] sm:$0xff] }
 0x2a6   : > { %v932_v20 = vmul.f32 %v2536_v45, %v916_v7 }
 0x2aa   : > { %v1192_v46 = vpop.f32.mrf.mxu1 }
 0x2ab   : > { %v1228_v12 = vadd.f32 %v1192_v46, %v1107_v54 }
 0x2ad   : > { %1244 = vst [vmem:[#allocation4 + $0x18] sm:$0xff] %v1228_v12 }
 0x2b0   : > { %v956_v51 = vpop.xlane.xlu0 %955 }
 0x2b1   : > { %v981_v41 = vadd.f32 %v956_v51, %v933_v52  ;;  %v1111_v52 = vmul.f32 %v2614_v24, %v1015_v40 }
 0x2b2   : > { %v1195_v4 = vpop.f32.mrf.mxu1 }
 0x2b3   : > { %998 = vst.msk [vmem:[#allocation3 + $0x30] sm:$0xff] %vm991_vm1, %v981_v41  ;;  %v1229_v25 = vadd.f32 %v1195_v4, %v1108_v38  ;;  %v936_v41 = vmul.f32 %v2542_v32, %v920_v49  ;;  %v924_v4 = vld [vmem:[#allocation3 + $0x68] sm:$0xff]  ;;  %v922_v32 = vld [vmem:[#allocation3 + $0x58] sm:$0xff] }
 0x2b4   : > { %v940_v59 = vmul.f32 %v2596_v13, %v924_v4  ;;  %v938_v13 = vmul.f32 %v2558_v10, %v922_v32  ;;  %v941_v10 = vmul.f32 %v2601_v17, %v925_v21 }
 0x2b5   : > { %1245 = vst [vmem:[#allocation4 + $0x50] sm:$0xff] %v1229_v25 }
 0x2b8   : > { %v948_v39 = vpop.xlane.xlu0 %947  ;;  %v958_v35 = vpop.xlane.xlu1 %957 }
 0x2b9   : > { %v977_v0 = vadd.f32 %v948_v39, %v929_v3  ;;  %v982_v9 = vadd.f32 %v958_v35, %v934_v2  ;;  %v923_v2 = vld [vmem:[#allocation3 + $0x60] sm:$0xff] }
 0x2ba   : > { %v1197_v29 = vpop.f32.mrf.mxu1  ;;  %v1210_v37 = vpop.f32.mrf.mxu3  ;;  %v939_v39 = vmul.f32 %v2553_v63, %v923_v2  ;;  %v1016_v35 = vld [vmem:[#allocation4 + $0x40] sm:$0xff] }
 0x2bb   : > { %994 = vst.msk [vmem:[#allocation3 + $0x10] sm:$0xff] %vm991_vm1, %v977_v0  ;;  %v1230_v53 = vadd.f32 %v1197_v29, %v1109_v26  ;;  %v1235_v1 = vadd.f32 %v1210_v37, %v1114_v6 }
 0x2bc   : > { %999 = vst.msk [vmem:[#allocation3 + $0x38] sm:$0xff] %vm991_vm1, %v982_v9  ;;  %v1112_v9 = vmul.f32 %v2604_v22, %v1016_v35  ;;  %v1113_v22 = vmul.f32 %v2599_v8, %v1017_v30  ;;  %v1021_v8 = vld [vmem:[#allocation4 + $0x70] sm:$0xff] }
 0x2bd   : > { %1246 = vst [vmem:[#allocation4 + $0x68] sm:$0xff] %v1230_v53  ;;  %v926_v53 = vld [vmem:[#allocation3 + $0x78] sm:$0xff] }
 0x2be   : > { %1251 = vst [vmem:[#allocation4 + $0x10] sm:$0xff] %v1235_v1  ;;  %v942_v63 = vmul.f32 %v2588_v60, %v926_v53 }
 0x2c0   : > { %v952_v43 = vpop.xlane.xlu1 %951  ;;  %v960_v55 = vpop.xlane.xlu2 %959 }
 0x2c1   : > { %v979_v62 = vadd.f32 %v952_v43, %v931_v47  ;;  %v983_v15 = vadd.f32 %v960_v55, %v935_v5 }
 0x2c2   : > { %v1212_v23 = vpop.f32.mrf.mxu3 }
 0x2c3   : > { %996 = vst.msk [vmem:[#allocation3 + $0x20] sm:$0xff] %vm991_vm1, %v979_v62  ;;  %v1236_v56 = vadd.f32 %v1212_v23, %v1115_v34  ;;  %v1022_v62 = vld [vmem:[#allocation4 + $0x78] sm:$0xff] }
 0x2c4   : > { %1000 = vst.msk [vmem:[#allocation3 + $0x40] sm:$0xff] %vm991_vm1, %v983_v15  ;;  %v1200_v28 = vpop.f32.mrf.mxu1  ;;  %v1023_v15 = vld [vmem:[#allocation4 + $0x28] sm:$0xff] }
 0x2c5   : > { %1252 = vst [vmem:[#allocation4 + $0x38] sm:$0xff] %v1236_v56  ;;  %v1231_v50 = vadd.f32 %v1200_v28, %v1110_v27 }
 0x2c7   : > { %1247 = vst [vmem:[#allocation4 + $0x8] sm:$0xff] %v1231_v50 }
 0x2c8   : > { %v964_v44 = vpop.xlane.xlu1 %963  ;;  %v950_v54 = vpop.xlane.xlu2 %949 }
 0x2c9   : > { %v985_v46 = vadd.f32 %v964_v44, %v937_v18  ;;  %v978_v12 = vadd.f32 %v950_v54, %v930_v48 }
 0x2ca   : > { %v1215_v36 = vpop.f32.mrf.mxu3 }
 0x2cb   : > { %1002 = vst.msk [vmem:[#allocation3 + $0x50] sm:$0xff] %vm991_vm1, %v985_v46  ;;  %v1237_v51 = vadd.f32 %v1215_v36, %v1116_v14 }
 0x2cc   : > { %995 = vst.msk [vmem:[#allocation3 + $0x18] sm:$0xff] %vm991_vm1, %v978_v12  ;;  %v1202_v38 = vpop.f32.mrf.mxu1 }
 0x2cd   : > { %1253 = vst [vmem:[#allocation4 + $0x60] sm:$0xff] %v1237_v51  ;;  %v1232_v16 = vadd.f32 %v1202_v38, %v1111_v52 }
 0x2ce   : > { %v962_v25 = vpop.xlane.xlu0 %961 }
 0x2cf   : > { %1248 = vst [vmem:[#allocation4 + $0x48] sm:$0xff] %v1232_v16  ;;  %v984_v42 = vadd.f32 %v962_v25, %v936_v41 }
 0x2d0   : > { %v954_v24 = vpop.xlane.xlu2 %953 }
 0x2d1   : > { %1001 = vst.msk [vmem:[#allocation3 + $0x48] sm:$0xff] %vm991_vm1, %v984_v42  ;;  %v970_v61 = vpop.xlane.xlu1 %969  ;;  %v980_v57 = vadd.f32 %v954_v24, %v932_v20 }
 0x2d2   : > { %v988_v3 = vadd.f32 %v970_v61, %v940_v59  ;;  %v1217_v6 = vpop.f32.mrf.mxu3 }
 0x2d3   : > { %997 = vst.msk [vmem:[#allocation3 + $0x28] sm:$0xff] %vm991_vm1, %v980_v57 }
 0x2d4   : > { %1005 = vst.msk [vmem:[#allocation3 + $0x68] sm:$0xff] %vm991_vm1, %v988_v3 }
 0x2d6   : > { %v968_v26 = vpop.xlane.xlu0 %967 }
 0x2d7   : > { %v987_v45 = vadd.f32 %v968_v26, %v939_v39 }
 0x2d8   : > { %v966_v0 = vpop.xlane.xlu2 %965 }
 0x2d9   : > { %1004 = vst.msk [vmem:[#allocation3 + $0x60] sm:$0xff] %vm991_vm1, %v987_v45  ;;  %v986_v29 = vadd.f32 %v966_v0, %v938_v13 }
 0x2da   : > { %v1205_v37 = vpop.f32.mrf.mxu1  ;;  %v1220_v31 = vpop.f32.mrf.mxu3 }
 0x2db   : > { %1003 = vst.msk [vmem:[#allocation3 + $0x58] sm:$0xff] %vm991_vm1, %v986_v29  ;;  %v1233_v1 = vadd.f32 %v1205_v37, %v1112_v9 }
 0x2dd   : > { %1249 = vst [vmem:[#allocation4 + $0x40] sm:$0xff] %v1233_v1 }
 0x2de   : > { %v974_v19 = vpop.xlane.xlu0 %973 }
 0x2df   : > { %v990_v47 = vadd.f32 %v974_v19, %v942_v63 }
 0x2e0   : > { %v972_v5 = vpop.xlane.xlu2 %971 }
 0x2e1   : > { %1007 = vst.msk [vmem:[#allocation3 + $0x78] sm:$0xff] %vm991_vm1, %v990_v47  ;;  %v989_v43 = vadd.f32 %v972_v5, %v941_v10 }
 0x2e2   : > { %v1207_v55 = vpop.f32.mrf.mxu1  ;;  %v1222_v28 = vpop.f32.mrf.mxu3 }
 0x2e3   : > { %1006 = vst.msk [vmem:[#allocation3 + $0x70] sm:$0xff] %vm991_vm1, %v989_v43  ;;  %v1234_v34 = vadd.f32 %v1207_v55, %v1113_v22 }
 0x2e5   : > { %1250 = vst [vmem:[#allocation4 + $0x20] sm:$0xff] %v1234_v34 }
 0x2e8   : > { %v1097_v60 = vpop.permute.xlu2 %1096 }
 0x2e9   : > { %v1102_v23 = vpop.permute.xlu1 %1101  ;;  %v1118_v27 = vmul.f32 %v1097_v60, %v1022_v62 }
 0x2ea   : > { %v1119_v56 = vmul.f32 %v1102_v23, %v1023_v15 }
 0x2eb   : > { %v1239_v17 = vadd.f32 %v1220_v31, %v1118_v27 }
 0x2ec   : > { %v1240_v11 = vadd.f32 %v1222_v28, %v1119_v56 }
 0x2ed   : > { %1255 = vst [vmem:[#allocation4 + $0x78] sm:$0xff] %v1239_v17 }
 0x2ee   : > { %1256 = vst [vmem:[#allocation4 + $0x28] sm:$0xff] %v1240_v11 }
 0x2f1   : > { %v1092_v33 = vpop.permute.xlu0 %1091 }
 0x2f2   : > { %v1117_v50 = vmul.f32 %v1092_v33, %v1021_v8 }
 0x2f4   : > { %v1238_v58 = vadd.f32 %v1217_v6, %v1117_v50 }
 0x2f6   : > { %1254 = vst [vmem:[#allocation4 + $0x70] sm:$0xff] %v1238_v58 }
 0x2f7 PF: > { %p1746_p13 = scmp.ne.s32.totalorder %s2052_s12, 1 }
 0x2f9   : > { %1276 = sbr.rel (%p1746_p13) target bundleno = 936 (0x3a8), region = 44 }
 0x2fe   : > { %v1281_v18 = vld [vmem:[#allocation3 + $0x20] sm:$0xff]  ;;  %v1279_v48 = vld [vmem:[#allocation3 + $0x10] sm:$0xff]  ;;  %v2089_v44 = vmov 0   ;;  %v1282_v54 = vld [vmem:[#allocation3 + $0x28] sm:$0xff] }
 0x2ff   : > { %v1277_v40 = vld [vmem:[#allocation3] sm:$0xff]  ;;  %1981 = vset.pattern.permute.xlu2 %v2089_v44  ;;  %1980 = vset.pattern.permute.xlu1 %v2089_v44  ;;  %1982 = vrcp.f32 %v1281_v18  ;;  %v1280_v14 = vld [vmem:[#allocation3 + $0x18] sm:$0xff]  ;;  %v1278_v46 = vld [vmem:[#allocation3 + $0x8] sm:$0xff] }
 0x300   : > { %1979 = vset.pattern.permute.xlu0 %v2089_v44  ;;  %1984 = vrcp.f32 %v1279_v48  ;;  %v1285_v52 = vld [vmem:[#allocation3 + $0x40] sm:$0xff]  ;;  %v1284_v38 = vld [vmem:[#allocation3 + $0x38] sm:$0xff]  ;;  %v1283_v16 = vld [vmem:[#allocation3 + $0x30] sm:$0xff] }
 0x301   : > { %1986 = vrcp.f32 %v1277_v40  ;;  %v1288_v4 = vld [vmem:[#allocation3 + $0x58] sm:$0xff]  ;;  %v1287_v42 = vld [vmem:[#allocation3 + $0x50] sm:$0xff]  ;;  %v1286_v59 = vld [vmem:[#allocation3 + $0x48] sm:$0xff] }
 0x302   : > { %1988 = vrcp.f32 %v1282_v54  ;;  %v1291_v61 = vld [vmem:[#allocation3 + $0x70] sm:$0xff]  ;;  %v1290_v3 = vld [vmem:[#allocation3 + $0x68] sm:$0xff]  ;;  %v1289_v32 = vld [vmem:[#allocation3 + $0x60] sm:$0xff] }
 0x303   : > { %1990 = vrcp.f32 %v1280_v14  ;;  %v1292_v6 = vld [vmem:[#allocation3 + $0x78] sm:$0xff]  ;;  %v1313_v9 = vld [vmem:[#allocation4 + $0x50] sm:$0xff]  ;;  %v1314_v29 = vld [vmem:[#allocation4 + $0x68] sm:$0xff] }
 0x304   : > { %1992 = vrcp.f32 %v1278_v46  ;;  %v1311_v19 = vld [vmem:[#allocation4 + $0x58] sm:$0xff]  ;;  %v1309_v5 = vld [vmem:[#allocation4 + $0x30] sm:$0xff]  ;;  %v1310_v22 = vld [vmem:[#allocation4] sm:$0xff] }
 0x305   : > { %v1983_v12 = vpop.eup %1982  ;;  %1994 = vrcp.f32 %v1285_v52  ;;  %v1312_v47 = vld [vmem:[#allocation4 + $0x18] sm:$0xff]  ;;  %v1316_v27 = vld [vmem:[#allocation4 + $0x48] sm:$0xff]  ;;  %v1319_v58 = vld [vmem:[#allocation4 + $0x10] sm:$0xff] }
 0x306   : > { %v1985_v36 = vpop.eup %1984  ;;  %1347 = vperm.xlu2 %1981, %v1983_v12   ;;  %1996 = vrcp.f32 %v1284_v38  ;;  %v1315_v56 = vld [vmem:[#allocation4 + $0x8] sm:$0xff]  ;;  %v1320_v50 = vld [vmem:[#allocation4 + $0x38] sm:$0xff]  ;;  %v1317_v18 = vld [vmem:[#allocation4 + $0x40] sm:$0xff] }
 0x307   : > { %v1987_v49 = vpop.eup %1986  ;;  %1337 = vperm.xlu1 %1980, %v1985_v36   ;;  %1998 = vrcp.f32 %v1283_v16  ;;  %v1318_v48 = vld [vmem:[#allocation4 + $0x20] sm:$0xff] }
 0x308   : > { %1327 = vperm.xlu0 %1979, %v1987_v49   ;;  %v1989_v51 = vpop.eup %1988  ;;  %2000 = vrcp.f32 %v1288_v4  ;;  %v1321_v38 = vld [vmem:[#allocation4 + $0x60] sm:$0xff] }
 0x309   : > { %v1991_v7 = vpop.eup %1990  ;;  %2002 = vrcp.f32 %v1287_v42  ;;  %v1323_v42 = vld [vmem:[#allocation4 + $0x78] sm:$0xff] }
 0x30a   : > { %v1993_v41 = vpop.eup %1992  ;;  %2004 = vrcp.f32 %v1286_v59  ;;  %v1324_v59 = vld [vmem:[#allocation4 + $0x28] sm:$0xff] }
 0x30b   : > { %v1995_v25 = vpop.eup %1994  ;;  %2006 = vrcp.f32 %v1291_v61 }
 0x30c   : > { %v1997_v20 = vpop.eup %1996  ;;  %2008 = vrcp.f32 %v1290_v3 }
 0x30d   : > { %v1999_v24 = vpop.eup %1998  ;;  %2010 = vrcp.f32 %v1289_v32 }
 0x30e   : > { %1352 = vperm.xlu2 %1981, %v1989_v51   ;;  %v2001_v57 = vpop.eup %2000  ;;  %2012 = vrcp.f32 %v1292_v6  ;;  %v1322_v51 = vld [vmem:[#allocation4 + $0x70] sm:$0xff] }
 0x30f   : > { %1342 = vperm.xlu1 %1980, %v1991_v7   ;;  %v2003_v2 = vpop.eup %2002 }
 0x310   : > { %1332 = vperm.xlu0 %1979, %v1993_v41   ;;  %v2005_v39 = vpop.eup %2004 }
 0x311   : > { %v2007_v35 = vpop.eup %2006 }
 0x312   : > { %v2009_v26 = vpop.eup %2008 }
 0x313   : > { %v2011_v45 = vpop.eup %2010 }
 0x314   : > { %v2013_v13 = vpop.eup %2012 }
 0x316   : > { %1367 = vperm.xlu2 %1981, %v1995_v25  }
 0x317   : > { %1362 = vperm.xlu1 %1980, %v1997_v20  }
 0x318   : > { %1357 = vperm.xlu0 %1979, %v1999_v24  }
 0x31e   : > { %1382 = vperm.xlu2 %1981, %v2001_v57  }
 0x31f   : > { %1377 = vperm.xlu1 %1980, %v2003_v2  }
 0x320   : > { %1372 = vperm.xlu0 %1979, %v2005_v39  }
 0x326   : > { %1397 = vperm.xlu2 %1981, %v2007_v35  }
 0x327   : > { %1392 = vperm.xlu1 %1980, %v2009_v26  }
 0x328   : > { %1387 = vperm.xlu0 %1979, %v2011_v45  }
 0x330   : > { %1402 = vperm.xlu0 %1979, %v2013_v13  }
 0x360   : > { %v1348_v0 = vpop.permute.xlu2 %1347 }
 0x361   : > { %v1409_v37 = vmul.f32 %v1348_v0, %v1313_v9 }
 0x368   : > { %v1353_v53 = vpop.permute.xlu2 %1352 }
 0x369   : > { %v1410_v1 = vmul.f32 %v1353_v53, %v1314_v29 }
 0x36b   : > { %v1786_v21 = vpack.c.bf16 %v1410_v1, %v1409_v37 }
 0x36d   : > { %1814 = vst [vmem:[%s2182_s10 + $0x10] sm:$0xff] %v1786_v21  }
 0x370   : > { %v1368_v23 = vpop.permute.xlu2 %1367 }
 0x371   : > { %v1413_v12 = vmul.f32 %v1368_v23, %v1317_v18 }
 0x378   : > { %v1383_v40 = vpop.permute.xlu2 %1382 }
 0x379   : > { %v1338_v63 = vpop.permute.xlu1 %1337  ;;  %v1416_v54 = vmul.f32 %v1383_v40, %v1320_v50 }
 0x37a   : > { %v1328_v30 = vpop.permute.xlu0 %1327  ;;  %v1407_v10 = vmul.f32 %v1338_v63, %v1311_v19 }
 0x37b   : > { %v1405_v34 = vmul.f32 %v1328_v30, %v1309_v5 }
 0x380   : > { %v1398_v20 = vpop.permute.xlu2 %1397 }
 0x381   : > { %v1343_v31 = vpop.permute.xlu1 %1342  ;;  %v1419_v61 = vmul.f32 %v1398_v20, %v1323_v42 }
 0x382   : > { %v1408_v43 = vmul.f32 %v1343_v31, %v1312_v47  ;;  %v1333_v55 = vpop.permute.xlu0 %1332 }
 0x383   : > { %v1406_v62 = vmul.f32 %v1333_v55, %v1310_v22 }
 0x384   : > { %v1781_v15 = vpack.c.bf16 %v1408_v43, %v1407_v10 }
 0x385   : > { %v1776_v60 = vpack.c.bf16 %v1406_v62, %v1405_v34 }
 0x386   : > { %1813 = vst [vmem:[%s2182_s10 + $0x8] sm:$0xff] %v1781_v15  }
 0x387   : > { %1777 = vst [vmem:[%s2182_s10] sm:$0xff] %v1776_v60  }
 0x389   : > { %v1363_v28 = vpop.permute.xlu1 %1362 }
 0x38a   : > { %v1412_v17 = vmul.f32 %v1363_v28, %v1316_v27  ;;  %v1358_v11 = vpop.permute.xlu0 %1357 }
 0x38b   : > { %v1411_v8 = vmul.f32 %v1358_v11, %v1315_v56 }
 0x38d   : > { %v1791_v33 = vpack.c.bf16 %v1412_v17, %v1411_v8 }
 0x38f   : > { %1815 = vst [vmem:[%s2182_s10 + $0x18] sm:$0xff] %v1791_v33  }
 0x391   : > { %v1378_v44 = vpop.permute.xlu1 %1377 }
 0x392   : > { %v1415_v14 = vmul.f32 %v1378_v44, %v1319_v58  ;;  %v1373_v46 = vpop.permute.xlu0 %1372 }
 0x393   : > { %v1414_v36 = vmul.f32 %v1373_v46, %v1318_v48 }
 0x394   : > { %v1801_v49 = vpack.c.bf16 %v1416_v54, %v1415_v14 }
 0x395   : > { %v1796_v52 = vpack.c.bf16 %v1414_v36, %v1413_v12 }
 0x396   : > { %1817 = vst [vmem:[%s2182_s10 + $0x28] sm:$0xff] %v1801_v49  }
 0x397   : > { %1816 = vst [vmem:[%s2182_s10 + $0x20] sm:$0xff] %v1796_v52  }
 0x399   : > { %v1393_v7 = vpop.permute.xlu1 %1392 }
 0x39a   : > { %v1418_v16 = vmul.f32 %v1393_v7, %v1322_v51  ;;  %v1388_v41 = vpop.permute.xlu0 %1387 }
 0x39b   : > { %v1417_v4 = vmul.f32 %v1388_v41, %v1321_v38 }
 0x39d   : > { %v1806_v25 = vpack.c.bf16 %v1418_v16, %v1417_v4 }
 0x39f   : > { %1818 = vst [vmem:[%s2182_s10 + $0x30] sm:$0xff] %v1806_v25  }
 0x3a2   : > { %v1403_v24 = vpop.permute.xlu0 %1402 }
 0x3a3   : > { %v1420_v57 = vmul.f32 %v1403_v24, %v1324_v59 }
 0x3a5   : > { %v1811_v3 = vpack.c.bf16 %v1420_v57, %v1419_v61 }
 0x3a7   : > { %1819 = vst [vmem:[%s2182_s10 + $0x38] sm:$0xff] %v1811_v3  }
 0x3a8 PF: > { %s13_s20 = sadd.s32 1, %s2084_s20   ;;  %s2692_s27 = sld [smem:[#allocation5_spill]] }
 0x3a9   : > { %p10_p0 = scmp.ge.s32.totalorder %s13_s20, 18   ;;  %s2693_s29 = sld [smem:[#allocation6_spill]] }
 0x3aa   : > { %s2694_s12 = smov %s2068_s16  ;;  %s2695_s13 = smov %s2072_s17 }
 0x3ab   : > { %s2696_s14 = smov %s2076_s18  ;;  %s2697_s15 = smov %s2080_s19 }
 0x3ac   : > { %s2698_s16 = smov %s2703_s21  ;;  %s2699_s17 = smov %s2707_s22 }
 0x3ad   :  { %12 = sbr.rel (!%p10_p0) target bundleno = 5 (0x5), region = 80 }
 0x3ae   : > { %s2700_s18 = smov %s2692_s27 }
 0x3af   : > { %s2701_s19 = smov %s2693_s29 }

// kernel: glm_forward.9
= control target key start
LH: loop header
LB: loop body
LE: loop exit
PB: predicated region body
PF: predicated region fallthrough
CT: control target
= control target key end

     0   :  { %s7509_s0 = inlined_call_operand.vmem [shape: f32[2,256,128], index: 0, kind: input, shape index: {}]   ;;  %s7510_s1 = inlined_call_operand.vmem [shape: bf16[2,2,256,128], index: 1, kind: input, shape index: {}]   ;;  %s7511_s2 = inlined_call_operand.vmem [shape: bf16[2,128,128], index: 2, kind: input, shape index: {}]   ;;  %s7512_s3 = inlined_call_operand.vmem [shape: f32[1,128], index: 3, kind: input, shape index: {}]   ;;  %s7513_s4 = inlined_call_operand.vmem [shape: bf16[128,512], index: 4, kind: input, shape index: {}]   ;;  %s7514_s5 = inlined_call_operand.vmem [shape: f32[1,512], index: 5, kind: input, shape index: {}]   ;;  %s7515_s6 = inlined_call_operand.vmem [shape: bf16[128,512], index: 6, kind: input, shape index: {}]   ;;  %s7516_s7 = inlined_call_operand.vmem [shape: f32[1,512], index: 7, kind: input, shape index: {}]   ;;  %s7517_s8 = inlined_call_operand.vmem [shape: bf16[512,128], index: 8, kind: input, shape index: {}]   ;;  %s7518_s9 = inlined_call_operand.vmem [shape: f32[1,128], index: 9, kind: input, shape index: {}]   ;;  %s7519_s10 = inlined_call_operand.vmem [shape: f32[1,128], index: 10, kind: input, shape index: {}]   ;;  %s7520_s11 = inlined_call_operand.vmem [shape: f32[1,128], index: 11, kind: input, shape index: {}]   ;;  %s7521_s12 = inlined_call_operand.vmem [shape: f32[2,256,128], index: 12, kind: output, shape index: {}]  }
   0x1   :  { %7570 = sst [smem:[#allocation79_spill]] %s7509_s0 }
   0x2   :  { %7571 = sst [smem:[#allocation80_spill]] %s7510_s1 }
   0x3   :  { %7572 = sst [smem:[#allocation81_spill]] %s7511_s2 }
   0x4   :  { %7573 = sst [smem:[#allocation82_spill]] %s7512_s3 }
   0x5   :  { %7574 = sst [smem:[#allocation83_spill]] %s7513_s4 }
   0x6   :  { %7575 = sst [smem:[#allocation84_spill]] %s7515_s6 }
   0x7   :  { %7576 = sst [smem:[#allocation85_spill]] %s7517_s8 }
   0x8   :  { %7577 = sst [smem:[#allocation86_spill]] %s7518_s9 }
   0x9   :  { %7578 = sst [smem:[#allocation87_spill]] %s7519_s10 }
   0xa   :  { %7579 = sst [smem:[#allocation88_spill]] %s7520_s11 }
   0xb   :  { %s4948_s21 = smov 0   ;;  %s4950_s22 = smov 0  }
   0xc   :  { %s4952_s23 = smov 0   ;;  %s4954_s24 = smov 0  }
   0xd   :  { %s4956_s25 = smov 0   ;;  %s4958_s26 = smov 0  }
   0xe   :  { %s4960_s27 = smov 0   ;;  %s4962_s28 = smov 0  }
   0xf   :  { %s4964_s29 = smov 0   ;;  %s4966_s30 = smov 0  }
  0x10   :  { %s4968_s13 = smov 0  }
  0x11 LB: > { %s34_s14 = sadd.s32 1, %s4867_s28  ;;  %s37_s15 = sadd.s32 1, %s4871_s29  ;;  %s4879_s13 = sphi %s4968_s13, %s22_s13   ;;  %s4875_s30 = sphi %s4966_s30, %s7826_s30   ;;  %s4871_s29 = sphi %s4964_s29, %s7825_s29   ;;  %s4867_s28 = sphi %s4962_s28, %s7824_s28   ;;  %s4863_s27 = sphi %s4960_s27, %s7823_s27   ;;  %s4859_s26 = sphi %s4958_s26, %s7822_s26   ;;  %s4855_s25 = sphi %s4956_s25, %s7821_s25   ;;  %s4851_s24 = sphi %s4954_s24, %s7820_s24   ;;  %s4847_s23 = sphi %s4952_s23, %s7819_s23   ;;  %s4843_s22 = sphi %s4950_s22, %s7818_s22   ;;  %s4839_s21 = sphi %s4948_s21, %s7817_s21  }
  0x12   : > { %p35_p0 = scmp.ge.s32.totalorder %s34_s14, 2  ;;  %s41_s16 = sadd.s32 1, %s4875_s30 }
  0x13   : > { %p85_p1 = scmp.ne.s32.totalorder %s4851_s24, %s4847_s23  ;;  %p86_p2 = scmp.eq.s32.totalorder %s4879_s13, 0 }
  0x14   : > { %s7828_s14 = smov (%p35_p0, %s34_s14), 0  ;;  %s7830_s15 = smov (!%p35_p0, %s37_s15), %s4871_s29 }
  0x15   : > { %7580 = sst [smem:[#allocation6_spill]] %s7828_s14  ;;  %s143_s17 = ssub.s32 %s4867_s28, %s7828_s14 }
  0x16   : > { %p39_p3 = scmp.ge.s32.totalorder %s7830_s15, 2  ;;  %p144_p4 = scmp.eq.s32.totalorder %s143_s17, 0 }
  0x17   : > { %p5016_p5 = por %p86_p2, %p85_p1  ;;  %s146_s19 = sadd.s32 1, %s4843_s22 }
  0x18   : > { %s7832_s15 = smov (%p39_p3, %s7830_s15), 0  ;;  %s7834_s16 = smov (!%p39_p3, %s41_s16), %s4875_s30 }
  0x19   : > { %7582 = sst [smem:[#allocation7_spill]] %s7832_s15  ;;  %p153_p6 = scmp.ne.s32.totalorder %s4843_s22, %s4839_s21 }
  0x1a   : > { %p43_p7 = scmp.ge.s32.totalorder %s7834_s16, 2  ;;  %s74_s20 = ssub.s32 %s4871_s29, %s7832_s15 }
  0x1b   : > { %s5029_s11 = scalar_select %p144_p4, %s4843_s22, %s146_s19  }
  0x1c   : > { %s7836_s16 = smov (%p43_p7, %s7834_s16), 0  ;;  %p5035_p8 = por %p153_p6, %p86_p2 }
  0x1d   : > { %7583 = sst [smem:[#allocation8_spill]] %s5029_s11  ;;  %s73_s14 = ssub.s32 %s4875_s30, %s7836_s16 }
  0x1e   : > { %7584 = sst [smem:[#allocation9_spill]] %s7836_s16  ;;  %s75_s10 = sor.u32 %s74_s20, %s73_s14 }
  0x1f   : > { %s78_s3 = sadd.s32 1, %s4851_s24  ;;  %p76_p9 = scmp.eq.s32.totalorder %s75_s10, 0 }
  0x20   : > { %p4042_p10 = scmp.ge.s32.totalorder %s4879_s13, 8 }
  0x21   : > { %s5043_s9 = scalar_select %p76_p9, %s4851_s24, %s78_s3  }
  0x22   : > { %389 = sbr.rel (%p4042_p10) target bundleno = 117 (0x75), region = 36 }
  0x27   : > { %405 = sbr.rel (!%p5016_p5) target bundleno = 65 (0x41), region = 44  ;;  %s407_s19 = sand.u32 (%p5016_p5), 1, %s4851_s24  }
  0x28   : > { %s4044_s15 = sshll.u32 (%p5016_p5), %s4871_s29, 4  ;;  %s4043_s11 = sshll.u32 (%p5016_p5), %s407_s19, 7 }
  0x29   : > { %s4045_s2 = sshll.u32 (%p5016_p5), %s4875_s30, 6  ;;  %s7586_s1 = sld [smem:[#allocation80_spill]] (%p5016_p5) }
  0x2a   : > { %s412_s8 = sadd.s32 (%p5016_p5), %s4045_s2, %s4044_s15  ;;  %s409_s2 = scalar_lea.vmem (%p5016_p5), [#allocation3], %s4043_s11 }
  0x2b   : > { %s4046_s16 = sshll.u32 (%p5016_p5), %s412_s8, 2 }
  0x2f   : > { %s5054_s3 = scalar_lea.vmem %s7586_s1, %s4046_s16 }
  0x30   : > { %v431_v0 = vld [vmem:[%s5054_s3] sm:$0xff]   ;;  %v435_v1 = vld [vmem:[%s5054_s3 + $0x8] sm:$0xff]   ;;  %v439_v2 = vld [vmem:[%s5054_s3 + $0x10] sm:$0xff]  }
  0x31   : > { %432 = vst [vmem:[%s409_s2] sm:$0xff] %v431_v0   ;;  %v443_v3 = vld [vmem:[%s5054_s3 + $0x18] sm:$0xff]   ;;  %v447_v4 = vld [vmem:[%s5054_s3 + $0x20] sm:$0xff]   ;;  %v451_v5 = vld [vmem:[%s5054_s3 + $0x28] sm:$0xff]  }
  0x32   : > { %436 = vst [vmem:[%s409_s2 + $0x8] sm:$0xff] %v435_v1   ;;  %v455_v6 = vld [vmem:[%s5054_s3 + $0x30] sm:$0xff]   ;;  %v459_v7 = vld [vmem:[%s5054_s3 + $0x38] sm:$0xff]   ;;  %v463_v8 = vld [vmem:[%s5054_s3 + $0x80] sm:$0xff]  }
  0x33   : > { %440 = vst [vmem:[%s409_s2 + $0x10] sm:$0xff] %v439_v2   ;;  %v467_v9 = vld [vmem:[%s5054_s3 + $0x88] sm:$0xff]   ;;  %v471_v10 = vld [vmem:[%s5054_s3 + $0x90] sm:$0xff]   ;;  %v475_v11 = vld [vmem:[%s5054_s3 + $0x98] sm:$0xff]  }
  0x34   : > { %444 = vst [vmem:[%s409_s2 + $0x18] sm:$0xff] %v443_v3   ;;  %v479_v12 = vld [vmem:[%s5054_s3 + $0xa0] sm:$0xff]   ;;  %v483_v13 = vld [vmem:[%s5054_s3 + $0xa8] sm:$0xff]   ;;  %v487_v14 = vld [vmem:[%s5054_s3 + $0xb0] sm:$0xff]  }
  0x35   : > { %448 = vst [vmem:[%s409_s2 + $0x20] sm:$0xff] %v447_v4   ;;  %v491_v15 = vld [vmem:[%s5054_s3 + $0xb8] sm:$0xff]  }
  0x36   : > { %452 = vst [vmem:[%s409_s2 + $0x28] sm:$0xff] %v451_v5  }
  0x37   : > { %456 = vst [vmem:[%s409_s2 + $0x30] sm:$0xff] %v455_v6  }
  0x38   : > { %460 = vst [vmem:[%s409_s2 + $0x38] sm:$0xff] %v459_v7  }
  0x39   : > { %464 = vst [vmem:[%s409_s2 + $0x40] sm:$0xff] %v463_v8  }
  0x3a   : > { %468 = vst [vmem:[%s409_s2 + $0x48] sm:$0xff] %v467_v9  }
  0x3b   : > { %472 = vst [vmem:[%s409_s2 + $0x50] sm:$0xff] %v471_v10  }
  0x3c   : > { %476 = vst [vmem:[%s409_s2 + $0x58] sm:$0xff] %v475_v11  }
  0x3d   : > { %480 = vst [vmem:[%s409_s2 + $0x60] sm:$0xff] %v479_v12  }
  0x3e   : > { %484 = vst [vmem:[%s409_s2 + $0x68] sm:$0xff] %v483_v13  }
  0x3f   : > { %488 = vst [vmem:[%s409_s2 + $0x70] sm:$0xff] %v487_v14  }
  0x40   : > { %492 = vst [vmem:[%s409_s2 + $0x78] sm:$0xff] %v491_v15  }
  0x41 PF: > { %582 = sbr.rel (!%p5035_p8) target bundleno = 91 (0x5b), region = 85  ;;  %s584_s8 = sand.u32 (%p5035_p8), 1, %s4843_s22  }
  0x42   : > { %s4423_s10 = sshll.u32 (%p5035_p8), %s4867_s28, 3  ;;  %s4047_s11 = sshll.u32 (%p5035_p8), %s584_s8, 7 }
  0x43   : > { %s7587_s4 = sld [smem:[#allocation83_spill]] (%p5035_p8)  ;;  %s586_s19 = scalar_lea.vmem (%p5035_p8), [#allocation4], %s4047_s11 }
  0x49   : > { %s5079_s18 = scalar_lea.vmem %s7587_s4, %s4423_s10 }
  0x4a   : > { %v648_v16 = vld [vmem:[%s5079_s18] sm:$0xff]  ;;  %v650_v17 = vld [vmem:[%s5079_s18 + $0x10] sm:$0xff] }
  0x4b   : > { %v652_v18 = vld [vmem:[%s5079_s18 + $0x20] sm:$0xff]  ;;  %649 = vst [vmem:[%s586_s19] sm:$0xff] %v648_v16  ;;  %v654_v19 = vld [vmem:[%s5079_s18 + $0x30] sm:$0xff] }
  0x4c   : > { %651 = vst [vmem:[%s586_s19 + $0x8] sm:$0xff] %v650_v17  ;;  %v656_v20 = vld [vmem:[%s5079_s18 + $0x40] sm:$0xff]  ;;  %v658_v21 = vld [vmem:[%s5079_s18 + $0x50] sm:$0xff] }
  0x4d   : > { %653 = vst [vmem:[%s586_s19 + $0x10] sm:$0xff] %v652_v18  ;;  %v660_v22 = vld [vmem:[%s5079_s18 + $0x60] sm:$0xff]  ;;  %v662_v23 = vld [vmem:[%s5079_s18 + $0x70] sm:$0xff] }
  0x4e   : > { %655 = vst [vmem:[%s586_s19 + $0x18] sm:$0xff] %v654_v19  ;;  %v664_v24 = vld [vmem:[%s5079_s18 + $0x80] sm:$0xff]  ;;  %v666_v25 = vld [vmem:[%s5079_s18 + $0x90] sm:$0xff] }
  0x4f   : > { %657 = vst [vmem:[%s586_s19 + $0x20] sm:$0xff] %v656_v20  ;;  %v668_v26 = vld [vmem:[%s5079_s18 + $0xa0] sm:$0xff]  ;;  %v670_v27 = vld [vmem:[%s5079_s18 + $0xb0] sm:$0xff] }
  0x50   : > { %659 = vst [vmem:[%s586_s19 + $0x28] sm:$0xff] %v658_v21  ;;  %v672_v28 = vld [vmem:[%s5079_s18 + $0xc0] sm:$0xff]  ;;  %v674_v29 = vld [vmem:[%s5079_s18 + $0xd0] sm:$0xff] }
  0x51   : > { %661 = vst [vmem:[%s586_s19 + $0x30] sm:$0xff] %v660_v22  ;;  %v676_v30 = vld [vmem:[%s5079_s18 + $0xe0] sm:$0xff]  ;;  %v678_v31 = vld [vmem:[%s5079_s18 + $0xf0] sm:$0xff] }
  0x52   : > { %663 = vst [vmem:[%s586_s19 + $0x38] sm:$0xff] %v662_v23 }
  0x53   : > { %665 = vst [vmem:[%s586_s19 + $0x40] sm:$0xff] %v664_v24 }
  0x54   : > { %667 = vst [vmem:[%s586_s19 + $0x48] sm:$0xff] %v666_v25 }
  0x55   : > { %669 = vst [vmem:[%s586_s19 + $0x50] sm:$0xff] %v668_v26 }
  0x56   : > { %671 = vst [vmem:[%s586_s19 + $0x58] sm:$0xff] %v670_v27 }
  0x57   : > { %673 = vst [vmem:[%s586_s19 + $0x60] sm:$0xff] %v672_v28 }
  0x58   : > { %675 = vst [vmem:[%s586_s19 + $0x68] sm:$0xff] %v674_v29 }
  0x59   : > { %677 = vst [vmem:[%s586_s19 + $0x70] sm:$0xff] %v676_v30 }
  0x5a   : > { %679 = vst [vmem:[%s586_s19 + $0x78] sm:$0xff] %v678_v31 }
  0x5b PF: > { %693 = sbr.rel (!%p5035_p8) target bundleno = 117 (0x75), region = 127  ;;  %s695_s14 = sand.u32 (%p5035_p8), 1, %s4843_s22  }
  0x5c   : > { %s4424_s20 = sshll.u32 (%p5035_p8), %s4867_s28, 3  ;;  %s4050_s3 = sshll.u32 (%p5035_p8), %s695_s14, 7 }
  0x5d   : > { %s7588_s6 = sld [smem:[#allocation84_spill]] (%p5035_p8)  ;;  %s697_s17 = scalar_lea.vmem (%p5035_p8), [#allocation5], %s4050_s3 }
  0x63   : > { %s5104_s10 = scalar_lea.vmem %s7588_s6, %s4424_s20 }
  0x64   : > { %v759_v32 = vld [vmem:[%s5104_s10] sm:$0xff]  ;;  %v761_v33 = vld [vmem:[%s5104_s10 + $0x10] sm:$0xff] }
  0x65   : > { %v763_v34 = vld [vmem:[%s5104_s10 + $0x20] sm:$0xff]  ;;  %760 = vst [vmem:[%s697_s17] sm:$0xff] %v759_v32  ;;  %v765_v35 = vld [vmem:[%s5104_s10 + $0x30] sm:$0xff] }
  0x66   : > { %762 = vst [vmem:[%s697_s17 + $0x8] sm:$0xff] %v761_v33  ;;  %v767_v36 = vld [vmem:[%s5104_s10 + $0x40] sm:$0xff]  ;;  %v769_v37 = vld [vmem:[%s5104_s10 + $0x50] sm:$0xff] }
  0x67   : > { %764 = vst [vmem:[%s697_s17 + $0x10] sm:$0xff] %v763_v34  ;;  %v771_v38 = vld [vmem:[%s5104_s10 + $0x60] sm:$0xff]  ;;  %v773_v39 = vld [vmem:[%s5104_s10 + $0x70] sm:$0xff] }
  0x68   : > { %766 = vst [vmem:[%s697_s17 + $0x18] sm:$0xff] %v765_v35  ;;  %v775_v40 = vld [vmem:[%s5104_s10 + $0x80] sm:$0xff]  ;;  %v777_v41 = vld [vmem:[%s5104_s10 + $0x90] sm:$0xff] }
  0x69   : > { %768 = vst [vmem:[%s697_s17 + $0x20] sm:$0xff] %v767_v36  ;;  %v779_v42 = vld [vmem:[%s5104_s10 + $0xa0] sm:$0xff]  ;;  %v781_v43 = vld [vmem:[%s5104_s10 + $0xb0] sm:$0xff] }
  0x6a   : > { %770 = vst [vmem:[%s697_s17 + $0x28] sm:$0xff] %v769_v37  ;;  %v783_v44 = vld [vmem:[%s5104_s10 + $0xc0] sm:$0xff]  ;;  %v785_v45 = vld [vmem:[%s5104_s10 + $0xd0] sm:$0xff] }
  0x6b   : > { %772 = vst [vmem:[%s697_s17 + $0x30] sm:$0xff] %v771_v38  ;;  %v787_v46 = vld [vmem:[%s5104_s10 + $0xe0] sm:$0xff]  ;;  %v789_v47 = vld [vmem:[%s5104_s10 + $0xf0] sm:$0xff] }
  0x6c   : > { %774 = vst [vmem:[%s697_s17 + $0x38] sm:$0xff] %v773_v39 }
  0x6d   : > { %776 = vst [vmem:[%s697_s17 + $0x40] sm:$0xff] %v775_v40 }
  0x6e   : > { %778 = vst [vmem:[%s697_s17 + $0x48] sm:$0xff] %v777_v41 }
  0x6f   : > { %780 = vst [vmem:[%s697_s17 + $0x50] sm:$0xff] %v779_v42 }
  0x70   : > { %782 = vst [vmem:[%s697_s17 + $0x58] sm:$0xff] %v781_v43 }
  0x71   : > { %784 = vst [vmem:[%s697_s17 + $0x60] sm:$0xff] %v783_v44 }
  0x72   : > { %786 = vst [vmem:[%s697_s17 + $0x68] sm:$0xff] %v785_v45 }
  0x73   : > { %788 = vst [vmem:[%s697_s17 + $0x70] sm:$0xff] %v787_v46 }
  0x74   : > { %790 = vst [vmem:[%s697_s17 + $0x78] sm:$0xff] %v789_v47 }
  0x75 PF: > { %p4053_p11 = scmp.ge.s32.totalorder %s4879_s13, 1  ;;  %p812_p12 = scmp.lt.s32.totalorder %s4879_s13, 9 }
  0x77   : > { %p813_p13 = pnand %p4053_p11, %p812_p12 }
  0x79   : > { %816 = sbr.rel (%p813_p13) target bundleno = 1390 (0x56e), region = 173 }
  0x7e   : > { %s819_s11 = sand.u32 1, %s4847_s23   ;;  %s826_s15 = sand.u32 1, %s4839_s21  }
  0x7f   : > { %s4054_s16 = sshll.u32 %s819_s11, 7  ;;  %s4055_s18 = sshll.u32 %s826_s15, 7 }
  0x80   : > { %s4057_s19 = sshll.u32 %s4859_s26, 4  ;;  %p909_p0 = scmp.lt.s32.totalorder %s4863_s27, 1 }
  0x81   : > { %p911_p1 = scmp.lt.s32.totalorder %s4057_s19, 31  ;;  %s4060_s14 = sshll.u32 %s4855_s25, 1 }
  0x82   : > { %s4062_s20 = sshll.u32 %s4855_s25, 5  ;;  %s7838_s27 = smov (!%p909_p0, %s4863_s27), 1 }
  0x83   : > { %s7840_s19 = smov (!%p911_p1, %s4057_s19), 31  ;;  %s4058_s3 = sshll.u32 %s7838_s27, 5 }
  0x84   : > { %p921_p2 = scmp.lt.s32.totalorder %s4060_s14, 3  ;;  %s914_s2 = sadd.s32 %s4058_s3, %s7840_s19 }
  0x85   : > { %p932_p3 = scmp.lt.s32.totalorder %s4062_s20, 63  ;;  %s4059_s8 = sshll.u32 %s914_s2, 3 }
  0x86   : > { %s7589_s0 = sld [smem:[#allocation79_spill]]  ;;  %s5139_s26 = scalar_lea.vmem %s7521_s12, %s4059_s8 }
  0x87   : > { %s7842_s14 = smov (!%p921_p2, %s4060_s14), 3  ;;  %s7844_s20 = smov (!%p932_p3, %s4062_s20), 63 }
  0x88   : > { %s923_s15 = scalar_lea.vmem %s7514_s5, %s7842_s14  ;;  %s929_s2 = scalar_lea.vmem %s7516_s7, %s7842_s14 }
  0x89   : > { %s4063_s10 = sshll.u32 %s7844_s20, 2  ;;  %s7590_s4 = sld [smem:[#allocation85_spill]] }
  0x8a   : > { %s5158_s23 = scalar_lea.vmem [#allocation4], %s4055_s18  ;;  %s5160_s6 = scalar_lea.vmem [#allocation5], %s4055_s18 }
  0x8b   : > { %p4067_p4 = scmp.ne.s32.totalorder %s4855_s25, 0 }
  0x8c   : > { %s5134_s1 = scalar_lea.vmem %s7589_s0, %s4059_s8  ;;  %s5156_s8 = scalar_lea.vmem [#allocation3], %s4054_s16 }
  0x8d   : > { %950 = sbr.rel (%p4067_p4) target bundleno = 163 (0xa3), region = 189 }
  0x8f   : > { %s5154_s21 = scalar_lea.vmem %s7590_s4, %s4063_s10 }
  0x92   : > { %v4881_v48 = vmov 0.0  }
  0x93   : > { %951 = vst [vmem:[#allocation2 + $0x30] sm:$0xff] %v4881_v48 }
  0x94   : > { %952 = vst [vmem:[#allocation2] sm:$0xff] %v4881_v48 }
  0x95   : > { %953 = vst [vmem:[#allocation2 + $0x58] sm:$0xff] %v4881_v48 }
  0x96   : > { %954 = vst [vmem:[#allocation2 + $0x18] sm:$0xff] %v4881_v48 }
  0x97   : > { %955 = vst [vmem:[#allocation2 + $0x50] sm:$0xff] %v4881_v48 }
  0x98   : > { %956 = vst [vmem:[#allocation2 + $0x68] sm:$0xff] %v4881_v48 }
  0x99   : > { %957 = vst [vmem:[#allocation2 + $0x8] sm:$0xff] %v4881_v48 }
  0x9a   : > { %958 = vst [vmem:[#allocation2 + $0x48] sm:$0xff] %v4881_v48 }
  0x9b   : > { %959 = vst [vmem:[#allocation2 + $0x40] sm:$0xff] %v4881_v48 }
  0x9c   : > { %960 = vst [vmem:[#allocation2 + $0x20] sm:$0xff] %v4881_v48 }
  0x9d   : > { %961 = vst [vmem:[#allocation2 + $0x10] sm:$0xff] %v4881_v48 }
  0x9e   : > { %962 = vst [vmem:[#allocation2 + $0x38] sm:$0xff] %v4881_v48 }
  0x9f   : > { %963 = vst [vmem:[#allocation2 + $0x60] sm:$0xff] %v4881_v48 }
  0xa0   : > { %964 = vst [vmem:[#allocation2 + $0x70] sm:$0xff] %v4881_v48 }
  0xa1   : > { %965 = vst [vmem:[#allocation2 + $0x78] sm:$0xff] %v4881_v48 }
  0xa2   : > { %966 = vst [vmem:[#allocation2 + $0x28] sm:$0xff] %v4881_v48 }
  0xa3 PF: > { %v4126_v49 = vld [vmem:[%s5158_s23 + $0x70] sm:$0xf]  ;;  %v4440_v50 = vld [vmem:[%s5158_s23 + $0x74] sm:$0xf0]  ;;  %v4439_v51 = vld [vmem:[%s5158_s23 + $0x74] sm:$0xf] }
  0xa4   : > { %v4127_v52 = vor.u32 %v4440_v50, %v4126_v49  ;;  %v4128_v53 = vld [vmem:[%s5158_s23 + $0x78] sm:$0xf0]  ;;  %v4118_v54 = vld [vmem:[%s5158_s23 + $0x60] sm:$0xf]  ;;  %v4438_v55 = vld [vmem:[%s5158_s23 + $0x64] sm:$0xf0] }
  0xa5   : > { %v4131_v56 = vor.u32 %v4439_v51, %v4128_v53  ;;  %v4437_v57 = vld [vmem:[%s5158_s23 + $0x64] sm:$0xf]  ;;  %v4120_v58 = vld [vmem:[%s5158_s23 + $0x68] sm:$0xf0]  ;;  %v4119_v59 = vor.u32 %v4438_v55, %v4118_v54  ;;  %v4110_v61 = vld [vmem:[%s5158_s23 + $0x50] sm:$0xf] }
  0xa6   : > { %4505 = vmatpush.bf16.msra.mxu2 %v4127_v52  ;;  %1093 = vmatpush.bf16.msra.mxu0 %v4127_v52  ;;  %v4123_v60 = vor.u32 %v4437_v57, %v4120_v58  ;;  %v4436_v62 = vld [vmem:[%s5158_s23 + $0x54] sm:$0xf0]  ;;  %v4435_v63 = vld [vmem:[%s5158_s23 + $0x54] sm:$0xf]  ;;  %v4112_v0 = vld [vmem:[%s5158_s23 + $0x58] sm:$0xf0] }
  0xa7   : > { %4513 = vmatpush.bf16.msra.mxu3 %v4131_v56  ;;  %1142 = vmatpush.bf16.msra.mxu1 %v4131_v56  ;;  %v4111_v1 = vor.u32 %v4436_v62, %v4110_v61  ;;  %v4115_v2 = vor.u32 %v4435_v63, %v4112_v0  ;;  %v4102_v3 = vld [vmem:[%s5158_s23 + $0x40] sm:$0xf]  ;;  %v4434_v4 = vld [vmem:[%s5158_s23 + $0x44] sm:$0xf0]  ;;  %v4433_v5 = vld [vmem:[%s5158_s23 + $0x44] sm:$0xf] }
  0xa8   : > { %v4104_v6 = vld [vmem:[%s5158_s23 + $0x48] sm:$0xf0]  ;;  %v4103_v7 = vor.u32 %v4434_v4, %v4102_v3  ;;  %v4094_v9 = vld [vmem:[%s5158_s23 + $0x30] sm:$0xf]  ;;  %v4432_v10 = vld [vmem:[%s5158_s23 + $0x34] sm:$0xf0] }
  0xa9   : > { %v4107_v8 = vor.u32 %v4433_v5, %v4104_v6  ;;  %v4431_v11 = vld [vmem:[%s5158_s23 + $0x34] sm:$0xf]  ;;  %v4096_v12 = vld [vmem:[%s5158_s23 + $0x38] sm:$0xf0]  ;;  %v4095_v13 = vor.u32 %v4432_v10, %v4094_v9  ;;  %v4086_v15 = vld [vmem:[%s5158_s23 + $0x20] sm:$0xf] }
  0xaa   : > { %4506 = vmatpush.bf16.msra.mxu2 %v4119_v59  ;;  %1094 = vmatpush.bf16.msra.mxu0 %v4119_v59  ;;  %v4099_v14 = vor.u32 %v4431_v11, %v4096_v12  ;;  %v4430_v16 = vld [vmem:[%s5158_s23 + $0x24] sm:$0xf0]  ;;  %v4429_v17 = vld [vmem:[%s5158_s23 + $0x24] sm:$0xf]  ;;  %v4088_v18 = vld [vmem:[%s5158_s23 + $0x28] sm:$0xf0] }
  0xab   : > { %4514 = vmatpush.bf16.msra.mxu3 %v4123_v60  ;;  %1143 = vmatpush.bf16.msra.mxu1 %v4123_v60  ;;  %v4087_v19 = vor.u32 %v4430_v16, %v4086_v15  ;;  %v4091_v20 = vor.u32 %v4429_v17, %v4088_v18  ;;  %v4078_v21 = vld [vmem:[%s5158_s23 + $0x10] sm:$0xf]  ;;  %v4428_v22 = vld [vmem:[%s5158_s23 + $0x14] sm:$0xf0]  ;;  %v4427_v23 = vld [vmem:[%s5158_s23 + $0x14] sm:$0xf] }
  0xac   : > { %v4080_v24 = vld [vmem:[%s5158_s23 + $0x18] sm:$0xf0]  ;;  %v4079_v25 = vor.u32 %v4428_v22, %v4078_v21  ;;  %v4070_v27 = vld [vmem:[%s5158_s23] sm:$0xf]  ;;  %v4426_v28 = vld [vmem:[%s5158_s23 + $0x4] sm:$0xf0] }
  0xad   : > { %v4083_v26 = vor.u32 %v4427_v23, %v4080_v24  ;;  %v4425_v29 = vld [vmem:[%s5158_s23 + $0x4] sm:$0xf]  ;;  %v4072_v30 = vld [vmem:[%s5158_s23 + $0x8] sm:$0xf0]  ;;  %v4190_v31 = vld [vmem:[%s5160_s6 + $0x70] sm:$0xf]  ;;  %v4071_v35 = vor.u32 %v4426_v28, %v4070_v27 }
  0xae   : > { %4507 = vmatpush.bf16.msra.mxu2 %v4111_v1  ;;  %1095 = vmatpush.bf16.msra.mxu0 %v4111_v1  ;;  %v4456_v32 = vld [vmem:[%s5160_s6 + $0x74] sm:$0xf0]  ;;  %v4455_v33 = vld [vmem:[%s5160_s6 + $0x74] sm:$0xf]  ;;  %v4192_v34 = vld [vmem:[%s5160_s6 + $0x78] sm:$0xf0]  ;;  %v4075_v38 = vor.u32 %v4425_v29, %v4072_v30 }
  0xaf   : > { %4515 = vmatpush.bf16.msra.mxu3 %v4115_v2  ;;  %1144 = vmatpush.bf16.msra.mxu1 %v4115_v2  ;;  %v975_v36 = vld [vmem:[%s5134_s1 + $0x40] sm:$0xff]  ;;  %v976_v37 = vld [vmem:[%s5134_s1 + $0x48] sm:$0xff]  ;;  %v4191_v39 = vor.u32 %v4456_v32, %v4190_v31  ;;  %v4195_v40 = vor.u32 %v4455_v33, %v4192_v34  ;;  %v4174_v48 = vld [vmem:[%s5160_s6 + $0x50] sm:$0xf]  ;;  %p4260_p5 = scmp.ne.s32.totalorder %s4855_s25, 1 }
  0xb0   : > { %v4182_v41 = vld [vmem:[%s5160_s6 + $0x60] sm:$0xf]  ;;  %v4454_v42 = vld [vmem:[%s5160_s6 + $0x64] sm:$0xf0]  ;;  %v5203_v43 = vpack.c.bf16 %v976_v37, %v975_v36  ;;  %v4453_v44 = vld [vmem:[%s5160_s6 + $0x64] sm:$0xf] }
  0xb1   : > { %v4184_v45 = vld [vmem:[%s5160_s6 + $0x68] sm:$0xf0]  ;;  %v4183_v46 = vor.u32 %v4454_v42, %v4182_v41  ;;  %v4452_v49 = vld [vmem:[%s5160_s6 + $0x54] sm:$0xf0]  ;;  %v4451_v50 = vld [vmem:[%s5160_s6 + $0x54] sm:$0xf] }
  0xb2   : > { %4508 = vmatpush.bf16.msra.mxu2 %v4103_v7  ;;  %1096 = vmatpush.bf16.msra.mxu0 %v4103_v7  ;;  %v4187_v47 = vor.u32 %v4453_v44, %v4184_v45  ;;  %v4176_v51 = vld [vmem:[%s5160_s6 + $0x58] sm:$0xf0]  ;;  %v4175_v52 = vor.u32 %v4452_v49, %v4174_v48  ;;  %v4166_v54 = vld [vmem:[%s5160_s6 + $0x40] sm:$0xf]  ;;  %v4450_v55 = vld [vmem:[%s5160_s6 + $0x44] sm:$0xf0] }
  0xb3   : > { %4516 = vmatpush.bf16.msra.mxu3 %v4107_v8  ;;  %1145 = vmatpush.bf16.msra.mxu1 %v4107_v8  ;;  %v4179_v53 = vor.u32 %v4451_v50, %v4176_v51  ;;  %v4449_v56 = vld [vmem:[%s5160_s6 + $0x44] sm:$0xf]  ;;  %v4168_v57 = vld [vmem:[%s5160_s6 + $0x48] sm:$0xf0]  ;;  %v4167_v58 = vor.u32 %v4450_v55, %v4166_v54  ;;  %v4158_v60 = vld [vmem:[%s5160_s6 + $0x30] sm:$0xf] }
  0xb4   : > { %v4171_v59 = vor.u32 %v4449_v56, %v4168_v57  ;;  %v4448_v61 = vld [vmem:[%s5160_s6 + $0x34] sm:$0xf0]  ;;  %v4447_v62 = vld [vmem:[%s5160_s6 + $0x34] sm:$0xf]  ;;  %v4160_v63 = vld [vmem:[%s5160_s6 + $0x38] sm:$0xf0] }
  0xb5   : > { %v977_v0 = vld [vmem:[%s5134_s1 + $0x50] sm:$0xff]  ;;  %v978_v1 = vld [vmem:[%s5134_s1 + $0x58] sm:$0xff]  ;;  %v4159_v2 = vor.u32 %v4448_v61, %v4158_v60  ;;  %v4163_v3 = vor.u32 %v4447_v62, %v4160_v63  ;;  %v4150_v4 = vld [vmem:[%s5160_s6 + $0x20] sm:$0xf]  ;;  %s7808_s20 = sld [smem:[#allocation81_spill]] (!%p4260_p5) }
  0xb6   : > { %4509 = vmatpush.bf16.msra.mxu2 %v4095_v13  ;;  %1097 = vmatpush.bf16.msra.mxu0 %v4095_v13  ;;  %v4446_v5 = vld [vmem:[%s5160_s6 + $0x24] sm:$0xf0]  ;;  %v5225_v6 = vpack.c.bf16 %v978_v1, %v977_v0  ;;  %v4445_v7 = vld [vmem:[%s5160_s6 + $0x24] sm:$0xf]  ;;  %v4152_v8 = vld [vmem:[%s5160_s6 + $0x28] sm:$0xf0] }
  0xb7   : > { %4517 = vmatpush.bf16.msra.mxu3 %v4099_v14  ;;  %1146 = vmatpush.bf16.msra.mxu1 %v4099_v14  ;;  %v4151_v9 = vor.u32 %v4446_v5, %v4150_v4  ;;  %v4155_v10 = vor.u32 %v4445_v7, %v4152_v8  ;;  %v4142_v11 = vld [vmem:[%s5160_s6 + $0x10] sm:$0xf]  ;;  %v4444_v12 = vld [vmem:[%s5160_s6 + $0x14] sm:$0xf0]  ;;  %v4443_v13 = vld [vmem:[%s5160_s6 + $0x14] sm:$0xf] }
  0xb8   : > { %v4143_v14 = vor.u32 %v4444_v12, %v4142_v11  ;;  %v4144_v15 = vld [vmem:[%s5160_s6 + $0x18] sm:$0xf0]  ;;  %v4134_v17 = vld [vmem:[%s5160_s6] sm:$0xf]  ;;  %v4442_v18 = vld [vmem:[%s5160_s6 + $0x4] sm:$0xf0] }
  0xb9   : > { %v4147_v16 = vor.u32 %v4443_v13, %v4144_v15  ;;  %v4136_v21 = vld [vmem:[%s5160_s6 + $0x8] sm:$0xf0]  ;;  %v4135_v24 = vor.u32 %v4442_v18, %v4134_v17  ;;  %v969_v29 = vld [vmem:[%s5134_s1 + $0x10] sm:$0xff]  ;;  %v970_v30 = vld [vmem:[%s5134_s1 + $0x18] sm:$0xff]  ;;  %s7809_s18 = sld [smem:[#allocation86_spill]] (!%p4260_p5) }
  0xba   : > { %4510 = vmatpush.bf16.msra.mxu2 %v4087_v19  ;;  %1098 = vmatpush.bf16.msra.mxu0 %v4087_v19  ;;  %v967_v19 = vld [vmem:[%s5134_s1] sm:$0xff]  ;;  %v968_v22 = vld [vmem:[%s5134_s1 + $0x8] sm:$0xff]  ;;  %v984_v31 = vpack.c.bf16 %v970_v30, %v969_v29  ;;  %v981_v32 = vld [vmem:[%s5134_s1 + $0x70] sm:$0xff]  ;;  %s7810_s11 = sld [smem:[#allocation82_spill]] (!%p4260_p5) }
  0xbb   : > { %4518 = vmatpush.bf16.msra.mxu3 %v4091_v20  ;;  %1147 = vmatpush.bf16.msra.mxu1 %v4091_v20  ;;  %v4441_v20 = vld [vmem:[%s5160_s6 + $0x4] sm:$0xf]  ;;  %v983_v23 = vpack.c.bf16 %v968_v22, %v967_v19  ;;  %v980_v27 = vld [vmem:[%s5134_s1 + $0x68] sm:$0xff]  ;;  %v982_v33 = vld [vmem:[%s5134_s1 + $0x78] sm:$0xff] }
  0xbc   : > { %v990_v34 = vpack.c.bf16 %v982_v33, %v981_v32  ;;  %v972_v36 = vld [vmem:[%s5134_s1 + $0x28] sm:$0xff]  ;;  %v4464_v56 = vld [vmem:[%s5154_s21 + $0x38] sm:$0xff]  ;;  %v4463_v0 = vld [vmem:[%s5154_s21 + $0x30] sm:$0xff] }
  0xbd   : > { %v4472_v57 = vld [vmem:[%s5154_s21 + $0x78] sm:$0xff]  ;;  %v4471_v1 = vld [vmem:[%s5154_s21 + $0x70] sm:$0xff]  ;;  %v4470_v15 = vld [vmem:[%s5154_s21 + $0x68] sm:$0xff] }
  0xbe   : > { %4511 = vmatpush.bf16.msra.mxu2 %v4079_v25  ;;  %1099 = vmatpush.bf16.msra.mxu0 %v4079_v25  ;;  %v4139_v25 = vor.u32 %v4441_v20, %v4136_v21  ;;  %v1007_v20 = vld [vmem:[%s923_s15] sm:$0x3]  ;;  %s7811_s15 = sld [smem:[#allocation87_spill]] (!%p4260_p5) }
  0xbf   : > { %4519 = vmatpush.bf16.msra.mxu3 %v4083_v26  ;;  %1148 = vmatpush.bf16.msra.mxu1 %v4083_v26  ;;  %v979_v26 = vld [vmem:[%s5134_s1 + $0x60] sm:$0xff]  ;;  %v5349_v29 = vperm.slane %v1007_v20, 1 }
  0xc0   : > { %v989_v28 = vpack.c.bf16 %v980_v27, %v979_v26  ;;  %v5346_v27 = vperm.slane %v1007_v20, 0 }
  0xc2   : > { %4512 = vmatpush.bf16.msra.mxu2 %v4071_v35  ;;  %1100 = vmatpush.bf16.msra.mxu0 %v4071_v35  ;;  %v971_v35 = vld [vmem:[%s5134_s1 + $0x20] sm:$0xff] }
  0xc3   : > { %4520 = vmatpush.bf16.msra.mxu3 %v4075_v38  ;;  %1149 = vmatpush.bf16.msra.mxu1 %v4075_v38  ;;  %v985_v37 = vpack.c.bf16 %v972_v36, %v971_v35  ;;  %v973_v38 = vld [vmem:[%s5134_s1 + $0x30] sm:$0xff]  ;;  %v4461_v36 = vld [vmem:[%s5154_s21 + $0x20] sm:$0xff] }
  0xc5   : > { %1121 = vmatmul.bf16.vlgmr.msra.gmra.mxu2 %v5203_v43  ;;  %1101 = vmatmul.bf16.vlgmr.msra.gmra.mxu0 %v983_v23 }
  0xc6   : > { %1293 = vmatpush.bf16.msrb.mxu2 %v4191_v39  ;;  %1170 = vmatmul.bf16.vlgmr.msra.gmra.mxu3 %v5203_v43  ;;  %v974_v39 = vld [vmem:[%s5134_s1 + $0x38] sm:$0xff] }
  0xc7   : > { %1342 = vmatpush.bf16.msrb.mxu3 %v4195_v40  ;;  %1150 = vmatmul.bf16.vlgmr.msra.gmra.mxu1 %v983_v23  ;;  %v986_v40 = vpack.c.bf16 %v974_v39, %v973_v38 }
  0xc8   : > { %2863 = vmatpush.bf16.msrb.mxu0 %v4464_v56  ;;  %2912 = vmatpush.bf16.msrb.mxu1 %v4472_v57 }
  0xca   : > { %1294 = vmatpush.bf16.msrb.mxu2 %v4183_v46 }
  0xcb   : > { %1343 = vmatpush.bf16.msrb.mxu3 %v4187_v47 }
  0xcc   : > { %2864 = vmatpush.bf16.msrb.mxu0 %v4463_v0  ;;  %2913 = vmatpush.bf16.msrb.mxu1 %v4471_v1 }
  0xce   : > { %1295 = vmatpush.bf16.msrb.mxu2 %v4175_v52 }
  0xcf   : > { %1344 = vmatpush.bf16.msrb.mxu3 %v4179_v53 }
  0xd0   : > { %2914 = vmatpush.bf16.msrb.mxu1 %v4470_v15  ;;  %v4460_v15 = vld [vmem:[%s5154_s21 + $0x18] sm:$0xff] }
  0xd2   : > { %1296 = vmatpush.bf16.msrb.mxu2 %v4167_v58 }
  0xd3   : > { %1345 = vmatpush.bf16.msrb.mxu3 %v4171_v59  ;;  %v1207_v59 = vld [vmem:[%s929_s2] sm:$0x3]  ;;  %s7812_s2 = sld [smem:[#allocation88_spill]] (!%p4260_p5) }
  0xd4   : > { %v5294_v61 = vperm.slane %v1207_v59, 0  ;;  %v5296_v62 = vperm.slane %v1207_v59, 1 }
  0xd5   : > { %1126 = vmatmul.bf16.gmra.mxu2 %v5225_v6  ;;  %1106 = vmatmul.bf16.gmra.mxu0 %v984_v31 }
  0xd6   : > { %1297 = vmatpush.bf16.msrb.mxu2 %v4159_v2  ;;  %1175 = vmatmul.bf16.gmra.mxu3 %v5225_v6 }
  0xd7   : > { %1346 = vmatpush.bf16.msrb.mxu3 %v4163_v3  ;;  %1155 = vmatmul.bf16.gmra.mxu1 %v984_v31 }
  0xda   : > { %1298 = vmatpush.bf16.msrb.mxu2 %v4151_v9 }
  0xdb   : > { %1347 = vmatpush.bf16.msrb.mxu3 %v4155_v10 }
  0xde   : > { %1299 = vmatpush.bf16.msrb.mxu2 %v4143_v14  ;;  %v4462_v14 = vld [vmem:[%s5154_s21 + $0x28] sm:$0xff] }
  0xdf   : > { %1348 = vmatpush.bf16.msrb.mxu3 %v4147_v16  ;;  %2865 = vmatpush.bf16.msrb.mxu0 %v4462_v14 }
  0xe2   : > { %1300 = vmatpush.bf16.msrb.mxu2 %v4135_v24 }
  0xe3   : > { %1349 = vmatpush.bf16.msrb.mxu3 %v4139_v25  ;;  %2866 = vmatpush.bf16.msrb.mxu0 %v4461_v36 }
  0xe5   : > { %1131 = vmatmul.bf16.gmra.mxu2 %v989_v28  ;;  %1111 = vmatmul.bf16.gmra.mxu0 %v985_v37 }
  0xe6   : > { %1180 = vmatmul.bf16.gmra.mxu3 %v989_v28 }
  0xe7   : > { %1160 = vmatmul.bf16.gmra.mxu1 %v985_v37  ;;  %2867 = vmatpush.bf16.msrb.mxu0 %v4460_v15 }
  0xf5   : > { %1136 = vmatmul.bf16.gmra.mxu2 %v990_v34  ;;  %1116 = vmatmul.bf16.gmra.mxu0 %v986_v40 }
  0xf6   : > { %1185 = vmatmul.bf16.gmra.mxu3 %v990_v34 }
  0xf7   : > { %1165 = vmatmul.bf16.gmra.mxu1 %v986_v40 }
 0x105   : > { %1301 = vmatmul.bf16.vlgmr.msrb.gmra.mxu2 %v983_v23 }
 0x106   : > { %1350 = vmatmul.bf16.vlgmr.msrb.gmra.mxu3 %v983_v23 }
 0x115   : > { %1306 = vmatmul.bf16.gmra.mxu2 %v984_v31 }
 0x116   : > { %1355 = vmatmul.bf16.gmra.mxu3 %v984_v31 }
 0x125   : > { %1311 = vmatmul.bf16.gmra.mxu2 %v985_v37 }
 0x126   : > { %1360 = vmatmul.bf16.gmra.mxu3 %v985_v37  ;;  %v4469_v37 = vld [vmem:[%s5154_s21 + $0x60] sm:$0xff] }
 0x127   : > { %2915 = vmatpush.bf16.msrb.mxu1 %v4469_v37 }
 0x135   : > { %1316 = vmatmul.bf16.gmra.mxu2 %v986_v40 }
 0x136   : > { %1365 = vmatmul.bf16.gmra.mxu3 %v986_v40 }
 0x145   : > { %1321 = vmatmul.bf16.gmra.mxu2 %v5203_v43 }
 0x146   : > { %1370 = vmatmul.bf16.gmra.mxu3 %v5203_v43 }
 0x148   : > { %v5253_v41 = vpop.f32.mrf.mxu2 }
 0x149   : > { %v5255_v42 = vpop.f32.mrf.mxu3  ;;  %v5369_v38 = vadd.f32 %v5253_v41, %v5346_v27 }
 0x14a   : > { %v5373_v39 = vadd.f32 %v5255_v42, %v5349_v29 }
 0x14b   : > { %7596 = vst [vmem:[#allocation15_spill] sm:$0xff] %v5369_v38 }
 0x14c   : > { %7597 = vst [vmem:[#allocation16_spill] sm:$0xff] %v5373_v39 }
 0x150   : > { %v5257_v44 = vpop.f32.mrf.mxu2 }
 0x151   : > { %v5259_v45 = vpop.f32.mrf.mxu3  ;;  %v5383_v57 = vadd.f32 %v5257_v44, %v5346_v27 }
 0x152   : > { %v5387_v59 = vadd.f32 %v5259_v45, %v5349_v29 }
 0x153   : > { %7599 = vst [vmem:[#allocation18_spill] sm:$0xff] %v5383_v57  ;;  %v4458_v57 = vld [vmem:[%s5154_s21 + $0x8] sm:$0xff] }
 0x154   : > { %7600 = vst [vmem:[#allocation19_spill] sm:$0xff] %v5387_v59 }
 0x155   : > { %1326 = vmatmul.bf16.gmra.mxu2 %v5225_v6 }
 0x156   : > { %1375 = vmatmul.bf16.gmra.mxu3 %v5225_v6 }
 0x158   : > { %v5263_v46 = vpop.f32.mrf.mxu2 }
 0x159   : > { %v5265_v47 = vpop.f32.mrf.mxu3 }
 0x15a   : > { %v5400_v44 = vadd.f32 %v5265_v47, %v5349_v29 }
 0x15c   : > { %7603 = vst [vmem:[#allocation22_spill] sm:$0xff] %v5400_v44 }
 0x160   : > { %v5267_v48 = vpop.f32.mrf.mxu2 }
 0x161   : > { %v5269_v43 = vpop.f32.mrf.mxu3  ;;  %v5404_v45 = vadd.f32 %v5267_v48, %v5346_v27 }
 0x163   : > { %7604 = vst [vmem:[#allocation23_spill] sm:$0xff] %v5404_v45 }
 0x165   : > { %1331 = vmatmul.bf16.gmra.mxu2 %v989_v28 }
 0x166   : > { %1380 = vmatmul.bf16.gmra.mxu3 %v989_v28 }
 0x168   : > { %v5271_v49 = vpop.f32.mrf.mxu2 }
 0x169   : > { %v5273_v50 = vpop.f32.mrf.mxu3 }
 0x16a   : > { %v5421_v47 = vadd.f32 %v5273_v50, %v5349_v29 }
 0x16c   : > { %7607 = vst [vmem:[#allocation26_spill] sm:$0xff] %v5421_v47 }
 0x170   : > { %v5275_v51 = vpop.f32.mrf.mxu2 }
 0x171   : > { %v5277_v52 = vpop.f32.mrf.mxu3  ;;  %v5425_v48 = vadd.f32 %v5275_v51, %v5346_v27 }
 0x172   : > { %v5441_v51 = vadd.f32 %v5277_v52, %v5349_v29 }
 0x173   : > { %7608 = vst [vmem:[#allocation27_spill] sm:$0xff] %v5425_v48 }
 0x174   : > { %7609 = vst [vmem:[#allocation28_spill] sm:$0xff] %v5441_v51 }
 0x175   : > { %1336 = vmatmul.bf16.gmra.mxu2 %v990_v34 }
 0x176   : > { %1385 = vmatmul.bf16.gmra.mxu3 %v990_v34 }
 0x178   : > { %v5279_v53 = vpop.f32.mrf.mxu2 }
 0x179   : > { %7591 = vst [vmem:[#allocation10_spill] sm:$0xff] %v5279_v53  ;;  %v5281_v54 = vpop.f32.mrf.mxu3 }
 0x17a   : > { %7592 = vst [vmem:[#allocation11_spill] sm:$0xff] %v5281_v54  ;;  %v4467_v54 = vld [vmem:[%s5154_s21 + $0x50] sm:$0xff] }
 0x180   : > { %v5283_v55 = vpop.f32.mrf.mxu2 }
 0x181   : > { %7593 = vst [vmem:[#allocation12_spill] sm:$0xff] %v5283_v55  ;;  %v5287_v58 = vpop.f32.mrf.mxu3 }
 0x182   : > { %7594 = vst [vmem:[#allocation13_spill] sm:$0xff] %v5287_v58 }
 0x188   : > { %v1302_v60 = vpop.f32.mrf.mxu2 }
 0x189   : > { %v1351_v63 = vpop.f32.mrf.mxu3  ;;  %v5301_v2 = vadd.f32 %v1302_v60, %v5294_v61 }
 0x18a   : > { %v5304_v3 = vadd.f32 %v1351_v63, %v5296_v62  ;;  %v5396_v63 = vadd.f32 %v5263_v46, %v5346_v27  ;;  %v5416_v46 = vadd.f32 %v5271_v49, %v5346_v27  ;;  %v4468_v49 = vld [vmem:[%s5154_s21 + $0x58] sm:$0xff] }
 0x18b   : > { %v5307_v5 = vmul.f32 0.70710677, %v5301_v2  ;;  %v5444_v20 = vmul.f32 0.5, %v5301_v2  ;;  %2916 = vmatpush.bf16.msrb.mxu1 %v4468_v49 }
 0x18c   : > { %v5310_v6 = vmul.f32 0.70710677, %v5304_v3  ;;  %7602 = vst [vmem:[#allocation21_spill] sm:$0xff] %v5396_v63 }
 0x18d   : > { %v1455_v9 = vand.u32 2147483647, %v5307_v5  ;;  %7606 = vst [vmem:[#allocation25_spill] sm:$0xff] %v5416_v46 }
 0x18e   : > { %v1456_v10 = vand.u32 2147483647, %v5310_v6 }
 0x18f   : > { %v1487_v16 = vmul.f32 0.3275911, %v1455_v9  ;;  %v2319_v34 = vsub.f32 0.0, %v1455_v9  ;;  %2917 = vmatpush.bf16.msrb.mxu1 %v4467_v54 }
 0x190   : > { %v1304_v4 = vpop.f32.mrf.mxu2  ;;  %v1488_v17 = vmul.f32 0.3275911, %v1456_v10  ;;  %v2320_v41 = vsub.f32 0.0, %v1456_v10 }
 0x191   : > { %v5313_v7 = vadd.f32 %v1304_v4, %v5294_v61  ;;  %v1353_v8 = vpop.f32.mrf.mxu3  ;;  %v5336_v21 = vadd.f32 1.0, %v1487_v16  ;;  %v5412_v4 = vadd.f32 %v5269_v43, %v5349_v29 }
 0x192   : > { %v5318_v12 = vadd.f32 %v1353_v8, %v5296_v62  ;;  %v5341_v23 = vadd.f32 1.0, %v1488_v17  ;;  %v2351_v8 = vmul.f32 %v2319_v34, %v1455_v9  ;;  %v2352_v17 = vmul.f32 %v2320_v41, %v1456_v10 }
 0x193   : > { %v5321_v13 = vmul.f32 0.70710677, %v5313_v7  ;;  %4627 = vrcp.f32 %v5336_v21  ;;  %7605 = vst [vmem:[#allocation24_spill] sm:$0xff] %v5412_v4  ;;  %v1562_v16 = vand.u32 2147483648, %v5336_v21  ;;  %v5465_v58 = vmul.f32 0.5, %v5313_v7 }
 0x194   : > { %v5326_v18 = vmul.f32 0.70710677, %v5318_v12  ;;  %4629 = vrcp.f32 %v5341_v23  ;;  %v2383_v10 = vmul.f32 1.442695, %v2351_v8  ;;  %v2385_v8 = vmul.f32 1.442695, %v2352_v17 }
 0x195   : > { %v5329_v19 = vand.u32 2147483647, %v5321_v13  ;;  %v5461_v15 = vor.u32 1.1754944e-38, %v1562_v16  ;;  %v5477_v16 = vmul.f32 0.5, %v5318_v12  ;;  %vm1556_vm0 = vweird.f32 %v5336_v21 }
 0x196   : > { %v5344_v25 = vand.u32 2147483647, %v5326_v18  ;;  %v7617_v39 = vand.u32 2147483647, %v5336_v21  ;;  %vm1571_vm5 = vweird.f32 %v5341_v23 }
 0x197   : > { %v1489_v28 = vmul.f32 0.3275911, %v5329_v19  ;;  %v2321_v52 = vsub.f32 0.0, %v5329_v19  ;;  %7610 = vst [vmem:[#allocation29_spill] sm:$0xff] %v5477_v16 }
 0x198   : > { %v1307_v11 = vpop.f32.mrf.mxu2  ;;  %v1490_v33 = vmul.f32 0.3275911, %v5344_v25  ;;  %vm5562_vm3 = vcmp.eq.f32.partialorder %v7617_v39, 8.507059e+37 }
 0x199   : > { %v5339_v22 = vadd.f32 %v1307_v11, %v5294_v61  ;;  %v1356_v24 = vpop.f32.mrf.mxu3  ;;  %v5363_v35 = vadd.f32 1.0, %v1489_v28  ;;  %v5392_v42 = vpop.eup %4627  ;;  %v1577_v28 = vand.u32 2147483648, %v5341_v23 }
 0x19a   : > { %v5356_v31 = vadd.f32 %v1356_v24, %v5296_v62  ;;  %v5406_v0 = vadd.f32 1.0, %v1490_v33  ;;  %v5408_v1 = vpop.eup %4629  ;;  %v1552_v9 = vmul.f32 %v5392_v42, %v5336_v21  ;;  %v5453_v33 = vmul.f32 0.5, %v5304_v3 }
 0x19b   : > { %v5353_v30 = vmul.f32 0.70710677, %v5339_v22  ;;  %4631 = vrcp.f32 %v5363_v35  ;;  %v1567_v24 = vmul.f32 %v5408_v1, %v5341_v23  ;;  %v2322_v3 = vsub.f32 0.0, %v5344_v25 }
 0x19c   : > { %v5379_v56 = vmul.f32 0.70710677, %v5356_v31  ;;  %4633 = vrcp.f32 %v5406_v0  ;;  %v1553_v41 = vsub.f32 1.0, %v1552_v9  ;;  %v5473_v55 = vor.u32 1.1754944e-38, %v1577_v28 }
 0x19d   : > { %7595 = vst [vmem:[#allocation14_spill] sm:$0xff] %v5353_v30  ;;  %v5376_v40 = vand.u32 2147483647, %v5353_v30  ;;  %4635 = vpow2.f32 %v2383_v10  ;;  %v2353_v9 = vmul.f32 %v2321_v52, %v5329_v19  ;;  %vm1557_vm1 = vweird.f32 %v5392_v42 }
 0x19e   : > { %7598 = vst [vmem:[#allocation17_spill] sm:$0xff] %v5379_v56  ;;  %v5429_v43 = vand.u32 2147483647, %v5379_v56  ;;  %v1554_v19 = vmul.f32 %v5392_v42, %v1553_v41  ;;  %v2354_v52 = vmul.f32 %v2322_v3, %v5344_v25  ;;  %v5495_v53 = vmul.f32 0.5, %v5339_v22  ;;  %vm5540_vm2 = vmor %vm1556_vm0, %vm1557_vm1 }
 0x19f   : > { %v1491_v11 = vmul.f32 0.3275911, %v5376_v40  ;;  %v1592_v54 = vand.u32 2147483648, %v5363_v35  ;;  %v5553_v63 = vmul.f32 0.5, %v5356_v31  ;;  %vm1572_vm4 = vweird.f32 %v5408_v1 }
 0x1a0   : > { %v1309_v26 = vpop.f32.mrf.mxu2  ;;  %v1492_v36 = vmul.f32 0.3275911, %v5429_v43  ;;  %7611 = vst [vmem:[#allocation30_spill] sm:$0xff] %v5495_v53  ;;  %v5512_v3 = vadd.f32 %v5392_v42, %v1554_v19  ;;  %v2324_v47 = vsub.f32 0.0, %v5429_v43  ;;  %vm5643_vm6 = vmor %vm1571_vm5, %vm1572_vm4  ;;  %vm1586_vm9 = vweird.f32 %v5363_v35 }
 0x1a1   : > { %v5360_v32 = vadd.f32 %v1309_v26, %v5294_v61  ;;  %v1358_v14 = vpop.f32.mrf.mxu3  ;;  %v5456_v34 = vadd.f32 1.0, %v1491_v11  ;;  %v5459_v37 = vpop.eup %4631  ;;  %v1568_v26 = vsub.f32 1.0, %v1567_v24  ;;  %v4459_v11 = vld [vmem:[%s5154_s21 + $0x10] sm:$0xff]  ;;  %v5528_v19 = vor.u32 1.1754944e-38, %v1592_v54  ;;  %7616 = vst [vmem:[#allocation33_spill] sm:$0xff] %v5553_v63 }
 0x1a2   : > { %v5469_v2 = vadd.f32 %v1358_v14, %v5296_v62  ;;  %v5479_v17 = vpop.eup %4633  ;;  %v1582_v7 = vmul.f32 %v5459_v37, %v5363_v35  ;;  %v2323_v14 = vsub.f32 0.0, %v5376_v40  ;;  %v5486_v24 = vadd.f32 1.0, %v1492_v36  ;;  %2868 = vmatpush.bf16.msrb.mxu0 %v4459_v11 }
 0x1a3   : > { %v5390_v60 = vmul.f32 0.70710677, %v5360_v32  ;;  %4637 = vrcp.f32 %v5456_v34  ;;  %v1569_v28 = vmul.f32 %v5408_v1, %v1568_v26  ;;  %v2387_v11 = vmul.f32 1.442695, %v2353_v9  ;;  %v5509_v22 = vpop.eup %4635 }
 0x1a4   : > { %4639 = vpow2.f32 %v2385_v8  ;;  %v5498_v36 = vmul.f32 0.70710677, %v5469_v2  ;;  %v1597_v41 = vmul.f32 %v5479_v17, %v5406_v0  ;;  %v2355_v25 = vmul.f32 %v2323_v14, %v5376_v40 }
 0x1a5   : > { %7601 = vst [vmem:[#allocation20_spill] sm:$0xff] %v5390_v60  ;;  %v5437_v50 = vand.u32 2147483647, %v5390_v60  ;;  %4641 = vrcp.f32 %v5486_v24  ;;  %v1607_v9 = vand.u32 2147483648, %v5406_v0  ;;  %v2389_v14 = vmul.f32 1.442695, %v2354_v52 }
 0x1a6   : > { %7612 = vst [vmem:[#allocation31_spill] sm:$0xff] %v5498_v36  ;;  %v5524_v26 = vand.u32 2147483647, %v5498_v36  ;;  %v1598_v46 = vsub.f32 1.0, %v1597_v41  ;;  %v2391_v45 = vmul.f32 1.442695, %v2355_v25  ;;  %v2356_v41 = vmul.f32 %v2324_v47, %v5429_v43  ;;  %2869 = vmatpush.bf16.msrb.mxu0 %v4458_v57 }
 0x1a7   : > { %v1493_v49 = vmul.f32 0.3275911, %v5437_v50  ;;  %v2325_v40 = vsub.f32 0.0, %v5437_v50  ;;  %v5544_v54 = vor.u32 1.1754944e-38, %v1607_v9  ;;  %v1559_v9 = vsel %vm5540_vm2, %v5392_v42, %v5512_v3 }
 0x1a8   : > { %v1312_v10 = vpop.f32.mrf.mxu2  ;;  %v1494_v59 = vmul.f32 0.3275911, %v5524_v26  ;;  %v1599_v31 = vmul.f32 %v5479_v17, %v1598_v46  ;;  %v2393_v43 = vmul.f32 1.442695, %v2356_v41  ;;  %v5616_v53 = vmul.f32 0.5, %v5469_v2 }
 0x1a9   : > { %v5490_v12 = vadd.f32 1.0, %v1493_v49  ;;  %v1361_v51 = vpop.f32.mrf.mxu3  ;;  %v5504_v8 = vadd.f32 %v1312_v10, %v5294_v61  ;;  %v1583_v49 = vsub.f32 1.0, %v1582_v7  ;;  %v5517_v10 = vpop.eup %4637  ;;  %v5520_v7 = vadd.f32 %v5408_v1, %v1569_v28 }
 0x1aa   : > { %v5526_v48 = vpop.eup %4639  ;;  %v1622_v28 = vand.u32 2147483648, %v5456_v34  ;;  %v2357_v3 = vmul.f32 %v2325_v40, %v5437_v50  ;;  %v5595_v40 = vadd.f32 %v5479_v17, %v1599_v31  ;;  %7625 = vst [vmem:[#allocation39_spill] sm:$0xff] %v5616_v53  ;;  %vm1587_vm7 = vweird.f32 %v5459_v37 }
 0x1ab   : > { %4643 = vrcp.f32 %v5490_v12  ;;  %v5531_v4 = vmul.f32 0.70710677, %v5504_v8  ;;  %v1584_v44 = vmul.f32 %v5459_v37, %v1583_v49  ;;  %v1362_v49 = vadd.f32 %v1361_v51, %v5296_v62  ;;  %v5550_v25 = vpop.eup %4641  ;;  %vm5739_vm12 = vmor %vm1586_vm9, %vm1587_vm7 }
 0x1ac   : > { %4645 = vpow2.f32 %v2387_v11  ;;  %v1612_v11 = vmul.f32 %v5517_v10, %v5456_v34  ;;  %v5572_v51 = vmul.f32 0.5, %v5360_v32  ;;  %v5578_v39 = vor.u32 1.1754944e-38, %v1622_v28 }
 0x1ad   : > { %7613 = vst [vmem:[#allocation32_spill] sm:$0xff] %v5531_v4  ;;  %4647 = vpow2.f32 %v2389_v14  ;;  %v1463_v14 = vand.u32 2147483647, %v5531_v4  ;;  %v5576_v21 = vadd.f32 %v5459_v37, %v1584_v44  ;;  %v1637_v32 = vand.u32 2147483648, %v5486_v24 }
 0x1ae   : > { %7620 = vst [vmem:[#allocation34_spill] sm:$0xff] %v5572_v51  ;;  %4649 = vpow2.f32 %v2391_v45  ;;  %v1613_v46 = vsub.f32 1.0, %v1612_v11  ;;  %v5585_v51 = vmul.f32 0.70710677, %v1362_v49  ;;  %v1627_v44 = vmul.f32 %v5550_v25, %v5486_v24 }
 0x1af   : > { %v5591_v45 = vadd.f32 1.0, %v1494_v59  ;;  %v1495_v4 = vmul.f32 0.3275911, %v1463_v14  ;;  %v1652_v36 = vand.u32 2147483648, %v5490_v12  ;;  %v2395_v60 = vmul.f32 1.442695, %v2357_v3 }
 0x1b0   : > { %v1314_v42 = vpop.f32.mrf.mxu2  ;;  %7621 = vst [vmem:[#allocation35_spill] sm:$0xff] %v5585_v51  ;;  %v2326_v59 = vsub.f32 0.0, %v5524_v26  ;;  %v5607_v56 = vor.u32 1.1754944e-38, %v1637_v32  ;;  %4651 = vpow2.f32 %v2393_v43  ;;  %v1464_v31 = vand.u32 2147483647, %v5585_v51 }
 0x1b1   : > { %v5566_v47 = vpop.eup %4643  ;;  %v1363_v52 = vpop.f32.mrf.mxu3  ;;  %7622 = vst [vmem:[#allocation36_spill] sm:$0xff] %v5591_v45  ;;  %v1315_v50 = vadd.f32 %v1314_v42, %v5294_v61  ;;  %v1614_v42 = vmul.f32 %v5517_v10, %v1613_v46  ;;  %4653 = vrcp.f32 %v5591_v45  ;;  %v5618_v3 = vadd.f32 1.0, %v1495_v4 }
 0x1b2   : > { %v5581_v38 = vpop.eup %4645  ;;  %v1642_v28 = vmul.f32 %v5566_v47, %v5490_v12  ;;  %v5599_v41 = vadd.f32 %v1363_v52, %v5296_v62  ;;  %v1628_v52 = vsub.f32 1.0, %v1627_v44  ;;  %v5626_v43 = vsel %vm5562_vm3, %v5461_v15, %v1559_v9 }
 0x1b3   : > { %v5601_v63 = vpop.eup %4647  ;;  %v5613_v16 = vmul.f32 0.70710677, %v1315_v50  ;;  %7626 = vst [vmem:[#allocation40_spill] sm:$0xff] %v5618_v3  ;;  %v5628_v32 = vor.u32 1.1754944e-38, %v1652_v36  ;;  %4655 = vpow2.f32 %v2395_v60  ;;  %v2358_v44 = vmul.f32 %v2326_v59, %v5524_v26 }
 0x1b4   : > { %v5610_v11 = vpop.eup %4649  ;;  %v1643_v30 = vsub.f32 1.0, %v1642_v28  ;;  %v5621_v46 = vmul.f32 0.70710677, %v5599_v41  ;;  %v2327_v28 = vsub.f32 0.0, %v1463_v14  ;;  %v5632_v51 = vadd.f32 %v5517_v10, %v1614_v42 }
 0x1b5   : > { %7623 = vst [vmem:[#allocation37_spill] sm:$0xff] %v5610_v11  ;;  %v5635_v4 = vmul.f32 0.5, %v5504_v8  ;;  %v5637_v2 = vmul.f32 0.5, %v1362_v49  ;;  %v1496_v53 = vmul.f32 0.3275911, %v1464_v31  ;;  %v1629_v60 = vmul.f32 %v5550_v25, %v1628_v52 }
 0x1b6   : > { %7624 = vst [vmem:[#allocation38_spill] sm:$0xff] %v5613_v16  ;;  %v1644_v15 = vmul.f32 %v5566_v47, %v1643_v30  ;;  %v5650_v36 = vand.u32 2147483647, %v5613_v16  ;;  %v2031_v8 = vmul.f32 1.0614054, %v5626_v43  ;;  %v5653_v26 = vpop.eup %4651  ;;  %v1667_v49 = vand.u32 2147483648, %v5591_v45 }
 0x1b7   : > { %7627 = vst [vmem:[#allocation41_spill] sm:$0xff] %v5621_v46  ;;  %4657 = vrcp.f32 %v5618_v3  ;;  %v5658_v9 = vand.u32 2147483647, %v5621_v46  ;;  %v1574_v30 = vsel %vm5643_vm6, %v5408_v1, %v5520_v7  ;;  %v5664_v59 = vpop.eup %4653  ;;  %v2397_v52 = vmul.f32 1.442695, %v2358_v44 }
 0x1b8   : > { %7628 = vst [vmem:[#allocation42_spill] sm:$0xff] %v5628_v32  ;;  %v5670_v16 = vadd.f32 1.0, %v1496_v53  ;;  %v2328_v46 = vsub.f32 0.0, %v1464_v31  ;;  %v7636_v11 = vand.u32 2147483647, %v5341_v23  ;;  %v5679_v7 = vadd.f32 %v5550_v25, %v1629_v60  ;;  %v1317_v60 = vpop.f32.mrf.mxu2 }
 0x1b9   : > { %7629 = vst [vmem:[#allocation43_spill] sm:$0xff] %v5635_v4  ;;  %v5668_v4 = vmul.f32 0.5, %v1315_v50  ;;  %v5675_v1 = vpop.eup %4655  ;;  %v5682_v44 = vadd.f32 %v5566_v47, %v1644_v15  ;;  %v4466_v50 = vld [vmem:[%s5154_s21 + $0x48] sm:$0xff]  ;;  %v1657_v23 = vmul.f32 %v5664_v59, %v5591_v45  ;;  %4659 = vpow2.f32 %v2397_v52 }
 0x1ba   : > { %7630 = vst [vmem:[#allocation44_spill] sm:$0xff] %v5637_v2  ;;  %v2359_v2 = vmul.f32 %v2327_v28, %v1463_v14  ;;  %vm1576_vm8 = vcmp.eq.f32.partialorder %v7636_v11, 8.507059e+37  ;;  %v1497_v14 = vmul.f32 0.3275911, %v5650_v36  ;;  %v5691_v11 = vor.u32 1.1754944e-38, %v1667_v49  ;;  %2918 = vmatpush.bf16.msrb.mxu1 %v4466_v50 }
 0x1bb   : > { %7633 = vst [vmem:[#allocation45_spill] sm:$0xff] %v5653_v26  ;;  %v2063_v26 = vadd.f32 -1.4531521, %v2031_v8  ;;  %v5686_v53 = vsel %vm1576_vm8, %v5473_v55, %v1574_v30  ;;  %v1682_v28 = vand.u32 2147483648, %v5618_v3  ;;  %v1498_v8 = vmul.f32 0.3275911, %v5658_v9  ;;  %v1366_v30 = vpop.f32.mrf.mxu3 }
 0x1bc   : > { %7634 = vst [vmem:[#allocation46_spill] sm:$0xff] %v5668_v4  ;;  %v2032_v55 = vmul.f32 1.0614054, %v5686_v53  ;;  %vm1602_vm10 = vweird.f32 %v5479_v17  ;;  %v2399_v49 = vmul.f32 1.442695, %v2359_v2  ;;  %4661 = vrcp.f32 %v5670_v16 }
 0x1bd   : > { %7635 = vst [vmem:[#allocation47_spill] sm:$0xff] %v5670_v16  ;;  %v2095_v42 = vmul.f32 %v2063_v26, %v5626_v43  ;;  %v5698_v4 = vpop.eup %4657  ;;  %v5705_v52 = vadd.f32 1.0, %v1497_v14  ;;  %v5708_v26 = vadd.f32 %v1317_v60, %v5294_v61  ;;  %vm1601_vm11 = vweird.f32 %v5406_v0 }
 0x1be   : > { %7637 = vst [vmem:[#allocation48_spill] sm:$0xff] %v5675_v1  ;;  %v2360_v1 = vmul.f32 %v2328_v46, %v1464_v31  ;;  %v2064_v15 = vadd.f32 -1.4531521, %v2032_v55  ;;  %v1658_v50 = vsub.f32 1.0, %v1657_v23  ;;  %v5711_v32 = vor.u32 1.1754944e-38, %v1682_v28  ;;  %v1102_v46 = vpop.f32.mrf.mxu0  ;;  %vm5782_vm14 = vmor %vm1601_vm11, %vm1602_vm10 }
 0x1bf   : > { %7638 = vst [vmem:[#allocation49_spill] sm:$0xff] %v5682_v44  ;;  %v2127_v57 = vadd.f32 1.4214138, %v2095_v42  ;;  %v5713_v44 = vadd.f32 1.0, %v1498_v8  ;;  %v5716_v2 = vadd.f32 %v1366_v30, %v5296_v62  ;;  %v1697_v31 = vand.u32 2147483648, %v5670_v16  ;;  %v5727_v8 = vpop.eup %4659 }
 0x1c0   : > { %7639 = vst [vmem:[#allocation50_spill] sm:$0xff] %v5691_v11  ;;  %v5703_v11 = vmul.f32 0.5, %v5599_v41  ;;  %v1672_v41 = vmul.f32 %v5698_v4, %v5618_v3  ;;  %v2096_v14 = vmul.f32 %v2064_v15, %v5686_v53  ;;  %4663 = vpow2.f32 %v2399_v49 }
 0x1c1   : > { %7640 = vst [vmem:[#allocation51_spill] sm:$0xff] %v5698_v4  ;;  %v2159_v42 = vmul.f32 %v2127_v57, %v5626_v43  ;;  %v2401_v60 = vmul.f32 1.442695, %v2360_v1  ;;  %v2329_v23 = vsub.f32 0.0, %v5650_v36  ;;  %v5725_v28 = vadd.f32 %v1102_v46, %v5346_v27 }
 0x1c2   : > { %7641 = vst [vmem:[#allocation52_spill] sm:$0xff] %v5703_v11  ;;  %4665 = vrcp.f32 %v5705_v52  ;;  %v2128_v30 = vadd.f32 1.4214138, %v2096_v14  ;;  %v5731_v11 = vmul.f32 0.70710677, %v5708_v26  ;;  %v1659_v15 = vmul.f32 %v5664_v59, %v1658_v50 }
 0x1c3   : > { %7642 = vst [vmem:[#allocation53_spill] sm:$0xff] %v5705_v52  ;;  %v2191_v55 = vadd.f32 -0.28449672, %v2159_v42  ;;  %4667 = vrcp.f32 %v5713_v44  ;;  %v5747_v57 = vmul.f32 0.70710677, %v5716_v2  ;;  %v1673_v46 = vsub.f32 1.0, %v1672_v41 }
 0x1c4   : > { %7643 = vst [vmem:[#allocation54_spill] sm:$0xff] %v5711_v32  ;;  %v5733_v32 = vpop.eup %4661  ;;  %v5749_v42 = vor.u32 1.1754944e-38, %v1697_v31  ;;  %v2160_v14 = vmul.f32 %v2128_v30, %v5686_v53  ;;  %4669 = vpow2.f32 %v2401_v60  ;;  %v1712_v50 = vand.u32 2147483648, %v5705_v52 }
 0x1c5   : > { %7644 = vst [vmem:[#allocation55_spill] sm:$0xff] %v5725_v28  ;;  %v2361_v49 = vmul.f32 %v2329_v23, %v5650_v36  ;;  %v2223_v3 = vmul.f32 %v2191_v55, %v5626_v43  ;;  %v2330_v45 = vsub.f32 0.0, %v5658_v9  ;;  %v1467_v41 = vand.u32 2147483647, %v5731_v11 }
 0x1c6   : > { %7645 = vst [vmem:[#allocation56_spill] sm:$0xff] %v5727_v8  ;;  %v1589_v8 = vsel %vm5739_vm12, %v5459_v37, %v5576_v21  ;;  %v2192_v28 = vadd.f32 -0.28449672, %v2160_v14  ;;  %v7651_v31 = vand.u32 2147483647, %v5363_v35  ;;  %v5763_v30 = vpop.eup %4663  ;;  %v5766_v1 = vadd.f32 %v5664_v59, %v1659_v15  ;;  %v1151_v21 = vpop.f32.mrf.mxu1  ;;  %v4465_v35 = vld [vmem:[%s5154_s21 + $0x40] sm:$0xff] }
 0x1c7   : > { %7646 = vst [vmem:[#allocation57_spill] sm:$0xff] %v5731_v11  ;;  %v1687_v37 = vmul.f32 %v5733_v32, %v5670_v16  ;;  %v5771_v36 = vand.u32 2147483647, %v5747_v57  ;;  %v1674_v55 = vmul.f32 %v5698_v4, %v1673_v46  ;;  %v5789_v14 = vadd.f32 %v1151_v21, %v5349_v29  ;;  %2919 = vmatpush.bf16.msrb.mxu1 %v4465_v35 }
 0x1c8   : > { %7649 = vst [vmem:[#allocation58_spill] sm:$0xff] %v5747_v57  ;;  %vm1591_vm13 = vcmp.eq.f32.partialorder %v7651_v31, 8.507059e+37  ;;  %v5776_v23 = vpop.eup %4665  ;;  %v5794_v31 = vor.u32 1.1754944e-38, %v1712_v50  ;;  %v2403_v57 = vmul.f32 1.442695, %v2361_v49  ;;  %v1604_v46 = vsel %vm5782_vm14, %v5479_v17, %v5595_v40 }
 0x1c9   : > { %7650 = vst [vmem:[#allocation59_spill] sm:$0xff] %v5749_v42  ;;  %v5774_v60 = vsel %vm1591_vm13, %v5528_v19, %v1589_v8  ;;  %v2224_v19 = vmul.f32 %v2192_v28, %v5686_v53  ;;  %v5792_v8 = vpop.eup %4667  ;;  %v2255_v11 = vadd.f32 0.2548296, %v2223_v3  ;;  %v2362_v15 = vmul.f32 %v2330_v45, %v5658_v9 }
 0x1ca   : > { %7652 = vst [vmem:[#allocation60_spill] sm:$0xff] %v5763_v30  ;;  %v1499_v21 = vmul.f32 0.3275911, %v1467_v41  ;;  %v2033_v42 = vmul.f32 1.0614054, %v5774_v60  ;;  %v5802_v16 = vpop.eup %4669  ;;  %v1688_v28 = vsub.f32 1.0, %v1687_v37  ;;  %v1702_v50 = vmul.f32 %v5776_v23, %v5705_v52 }
 0x1cb   : > { %7655 = vst [vmem:[#allocation61_spill] sm:$0xff] %v5794_v31  ;;  %v2256_v30 = vadd.f32 0.2548296, %v2224_v19  ;;  %v1500_v49 = vmul.f32 0.3275911, %v5771_v36  ;;  %v4457_v31 = vld [vmem:[%s5154_s21] sm:$0xff]  ;;  %v5812_v17 = vadd.f32 %v5698_v4, %v1674_v55  ;;  %v1717_v45 = vmul.f32 %v5792_v8, %v5713_v44 }
 0x1cc   : > { %7656 = vst [vmem:[#allocation62_spill] sm:$0xff] %v5802_v16  ;;  %v7657_v3 = vand.u32 2147483647, %v5406_v0  ;;  %v2065_v40 = vadd.f32 -1.4531521, %v2033_v42  ;;  %vm1617_vm0 = vweird.f32 %v5517_v10  ;;  %v1727_v37 = vand.u32 2147483648, %v5713_v44  ;;  %2870 = vmatpush.bf16.msrb.mxu0 %v4457_v31 }
 0x1cd   : > { %7658 = vst [vmem:[#allocation63_spill] sm:$0xff] %v5812_v17  ;;  %v2287_v19 = vmul.f32 %v2255_v11, %v5626_v43  ;;  %v2331_v0 = vsub.f32 0.0, %v1467_v41  ;;  %v2288_v16 = vmul.f32 %v2256_v30, %v5686_v53  ;;  %v5825_v52 = vadd.f32 1.0, %v1499_v21 }
 0x1ce   : > { %vm1606_vm15 = vcmp.eq.f32.partialorder %v7657_v3, 8.507059e+37  ;;  %vm1616_vm1 = vweird.f32 %v5456_v34  ;;  %v1689_v42 = vmul.f32 %v5733_v32, %v1688_v28  ;;  %v5830_v17 = vadd.f32 1.0, %v1500_v49  ;;  %v1104_v49 = vpop.f32.mrf.mxu0 }
 0x1cf   : > { %v5817_v9 = vsel %vm1606_vm15, %v5544_v54, %v1604_v46  ;;  %v2097_v54 = vmul.f32 %v2065_v40, %v5774_v60  ;;  %v1703_v46 = vsub.f32 1.0, %v1702_v50  ;;  %4671 = vpow2.f32 %v2403_v57  ;;  %v1319_v50 = vpop.f32.mrf.mxu2  ;;  %vm5883_vm6 = vmor %vm1616_vm1, %vm1617_vm0 }
 0x1d0   : > { %v2034_v3 = vmul.f32 1.0614054, %v5817_v9  ;;  %7659 = vst [vmem:[#allocation64_spill] sm:$0xff] %v5830_v17  ;;  %v1718_v11 = vsub.f32 1.0, %v1717_v45  ;;  %v2405_v31 = vmul.f32 1.442695, %v2362_v15  ;;  %v5835_v53 = vmul.f32 %v5509_v22, %v2287_v19 }
 0x1d1   : > { %v2129_v35 = vadd.f32 1.4214138, %v2097_v54  ;;  %v5832_v4 = vor.u32 1.1754944e-38, %v1727_v37  ;;  %v2363_v30 = vmul.f32 %v2331_v0, %v1467_v41  ;;  %v5839_v40 = vmul.f32 %v5526_v48, %v2288_v16 }
 0x1d2   : > { %v2066_v43 = vadd.f32 -1.4531521, %v2034_v3  ;;  %4673 = vrcp.f32 %v5825_v52  ;;  %v2332_v28 = vsub.f32 0.0, %v5771_v36  ;;  %vm1632_vm2 = vweird.f32 %v5550_v25 }
 0x1d3   : > { %v2161_v57 = vmul.f32 %v2129_v35, %v5774_v60  ;;  %v5846_v15 = vadd.f32 %v5733_v32, %v1689_v42  ;;  %v1704_v22 = vmul.f32 %v5776_v23, %v1703_v46  ;;  %4675 = vrcp.f32 %v5830_v17 }
 0x1d4   : > { %v2098_v21 = vmul.f32 %v2066_v43, %v5817_v9  ;;  %vm2511_vm3 = vcmp.lt.f32.partialorder %v5307_v5, 0.0  ;;  %v1719_v48 = vmul.f32 %v5792_v8, %v1718_v11  ;;  %4677 = vpow2.f32 %v2405_v31 }
 0x1d5   : > { %v1742_v16 = vand.u32 2147483648, %v5825_v52  ;;  %v2193_v45 = vadd.f32 -0.28449672, %v2161_v57  ;;  %vm2512_vm4 = vcmp.lt.f32.partialorder %v5310_v6, 0.0  ;;  %vm1631_vm5 = vweird.f32 %v5486_v24  ;;  %v5863_v54 = vpop.eup %4671  ;;  %v1153_v57 = vpop.f32.mrf.mxu1 }
 0x1d6   : > { %v2130_v41 = vadd.f32 1.4214138, %v2098_v21  ;;  %v2479_v37 = vsub.f32 1.0, %v5835_v53  ;;  %v5857_v19 = vmul.f32 0.5, %v5708_v26  ;;  %v5861_v3 = vadd.f32 %v1319_v50, %v5294_v61  ;;  %7661 = vst [vmem:[#allocation66_spill] sm:$0xff] %v5863_v54  ;;  %v1368_v50 = vpop.f32.mrf.mxu3  ;;  %vm5933_vm10 = vmor %vm1631_vm5, %vm1632_vm2 }
 0x1d7   : > { %v2480_v42 = vsub.f32 1.0, %v5839_v40  ;;  %v2407_v46 = vmul.f32 1.442695, %v2363_v30  ;;  %v2364_v43 = vmul.f32 %v2332_v28, %v5771_v36  ;;  %v2225_v11 = vmul.f32 %v2193_v45, %v5774_v60 }
 0x1d8   : > { %7660 = vst [vmem:[#allocation65_spill] sm:$0xff] %v5857_v19  ;;  %v2162_v0 = vmul.f32 %v2130_v41, %v5817_v9  ;;  %v5869_v31 = vadd.f32 %v5776_v23, %v1704_v22  ;;  %v5872_v26 = vmul.f32 0.5, %v5716_v2  ;;  %v5875_v35 = vadd.f32 %v1104_v49, %v5346_v27  ;;  %v5877_v21 = vpop.eup %4673 }
 0x1d9   : > { %v5888_v30 = vadd.f32 %v5792_v8, %v1719_v48  ;;  %v5891_v40 = vor.u32 1.1754944e-38, %v1742_v16  ;;  %v2257_v28 = vadd.f32 0.2548296, %v2225_v11  ;;  %v5893_v22 = vpop.eup %4675  ;;  %vm2513_vm7 = vcmp.lt.f32.partialorder %v5321_v13, 0.0 }
 0x1da   : > { %7662 = vst [vmem:[#allocation67_spill] sm:$0xff] %v5872_v26  ;;  %v2194_v53 = vadd.f32 -0.28449672, %v2162_v0  ;;  %v2543_v41 = vsub.f32 0.0, %v2479_v37  ;;  %v5898_v45 = vmul.f32 0.70710677, %v5861_v3  ;;  %v1619_v48 = vsel %vm5883_vm6, %v5517_v10, %v5632_v51  ;;  %v5904_v16 = vpop.eup %4677 }
 0x1db   : > { %7665 = vst [vmem:[#allocation68_spill] sm:$0xff] %v5891_v40  ;;  %v2544_v0 = vsub.f32 0.0, %v2480_v42  ;;  %4679 = vpow2.f32 %v2407_v46  ;;  %v2409_v11 = vmul.f32 1.442695, %v2364_v43  ;;  %v2289_v2 = vmul.f32 %v2257_v28, %v5774_v60 }
 0x1dc   : > { %7666 = vst [vmem:[#allocation69_spill] sm:$0xff] %v5893_v22  ;;  %v2226_v49 = vmul.f32 %v2194_v53, %v5817_v9  ;;  %v5908_v55 = vadd.f32 %v1153_v57, %v5349_v29  ;;  %v5911_v53 = vadd.f32 %v1368_v50, %v5296_v62  ;;  %v7669_v19 = vand.u32 2147483647, %v5456_v34 }
 0x1dd   : > { %7667 = vst [vmem:[#allocation70_spill] sm:$0xff] %v5898_v45  ;;  %vm2514_vm9 = vcmp.lt.f32.partialorder %v5326_v18, 0.0  ;;  %v1732_v10 = vmul.f32 %v5877_v21, %v5825_v52  ;;  %v1747_v51 = vmul.f32 %v5893_v22, %v5830_v17  ;;  %v2449_v60 = vmul.f32 %v5581_v38, %v2289_v2  ;;  %v7677_v18 = vld [vmem:[#allocation29_spill] sm:$0xff] }
 0x1de   : > { %7668 = vst [vmem:[#allocation71_spill] sm:$0xff] %v5904_v16  ;;  %v2258_v26 = vadd.f32 0.2548296, %v2226_v49  ;;  %vm1621_vm8 = vcmp.eq.f32.partialorder %v7669_v19, 8.507059e+37  ;;  %v2575_v43 = vsel %vm2511_vm3, %v2543_v41, %v2479_v37  ;;  %v1469_v19 = vand.u32 2147483647, %v5898_v45 }
 0x1df   : > { %v5922_v46 = vsel %vm1621_vm8, %v5578_v39, %v1619_v48  ;;  %v2576_v38 = vsel %vm2512_vm4, %v2544_v0, %v2480_v42  ;;  %4681 = vpow2.f32 %v2409_v11  ;;  %v2481_v39 = vsub.f32 1.0, %v2449_v60  ;;  %v1322_v11 = vpop.f32.mrf.mxu2 }
 0x1e0   : > { %v2290_v34 = vmul.f32 %v2258_v26, %v5817_v9  ;;  %v5942_v9 = vmul.f32 0.70710677, %v5911_v53  ;;  %v2035_v26 = vmul.f32 1.0614054, %v5922_v46  ;;  %v1634_v2 = vsel %vm5933_vm10, %v5550_v25, %v5679_v7 }
 0x1e1   : > { %v5949_v57 = vpop.eup %4679  ;;  %v2607_v6 = vadd.f32 1.0, %v2575_v43  ;;  %v1733_v42 = vsub.f32 1.0, %v1732_v10  ;;  %v1748_v50 = vsub.f32 1.0, %v1747_v51  ;;  %v2545_v41 = vsub.f32 0.0, %v2481_v39  ;;  %v1371_v43 = vpop.f32.mrf.mxu3 }
 0x1e2   : > { %v2450_v37 = vmul.f32 %v5601_v63, %v2290_v34  ;;  %7672 = vst [vmem:[#allocation72_spill] sm:$0xff] %v5942_v9  ;;  %v2608_v49 = vadd.f32 1.0, %v2576_v38  ;;  %v1501_v0 = vmul.f32 0.3275911, %v1469_v19  ;;  %v7674_v63 = vand.u32 2147483647, %v5486_v24 }
 0x1e3   : > { %7673 = vst [vmem:[#allocation73_spill] sm:$0xff] %v5949_v57  ;;  %v2577_v60 = vsel %vm2513_vm7, %v2545_v41, %v2481_v39  ;;  %v2067_v34 = vadd.f32 -1.4531521, %v2035_v26  ;;  %v5959_v25 = vadd.f32 %v1322_v11, %v5294_v61  ;;  %vm1647_vm12 = vweird.f32 %v5566_v47 }
 0x1e4   : > { %v2482_v48 = vsub.f32 1.0, %v2450_v37  ;;  %vm1636_vm11 = vcmp.eq.f32.partialorder %v7674_v63, 8.507059e+37  ;;  %v2609_v7 = vadd.f32 1.0, %v2577_v60  ;;  %v1470_v51 = vand.u32 2147483647, %v5942_v9 }
 0x1e5   : > { %v5956_v28 = vsel %vm1636_vm11, %v5607_v56, %v1634_v2  ;;  %v5964_v38 = vpop.eup %4681  ;;  %v2639_v13 = vmul.f32 %v2607_v6, %v5444_v20  ;;  %v1734_v39 = vmul.f32 %v5877_v21, %v1733_v42  ;;  %v2099_v56 = vmul.f32 %v2067_v34, %v5922_v46 }
 0x1e6   : > { %v2546_v10 = vsub.f32 0.0, %v2482_v48  ;;  %v2036_v24 = vmul.f32 1.0614054, %v5956_v28  ;;  %7675 = vst [vmem:[#allocation74_spill] sm:$0xff] %v5964_v38  ;;  %v5970_v37 = vmul.f32 0.70710677, %v5959_v25  ;;  %vm1646_vm13 = vweird.f32 %v5490_v12 }
 0x1e7   : > { %v2641_v26 = vmul.f32 %v2609_v7, %v5465_v58  ;;  %v2333_v41 = vsub.f32 0.0, %v1469_v19  ;;  %v5977_v63 = vadd.f32 %v1371_v43, %v5296_v62  ;;  %v2640_v20 = vmul.f32 %v2608_v49, %v5453_v33  ;;  %v7678_v49 = vld [vmem:[#allocation55_spill] sm:$0xff]  ;;  %v7679_v43 = vld [vmem:[#allocation36_spill] sm:$0xff]  ;;  %vm6021_vm0 = vmor %vm1646_vm13, %vm1647_vm12 }
 0x1e8   : > { %v2578_v2 = vsel %vm2514_vm9, %v2546_v10, %v2482_v48  ;;  %v2131_v42 = vadd.f32 1.4214138, %v2099_v56  ;;  %v2068_v11 = vadd.f32 -1.4531521, %v2036_v24  ;;  %v1749_v60 = vmul.f32 %v5893_v22, %v1748_v50 }
 0x1e9   : > { %v2610_v6 = vadd.f32 1.0, %v2578_v2  ;;  %v5981_v34 = vadd.f32 1.0, %v1501_v0  ;;  %v1502_v36 = vmul.f32 0.3275911, %v1470_v51  ;;  %v5984_v5 = vand.u32 2147483647, %v5970_v37 }
 0x1ea   : > { %vm1662_vm14 = vweird.f32 %v5664_v59  ;;  %v2673_v58 = vmul.f32 %v2641_v26, %v5875_v35  ;;  %v2163_v7 = vmul.f32 %v2131_v42, %v5922_v46  ;;  %v2100_v33 = vmul.f32 %v2068_v11, %v5956_v28 }
 0x1eb   : > { %7676 = vst [vmem:[#allocation75_spill] sm:$0xff] %v5981_v34  ;;  %v2642_v48 = vmul.f32 %v2610_v6, %v7677_v18  ;;  %v2671_v10 = vmul.f32 %v2639_v13, %v7678_v49  ;;  %v2365_v24 = vmul.f32 %v2333_v41, %v1469_v19  ;;  %v1503_v50 = vmul.f32 0.3275911, %v5984_v5  ;;  %v1107_v41 = vpop.f32.mrf.mxu0 }
 0x1ec   : > { %v5994_v0 = vmul.f32 0.70710677, %v5977_v63  ;;  %vm1661_vm15 = vweird.f32 %v7679_v43  ;;  %v2672_v56 = vmul.f32 %v2640_v20, %v5789_v14  ;;  %v2195_v26 = vadd.f32 -0.28449672, %v2163_v7 }
 0x1ed   : > { %v2674_v35 = vmul.f32 %v2642_v48, %v5908_v55  ;;  %v2132_v2 = vadd.f32 1.4214138, %v2100_v33  ;;  %4683 = vrcp.f32 %v5981_v34  ;;  %v2334_v6 = vsub.f32 0.0, %v1470_v51  ;;  %vm6061_vm2 = vmor %vm1661_vm15, %vm1662_vm14 }
 0x1ee   : > { %v6000_v42 = vadd.f32 1.0, %v1503_v50  ;;  %v6003_v19 = vand.u32 2147483647, %v5994_v0  ;;  %v6005_v13 = vadd.f32 1.0, %v1502_v36  ;;  %v2227_v11 = vmul.f32 %v2195_v26, %v5922_v46 }
 0x1ef   : > { %v2164_v18 = vmul.f32 %v2132_v2, %v5956_v28  ;;  %v2703_v14 = vpack.c.bf16 %v2673_v58, %v2671_v10  ;;  %v7681_v55 = vand.u32 2147483648, %v5830_v17  ;;  %v2411_v48 = vmul.f32 1.442695, %v2365_v24  ;;  %v7686_v2 = vld [vmem:[#allocation49_spill] sm:$0xff] }
 0x1f0   : > { %7680 = vst [vmem:[#allocation29_spill] sm:$0xff] %v6005_v13  ;;  %v6014_v7 = vadd.f32 %v1107_v41, %v5346_v27  ;;  %4685 = vrcp.f32 %v6000_v42  ;;  %v6026_v58 = vmul.f32 0.5, %v5861_v3  ;;  %v2259_v33 = vadd.f32 0.2548296, %v2227_v11 }
 0x1f1   : > { %v6011_v20 = vor.u32 1.1754944e-38, %v7681_v55  ;;  %v2196_v49 = vadd.f32 -0.28449672, %v2164_v18  ;;  %2871 = vmatmul.bf16.vlgmr.msrb.gmra.mxu0 %v2703_v14  ;;  %v2704_v10 = vpack.c.bf16 %v2674_v35, %v2672_v56  ;;  %v1772_v24 = vand.u32 2147483648, %v5981_v34 }
 0x1f2   : > { %7685 = vst [vmem:[#allocation36_spill] sm:$0xff] %v6026_v58  ;;  %v2366_v50 = vmul.f32 %v2334_v6, %v1470_v51  ;;  %v1504_v26 = vmul.f32 0.3275911, %v6003_v19  ;;  %v1649_v41 = vsel %vm6021_vm0, %v5566_v47, %v7686_v2  ;;  %v6035_v55 = vadd.f32 %v5877_v21, %v1734_v39 }
 0x1f3   : > { %7682 = vst [vmem:[#allocation55_spill] sm:$0xff] %v6011_v20  ;;  %v6038_v3 = vadd.f32 %v5893_v22, %v1749_v60  ;;  %v6041_v11 = vmul.f32 0.5, %v5911_v53  ;;  %v1787_v56 = vand.u32 2147483648, %v6005_v13  ;;  %2920 = vmatmul.bf16.vlgmr.msrb.gmra.mxu1 %v2704_v10  ;;  %v6044_v51 = vpop.eup %4683  ;;  %4687 = vpow2.f32 %v2411_v48  ;;  %v7691_v60 = vld [vmem:[#allocation42_spill] sm:$0xff]  ;;  %v1156_v10 = vpop.f32.mrf.mxu1 }
 0x1f4   : > { %7687 = vst [vmem:[#allocation49_spill] sm:$0xff] %v6035_v55  ;;  %v2228_v35 = vmul.f32 %v2196_v49, %v5956_v28  ;;  %v6047_v6 = vadd.f32 1.0, %v1504_v26  ;;  %v7690_v47 = vand.u32 2147483647, %v5490_v12  ;;  %4689 = vrcp.f32 %v6005_v13 }
 0x1f5   : > { %7688 = vst [vmem:[#allocation76_spill] sm:$0xff] %v6038_v3  ;;  %v2291_v53 = vmul.f32 %v2259_v33, %v5922_v46  ;;  %v6065_v12 = vor.u32 1.1754944e-38, %v1772_v24  ;;  %v6068_v49 = vmul.f32 1.442695, %v2366_v50  ;;  %v6071_v46 = vor.u32 1.1754944e-38, %v1787_v56 }
 0x1f6   : > { %7689 = vst [vmem:[#allocation77_spill] sm:$0xff] %v6041_v11  ;;  %vm1651_vm1 = vcmp.eq.f32.partialorder %v7690_v47, 8.507059e+37  ;;  %v4686_v14 = vpop.eup %4685  ;;  %4691 = vrcp.f32 %v6047_v6  ;;  %v6074_v33 = vadd.f32 %v1156_v10, %v5349_v29  ;;  %v1664_v24 = vsel %vm6061_vm2, %v5664_v59, %v5766_v1  ;;  %v1324_v47 = vpop.f32.mrf.mxu2 }
 0x1f7   : > { %v6055_v18 = vsel %vm1651_vm1, %v7691_v60, %v1649_v41  ;;  %7694 = vst [vmem:[#allocation42_spill] sm:$0xff] %v6065_v12  ;;  %v1792_v26 = vmul.f32 %v4686_v14, %v6000_v42  ;;  %v6083_v2 = vmul.f32 %v6044_v51, %v5981_v34  ;;  %v2260_v50 = vadd.f32 0.2548296, %v2228_v35  ;;  %v7696_v60 = vld [vmem:[#allocation37_spill] sm:$0xff]  ;;  %v7699_v35 = vld [vmem:[#allocation50_spill] sm:$0xff] }
 0x1f8   : > { %7695 = vst [vmem:[#allocation78_spill] sm:$0xff] %v6071_v46  ;;  %v1802_v41 = vand.u32 2147483648, %v6000_v42  ;;  %v2037_v56 = vmul.f32 1.0614054, %v6055_v18  ;;  %v6088_v10 = vmul.f32 %v7696_v60, %v2291_v53  ;;  %v2335_v39 = vsub.f32 0.0, %v5984_v5  ;;  %v7700_v46 = vld [vmem:[#allocation14_spill] sm:$0xff] }
 0x1f9   : > { %v1793_v36 = vsub.f32 1.0, %v1792_v26  ;;  %v7697_v11 = vand.u32 2147483647, %v7679_v43  ;;  %v6093_v59 = vpop.eup %4687  ;;  %vm1796_vm4 = vweird.f32 %v6000_v42  ;;  %v6100_v58 = vadd.f32 %v1324_v47, %v5294_v61  ;;  %v7701_v12 = vld [vmem:[#allocation45_spill] sm:$0xff] }
 0x1fa   : > { %7698 = vst [vmem:[#allocation37_spill] sm:$0xff] %v6093_v59  ;;  %v2069_v1 = vadd.f32 -1.4531521, %v2037_v56  ;;  %v6102_v9 = vpop.eup %4689  ;;  %vm1797_vm5 = vweird.f32 %v4686_v14  ;;  %v1800_v26 = vand.u32 2147483647, %v6000_v42  ;;  %v2292_v60 = vmul.f32 %v2260_v50, %v5956_v28 }
 0x1fb   : > { %vm1666_vm3 = vcmp.eq.f32.partialorder %v7697_v11, 8.507059e+37  ;;  %v1794_v53 = vmul.f32 %v4686_v14, %v1793_v36  ;;  %v1803_v59 = vor.u32 1.1754944e-38, %v1802_v41  ;;  %v2483_v47 = vsub.f32 1.0, %v6088_v10  ;;  %vm1798_vm7 = vmor %vm1796_vm4, %vm1797_vm5 }
 0x1fc   : > { %v6097_v48 = vsel %vm1666_vm3, %v7699_v35, %v1664_v24  ;;  %v4692_v11 = vpop.eup %4691  ;;  %v2101_v56 = vmul.f32 %v2069_v1, %v6055_v18  ;;  %v6109_v24 = vmul.f32 0.70710677, %v6100_v58  ;;  %v1815_v36 = vand.u32 2147483647, %v6047_v6 }
 0x1fd   : > { %v2038_v43 = vmul.f32 1.0614054, %v6097_v48  ;;  %v1795_v35 = vadd.f32 %v4686_v14, %v1794_v53  ;;  %v1807_v45 = vmul.f32 %v4692_v11, %v6047_v6  ;;  %vm2515_vm6 = vcmp.lt.f32.partialorder %v7700_v46, 0.0 }
 0x1fe   : > { %v2367_v28 = vmul.f32 %v2335_v39, %v5984_v5  ;;  %v2133_v50 = vadd.f32 1.4214138, %v2101_v56  ;;  %v6119_v1 = vand.u32 2147483647, %v6109_v24  ;;  %vm1801_vm8 = vcmp.eq.f32.partialorder %v1800_v26, 8.507059e+37  ;;  %v1373_v56 = vpop.f32.mrf.mxu3 }
 0x1ff   : > { %v2070_v41 = vadd.f32 -1.4531521, %v2038_v43  ;;  %v1799_v38 = vsel %vm1798_vm7, %v4686_v14, %v1795_v35  ;;  %v1808_v10 = vsub.f32 1.0, %v1807_v45  ;;  %v1817_v53 = vand.u32 2147483648, %v6047_v6 }
 0x200   : > { %v2452_v57 = vmul.f32 %v7701_v12, %v2292_v60  ;;  %v6123_v34 = vsel %vm1801_vm8, %v1803_v59, %v1799_v38  ;;  %vm1812_vm9 = vweird.f32 %v4692_v11  ;;  %v2165_v42 = vmul.f32 %v2133_v50, %v6055_v18  ;;  %v7704_v12 = vld [vmem:[#allocation17_spill] sm:$0xff] }
 0x201   : > { %v2047_v20 = vmul.f32 1.0614054, %v6123_v34  ;;  %v1809_v5 = vmul.f32 %v4692_v11, %v1808_v10  ;;  %v2102_v39 = vmul.f32 %v2070_v41, %v6097_v48  ;;  %v1505_v43 = vmul.f32 0.3275911, %v6119_v1 }
 0x202   : > { %v2547_v14 = vsub.f32 0.0, %v2483_v47  ;;  %vm1811_vm10 = vweird.f32 %v6047_v6  ;;  %vm6130_vm11 = vcmp.eq.f32.partialorder %v1815_v36, 8.507059e+37  ;;  %v2197_v38 = vadd.f32 -0.28449672, %v2165_v42  ;;  %v7705_v36 = vld [vmem:[#allocation51_spill] sm:$0xff] }
 0x203   : > { %vm2516_vm12 = vcmp.lt.f32.partialorder %v7704_v12, 0.0  ;;  %v2079_v59 = vadd.f32 -1.4531521, %v2047_v20  ;;  %v1810_v26 = vadd.f32 %v4692_v11, %v1809_v5  ;;  %v2134_v60 = vadd.f32 1.4214138, %v2102_v39  ;;  %vm1813_vm13 = vmor %vm1811_vm10, %vm1812_vm9 }
 0x204   : > { %v6135_v35 = vadd.f32 1.0, %v1505_v43  ;;  %v2484_v50 = vsub.f32 1.0, %v2452_v57  ;;  %v1818_v41 = vor.u32 1.1754944e-38, %v1817_v53  ;;  %v2229_v10 = vmul.f32 %v2197_v38, %v6055_v18  ;;  %v7706_v43 = vld [vmem:[#allocation20_spill] sm:$0xff] }
 0x205   : > { %v6140_v6 = vadd.f32 %v1373_v56, %v5296_v62  ;;  %vm1677_vm14 = vweird.f32 %v7705_v36  ;;  %v2111_v42 = vmul.f32 %v2079_v59, %v6123_v34  ;;  %v1814_v3 = vsel %vm1813_vm13, %v4692_v11, %v1810_v26  ;;  %v7707_v56 = vld [vmem:[#allocation40_spill] sm:$0xff] }
 0x206   : > { %v2166_v20 = vmul.f32 %v2134_v60, %v6097_v48  ;;  %4693 = vrcp.f32 %v6135_v35  ;;  %v6148_v57 = vmul.f32 %v6102_v9, %v6005_v13  ;;  %v6152_v53 = vsel %vm6130_vm11, %v1818_v41, %v1814_v3 }
 0x207   : > { %v2336_v5 = vsub.f32 0.0, %v6003_v19  ;;  %v2261_v39 = vadd.f32 0.2548296, %v2229_v10  ;;  %vm2517_vm15 = vcmp.lt.f32.partialorder %v7706_v43, 0.0  ;;  %vm1676_vm0 = vweird.f32 %v7707_v56 }
 0x208   : > { %v2579_v11 = vsel %vm2515_vm6, %v2547_v14, %v2483_v47  ;;  %v2143_v38 = vadd.f32 1.4214138, %v2111_v42  ;;  %v2048_v59 = vmul.f32 1.0614054, %v6152_v53  ;;  %v2198_v26 = vadd.f32 -0.28449672, %v2166_v20  ;;  %vm6192_vm4 = vmor %vm1676_vm0, %vm1677_vm14 }
 0x209   : > { %v2548_v13 = vsub.f32 0.0, %v2484_v50  ;;  %v2415_v45 = vmul.f32 1.442695, %v2367_v28  ;;  %v2293_v3 = vmul.f32 %v2261_v39, %v6055_v18  ;;  %v6165_v17 = vmul.f32 0.70710677, %v6140_v6  ;;  %v7709_v42 = vld [vmem:[#allocation48_spill] sm:$0xff] }
 0x20a   : > { %v2175_v41 = vmul.f32 %v2143_v38, %v6123_v34  ;;  %v2080_v10 = vadd.f32 -1.4531521, %v2048_v59  ;;  %v2230_v16 = vmul.f32 %v2198_v26, %v6097_v48  ;;  %v2611_v47 = vadd.f32 1.0, %v2579_v11  ;;  %v7710_v38 = vld [vmem:[#allocation31_spill] sm:$0xff] }
 0x20b   : > { %7708 = vst [vmem:[#allocation50_spill] sm:$0xff] %v6165_v17  ;;  %v2368_v14 = vmul.f32 %v2336_v5, %v6003_v19  ;;  %v2453_v20 = vmul.f32 %v7709_v42, %v2293_v3  ;;  %v6172_v39 = vand.u32 2147483647, %v6165_v17  ;;  %vm2518_vm1 = vcmp.lt.f32.partialorder %v7710_v38, 0.0 }
 0x20c   : > { %v4694_v60 = vpop.eup %4693  ;;  %v2207_v22 = vadd.f32 -0.28449672, %v2175_v41  ;;  %v2112_v28 = vmul.f32 %v2080_v10, %v6152_v53  ;;  %v2262_v18 = vadd.f32 0.2548296, %v2230_v16  ;;  %vm1692_vm2 = vweird.f32 %v5733_v32  ;;  %v7711_v41 = vld [vmem:[#allocation47_spill] sm:$0xff]  ;;  %v7712_v10 = vld [vmem:[#allocation30_spill] sm:$0xff] }
 0x20d   : > { %v2580_v59 = vsel %vm2516_vm12, %v2548_v13, %v2484_v50  ;;  %4695 = vpow2.f32 %v2415_v45  ;;  %v2485_v11 = vsub.f32 1.0, %v2453_v20  ;;  %v1822_v19 = vmul.f32 %v4694_v60, %v6135_v35  ;;  %v7713_v50 = vld [vmem:[#allocation56_spill] sm:$0xff] }
 0x20e   : > { %v2239_v5 = vmul.f32 %v2207_v22, %v6123_v34  ;;  %v2144_v26 = vadd.f32 1.4214138, %v2112_v28  ;;  %v2294_v3 = vmul.f32 %v2262_v18, %v6097_v48  ;;  %v1506_v16 = vmul.f32 0.3275911, %v6172_v39  ;;  %v1109_v48 = vpop.f32.mrf.mxu0 }
 0x20f   : > { %vm1691_vm3 = vweird.f32 %v7711_v41  ;;  %v2643_v42 = vmul.f32 %v2611_v47, %v7712_v10  ;;  %v2417_v46 = vmul.f32 1.442695, %v2368_v14  ;;  %v2549_v54 = vsub.f32 0.0, %v2485_v11 }
 0x210   : > { %v1823_v40 = vsub.f32 1.0, %v1822_v19  ;;  %v2612_v12 = vadd.f32 1.0, %v2580_v59  ;;  %v2176_v13 = vmul.f32 %v2144_v26, %v6152_v53  ;;  %v2454_v45 = vmul.f32 %v7713_v50, %v2294_v3  ;;  %v7716_v26 = vld [vmem:[#allocation63_spill] sm:$0xff]  ;;  %v1158_v50 = vpop.f32.mrf.mxu1  ;;  %vm6226_vm10 = vmor %vm1691_vm3, %vm1692_vm2 }
 0x211   : > { %v6186_v20 = vadd.f32 1.0, %v1506_v16  ;;  %v2581_v47 = vsel %vm2517_vm15, %v2549_v54, %v2485_v11  ;;  %vm1827_vm5 = vweird.f32 %v4694_v60  ;;  %v1832_v28 = vand.u32 2147483648, %v6135_v35 }
 0x212   : > { %v1824_v14 = vmul.f32 %v4694_v60, %v1823_v40  ;;  %v2271_v18 = vadd.f32 0.2548296, %v2239_v5  ;;  %v2486_v59 = vsub.f32 1.0, %v2454_v45  ;;  %v1830_v19 = vand.u32 2147483647, %v6135_v35  ;;  %v7718_v5 = vld [vmem:[#allocation33_spill] sm:$0xff] }
 0x213   : > { %v1679_v3 = vsel %vm6192_vm4, %v7705_v36, %v7716_v26  ;;  %v4696_v16 = vpop.eup %4695  ;;  %v2613_v10 = vadd.f32 1.0, %v2581_v47  ;;  %vm1826_vm6 = vweird.f32 %v6135_v35  ;;  %4697 = vrcp.f32 %v6186_v20  ;;  %v7719_v47 = vld [vmem:[#allocation54_spill] sm:$0xff] }
 0x214   : > { %v1825_v17 = vadd.f32 %v4694_v60, %v1824_v14  ;;  %v2208_v54 = vadd.f32 -0.28449672, %v2176_v13  ;;  %v1110_v40 = vadd.f32 %v1109_v48, %v5346_v27  ;;  %v2550_v43 = vsub.f32 0.0, %v2486_v59  ;;  %vm1828_vm7 = vmor %vm1826_vm6, %vm1827_vm5 }
 0x215   : > { %v7717_v11 = vand.u32 2147483647, %v7707_v56  ;;  %v2644_v45 = vmul.f32 %v2612_v12, %v7718_v5  ;;  %v1833_v22 = vor.u32 1.1754944e-38, %v1832_v28  ;;  %v2303_v35 = vmul.f32 %v2271_v18, %v6123_v34  ;;  %v7720_v56 = vld [vmem:[#allocation34_spill] sm:$0xff] }
 0x216   : > { %v1829_v36 = vsel %vm1828_vm7, %v4694_v60, %v1825_v17  ;;  %v1159_v14 = vadd.f32 %v1158_v50, %v5349_v29  ;;  %v2582_v13 = vsel %vm2518_vm1, %v2550_v43, %v2486_v59  ;;  %vm1831_vm9 = vcmp.eq.f32.partialorder %v1830_v19, 8.507059e+37  ;;  %v1376_v17 = vpop.f32.mrf.mxu3 }
 0x217   : > { %vm1681_vm8 = vcmp.eq.f32.partialorder %v7717_v11, 8.507059e+37  ;;  %v2675_v48 = vmul.f32 %v2643_v42, %v6014_v7  ;;  %4699 = vpow2.f32 %v2417_v46  ;;  %v2645_v11 = vmul.f32 %v2613_v10, %v7720_v56 }
 0x218   : > { %v6212_v26 = vsel %vm1681_vm8, %v7719_v47, %v1679_v3  ;;  %v6220_v55 = vsel %vm1831_vm9, %v1833_v22, %v1829_v36  ;;  %v2240_v34 = vmul.f32 %v2208_v54, %v6152_v53  ;;  %v2337_v38 = vsub.f32 0.0, %v6119_v1  ;;  %v7724_v36 = vld [vmem:[#allocation59_spill] sm:$0xff] }
 0x219   : > { %v2049_v60 = vmul.f32 1.0614054, %v6220_v55  ;;  %v2039_v7 = vmul.f32 1.0614054, %v6212_v26  ;;  %v4698_v46 = vpop.eup %4697  ;;  %v6235_v42 = vmul.f32 %v2644_v45, %v6074_v33  ;;  %v2614_v12 = vadd.f32 1.0, %v2582_v13  ;;  %v7725_v22 = vld [vmem:[#allocation39_spill] sm:$0xff] }
 0x21a   : > { %vm1841_vm11 = vweird.f32 %v6186_v20  ;;  %v1694_v28 = vsel %vm6226_vm10, %v5733_v32, %v5846_v15  ;;  %v6242_v18 = vmul.f32 %v4696_v16, %v2303_v35  ;;  %v1837_v19 = vmul.f32 %v4698_v46, %v6186_v20  ;;  %v1327_v15 = vpop.f32.mrf.mxu2 }
 0x21b   : > { %v2081_v59 = vadd.f32 -1.4531521, %v2049_v60  ;;  %v1845_v3 = vand.u32 2147483647, %v6186_v20  ;;  %v2677_v10 = vmul.f32 %v2645_v11, %v1110_v40  ;;  %v1847_v50 = vand.u32 2147483648, %v6186_v20 }
 0x21c   : > { %v2071_v33 = vadd.f32 -1.4531521, %v2039_v7  ;;  %v7723_v54 = vand.u32 2147483647, %v7711_v41  ;;  %v2272_v43 = vadd.f32 0.2548296, %v2240_v34  ;;  %v2646_v47 = vmul.f32 %v2614_v12, %v7725_v22 }
 0x21d   : > { %v2113_v5 = vmul.f32 %v2081_v59, %v6220_v55  ;;  %v1838_v45 = vsub.f32 1.0, %v1837_v19  ;;  %v4700_v16 = vpop.eup %4699  ;;  %v6257_v13 = vadd.f32 %v1327_v15, %v5294_v61  ;;  %v2495_v41 = vsub.f32 1.0, %v6242_v18 }
 0x21e   : > { %vm1696_vm12 = vcmp.eq.f32.partialorder %v7723_v54, 8.507059e+37  ;;  %v2103_v35 = vmul.f32 %v2071_v33, %v6212_v26  ;;  %vm1842_vm13 = vweird.f32 %v4698_v46  ;;  %v1848_v34 = vor.u32 1.1754944e-38, %v1847_v50 }
 0x21f   : > { %v6251_v32 = vsel %vm1696_vm12, %v7724_v36, %v1694_v28  ;;  %v2145_v56 = vadd.f32 1.4214138, %v2113_v5  ;;  %v1839_v11 = vmul.f32 %v4698_v46, %v1838_v45  ;;  %v2705_v28 = vpack.c.bf16 %v2677_v10, %v2675_v48  ;;  %vm1843_vm14 = vmor %vm1841_vm11, %vm1842_vm13 }
 0x220   : > { %v2040_v40 = vmul.f32 1.0614054, %v6251_v32  ;;  %v2135_v60 = vadd.f32 1.4214138, %v2103_v35  ;;  %v2304_v59 = vmul.f32 %v2272_v43, %v6152_v53  ;;  %v6263_v33 = vmul.f32 0.70710677, %v6257_v13 }
 0x221   : > { %v2177_v12 = vmul.f32 %v2145_v56, %v6220_v55  ;;  %v1840_v19 = vadd.f32 %v4698_v46, %v1839_v11  ;;  %v2678_v54 = vmul.f32 %v2646_v47, %v1159_v14  ;;  %v6270_v50 = vadd.f32 %v1376_v17, %v5296_v62  ;;  %2876 = vmatmul.bf16.gmra.mxu0 %v2705_v28 }
 0x222   : > { %v2072_v7 = vadd.f32 -1.4531521, %v2040_v40  ;;  %v2167_v18 = vmul.f32 %v2135_v60, %v6212_v26  ;;  %vm1846_vm15 = vcmp.eq.f32.partialorder %v1845_v3, 8.507059e+37  ;;  %v6273_v10 = vand.u32 2147483647, %v6263_v33 }
 0x223   : > { %v2209_v48 = vadd.f32 -0.28449672, %v2177_v12  ;;  %v1844_v53 = vsel %vm1843_vm14, %v4698_v46, %v1840_v19  ;;  %v2369_v43 = vmul.f32 %v2337_v38, %v6119_v1  ;;  %v2464_v36 = vmul.f32 %v4700_v16, %v2304_v59 }
 0x224   : > { %v2104_v5 = vmul.f32 %v2072_v7, %v6251_v32  ;;  %v6276_v14 = vsel %vm1846_vm15, %v1848_v34, %v1844_v53  ;;  %v2199_v20 = vadd.f32 -0.28449672, %v2167_v18  ;;  %v2338_v22 = vsub.f32 0.0, %v6172_v39 }
 0x225   : > { %v2050_v15 = vmul.f32 1.0614054, %v6276_v14  ;;  %v1507_v47 = vmul.f32 0.3275911, %v6273_v10  ;;  %v2559_v35 = vsub.f32 0.0, %v2495_v41  ;;  %v2706_v40 = vpack.c.bf16 %v2678_v54, %v6235_v42  ;;  %v7728_v54 = vld [vmem:[#allocation53_spill] sm:$0xff] }
 0x226   : > { %v2136_v45 = vadd.f32 1.4214138, %v2104_v5  ;;  %v6283_v3 = vmul.f32 0.70710677, %v6270_v50  ;;  %v2241_v1 = vmul.f32 %v2209_v48, %v6220_v55  ;;  %v2231_v56 = vmul.f32 %v2199_v20, %v6212_v26 }
 0x227   : > { %v2082_v38 = vadd.f32 -1.4531521, %v2050_v15  ;;  %v6288_v16 = vadd.f32 1.0, %v1507_v47  ;;  %v7726_v11 = vsub.f32 1.0, %v6083_v2  ;;  %v2419_v34 = vmul.f32 1.442695, %v2369_v43  ;;  %2925 = vmatmul.bf16.gmra.mxu1 %v2706_v40  ;;  %v1112_v47 = vpop.f32.mrf.mxu0 }
 0x228   : > { %v2168_v46 = vmul.f32 %v2136_v45, %v6251_v32  ;;  %v6294_v7 = vand.u32 2147483647, %v6283_v3  ;;  %vm1707_vm0 = vweird.f32 %v5776_v23  ;;  %vm2527_vm1 = vcmp.lt.f32.partialorder %v5970_v37, 0.0 }
 0x229   : > { %v1764_v17 = vmul.f32 %v6044_v51, %v7726_v11  ;;  %v2496_v42 = vsub.f32 1.0, %v2464_v36  ;;  %v2370_v28 = vmul.f32 %v2338_v22, %v6172_v39  ;;  %4701 = vrcp.f32 %v6288_v16 }
 0x22a   : > { %v2200_v60 = vadd.f32 -0.28449672, %v2168_v46  ;;  %v7727_v59 = vsub.f32 1.0, %v6148_v57  ;;  %4703 = vpow2.f32 %v6068_v49  ;;  %v1407_v12 = vmul.f32 0.5, %v5959_v25 }
 0x22b   : > { %v2591_v19 = vsel %vm2527_vm1, %v2559_v35, %v2495_v41  ;;  %vm1706_vm2 = vweird.f32 %v7728_v54  ;;  %v2273_v18 = vadd.f32 0.2548296, %v2241_v1  ;;  %v2114_v5 = vmul.f32 %v2082_v38, %v6276_v14 }
 0x22c   : > { %v1779_v2 = vmul.f32 %v6102_v9, %v7727_v59  ;;  %v2263_v37 = vadd.f32 0.2548296, %v2231_v56  ;;  %v1508_v48 = vmul.f32 0.3275911, %v6294_v7  ;;  %v6309_v39 = vadd.f32 %v6044_v51, %v1764_v17  ;;  %vm6360_vm6 = vmor %vm1706_vm2, %vm1707_vm0 }
 0x22d   : > { %v6312_v57 = vmul.f32 0.5, %v5977_v63  ;;  %4705 = vpow2.f32 %v2419_v34  ;;  %v2232_v49 = vmul.f32 %v2200_v60, %v6251_v32  ;;  %v2560_v53 = vsub.f32 0.0, %v2496_v42 }
 0x22e   : > { %v2421_v25 = vmul.f32 1.442695, %v2370_v28  ;;  %v2339_v41 = vsub.f32 0.0, %v6273_v10  ;;  %v6316_v43 = vadd.f32 1.0, %v1508_v48  ;;  %vm1722_vm3 = vweird.f32 %v5792_v8 }
 0x22f   : > { %v6320_v20 = vadd.f32 %v6102_v9, %v1779_v2  ;;  %v2623_v45 = vadd.f32 1.0, %v2591_v19  ;;  %vm2528_vm4 = vcmp.lt.f32.partialorder %v5994_v0, 0.0  ;;  %v6324_v63 = vmul.f32 0.5, %v6100_v58  ;;  %v4702_v36 = vpop.eup %4701  ;;  %v1161_v58 = vpop.f32.mrf.mxu1  ;;  %v7729_v2 = vld [vmem:[#allocation60_spill] sm:$0xff] }
 0x230   : > { %v2305_v15 = vmul.f32 %v2273_v18, %v6220_v55  ;;  %v2146_v22 = vadd.f32 1.4214138, %v2114_v5  ;;  %v2295_v35 = vmul.f32 %v2263_v37, %v6212_v26  ;;  %4707 = vrcp.f32 %v6316_v43  ;;  %v6329_v46 = vpop.eup %4703 }
 0x231   : > { %vm1721_vm5 = vweird.f32 %v5713_v44  ;;  %v6333_v40 = vmul.f32 0.5, %v6140_v6  ;;  %v6336_v0 = vadd.f32 %v1112_v47, %v5346_v27  ;;  %v2264_v1 = vadd.f32 0.2548296, %v2232_v49 }
 0x232   : > { %v1852_v55 = vmul.f32 %v4702_v36, %v6288_v16  ;;  %v2592_v38 = vsel %vm2528_vm4, %v2560_v53, %v2496_v42  ;;  %4709 = vpow2.f32 %v2421_v25  ;;  %v6340_v26 = vadd.f32 %v1161_v58, %v5349_v29  ;;  %v7736_v58 = vld [vmem:[#allocation61_spill] sm:$0xff]  ;;  %vm6397_vm13 = vmor %vm1721_vm5, %vm1722_vm3 }
 0x233   : > { %v2371_v56 = vmul.f32 %v2339_v41, %v6273_v10  ;;  %v4706_v11 = vpop.eup %4705  ;;  %v6343_v17 = vmul.f32 %v2623_v45, %v1407_v12  ;;  %v1860_v6 = vand.u32 2147483647, %v6288_v16  ;;  %v1862_v60 = vand.u32 2147483648, %v6288_v16  ;;  %v1329_v10 = vpop.f32.mrf.mxu2 }
 0x234   : > { %v1853_v34 = vsub.f32 1.0, %v1852_v55  ;;  %v6347_v28 = vmul.f32 %v4706_v11, %v2305_v15  ;;  %v2178_v59 = vmul.f32 %v2146_v22, %v6276_v14  ;;  %v6351_v42 = vmul.f32 %v7729_v2, %v2295_v35  ;;  %v7737_v55 = vld [vmem:[#allocation32_spill] sm:$0xff] }
 0x235   : > { %v6354_v19 = vmul.f32 0.5, %v6257_v13  ;;  %v2624_v12 = vadd.f32 1.0, %v2592_v38  ;;  %v2296_v18 = vmul.f32 %v2264_v1, %v6251_v32  ;;  %vm1857_vm7 = vweird.f32 %v4702_v36 }
 0x236   : > { %v1854_v5 = vmul.f32 %v4702_v36, %v1853_v34  ;;  %v4708_v37 = vpop.eup %4707  ;;  %vm1856_vm8 = vweird.f32 %v6288_v16  ;;  %v6366_v48 = vmul.f32 1.442695, %v2371_v56  ;;  %v6369_v13 = vmul.f32 0.5, %v6270_v50 }
 0x237   : > { %v1709_v49 = vsel %vm6360_vm6, %v5776_v23, %v5869_v31  ;;  %vm6375_vm9 = vcmp.eq.f32.partialorder %v1860_v6, 8.507059e+37  ;;  %v1863_v32 = vor.u32 1.1754944e-38, %v1862_v60  ;;  %v1867_v41 = vmul.f32 %v4708_v37, %v6316_v43  ;;  %vm1858_vm10 = vmor %vm1856_vm8, %vm1857_vm7  ;;  %v7735_v23 = vld [vmem:[#allocation62_spill] sm:$0xff] }
 0x238   : > { %v1855_v53 = vadd.f32 %v4702_v36, %v1854_v5  ;;  %v6380_v45 = vpop.eup %4709  ;;  %v2497_v16 = vsub.f32 1.0, %v6347_v28  ;;  %v2210_v15 = vadd.f32 -0.28449672, %v2178_v59  ;;  %v2487_v50 = vsub.f32 1.0, %v6351_v42  ;;  %v7748_v28 = vld [vmem:[#allocation50_spill] sm:$0xff] }
 0x239   : > { %v7734_v22 = vand.u32 2147483647, %v7728_v54  ;;  %v6387_v31 = vmul.f32 %v7735_v23, %v2296_v18  ;;  %v1868_v35 = vsub.f32 1.0, %v1867_v41  ;;  %vm2519_vm12 = vcmp.lt.f32.partialorder %v7737_v55, 0.0  ;;  %v7741_v18 = vld [vmem:[#allocation35_spill] sm:$0xff] }
 0x23a   : > { %v1859_v47 = vsel %vm1858_vm10, %v4702_v36, %v1855_v53  ;;  %vm1872_vm14 = vweird.f32 %v4708_v37  ;;  %v1875_v36 = vand.u32 2147483647, %v6316_v43  ;;  %v1877_v56 = vand.u32 2147483648, %v6316_v43 }
 0x23b   : > { %vm1711_vm11 = vcmp.eq.f32.partialorder %v7734_v22, 8.507059e+37  ;;  %v6403_v54 = vsel %vm6375_vm9, %v1863_v32, %v1859_v47  ;;  %v1869_v34 = vmul.f32 %v4708_v37, %v1868_v35  ;;  %v1724_v60 = vsel %vm6397_vm13, %v5792_v8, %v5888_v30 }
 0x23c   : > { %v6390_v1 = vsel %vm1711_vm11, %v7736_v58, %v1709_v49  ;;  %v2051_v11 = vmul.f32 1.0614054, %v6403_v54  ;;  %vm1737_vm15 = vweird.f32 %v5877_v21  ;;  %v2242_v59 = vmul.f32 %v2210_v15, %v6276_v14 }
 0x23d   : > { %v2041_v6 = vmul.f32 1.0614054, %v6390_v1  ;;  %v2551_v2 = vsub.f32 0.0, %v2487_v50  ;;  %vm1871_vm0 = vweird.f32 %v6316_v43  ;;  %v7740_v42 = vand.u32 2147483647, %v5713_v44 }
 0x23e   : > { %vm2520_vm2 = vcmp.lt.f32.partialorder %v7741_v18, 0.0  ;;  %v2083_v5 = vadd.f32 -1.4531521, %v2051_v11  ;;  %v1870_v49 = vadd.f32 %v4708_v37, %v1869_v34  ;;  %vm1736_vm3 = vweird.f32 %v5825_v52  ;;  %vm1873_vm4 = vmor %vm1871_vm0, %vm1872_vm14 }
 0x23f   : > { %vm1726_vm1 = vcmp.eq.f32.partialorder %v7740_v42, 8.507059e+37  ;;  %v2073_v53 = vadd.f32 -1.4531521, %v2041_v6  ;;  %v2488_v8 = vsub.f32 1.0, %v6387_v31  ;;  %v1878_v30 = vor.u32 1.1754944e-38, %v1877_v56  ;;  %vm6470_vm7 = vmor %vm1736_vm3, %vm1737_vm15 }
 0x240   : > { %v6420_v25 = vsel %vm1726_vm1, %v5832_v4, %v1724_v60  ;;  %v6427_v44 = vadd.f32 %v1329_v10, %v5294_v61  ;;  %v2115_v32 = vmul.f32 %v2083_v5, %v6403_v54  ;;  %v1874_v41 = vsel %vm1873_vm4, %v4708_v37, %v1870_v49  ;;  %v1378_v4 = vpop.f32.mrf.mxu3 }
 0x241   : > { %v2042_v43 = vmul.f32 1.0614054, %v6420_v25  ;;  %vm1876_vm5 = vcmp.eq.f32.partialorder %v1875_v36, 8.507059e+37  ;;  %v2105_v15 = vmul.f32 %v2073_v53, %v6390_v1  ;;  %vm2529_vm6 = vcmp.lt.f32.partialorder %v6109_v24, 0.0 }
 0x242   : > { %v2274_v22 = vadd.f32 0.2548296, %v2242_v59  ;;  %v6432_v23 = vsel %vm1876_vm5, %v1878_v30, %v1874_v41  ;;  %v6435_v47 = vmul.f32 0.70710677, %v6427_v44  ;;  %v6438_v35 = vmul.f32 %v2624_v12, %v6312_v57 }
 0x243   : > { %v2074_v31 = vadd.f32 -1.4531521, %v2042_v43  ;;  %v2147_v58 = vadd.f32 1.4214138, %v2115_v32  ;;  %v2052_v38 = vmul.f32 1.0614054, %v6432_v23  ;;  %v6446_v34 = vadd.f32 %v1378_v4, %v5296_v62 }
 0x244   : > { %v2137_v37 = vadd.f32 1.4214138, %v2105_v15  ;;  %v2552_v36 = vsub.f32 0.0, %v2488_v8  ;;  %v6443_v11 = vand.u32 2147483647, %v6435_v47  ;;  %v2583_v6 = vsel %vm2519_vm12, %v2551_v2, %v2487_v50 }
 0x245   : > { %v2106_v56 = vmul.f32 %v2074_v31, %v6420_v25  ;;  %v2179_v60 = vmul.f32 %v2147_v58, %v6403_v54  ;;  %v2084_v57 = vadd.f32 -1.4531521, %v2052_v38  ;;  %v2306_v59 = vmul.f32 %v2274_v22, %v6276_v14  ;;  %v7744_v31 = vld [vmem:[#allocation49_spill] sm:$0xff] }
 0x246   : > { %v2169_v12 = vmul.f32 %v2137_v37, %v6390_v1  ;;  %v2340_v42 = vsub.f32 0.0, %v6294_v7  ;;  %v1509_v5 = vmul.f32 0.3275911, %v6443_v11  ;;  %v2561_v49 = vsub.f32 0.0, %v2497_v16 }
 0x247   : > { %v2138_v10 = vadd.f32 1.4214138, %v2106_v56  ;;  %v2116_v53 = vmul.f32 %v2084_v57, %v6432_v23  ;;  %v6459_v50 = vmul.f32 0.70710677, %v6446_v34  ;;  %v2615_v55 = vadd.f32 1.0, %v2583_v6  ;;  %v7745_v6 = vld [vmem:[#allocation38_spill] sm:$0xff]  ;;  %v1114_v57 = vpop.f32.mrf.mxu0 }
 0x248   : > { %v2201_v30 = vadd.f32 -0.28449672, %v2169_v12  ;;  %v2584_v2 = vsel %vm2520_vm2, %v2552_v36, %v2488_v8  ;;  %v6464_v43 = vadd.f32 1.0, %v1509_v5  ;;  %v2211_v41 = vadd.f32 -0.28449672, %v2179_v60 }
 0x249   : > { %v2170_v14 = vmul.f32 %v2138_v10, %v6420_v25  ;;  %v2148_v15 = vadd.f32 1.4214138, %v2116_v53  ;;  %v6476_v22 = vand.u32 2147483647, %v6459_v50  ;;  %v2466_v18 = vmul.f32 %v6380_v45, %v2306_v59  ;;  %v7746_v45 = vld [vmem:[#allocation43_spill] sm:$0xff] }
 0x24a   : > { %v2233_v4 = vmul.f32 %v2201_v30, %v6390_v1  ;;  %4711 = vrcp.f32 %v6464_v43  ;;  %v1739_v58 = vsel %vm6470_vm7, %v5877_v21, %v7744_v31  ;;  %v2593_v38 = vsel %vm2529_vm6, %v2561_v49, %v2497_v16 }
 0x24b   : > { %v2202_v8 = vadd.f32 -0.28449672, %v2170_v14  ;;  %v2180_v37 = vmul.f32 %v2148_v15, %v6432_v23  ;;  %v2372_v36 = vmul.f32 %v2340_v42, %v6294_v7  ;;  %vm2521_vm8 = vcmp.lt.f32.partialorder %v7745_v6, 0.0  ;;  %v7749_v42 = vld [vmem:[#allocation68_spill] sm:$0xff] }
 0x24c   : > { %v2265_v56 = vadd.f32 0.2548296, %v2233_v4  ;;  %v2647_v60 = vmul.f32 %v2615_v55, %v7746_v45  ;;  %v1510_v59 = vmul.f32 0.3275911, %v6476_v22  ;;  %v7747_v21 = vand.u32 2147483647, %v5825_v52 }
 0x24d   : > { %v2234_v12 = vmul.f32 %v2202_v8, %v6420_v25  ;;  %vm2530_vm10 = vcmp.lt.f32.partialorder %v7748_v28, 0.0  ;;  %v2616_v24 = vadd.f32 1.0, %v2584_v2  ;;  %v2243_v16 = vmul.f32 %v2211_v41, %v6403_v54  ;;  %v7750_v55 = vld [vmem:[#allocation41_spill] sm:$0xff]  ;;  %v7751_v2 = vld [vmem:[#allocation66_spill] sm:$0xff]  ;;  %v7754_v45 = vld [vmem:[#allocation64_spill] sm:$0xff] }
 0x24e   : > { %vm1741_vm9 = vcmp.eq.f32.partialorder %v7747_v21, 8.507059e+37  ;;  %v2297_v7 = vmul.f32 %v2265_v56, %v6390_v1  ;;  %v2498_v5 = vsub.f32 1.0, %v2466_v18  ;;  %v2212_v49 = vadd.f32 -0.28449672, %v2180_v37  ;;  %v7752_v1 = vld [vmem:[#allocation69_spill] sm:$0xff]  ;;  %v1163_v18 = vpop.f32.mrf.mxu1 }
 0x24f   : > { %v6500_v10 = vsel %vm1741_vm9, %v7749_v42, %v1739_v58  ;;  %v2266_v53 = vadd.f32 0.2548296, %v2234_v12  ;;  %v6502_v30 = vadd.f32 1.0, %v1510_v59  ;;  %vm2522_vm11 = vcmp.lt.f32.partialorder %v7750_v55, 0.0  ;;  %v7755_v12 = vld [vmem:[#allocation71_spill] sm:$0xff] }
 0x250   : > { %4713 = vpow2.f32 %v6366_v48  ;;  %v2425_v52 = vmul.f32 1.442695, %v2372_v36  ;;  %v6507_v14 = vadd.f32 %v1114_v57, %v5346_v27  ;;  %v2457_v32 = vmul.f32 %v7751_v2, %v2297_v7  ;;  %v4712_v41 = vpop.eup %4711  ;;  %v7753_v48 = vld [vmem:[#allocation44_spill] sm:$0xff] }
 0x251   : > { %vm1752_vm12 = vweird.f32 %v7752_v1  ;;  %v6511_v15 = vadd.f32 1.0, %v2593_v38  ;;  %v6514_v4 = vmul.f32 %v2647_v60, %v6336_v0  ;;  %v2298_v8 = vmul.f32 %v2266_v53, %v6420_v25 }
 0x252   : > { %v2043_v31 = vmul.f32 1.0614054, %v6500_v10  ;;  %v2648_v58 = vmul.f32 %v2616_v24, %v7753_v48  ;;  %v2275_v37 = vadd.f32 0.2548296, %v2243_v16  ;;  %v2489_v36 = vsub.f32 1.0, %v2457_v32 }
 0x253   : > { %v1882_v56 = vmul.f32 %v4712_v41, %v6464_v43  ;;  %vm1751_vm13 = vweird.f32 %v7754_v45  ;;  %v2562_v57 = vsub.f32 0.0, %v2498_v5  ;;  %v2244_v38 = vmul.f32 %v2212_v49, %v6432_v23 }
 0x254   : > { %v2458_v59 = vmul.f32 %v7755_v12, %v2298_v8  ;;  %4715 = vrcp.f32 %v6502_v30  ;;  %v2553_v0 = vsub.f32 0.0, %v2489_v36  ;;  %v6525_v25 = vadd.f32 %v1163_v18, %v5349_v29  ;;  %vm1753_vm3 = vmor %vm1751_vm13, %vm1752_vm12  ;;  %v7756_v12 = vld [vmem:[#allocation46_spill] sm:$0xff] }
 0x255   : > { %4717 = vpow2.f32 %v2425_v52  ;;  %v1883_v60 = vsub.f32 1.0, %v1882_v56  ;;  %v1890_v24 = vand.u32 2147483647, %v6464_v43  ;;  %v1892_v16 = vand.u32 2147483648, %v6464_v43 }
 0x256   : > { %v2490_v21 = vsub.f32 1.0, %v2458_v59  ;;  %v2075_v7 = vadd.f32 -1.4531521, %v2043_v31  ;;  %v4714_v42 = vpop.eup %4713  ;;  %v2307_v53 = vmul.f32 %v2275_v37, %v6403_v54  ;;  %v2585_v49 = vsel %vm2521_vm8, %v2553_v0, %v2489_v36 }
 0x257   : > { %v1884_v2 = vmul.f32 %v4712_v41, %v1883_v60  ;;  %vm1887_vm14 = vweird.f32 %v4712_v41  ;;  %v6534_v52 = vsel %vm2530_vm10, %v2562_v57, %v2498_v5  ;;  %v6537_v32 = vmul.f32 %v2648_v58, %v6340_v26 }
 0x258   : > { %v2276_v18 = vadd.f32 0.2548296, %v2244_v38  ;;  %v2554_v8 = vsub.f32 0.0, %v2490_v21  ;;  %v2617_v48 = vadd.f32 1.0, %v2585_v49  ;;  %vm1886_vm15 = vweird.f32 %v6464_v43 }
 0x259   : > { %v1885_v56 = vadd.f32 %v4712_v41, %v1884_v2  ;;  %v2341_v54 = vsub.f32 0.0, %v6443_v11  ;;  %vm1888_vm0 = vmor %vm1886_vm15, %vm1887_vm14  ;;  %vm1891_vm1 = vcmp.eq.f32.partialorder %v1890_v24, 8.507059e+37  ;;  %v1893_v28 = vor.u32 1.1754944e-38, %v1892_v16  ;;  %v7760_v2 = vld [vmem:[#allocation55_spill] sm:$0xff] }
 0x25a   : > { %v4716_v31 = vpop.eup %4715  ;;  %v2586_v6 = vsel %vm2522_vm11, %v2554_v8, %v2490_v21  ;;  %v2107_v5 = vmul.f32 %v2075_v7, %v6500_v10  ;;  %v6544_v26 = vmul.f32 %v4714_v42, %v2307_v53  ;;  %v2308_v43 = vmul.f32 %v2276_v18, %v6432_v23  ;;  %v7757_v21 = vld [vmem:[#allocation76_spill] sm:$0xff] }
 0x25b   : > { %v4718_v37 = vpop.eup %4717  ;;  %v2618_v58 = vadd.f32 1.0, %v2586_v6  ;;  %v1889_v36 = vsel %vm1888_vm0, %v4712_v41, %v1885_v56  ;;  %v1897_v57 = vmul.f32 %v4716_v31, %v6502_v30  ;;  %vm1901_vm2 = vweird.f32 %v6502_v30  ;;  %v7759_v7 = vld [vmem:[#allocation52_spill] sm:$0xff]  ;;  %v1332_v6 = vpop.f32.mrf.mxu2 }
 0x25c   : > { %v6548_v38 = vsel %vm1891_vm1, %v1893_v28, %v1889_v36  ;;  %v1905_v55 = vand.u32 2147483647, %v6502_v30  ;;  %v2649_v59 = vmul.f32 %v2617_v48, %v7756_v12  ;;  %v1907_v60 = vand.u32 2147483648, %v6502_v30  ;;  %v1381_v36 = vpop.f32.mrf.mxu3 }
 0x25d   : > { %v2053_v0 = vmul.f32 1.0614054, %v6548_v38  ;;  %v1898_v41 = vsub.f32 1.0, %v1897_v57  ;;  %vm1902_vm4 = vweird.f32 %v4716_v31  ;;  %v2139_v23 = vadd.f32 1.4214138, %v2107_v5 }
 0x25e   : > { %v1754_v24 = vsel %vm1753_vm3, %v7752_v1, %v7757_v21  ;;  %v7758_v16 = vand.u32 2147483647, %v7754_v45  ;;  %v2650_v42 = vmul.f32 %v2618_v58, %v7759_v7  ;;  %v6567_v8 = vmul.f32 %v4718_v37, %v2308_v43  ;;  %vm1903_vm7 = vmor %vm1901_vm2, %vm1902_vm4  ;;  %v7763_v21 = vld [vmem:[#allocation75_spill] sm:$0xff] }
 0x25f   : > { %v2085_v53 = vadd.f32 -1.4531521, %v2053_v0  ;;  %v1899_v49 = vmul.f32 %v4716_v31, %v1898_v41  ;;  %vm6569_vm6 = vcmp.eq.f32.partialorder %v1905_v55, 8.507059e+37  ;;  %v2171_v56 = vmul.f32 %v2139_v23, %v6500_v10 }
 0x260   : > { %vm1756_vm5 = vcmp.eq.f32.partialorder %v7758_v16, 8.507059e+37  ;;  %v1908_v5 = vor.u32 1.1754944e-38, %v1907_v60  ;;  %v6577_v58 = vadd.f32 %v1332_v6, %v5294_v61  ;;  %v2681_v37 = vmul.f32 %v2649_v59, %v6507_v14 }
 0x261   : > { %v6565_v18 = vsel %vm1756_vm5, %v7760_v2, %v1754_v24  ;;  %v2117_v45 = vmul.f32 %v2085_v53, %v6548_v38  ;;  %v1900_v28 = vadd.f32 %v4716_v31, %v1899_v49  ;;  %v2203_v57 = vadd.f32 -0.28449672, %v2171_v56 }
 0x262   : > { %v2044_v1 = vmul.f32 1.0614054, %v6565_v18  ;;  %v6584_v55 = vadd.f32 %v1381_v36, %v5296_v62  ;;  %vm1767_vm8 = vweird.f32 %v6044_v51  ;;  %vm2531_vm9 = vcmp.lt.f32.partialorder %v6263_v33, 0.0 }
 0x263   : > { %v2682_v12 = vmul.f32 %v2650_v42, %v6525_v25  ;;  %v2149_v0 = vadd.f32 1.4214138, %v2117_v45  ;;  %v1904_v41 = vsel %vm1903_vm7, %v4716_v31, %v1900_v28  ;;  %v6590_v60 = vmul.f32 0.70710677, %v6577_v58 }
 0x264   : > { %v2076_v43 = vadd.f32 -1.4531521, %v2044_v1  ;;  %v2499_v14 = vsub.f32 1.0, %v6544_v26  ;;  %v6595_v30 = vsel %vm6569_vm6, %v1908_v5, %v1904_v41  ;;  %v2235_v59 = vmul.f32 %v2203_v57, %v6500_v10 }
 0x265   : > { %vm1766_vm10 = vweird.f32 %v7763_v21  ;;  %v2181_v24 = vmul.f32 %v2149_v0, %v6548_v38  ;;  %v2054_v25 = vmul.f32 1.0614054, %v6595_v30  ;;  %v1479_v31 = vand.u32 2147483647, %v6590_v60 }
 0x266   : > { %v2108_v23 = vmul.f32 %v2076_v43, %v6565_v18  ;;  %v6604_v16 = vmul.f32 0.70710677, %v6584_v55  ;;  %v2500_v26 = vsub.f32 1.0, %v6567_v8  ;;  %v2267_v7 = vadd.f32 0.2548296, %v2235_v59  ;;  %vm6642_vm13 = vmor %vm1766_vm10, %vm1767_vm8 }
 0x267   : > { %v2707_v53 = vpack.c.bf16 %v2681_v37, %v6514_v4  ;;  %v2373_v49 = vmul.f32 %v2341_v54, %v6443_v11  ;;  %v2086_v2 = vadd.f32 -1.4531521, %v2054_v25  ;;  %v1511_v48 = vmul.f32 0.3275911, %v1479_v31 }
 0x268   : > { %v2140_v42 = vadd.f32 1.4214138, %v2108_v23  ;;  %v2708_v56 = vpack.c.bf16 %v2682_v12, %v6537_v32  ;;  %v2563_v1 = vsub.f32 0.0, %v2499_v14  ;;  %v2213_v6 = vadd.f32 -0.28449672, %v2181_v24 }
 0x269   : > { %v6614_v28 = vand.u32 2147483647, %v6604_v16  ;;  %2881 = vmatmul.bf16.gmra.mxu0 %v2707_v53  ;;  %v2626_v8 = vadd.f32 1.0, %v6534_v52  ;;  %v2118_v4 = vmul.f32 %v2086_v2, %v6595_v30  ;;  %v2342_v5 = vsub.f32 0.0, %v6476_v22  ;;  %v7768_v2 = vld [vmem:[#allocation57_spill] sm:$0xff] }
 0x26a   : > { %v2172_v45 = vmul.f32 %v2140_v42, %v6565_v18  ;;  %v6619_v36 = vadd.f32 1.0, %v1511_v48  ;;  %2930 = vmatmul.bf16.gmra.mxu1 %v2708_v56  ;;  %v2564_v11 = vsub.f32 0.0, %v2500_v26  ;;  %v2299_v32 = vmul.f32 %v2267_v7, %v6500_v10 }
 0x26b   : > { %v1512_v37 = vmul.f32 0.3275911, %v6614_v28  ;;  %vm2532_vm11 = vcmp.lt.f32.partialorder %v6283_v3, 0.0  ;;  %v2427_v57 = vmul.f32 1.442695, %v2373_v49  ;;  %v2595_v52 = vsel %vm2531_vm9, %v2563_v1, %v2499_v14 }
 0x26c   : > { %v2204_v54 = vadd.f32 -0.28449672, %v2172_v45  ;;  %v2150_v43 = vadd.f32 1.4214138, %v2118_v4  ;;  %4719 = vrcp.f32 %v6619_v36  ;;  %v2245_v12 = vmul.f32 %v2213_v6, %v6548_v38  ;;  %v1117_v6 = vpop.f32.mrf.mxu0 }
 0x26d   : > { %v2343_v41 = vsub.f32 0.0, %v1479_v31  ;;  %vm1782_vm12 = vweird.f32 %v6102_v9  ;;  %v6632_v10 = vmul.f32 %v6511_v15, %v6324_v63  ;;  %v2374_v59 = vmul.f32 %v2342_v5, %v6476_v22  ;;  %v7766_v15 = vld [vmem:[#allocation73_spill] sm:$0xff] }
 0x26e   : > { %v2236_v0 = vmul.f32 %v2204_v54, %v6565_v18  ;;  %v2182_v3 = vmul.f32 %v2150_v43, %v6595_v30  ;;  %v6636_v23 = vadd.f32 1.0, %v1512_v37  ;;  %v6647_v14 = vmul.f32 %v2626_v8, %v6333_v40  ;;  %v7767_v22 = vld [vmem:[#allocation29_spill] sm:$0xff] }
 0x26f   : > { %v2596_v24 = vsel %vm2532_vm11, %v2564_v11, %v2500_v26  ;;  %v6650_v63 = vmul.f32 0.5, %v6427_v44  ;;  %v2459_v25 = vmul.f32 %v7766_v15, %v2299_v32  ;;  %vm1781_vm14 = vweird.f32 %v7767_v22 }
 0x270   : > { %v2627_v7 = vadd.f32 1.0, %v2595_v52  ;;  %4721 = vpow2.f32 %v2427_v57  ;;  %v6655_v42 = vmul.f32 0.5, %v6446_v34  ;;  %v1769_v53 = vsel %vm6642_vm13, %v6044_v51, %v6309_v39  ;;  %v1166_v51 = vpop.f32.mrf.mxu1  ;;  %vm6697_vm4 = vmor %vm1781_vm14, %vm1782_vm12 }
 0x271   : > { %v2277_v40 = vadd.f32 0.2548296, %v2245_v12  ;;  %v2268_v49 = vadd.f32 0.2548296, %v2236_v0  ;;  %v2375_v26 = vmul.f32 %v2343_v41, %v1479_v31  ;;  %4723 = vrcp.f32 %v6636_v23  ;;  %v7770_v31 = vld [vmem:[#allocation42_spill] sm:$0xff] }
 0x272   : > { %v4720_v44 = vpop.eup %4719  ;;  %vm2523_vm15 = vcmp.lt.f32.partialorder %v7768_v2, 0.0  ;;  %v2628_v48 = vadd.f32 1.0, %v2596_v24  ;;  %v2214_v56 = vadd.f32 -0.28449672, %v2182_v3  ;;  %v2429_v1 = vmul.f32 1.442695, %v2374_v59 }
 0x273   : > { %v7769_v34 = vand.u32 2147483647, %v7763_v21  ;;  %v6666_v45 = vadd.f32 %v1117_v6, %v5346_v27  ;;  %v2491_v8 = vsub.f32 1.0, %v2459_v25  ;;  %v1912_v39 = vmul.f32 %v4720_v44, %v6619_v36 }
 0x274   : > { %v6673_v5 = vmul.f32 %v2627_v7, %v6354_v19  ;;  %v6676_v11 = vadd.f32 %v1166_v51, %v5349_v29  ;;  %v1920_v32 = vand.u32 2147483647, %v6619_v36  ;;  %v1922_v21 = vand.u32 2147483648, %v6619_v36 }
 0x275   : > { %vm1771_vm0 = vcmp.eq.f32.partialorder %v7769_v34, 8.507059e+37  ;;  %v2309_v54 = vmul.f32 %v2277_v40, %v6548_v38  ;;  %v2300_v37 = vmul.f32 %v2268_v49, %v6565_v18  ;;  %v1913_v57 = vsub.f32 1.0, %v1912_v39  ;;  %v7776_v34 = vld [vmem:[#allocation58_spill] sm:$0xff]  ;;  %v1383_v38 = vpop.f32.mrf.mxu3 }
 0x276   : > { %v6670_v4 = vsel %vm1771_vm0, %v7770_v31, %v1769_v53  ;;  %v2431_v43 = vmul.f32 1.442695, %v2375_v26  ;;  %v4722_v52 = vpop.eup %4721  ;;  %v6683_v12 = vmul.f32 %v2628_v48, %v6369_v13  ;;  %v2246_v19 = vmul.f32 %v2214_v56, %v6595_v30 }
 0x277   : > { %4725 = vpow2.f32 %v2429_v1  ;;  %v2045_v0 = vmul.f32 1.0614054, %v6670_v4  ;;  %v4724_v41 = vpop.eup %4723  ;;  %v2555_v3 = vsub.f32 0.0, %v2491_v8  ;;  %v1914_v59 = vmul.f32 %v4720_v44, %v1913_v57 }
 0x278   : > { %vm1916_vm1 = vweird.f32 %v6619_v36  ;;  %vm1917_vm2 = vweird.f32 %v4720_v44  ;;  %vm6688_vm3 = vcmp.eq.f32.partialorder %v1920_v32, 8.507059e+37  ;;  %v1923_v18 = vor.u32 1.1754944e-38, %v1922_v21  ;;  %v7775_v36 = vld [vmem:[#allocation74_spill] sm:$0xff]  ;;  %v1334_v21 = vpop.f32.mrf.mxu2 }
 0x279   : > { %v1927_v33 = vmul.f32 %v4724_v41, %v6636_v23  ;;  %v2077_v13 = vadd.f32 -1.4531521, %v2045_v0  ;;  %v6701_v15 = vmul.f32 %v4722_v52, %v2309_v54  ;;  %v2460_v25 = vmul.f32 %v7775_v36, %v2300_v37  ;;  %vm1918_vm5 = vmor %vm1916_vm1, %vm1917_vm2  ;;  %v7778_v37 = vld [vmem:[#allocation78_spill] sm:$0xff] }
 0x27a   : > { %v1915_v7 = vadd.f32 %v4720_v44, %v1914_v59  ;;  %4727 = vpow2.f32 %v2431_v43  ;;  %v2278_v53 = vadd.f32 0.2548296, %v2246_v19  ;;  %vm1931_vm6 = vweird.f32 %v6636_v23 }
 0x27b   : > { %v1928_v40 = vsub.f32 1.0, %v1927_v33  ;;  %v2109_v49 = vmul.f32 %v2077_v13, %v6670_v4  ;;  %v2587_v26 = vsel %vm2523_vm15, %v2555_v3, %v2491_v8  ;;  %v1937_v56 = vand.u32 2147483648, %v6636_v23 }
 0x27c   : > { %v1919_v48 = vsel %vm1918_vm5, %v4720_v44, %v1915_v7  ;;  %v1784_v1 = vsel %vm6697_vm4, %v6102_v9, %v6320_v20  ;;  %vm2524_vm7 = vcmp.lt.f32.partialorder %v7776_v34, 0.0  ;;  %vm1932_vm8 = vweird.f32 %v4724_v41 }
 0x27d   : > { %v4726_v6 = vpop.eup %4725  ;;  %v6716_v51 = vsel %vm6688_vm3, %v1923_v18, %v1919_v48  ;;  %v1929_v39 = vmul.f32 %v4724_v41, %v1928_v40  ;;  %v1935_v2 = vand.u32 2147483647, %v6636_v23  ;;  %v2492_v8 = vsub.f32 1.0, %v2460_v25  ;;  %vm1933_vm10 = vmor %vm1931_vm6, %vm1932_vm8 }
 0x27e   : > { %v2055_v44 = vmul.f32 1.0614054, %v6716_v51  ;;  %v2141_v31 = vadd.f32 1.4214138, %v2109_v49  ;;  %v7777_v32 = vand.u32 2147483647, %v7767_v22  ;;  %v2310_v20 = vmul.f32 %v2278_v53, %v6595_v30 }
 0x27f   : > { %v2501_v9 = vsub.f32 1.0, %v6701_v15  ;;  %v1930_v54 = vadd.f32 %v4724_v41, %v1929_v39  ;;  %v1938_v19 = vor.u32 1.1754944e-38, %v1937_v56  ;;  %vm1936_vm11 = vcmp.eq.f32.partialorder %v1935_v2, 8.507059e+37 }
 0x280   : > { %vm1786_vm9 = vcmp.eq.f32.partialorder %v7777_v32, 8.507059e+37  ;;  %v6727_v43 = vpop.eup %4727  ;;  %v2087_v52 = vadd.f32 -1.4531521, %v2055_v44  ;;  %v2173_v0 = vmul.f32 %v2141_v31, %v6670_v4  ;;  %v2344_v59 = vsub.f32 0.0, %v6614_v28 }
 0x281   : > { %v6725_v57 = vsel %vm1786_vm9, %v7778_v37, %v1784_v1  ;;  %v1934_v3 = vsel %vm1933_vm10, %v4724_v41, %v1930_v54  ;;  %v6735_v30 = vadd.f32 %v1334_v21, %v5294_v61  ;;  %v2556_v18 = vsub.f32 0.0, %v2492_v8 }
 0x282   : > { %v2046_v22 = vmul.f32 1.0614054, %v6725_v57  ;;  %v2119_v33 = vmul.f32 %v2087_v52, %v6716_v51  ;;  %v6738_v13 = vsel %vm1936_vm11, %v1938_v19, %v1934_v3  ;;  %v2205_v23 = vadd.f32 -0.28449672, %v2173_v0 }
 0x283   : > { %v2470_v24 = vmul.f32 %v4726_v6, %v2310_v20  ;;  %v2056_v36 = vmul.f32 1.0614054, %v6738_v13  ;;  %v6742_v7 = vadd.f32 %v1383_v38, %v5296_v62  ;;  %vm2533_vm12 = vcmp.lt.f32.partialorder %v6435_v47, 0.0  ;;  %v7779_v20 = vld [vmem:[#allocation70_spill] sm:$0xff]  ;;  %v7780_v38 = vld [vmem:[#allocation37_spill] sm:$0xff] }
 0x284   : > { %v2078_v25 = vadd.f32 -1.4531521, %v2046_v22  ;;  %v2619_v41 = vadd.f32 1.0, %v2587_v26  ;;  %v2151_v53 = vadd.f32 1.4214138, %v2119_v33  ;;  %v2237_v40 = vmul.f32 %v2205_v23, %v6670_v4 }
 0x285   : > { %v6747_v49 = vmul.f32 0.70710677, %v6735_v30  ;;  %v2088_v48 = vadd.f32 -1.4531521, %v2056_v36  ;;  %v2376_v56 = vmul.f32 %v2344_v59, %v6614_v28  ;;  %v6752_v6 = vmul.f32 0.70710677, %v6742_v7 }
 0x286   : > { %v2110_v1 = vmul.f32 %v2078_v25, %v6725_v57  ;;  %vm2534_vm13 = vcmp.lt.f32.partialorder %v6459_v50, 0.0  ;;  %v2588_v39 = vsel %vm2524_vm7, %v2556_v18, %v2492_v8  ;;  %v2183_v26 = vmul.f32 %v2151_v53, %v6716_v51 }
 0x287   : > { %v2269_v2 = vadd.f32 0.2548296, %v2237_v40  ;;  %v1481_v44 = vand.u32 2147483647, %v6747_v49  ;;  %v2502_v31 = vsub.f32 1.0, %v2470_v24  ;;  %v2120_v32 = vmul.f32 %v2088_v48, %v6738_v13 }
 0x288   : > { %v2142_v21 = vadd.f32 1.4214138, %v2110_v1  ;;  %v6761_v28 = vand.u32 2147483647, %v6752_v6  ;;  %vm2525_vm14 = vcmp.lt.f32.partialorder %v7779_v20, 0.0  ;;  %v2565_v54 = vsub.f32 0.0, %v2501_v9 }
 0x289   : > { %v2215_v37 = vadd.f32 -0.28449672, %v2183_v26  ;;  %v2301_v34 = vmul.f32 %v2269_v2, %v6670_v4  ;;  %v1513_v8 = vmul.f32 0.3275911, %v1481_v44  ;;  %v2152_v52 = vadd.f32 1.4214138, %v2120_v32 }
 0x28a   : > { %v2433_v19 = vmul.f32 1.442695, %v2376_v56  ;;  %v2174_v0 = vmul.f32 %v2142_v21, %v6725_v57  ;;  %v1514_v22 = vmul.f32 0.3275911, %v6761_v28  ;;  %v2620_v3 = vadd.f32 1.0, %v2588_v39  ;;  %v7781_v4 = vld [vmem:[#allocation65_spill] sm:$0xff]  ;;  %v1119_v39 = vpop.f32.mrf.mxu0 }
 0x28b   : > { %v2247_v59 = vmul.f32 %v2215_v37, %v6716_v51  ;;  %v2461_v18 = vmul.f32 %v7780_v38, %v2301_v34  ;;  %v6771_v33 = vadd.f32 1.0, %v1513_v8  ;;  %v2566_v23 = vsub.f32 0.0, %v2502_v31  ;;  %v7782_v2 = vld [vmem:[#allocation67_spill] sm:$0xff]  ;;  %v1168_v37 = vpop.f32.mrf.mxu1  ;;  %v7783_v34 = vld [vmem:[#allocation72_spill] sm:$0xff] }
 0x28c   : > { %v2184_v24 = vmul.f32 %v2152_v52, %v6738_v13  ;;  %v2206_v36 = vadd.f32 -0.28449672, %v2174_v0  ;;  %v6774_v25 = vadd.f32 1.0, %v1514_v22  ;;  %v2651_v53 = vmul.f32 %v2619_v41, %v7781_v4  ;;  %v1337_v22 = vpop.f32.mrf.mxu2 }
 0x28d   : > { %v2279_v40 = vadd.f32 0.2548296, %v2247_v59  ;;  %v2493_v48 = vsub.f32 1.0, %v2461_v18  ;;  %4729 = vrcp.f32 %v6771_v33  ;;  %v2597_v56 = vsel %vm2533_vm12, %v2565_v54, %v2501_v9 }
 0x28e   : > { %v2216_v1 = vadd.f32 -0.28449672, %v2184_v24  ;;  %4731 = vpow2.f32 %v2433_v19  ;;  %v2238_v26 = vmul.f32 %v2206_v36, %v6725_v57  ;;  %v2652_v32 = vmul.f32 %v2620_v3, %v7782_v2 }
 0x28f   : > { %v6785_v21 = vmul.f32 0.5, %v6577_v58  ;;  %v2557_v41 = vsub.f32 0.0, %v2493_v48  ;;  %4733 = vrcp.f32 %v6774_v25  ;;  %v2598_v15 = vsel %vm2534_vm13, %v2566_v23, %v2502_v31 }
 0x290   : > { %v2311_v47 = vmul.f32 %v2279_v40, %v6716_v51  ;;  %v2248_v9 = vmul.f32 %v2216_v1, %v6738_v13  ;;  %v2270_v54 = vadd.f32 0.2548296, %v2238_v26  ;;  %vm2526_vm15 = vcmp.lt.f32.partialorder %v7783_v34, 0.0 }
 0x291   : > { %v6793_v8 = vadd.f32 1.0, %v2597_v56  ;;  %v6796_v52 = vmul.f32 %v2651_v53, %v6666_v45  ;;  %v1120_v58 = vadd.f32 %v1119_v39, %v5346_v27  ;;  %v2345_v19 = vsub.f32 0.0, %v1481_v44 }
 0x292   : > { %v2280_v0 = vadd.f32 0.2548296, %v2248_v9  ;;  %v2589_v50 = vsel %vm2525_vm14, %v2557_v41, %v2493_v48  ;;  %v6802_v31 = vadd.f32 %v1168_v37, %v5349_v29  ;;  %v2302_v51 = vmul.f32 %v2270_v54, %v6725_v57  ;;  %v7786_v37 = vld [vmem:[#allocation36_spill] sm:$0xff] }
 0x293   : > { %v4730_v3 = vpop.eup %4729  ;;  %v6805_v59 = vadd.f32 1.0, %v2598_v15  ;;  %v6808_v38 = vmul.f32 %v2652_v32, %v6676_v11  ;;  %v1950_v45 = vand.u32 2147483647, %v6771_v33  ;;  %v1952_v18 = vand.u32 2147483648, %v6771_v33 }
 0x294   : > { %v4732_v23 = vpop.eup %4731  ;;  %v2471_v20 = vmul.f32 %v6727_v43, %v2311_v47  ;;  %v2312_v24 = vmul.f32 %v2280_v0, %v6738_v13  ;;  %v2462_v36 = vmul.f32 %v6329_v46, %v2302_v51  ;;  %v1942_v57 = vmul.f32 %v4730_v3, %v6771_v33  ;;  %v1386_v43 = vpop.f32.mrf.mxu3 }
 0x295   : > { %v4734_v4 = vpop.eup %4733  ;;  %v2621_v53 = vadd.f32 1.0, %v2589_v50  ;;  %v2377_v40 = vmul.f32 %v2345_v19, %v1481_v44  ;;  %v2346_v48 = vsub.f32 0.0, %v6761_v28  ;;  %v6818_v11 = vadd.f32 %v1337_v22, %v5294_v61 }
 0x296   : > { %v2472_v56 = vmul.f32 %v4732_v23, %v2312_v24  ;;  %v2494_v1 = vsub.f32 1.0, %v2462_v36  ;;  %v1943_v39 = vsub.f32 1.0, %v1942_v57  ;;  %vm1946_vm0 = vweird.f32 %v6771_v33  ;;  %v7787_v36 = vld [vmem:[#allocation77_spill] sm:$0xff] }
 0x297   : > { %vm6821_vm1 = vcmp.eq.f32.partialorder %v1950_v45, 8.507059e+37  ;;  %v1953_v46 = vor.u32 1.1754944e-38, %v1952_v18  ;;  %v1957_v26 = vmul.f32 %v4734_v4, %v6774_v25  ;;  %v1965_v44 = vand.u32 2147483647, %v6774_v25 }
 0x298   : > { %v2503_v2 = vsub.f32 1.0, %v2471_v20  ;;  %vm2535_vm2 = vcmp.lt.f32.partialorder %v6590_v60, 0.0  ;;  %v2558_v32 = vsub.f32 0.0, %v2494_v1  ;;  %v1944_v41 = vmul.f32 %v4730_v3, %v1943_v39 }
 0x299   : > { %vm1947_vm3 = vweird.f32 %v4730_v3  ;;  %vm2536_vm4 = vcmp.lt.f32.partialorder %v6604_v16, 0.0  ;;  %v2653_v15 = vmul.f32 %v2621_v53, %v7786_v37  ;;  %v1958_v47 = vsub.f32 1.0, %v1957_v26 }
 0x29a   : > { %v6831_v9 = vmul.f32 0.70710677, %v6818_v11  ;;  %v6834_v54 = vadd.f32 %v1386_v43, %v5296_v62  ;;  %v2504_v19 = vsub.f32 1.0, %v2472_v56  ;;  %v2590_v0 = vsel %vm2526_vm15, %v2558_v32, %v2494_v1  ;;  %vm1948_vm5 = vmor %vm1946_vm0, %vm1947_vm3 }
 0x29b   : > { %v1945_v50 = vadd.f32 %v4730_v3, %v1944_v41  ;;  %v1967_v51 = vand.u32 2147483648, %v6774_v25  ;;  %v2622_v22 = vadd.f32 1.0, %v2590_v0  ;;  %v1959_v45 = vmul.f32 %v4734_v4, %v1958_v47 }
 0x29c   : > { %vm1962_vm6 = vweird.f32 %v4734_v4  ;;  %v1483_v18 = vand.u32 2147483647, %v6831_v9  ;;  %v2567_v23 = vsub.f32 0.0, %v2503_v2  ;;  %vm1961_vm7 = vweird.f32 %v6774_v25 }
 0x29d   : > { %v1949_v20 = vsel %vm1948_vm5, %v4730_v3, %v1945_v50  ;;  %v6844_v24 = vmul.f32 0.70710677, %v6834_v54  ;;  %v2685_v34 = vmul.f32 %v2653_v15, %v1120_v58  ;;  %v2654_v57 = vmul.f32 %v2622_v22, %v7787_v36  ;;  %vm1963_vm8 = vmor %vm1961_vm7, %vm1962_vm6 }
 0x29e   : > { %v6849_v53 = vsel %vm6821_vm1, %v1953_v46, %v1949_v20  ;;  %v1960_v33 = vadd.f32 %v4734_v4, %v1959_v45  ;;  %v2568_v56 = vsub.f32 0.0, %v2504_v19  ;;  %v1968_v39 = vor.u32 1.1754944e-38, %v1967_v51  ;;  %v1388_v51 = vpop.f32.mrf.mxu3 }
 0x29f   : > { %v2057_v1 = vmul.f32 1.0614054, %v6849_v53  ;;  %v1515_v43 = vmul.f32 0.3275911, %v1483_v18  ;;  %vm1966_vm9 = vcmp.eq.f32.partialorder %v1965_v44, 8.507059e+37  ;;  %v2378_v25 = vmul.f32 %v2346_v48, %v6761_v28 }
 0x2a0   : > { %v1964_v3 = vsel %vm1963_vm8, %v4734_v4, %v1960_v33  ;;  %v6854_v26 = vand.u32 2147483647, %v6844_v24  ;;  %v2686_v58 = vmul.f32 %v2654_v57, %v6802_v31  ;;  %v2599_v41 = vsel %vm2535_vm2, %v2567_v23, %v2503_v2 }
 0x2a1   : > { %v2089_v32 = vadd.f32 -1.4531521, %v2057_v1  ;;  %v6857_v13 = vsel %vm1966_vm9, %v1968_v39, %v1964_v3  ;;  %v6859_v46 = vadd.f32 1.0, %v1515_v43  ;;  %v2709_v44 = vpack.c.bf16 %v2685_v34, %v6796_v52 }
 0x2a2   : > { %v2058_v37 = vmul.f32 1.0614054, %v6857_v13  ;;  %v1516_v4 = vmul.f32 0.3275911, %v6854_v26  ;;  %v2600_v28 = vsel %vm2536_vm4, %v2568_v56, %v2504_v19  ;;  %v2347_v31 = vsub.f32 0.0, %v1483_v18  ;;  %v1339_v19 = vpop.f32.mrf.mxu2 }
 0x2a3   : > { %v2121_v48 = vmul.f32 %v2089_v32, %v6849_v53  ;;  %4735 = vrcp.f32 %v6859_v46  ;;  %v1416_v15 = vmul.f32 0.5, %v6584_v55  ;;  %v2435_v47 = vmul.f32 1.442695, %v2377_v40  ;;  %2886 = vmatmul.bf16.gmra.mxu0 %v2709_v44 }
 0x2a4   : > { %v2090_v0 = vadd.f32 -1.4531521, %v2058_v37  ;;  %v6871_v60 = vadd.f32 1.0, %v1516_v4  ;;  %v6875_v2 = vmul.f32 %v6793_v8, %v6650_v63  ;;  %v2437_v50 = vmul.f32 1.442695, %v2378_v25 }
 0x2a5   : > { %v2153_v52 = vadd.f32 1.4214138, %v2121_v48  ;;  %v2710_v16 = vpack.c.bf16 %v2686_v58, %v6808_v38  ;;  %v6880_v22 = vmul.f32 %v6805_v59, %v6655_v42  ;;  %v2631_v55 = vadd.f32 1.0, %v2599_v41 }
 0x2a6   : > { %v2632_v40 = vadd.f32 1.0, %v2600_v28  ;;  %v2122_v45 = vmul.f32 %v2090_v0, %v6857_v13  ;;  %v6884_v23 = vmul.f32 0.5, %v6735_v30  ;;  %v2379_v8 = vmul.f32 %v2347_v31, %v1483_v18 }
 0x2a7   : > { %v2185_v63 = vmul.f32 %v2153_v52, %v6849_v53  ;;  %4737 = vrcp.f32 %v6871_v60  ;;  %2935 = vmatmul.bf16.gmra.mxu1 %v2710_v16  ;;  %v6889_v20 = vadd.f32 %v1339_v19, %v5294_v61  ;;  %v6892_v42 = vadd.f32 %v1388_v51, %v5296_v62 }
 0x2a8   : > { %4739 = vpow2.f32 %v2435_v47  ;;  %v2154_v38 = vadd.f32 1.4214138, %v2122_v45  ;;  %v6895_v36 = vmul.f32 0.5, %v6742_v7  ;;  %v1980_v30 = vand.u32 2147483647, %v6859_v46 }
 0x2a9   : > { %v4736_v59 = vpop.eup %4735  ;;  %v2217_v34 = vadd.f32 -0.28449672, %v2185_v63  ;;  %4741 = vpow2.f32 %v2437_v50  ;;  %v6899_v18 = vmul.f32 %v2631_v55, %v6785_v21  ;;  %v6901_v57 = vmul.f32 %v2632_v40, %v1416_v15 }
 0x2aa   : > { %v2186_v33 = vmul.f32 %v2154_v38, %v6857_v13  ;;  %v1972_v61 = vmul.f32 %v4736_v59, %v6859_v46  ;;  %v1982_v56 = vand.u32 2147483648, %v6859_v46  ;;  %v2439_v1 = vmul.f32 1.442695, %v2379_v8 }
 0x2ab   : > { %v2249_v62 = vmul.f32 %v2217_v34, %v6849_v53  ;;  %v6908_v7 = vmul.f32 0.70710677, %v6889_v20  ;;  %v2348_v3 = vsub.f32 0.0, %v6854_v26  ;;  %v6912_v21 = vmul.f32 0.70710677, %v6892_v42 }
 0x2ac   : > { %v2218_v39 = vadd.f32 -0.28449672, %v2186_v33  ;;  %v1973_v43 = vsub.f32 1.0, %v1972_v61  ;;  %vm1976_vm10 = vweird.f32 %v6859_v46  ;;  %vm6915_vm11 = vcmp.eq.f32.partialorder %v1980_v30, 8.507059e+37 }
 0x2ad   : > { %v4738_v25 = vpop.eup %4737  ;;  %v2281_v58 = vadd.f32 0.2548296, %v2249_v62  ;;  %v6920_v41 = vand.u32 2147483647, %v6908_v7  ;;  %vm2537_vm12 = vcmp.lt.f32.partialorder %v6747_v49, 0.0  ;;  %vm1977_vm13 = vweird.f32 %v4736_v59 }
 0x2ae   : > { %v4740_v37 = vpop.eup %4739  ;;  %v2250_v4 = vmul.f32 %v2218_v39, %v6857_v13  ;;  %v1974_v44 = vmul.f32 %v4736_v59, %v1973_v43  ;;  %v1987_v28 = vmul.f32 %v4738_v25, %v6871_v60  ;;  %v1983_v15 = vor.u32 1.1754944e-38, %v1982_v56  ;;  %vm1978_vm15 = vmor %vm1976_vm10, %vm1977_vm13 }
 0x2af   : > { %v4742_v48 = vpop.eup %4741  ;;  %v2313_v31 = vmul.f32 %v2281_v58, %v6849_v53  ;;  %v1517_v47 = vmul.f32 0.3275911, %v6920_v41  ;;  %v6928_v0 = vand.u32 2147483647, %v6912_v21  ;;  %v1995_v19 = vand.u32 2147483647, %v6871_v60 }
 0x2b0   : > { %v2282_v52 = vadd.f32 0.2548296, %v2250_v4  ;;  %v1975_v50 = vadd.f32 %v4736_v59, %v1974_v44  ;;  %v1988_v16 = vsub.f32 1.0, %v1987_v28  ;;  %vm2538_vm14 = vcmp.lt.f32.partialorder %v6752_v6, 0.0  ;;  %v7791_v28 = vld [vmem:[#allocation18_spill] sm:$0xff] }
 0x2b1   : > { %v2473_v51 = vmul.f32 %v4740_v37, %v2313_v31  ;;  %v1997_v55 = vand.u32 2147483648, %v6871_v60  ;;  %v6935_v53 = vadd.f32 1.0, %v1517_v47  ;;  %v1518_v40 = vmul.f32 0.3275911, %v6928_v0  ;;  %v7792_v31 = vld [vmem:[#allocation16_spill] sm:$0xff] }
 0x2b2   : > { %v2314_v45 = vmul.f32 %v2282_v52, %v6857_v13  ;;  %v1979_v63 = vsel %vm1978_vm15, %v4736_v59, %v1975_v50  ;;  %v1989_v8 = vmul.f32 %v4738_v25, %v1988_v16  ;;  %vm1992_vm0 = vweird.f32 %v4738_v25 }
 0x2b3   : > { %v2505_v38 = vsub.f32 1.0, %v2473_v51  ;;  %v6941_v34 = vsel %vm6915_vm11, %v1983_v15, %v1979_v63  ;;  %v2380_v30 = vmul.f32 %v2348_v3, %v6854_v26  ;;  %4743 = vrcp.f32 %v6935_v53 }
 0x2b4   : > { %v2474_v46 = vmul.f32 %v4742_v48, %v2314_v45  ;;  %v2059_v33 = vmul.f32 1.0614054, %v6941_v34  ;;  %v1990_v61 = vadd.f32 %v4738_v25, %v1989_v8  ;;  %vm1991_vm1 = vweird.f32 %v6871_v60 }
 0x2b5   : > { %v2569_v62 = vsub.f32 0.0, %v2505_v38  ;;  %4745 = vpow2.f32 %v2439_v1  ;;  %vm1993_vm2 = vmor %vm1991_vm1, %vm1992_vm0  ;;  %v1998_v13 = vor.u32 1.1754944e-38, %v1997_v55  ;;  %v6947_v59 = vadd.f32 1.0, %v1518_v40 }
 0x2b6   : > { %v2506_v56 = vsub.f32 1.0, %v2474_v46  ;;  %v2091_v39 = vadd.f32 -1.4531521, %v2059_v33  ;;  %v1994_v43 = vsel %vm1993_vm2, %v4738_v25, %v1990_v61  ;;  %vm1996_vm3 = vcmp.eq.f32.partialorder %v1995_v19, 8.507059e+37  ;;  %v7790_v25 = vld [vmem:[#allocation15_spill] sm:$0xff] }
 0x2b7   : > { %v2601_v26 = vsel %vm2537_vm12, %v2569_v62, %v2505_v38  ;;  %v6951_v3 = vsel %vm1996_vm3, %v1998_v13, %v1994_v43  ;;  %v6953_v58 = vmul.f32 1.442695, %v2380_v30  ;;  %v2010_v32 = vand.u32 2147483647, %v6935_v53  ;;  %v7795_v38 = vld [vmem:[#allocation19_spill] sm:$0xff] }
 0x2b8   : > { %v2570_v60 = vsub.f32 0.0, %v2506_v56  ;;  %v2123_v1 = vmul.f32 %v2091_v39, %v6941_v34  ;;  %v2060_v37 = vmul.f32 1.0614054, %v6951_v3  ;;  %v2012_v4 = vand.u32 2147483648, %v6935_v53  ;;  %v7796_v39 = vld [vmem:[#allocation21_spill] sm:$0xff] }
 0x2b9   : > { %v4744_v44 = vpop.eup %4743  ;;  %4747 = vrcp.f32 %v6947_v59  ;;  %v2687_v49 = vmul.f32 %v6343_v17, %v7790_v25  ;;  %v2689_v48 = vmul.f32 %v6632_v10, %v7791_v28  ;;  %v2688_v15 = vmul.f32 %v6438_v35, %v7792_v31  ;;  %v7798_v25 = vld [vmem:[#allocation22_spill] sm:$0xff]  ;;  %v7799_v28 = vld [vmem:[#allocation24_spill] sm:$0xff] }
 0x2ba   : > { %v2633_v47 = vadd.f32 1.0, %v2601_v26  ;;  %v2602_v52 = vsel %vm2538_vm14, %v2570_v60, %v2506_v56  ;;  %v2155_v50 = vadd.f32 1.4214138, %v2123_v1  ;;  %v2092_v16 = vadd.f32 -1.4531521, %v2060_v37  ;;  %v7797_v26 = vld [vmem:[#allocation23_spill] sm:$0xff] }
 0x2bb   : > { %v6968_v19 = vpop.eup %4745  ;;  %v2002_v51 = vmul.f32 %v4744_v44, %v6935_v53  ;;  %vm2006_vm4 = vweird.f32 %v6935_v53  ;;  %vm6972_vm5 = vcmp.eq.f32.partialorder %v2010_v32, 8.507059e+37  ;;  %v2349_v10 = vsub.f32 0.0, %v6920_v41 }
 0x2bc   : > { %v2634_v55 = vadd.f32 1.0, %v2602_v52  ;;  %v2187_v35 = vmul.f32 %v2155_v50, %v6941_v34  ;;  %v2124_v6 = vmul.f32 %v2092_v16, %v6951_v3  ;;  %v2013_v40 = vor.u32 1.1754944e-38, %v2012_v4  ;;  %v7800_v52 = vld [vmem:[#allocation25_spill] sm:$0xff]  ;;  %v7801_v16 = vld [vmem:[#allocation27_spill] sm:$0xff] }
 0x2bd   : > { %v2003_v45 = vsub.f32 1.0, %v2002_v51  ;;  %v2025_v63 = vand.u32 2147483647, %v6947_v59  ;;  %v2711_v8 = vpack.c.bf16 %v2689_v48, %v2687_v49  ;;  %v2690_v30 = vmul.f32 %v6647_v14, %v7795_v38 }
 0x2be   : > { %v2665_v46 = vmul.f32 %v2633_v47, %v6884_v23  ;;  %v2219_v33 = vadd.f32 -0.28449672, %v2187_v35  ;;  %v2156_v61 = vadd.f32 1.4214138, %v2124_v6  ;;  %vm2007_vm6 = vweird.f32 %v4744_v44 }
 0x2bf   : > { %v4748_v62 = vpop.eup %4747  ;;  %v2004_v13 = vmul.f32 %v4744_v44, %v2003_v45  ;;  %2891 = vmatmul.bf16.gmra.mxu0 %v2711_v8  ;;  %v2712_v56 = vpack.c.bf16 %v2690_v30, %v2688_v15  ;;  %v2691_v43 = vmul.f32 %v6673_v5, %v7796_v39  ;;  %v2693_v32 = vmul.f32 %v6875_v2, %v7797_v26  ;;  %vm2008_vm7 = vmor %vm2006_vm4, %vm2007_vm6 }
 0x2c0   : > { %v2666_v60 = vmul.f32 %v2634_v55, %v6895_v36  ;;  %v2251_v1 = vmul.f32 %v2219_v33, %v6941_v34  ;;  %v2188_v14 = vmul.f32 %v2156_v61, %v6951_v3  ;;  %v2017_v23 = vmul.f32 %v4748_v62, %v6947_v59 }
 0x2c1   : > { %v2005_v37 = vadd.f32 %v4744_v44, %v2004_v13  ;;  %2940 = vmatmul.bf16.gmra.mxu1 %v2712_v56  ;;  %v2713_v4 = vpack.c.bf16 %v2693_v32, %v2691_v43  ;;  %v2692_v49 = vmul.f32 %v6683_v12, %v7798_v25  ;;  %v2694_v5 = vmul.f32 %v6880_v22, %v7799_v28  ;;  %v2719_v25 = vld [vmem:[#allocation2 + $0x30] sm:$0xff] }
 0x2c2   : > { %v2283_v48 = vadd.f32 0.2548296, %v2251_v1  ;;  %v2220_v31 = vadd.f32 -0.28449672, %v2188_v14  ;;  %v2018_v2 = vsub.f32 1.0, %v2017_v23  ;;  %v2027_v36 = vand.u32 2147483648, %v6947_v59 }
 0x2c3   : > { %v2009_v15 = vsel %vm2008_vm7, %v4744_v44, %v2005_v37  ;;  %v2714_v47 = vpack.c.bf16 %v2694_v5, %v2692_v49  ;;  %v7001_v50 = vmul.f32 %v6899_v18, %v7800_v52  ;;  %v7004_v12 = vmul.f32 %v2665_v46, %v7801_v16  ;;  %v7802_v44 = vld [vmem:[#allocation26_spill] sm:$0xff]  ;;  %v7803_v18 = vld [vmem:[#allocation28_spill] sm:$0xff]  ;;  %v2921_v49 = vpop.f32.mrf.mxu1 }
 0x2c4   : > { %v2252_v22 = vmul.f32 %v2220_v31, %v6951_v3  ;;  %v2014_v51 = vsel %vm6972_vm5, %v2013_v40, %v2009_v15  ;;  %v2019_v55 = vmul.f32 %v4748_v62, %v2018_v2  ;;  %vm2022_vm8 = vweird.f32 %v4748_v62 }
 0x2c5   : > { %v2061_v53 = vmul.f32 1.0614054, %v2014_v51  ;;  %v2715_v35 = vpack.c.bf16 %v7004_v12, %v7001_v50  ;;  %v7013_v6 = vmul.f32 %v6901_v57, %v7802_v44  ;;  %v7016_v45 = vmul.f32 %v2666_v60, %v7803_v18  ;;  %v2720_v44 = vld [vmem:[#allocation2] sm:$0xff] }
 0x2c6   : > { %v2020_v8 = vadd.f32 %v4748_v62, %v2019_v55  ;;  %vm2021_vm9 = vweird.f32 %v6947_v59  ;;  %v2315_v38 = vmul.f32 %v2283_v48, %v6941_v34  ;;  %v2028_v40 = vor.u32 1.1754944e-38, %v2027_v36 }
 0x2c7   : > { %v2093_v17 = vadd.f32 -1.4531521, %v2061_v53  ;;  %vm2023_vm10 = vmor %vm2021_vm9, %vm2022_vm8  ;;  %v2716_v30 = vpack.c.bf16 %v7016_v45, %v7013_v6  ;;  %v2284_v46 = vadd.f32 0.2548296, %v2252_v22  ;;  %v2381_v33 = vmul.f32 %v2349_v10, %v6920_v41 }
 0x2c8   : > { %v2024_v61 = vsel %vm2023_vm10, %v4748_v62, %v2020_v8  ;;  %vm2026_vm11 = vcmp.eq.f32.partialorder %v2025_v63, 8.507059e+37  ;;  %4749 = vpow2.f32 %v6953_v58  ;;  %v2350_v56 = vsub.f32 0.0, %v6928_v0 }
 0x2c9   : > { %v2125_v57 = vmul.f32 %v2093_v17, %v2014_v51  ;;  %v2029_v13 = vsel %vm2026_vm11, %v2028_v40, %v2024_v61  ;;  %v2475_v34 = vmul.f32 %v6968_v19, %v2315_v38  ;;  %v2316_v43 = vmul.f32 %v2284_v46, %v6951_v3  ;;  %v2872_v19 = vpop.f32.mrf.mxu0 }
 0x2ca   : > { %v2062_v59 = vmul.f32 1.0614054, %v2029_v13  ;;  %v2443_v26 = vmul.f32 1.442695, %v2381_v33  ;;  %v2382_v1 = vmul.f32 %v2350_v56, %v6928_v0  ;;  %v2922_v28 = vadd.f32 %v2921_v49, %v2872_v19  ;;  %v2722_v49 = vld [vmem:[#allocation2 + $0x18] sm:$0xff] }
 0x2cb   : > { %v2157_v39 = vadd.f32 1.4214138, %v2125_v57  ;;  %v2507_v63 = vsub.f32 1.0, %v2475_v34  ;;  %vm2539_vm12 = vcmp.lt.f32.partialorder %v6831_v9, 0.0  ;;  %v2923_v18 = vpop.f32.mrf.mxu1  ;;  %vm2540_vm13 = vcmp.lt.f32.partialorder %v6844_v24, 0.0 }
 0x2cc   : > { %v2094_v32 = vadd.f32 -1.4531521, %v2062_v59  ;;  %4751 = vpow2.f32 %v2443_v26  ;;  %v2445_v37 = vmul.f32 1.442695, %v2382_v1  ;;  %v2961_v2 = vadd.f32 %v2922_v28, %v2719_v25  ;;  %v2721_v1 = vld [vmem:[#allocation2 + $0x58] sm:$0xff] }
 0x2cd   : > { %v2189_v60 = vmul.f32 %v2157_v39, %v2014_v51  ;;  %v2571_v5 = vsub.f32 0.0, %v2507_v63  ;;  %vm2541_vm14 = vcmp.lt.f32.partialorder %v6908_v7, 0.0  ;;  %v1421_v59 = vmul.f32 0.5, %v6889_v20 }
 0x2ce   : > { %v2126_v41 = vmul.f32 %v2094_v32, %v2029_v13  ;;  %v4750_v10 = vpop.eup %4749  ;;  %4753 = vpow2.f32 %v2445_v37  ;;  %2977 = vst [vmem:[#allocation2 + $0x30] sm:$0xff] %v2961_v2  ;;  %vm2542_vm15 = vcmp.lt.f32.partialorder %v6912_v21, 0.0 }
 0x2cf   : > { %v2221_v62 = vadd.f32 -0.28449672, %v2189_v60  ;;  %2896 = vmatmul.bf16.gmra.mxu0 %v2713_v4  ;;  %v2476_v58 = vmul.f32 %v4750_v10, %v2316_v43  ;;  %v2603_v52 = vsel %vm2539_vm12, %v2571_v5, %v2507_v63  ;;  %v7805_v43 = vld [vmem:[#allocation12_spill] sm:$0xff]  ;;  %v1420_v60 = vmul.f32 0.5, %v6834_v54  ;;  %v7806_v54 = vld [vmem:[#allocation11_spill] sm:$0xff] }
 0x2d0   : > { %v2158_v14 = vadd.f32 1.4214138, %v2126_v41  ;;  %v2635_v8 = vadd.f32 1.0, %v2603_v52  ;;  %v1140_v7 = vadd.f32 %v7805_v43, %v5346_v27  ;;  %v1187_v21 = vadd.f32 %v7806_v54, %v5349_v29  ;;  %v2733_v54 = vld [vmem:[#allocation2 + $0x78] sm:$0xff] }
 0x2d1   : > { %v2253_v23 = vmul.f32 %v2221_v62, %v2014_v51  ;;  %2945 = vmatmul.bf16.gmra.mxu1 %v2714_v47  ;;  %v2508_v31 = vsub.f32 1.0, %v2476_v58  ;;  %v2874_v53 = vpop.f32.mrf.mxu0 }
 0x2d2   : > { %v2190_v3 = vmul.f32 %v2158_v14, %v2029_v13  ;;  %v4752_v15 = vpop.eup %4751  ;;  %v2924_v17 = vadd.f32 %v2923_v18, %v2874_v53  ;;  %v2726_v18 = vld [vmem:[#allocation2 + $0x48] sm:$0xff] }
 0x2d3   : > { %v2285_v48 = vadd.f32 0.2548296, %v2253_v23  ;;  %v2572_v47 = vsub.f32 0.0, %v2508_v31  ;;  %v2926_v50 = vpop.f32.mrf.mxu1  ;;  %v7807_v23 = vld [vmem:[#allocation13_spill] sm:$0xff] }
 0x2d4   : > { %v2222_v0 = vadd.f32 -0.28449672, %v2190_v3  ;;  %v4754_v40 = vpop.eup %4753  ;;  %v2962_v61 = vadd.f32 %v2924_v17, %v2720_v44  ;;  %v1189_v6 = vadd.f32 %v7807_v23, %v5349_v29 }
 0x2d5   : > { %v2317_v36 = vmul.f32 %v2285_v48, %v2014_v51  ;;  %v1419_v51 = vmul.f32 0.5, %v6818_v11  ;;  %v2604_v9 = vsel %vm2540_vm13, %v2572_v47, %v2508_v31  ;;  %v7804_v11 = vld [vmem:[#allocation10_spill] sm:$0xff]  ;;  %v2723_v48 = vld [vmem:[#allocation2 + $0x50] sm:$0xff]  ;;  %v2725_v47 = vld [vmem:[#allocation2 + $0x8] sm:$0xff] }
 0x2d6   : > { %v2254_v4 = vmul.f32 %v2222_v0, %v2029_v13  ;;  %2978 = vst [vmem:[#allocation2] sm:$0xff] %v2962_v61  ;;  %v1138_v24 = vadd.f32 %v7804_v11, %v5346_v27  ;;  %v1422_v27 = vmul.f32 0.5, %v6892_v42 }
 0x2d7   : > { %v2477_v16 = vmul.f32 %v4752_v15, %v2317_v36  ;;  %v2667_v56 = vmul.f32 %v2635_v8, %v1419_v51  ;;  %v2724_v36 = vld [vmem:[#allocation2 + $0x68] sm:$0xff]  ;;  %v2727_v51 = vld [vmem:[#allocation2 + $0x40] sm:$0xff] }
 0x2d8   : > { %v2286_v22 = vadd.f32 0.2548296, %v2254_v4 }
 0x2d9   : > { %v2509_v55 = vsub.f32 1.0, %v2477_v16  ;;  %v2877_v20 = vpop.f32.mrf.mxu0 }
 0x2da   : > { %v2318_v38 = vmul.f32 %v2286_v22, %v2029_v13  ;;  %v2636_v13 = vadd.f32 1.0, %v2604_v9  ;;  %v2927_v10 = vadd.f32 %v2926_v50, %v2877_v20  ;;  %v2731_v50 = vld [vmem:[#allocation2 + $0x60] sm:$0xff] }
 0x2db   : > { %v2573_v46 = vsub.f32 0.0, %v2509_v55  ;;  %v2928_v3 = vpop.f32.mrf.mxu1 }
 0x2dc   : > { %v2478_v33 = vmul.f32 %v4754_v40, %v2318_v38  ;;  %v2668_v63 = vmul.f32 %v2636_v13, %v1420_v60  ;;  %v2963_v14 = vadd.f32 %v2927_v10, %v2721_v1  ;;  %v2729_v13 = vld [vmem:[#allocation2 + $0x10] sm:$0xff] }
 0x2dd   : > { %v2605_v57 = vsel %vm2541_vm14, %v2573_v46, %v2509_v55 }
 0x2de   : > { %v2637_v34 = vadd.f32 1.0, %v2605_v57  ;;  %v2510_v39 = vsub.f32 1.0, %v2478_v33  ;;  %2979 = vst [vmem:[#allocation2 + $0x58] sm:$0xff] %v2963_v14  ;;  %v2728_v57 = vld [vmem:[#allocation2 + $0x20] sm:$0xff] }
 0x2df   : > { %2901 = vmatmul.bf16.gmra.mxu0 %v2715_v35  ;;  %v2699_v35 = vmul.f32 %v2667_v56, %v1138_v24 }
 0x2e0   : > { %v2669_v26 = vmul.f32 %v2637_v34, %v1421_v59  ;;  %v2574_v32 = vsub.f32 0.0, %v2510_v39 }
 0x2e1   : > { %2950 = vmatmul.bf16.gmra.mxu1 %v2716_v30  ;;  %v2700_v30 = vmul.f32 %v2668_v63, %v1187_v21  ;;  %v2879_v25 = vpop.f32.mrf.mxu0  ;;  %v2732_v63 = vld [vmem:[#allocation2 + $0x70] sm:$0xff] }
 0x2e2   : > { %v2606_v12 = vsel %vm2542_vm15, %v2574_v32, %v2510_v39  ;;  %v2701_v41 = vmul.f32 %v2669_v26, %v1140_v7  ;;  %v2929_v28 = vadd.f32 %v2928_v3, %v2879_v25  ;;  %v2730_v26 = vld [vmem:[#allocation2 + $0x38] sm:$0xff] }
 0x2e3   : > { %v2638_v62 = vadd.f32 1.0, %v2606_v12 }
 0x2e4   : > { %v2717_v58 = vpack.c.bf16 %v2701_v41, %v2699_v35  ;;  %v2964_v5 = vadd.f32 %v2929_v28, %v2722_v49 }
 0x2e5   : > { %v2670_v45 = vmul.f32 %v2638_v62, %v1422_v27 }
 0x2e6   : > { %2980 = vst [vmem:[#allocation2 + $0x18] sm:$0xff] %v2964_v5 }
 0x2e7   : > { %v2702_v37 = vmul.f32 %v2670_v45, %v1189_v6  ;;  %v2931_v31 = vpop.f32.mrf.mxu1 }
 0x2e9   : > { %v2718_v19 = vpack.c.bf16 %v2702_v37, %v2700_v30  ;;  %v2882_v42 = vpop.f32.mrf.mxu0  ;;  %v2734_v30 = vld [vmem:[#allocation2 + $0x28] sm:$0xff] }
 0x2ea   : > { %v2932_v0 = vadd.f32 %v2931_v31, %v2882_v42 }
 0x2ec   : > { %v2965_v2 = vadd.f32 %v2932_v0, %v2723_v48 }
 0x2ee   : > { %2981 = vst [vmem:[#allocation2 + $0x50] sm:$0xff] %v2965_v2 }
 0x2ef   : > { %2906 = vmatmul.bf16.gmra.mxu0 %v2717_v58  ;;  %v2933_v15 = vpop.f32.mrf.mxu1 }
 0x2f1   : > { %2955 = vmatmul.bf16.gmra.mxu1 %v2718_v19  ;;  %v2884_v29 = vpop.f32.mrf.mxu0 }
 0x2f2   : > { %v2934_v4 = vadd.f32 %v2933_v15, %v2884_v29 }
 0x2f4   : > { %v2966_v52 = vadd.f32 %v2934_v4, %v2724_v36 }
 0x2f6   : > { %2982 = vst [vmem:[#allocation2 + $0x68] sm:$0xff] %v2966_v52 }
 0x320   : > { %v2887_v16 = vpop.f32.mrf.mxu0 }
 0x324   : > { %v2936_v22 = vpop.f32.mrf.mxu1 }
 0x325   : > { %v2937_v55 = vadd.f32 %v2936_v22, %v2887_v16 }
 0x327   : > { %v2967_v53 = vadd.f32 %v2937_v55, %v2725_v47 }
 0x328   : > { %v2889_v44 = vpop.f32.mrf.mxu0 }
 0x329   : > { %2983 = vst [vmem:[#allocation2 + $0x8] sm:$0xff] %v2967_v53 }
 0x32c   : > { %v2938_v8 = vpop.f32.mrf.mxu1 }
 0x32d   : > { %v2939_v38 = vadd.f32 %v2938_v8, %v2889_v44 }
 0x32f   : > { %v2968_v17 = vadd.f32 %v2939_v38, %v2726_v18 }
 0x331   : > { %2984 = vst [vmem:[#allocation2 + $0x48] sm:$0xff] %v2968_v17 }
 0x33c   : > { %v2892_v40 = vpop.f32.mrf.mxu0 }
 0x33e   : > { %v2941_v46 = vpop.f32.mrf.mxu1 }
 0x33f   : > { %v2942_v9 = vadd.f32 %v2941_v46, %v2892_v40 }
 0x341   : > { %v2969_v33 = vadd.f32 %v2942_v9, %v2727_v51 }
 0x343   : > { %2985 = vst [vmem:[#allocation2 + $0x40] sm:$0xff] %v2969_v33 }
 0x344   : > { %v2894_v61 = vpop.f32.mrf.mxu0 }
 0x346   : > { %v2943_v56 = vpop.f32.mrf.mxu1 }
 0x347   : > { %v2944_v59 = vadd.f32 %v2943_v56, %v2894_v61 }
 0x349   : > { %v2970_v34 = vadd.f32 %v2944_v59, %v2728_v57 }
 0x34b   : > { %2986 = vst [vmem:[#allocation2 + $0x20] sm:$0xff] %v2970_v34 }
 0x34c   : > { %v2897_v39 = vpop.f32.mrf.mxu0 }
 0x34e   : > { %v2946_v11 = vpop.f32.mrf.mxu1 }
 0x34f   : > { %v2947_v24 = vadd.f32 %v2946_v11, %v2897_v39 }
 0x351   : > { %v2971_v43 = vadd.f32 %v2947_v24, %v2729_v13 }
 0x353   : > { %2987 = vst [vmem:[#allocation2 + $0x10] sm:$0xff] %v2971_v43 }
 0x354   : > { %v2899_v7 = vpop.f32.mrf.mxu0 }
 0x356   : > { %v2948_v32 = vpop.f32.mrf.mxu1 }
 0x357   : > { %v2949_v60 = vadd.f32 %v2948_v32, %v2899_v7 }
 0x359   : > { %v2972_v20 = vadd.f32 %v2949_v60, %v2730_v26 }
 0x35b   : > { %2988 = vst [vmem:[#allocation2 + $0x38] sm:$0xff] %v2972_v20 }
 0x35c   : > { %v2902_v1 = vpop.f32.mrf.mxu0 }
 0x35e   : > { %v2951_v12 = vpop.f32.mrf.mxu1 }
 0x35f   : > { %v2952_v35 = vadd.f32 %v2951_v12, %v2902_v1 }
 0x361   : > { %v2973_v41 = vadd.f32 %v2952_v35, %v2731_v50 }
 0x363   : > { %2989 = vst [vmem:[#allocation2 + $0x60] sm:$0xff] %v2973_v41 }
 0x364   : > { %v2904_v10 = vpop.f32.mrf.mxu0 }
 0x366   : > { %v2953_v27 = vpop.f32.mrf.mxu1 }
 0x367   : > { %v2954_v62 = vadd.f32 %v2953_v27, %v2904_v10 }
 0x369   : > { %v2974_v58 = vadd.f32 %v2954_v62, %v2732_v63 }
 0x36b   : > { %2990 = vst [vmem:[#allocation2 + $0x70] sm:$0xff] %v2974_v58 }
 0x36c   : > { %v2907_v14 = vpop.f32.mrf.mxu0 }
 0x36e   : > { %v2956_v21 = vpop.f32.mrf.mxu1 }
 0x36f   : > { %v2957_v23 = vadd.f32 %v2956_v21, %v2907_v14 }
 0x371   : > { %v2975_v6 = vadd.f32 %v2957_v23, %v2733_v54 }
 0x373   : > { %2991 = vst [vmem:[#allocation2 + $0x78] sm:$0xff] %v2975_v6 }
 0x374   : > { %v2909_v45 = vpop.f32.mrf.mxu0 }
 0x376   : > { %v2958_v37 = vpop.f32.mrf.mxu1 }
 0x377   : > { %v2959_v19 = vadd.f32 %v2958_v37, %v2909_v45  ;;  %2996 = sbr.rel (%p4260_p5) target bundleno = 1390 (0x56e), region = 193 }
 0x379   : > { %v2976_v25 = vadd.f32 %v2959_v19, %v2734_v30 }
 0x37b   : > { %2992 = vst [vmem:[#allocation2 + $0x28] sm:$0xff] %v2976_v25 }
 0x37c   : > { %v4504_v49 = vld [vmem:[%s7808_s20 + $0x78] sm:$0xff]  ;;  %v4503_v28 = vld [vmem:[%s7808_s20 + $0x70] sm:$0xff]  ;;  %v4502_v42 = vld [vmem:[%s7808_s20 + $0x68] sm:$0xff] }
 0x37d   : > { %v4488_v3 = vld [vmem:[%s7808_s20 + $0x38] sm:$0xff]  ;;  %3159 = vmatpush.bf16.msra.mxu0 %v4504_v49  ;;  %4521 = vmatpush.bf16.msra.mxu2 %v4504_v49  ;;  %v4487_v5 = vld [vmem:[%s7808_s20 + $0x30] sm:$0xff]  ;;  %v4486_v48 = vld [vmem:[%s7808_s20 + $0x28] sm:$0xff] }
 0x37e   : > { %3304 = vmatpush.bf16.msra.mxu1 %v4488_v3  ;;  %4529 = vmatpush.bf16.msra.mxu3 %v4488_v3  ;;  %v4501_v31 = vld [vmem:[%s7808_s20 + $0x60] sm:$0xff]  ;;  %v4500_v2 = vld [vmem:[%s7808_s20 + $0x58] sm:$0xff]  ;;  %v4499_v36 = vld [vmem:[%s7808_s20 + $0x50] sm:$0xff] }
 0x37f   : > { %v4485_v0 = vld [vmem:[%s7808_s20 + $0x20] sm:$0xff]  ;;  %v4484_v29 = vld [vmem:[%s7808_s20 + $0x18] sm:$0xff]  ;;  %v4483_v15 = vld [vmem:[%s7808_s20 + $0x10] sm:$0xff] }
 0x380   : > { %v4498_v4 = vld [vmem:[%s7808_s20 + $0x48] sm:$0xff]  ;;  %v4497_v16 = vld [vmem:[%s7808_s20 + $0x40] sm:$0xff]  ;;  %v4491_v40 = vld [vmem:[%s5156_s8 + $0x50] sm:$0xff] }
 0x381   : > { %3160 = vmatpush.bf16.msra.mxu0 %v4503_v28  ;;  %4522 = vmatpush.bf16.msra.mxu2 %v4503_v28  ;;  %v4482_v52 = vld [vmem:[%s7808_s20 + $0x8] sm:$0xff]  ;;  %v4481_v47 = vld [vmem:[%s7808_s20] sm:$0xff]  ;;  %v4495_v51 = vld [vmem:[%s5156_s8 + $0x70] sm:$0xff] }
 0x382   : > { %3305 = vmatpush.bf16.msra.mxu1 %v4487_v5  ;;  %4530 = vmatpush.bf16.msra.mxu3 %v4487_v5  ;;  %v4489_v22 = vld [vmem:[%s5156_s8 + $0x40] sm:$0xff]  ;;  %v4490_v18 = vld [vmem:[%s5156_s8 + $0x48] sm:$0xff]  ;;  %v4475_v46 = vld [vmem:[%s5156_s8 + $0x10] sm:$0xff] }
 0x383   : > { %v4493_v55 = vld [vmem:[%s5156_s8 + $0x60] sm:$0xff]  ;;  %v4494_v8 = vld [vmem:[%s5156_s8 + $0x68] sm:$0xff]  ;;  %v4479_v9 = vld [vmem:[%s5156_s8 + $0x30] sm:$0xff] }
 0x384   : > { %v4473_v53 = vld [vmem:[%s5156_s8] sm:$0xff]  ;;  %v4474_v38 = vld [vmem:[%s5156_s8 + $0x8] sm:$0xff]  ;;  %v4492_v33 = vld [vmem:[%s5156_s8 + $0x58] sm:$0xff] }
 0x385   : > { %3161 = vmatpush.bf16.msra.mxu0 %v4502_v42  ;;  %4523 = vmatpush.bf16.msra.mxu2 %v4502_v42  ;;  %v4477_v44 = vld [vmem:[%s5156_s8 + $0x20] sm:$0xff]  ;;  %v4478_v17 = vld [vmem:[%s5156_s8 + $0x28] sm:$0xff]  ;;  %v4496_v61 = vld [vmem:[%s5156_s8 + $0x78] sm:$0xff] }
 0x386   : > { %3306 = vmatpush.bf16.msra.mxu1 %v4486_v48  ;;  %4531 = vmatpush.bf16.msra.mxu3 %v4486_v48  ;;  %v4476_v57 = vld [vmem:[%s5156_s8 + $0x18] sm:$0xff]  ;;  %v7118_v59 = vld [vmem:[%s7809_s18] ss:$0 sm:$0xff]  ;;  %v3389_v34 = vld [vmem:[#allocation2 + $0x30] sm:$0xff] }
 0x387   : > { %v4480_v56 = vld [vmem:[%s5156_s8 + $0x38] sm:$0xff]  ;;  %v7123_v13 = vld [vmem:[%s7810_s11] ss:$0 sm:$0xff]  ;;  %v3409_v7 = vadd.f32 %v7118_v59, %v3389_v34  ;;  %v3374_v58 = vld [vmem:[%s5134_s1 + $0x8] sm:$0xff] }
 0x388   : > { %v3373_v24 = vld [vmem:[%s5134_s1] sm:$0xff]  ;;  %v3442_v30 = vmul.f32 1.5650846, %v3374_v58  ;;  %v3391_v28 = vld [vmem:[#allocation2 + $0x58] sm:$0xff] }
 0x389   : > { %3162 = vmatpush.bf16.msra.mxu0 %v4501_v31  ;;  %4524 = vmatpush.bf16.msra.mxu2 %v4501_v31  ;;  %v3441_v32 = vmul.f32 1.5650846, %v3373_v24  ;;  %v3397_v60 = vld [vmem:[#allocation2 + $0x40] sm:$0xff]  ;;  %v3400_v34 = vld [vmem:[#allocation2 + $0x38] sm:$0xff] }
 0x38a   : > { %3307 = vmatpush.bf16.msra.mxu1 %v4485_v0  ;;  %4532 = vmatpush.bf16.msra.mxu3 %v4485_v0  ;;  %v3381_v12 = vld [vmem:[%s5134_s1 + $0x40] sm:$0xff]  ;;  %v3417_v27 = vadd.f32 %v7118_v59, %v3397_v60 }
 0x38b   : > { %v3390_v35 = vld [vmem:[#allocation2] sm:$0xff]  ;;  %v3449_v21 = vmul.f32 1.5650846, %v3381_v12  ;;  %v3376_v12 = vld [vmem:[%s5134_s1 + $0x18] sm:$0xff] }
 0x38c   : > { %v3410_v23 = vadd.f32 %v7118_v59, %v3390_v35  ;;  %v3398_v37 = vld [vmem:[#allocation2 + $0x20] sm:$0xff] }
 0x38d   : > { %3163 = vmatpush.bf16.msra.mxu0 %v4500_v2  ;;  %4525 = vmatpush.bf16.msra.mxu2 %v4500_v2  ;;  %v3418_v31 = vadd.f32 %v7118_v59, %v3398_v37  ;;  %v3375_v2 = vld [vmem:[%s5134_s1 + $0x10] sm:$0xff] }
 0x38e   : > { %3308 = vmatpush.bf16.msra.mxu1 %v4484_v29  ;;  %4533 = vmatpush.bf16.msra.mxu3 %v4484_v29  ;;  %v3382_v29 = vld [vmem:[%s5134_s1 + $0x48] sm:$0xff] }
 0x391   : > { %3164 = vmatpush.bf16.msra.mxu0 %v4499_v36  ;;  %4526 = vmatpush.bf16.msra.mxu2 %v4499_v36 }
 0x392   : > { %3309 = vmatpush.bf16.msra.mxu1 %v4483_v15  ;;  %4534 = vmatpush.bf16.msra.mxu3 %v4483_v15 }
 0x395   : > { %3165 = vmatpush.bf16.msra.mxu0 %v4498_v4  ;;  %4527 = vmatpush.bf16.msra.mxu2 %v4498_v4  ;;  %v3411_v4 = vadd.f32 %v7118_v59, %v3391_v28 }
 0x396   : > { %3310 = vmatpush.bf16.msra.mxu1 %v4482_v52  ;;  %4535 = vmatpush.bf16.msra.mxu3 %v4482_v52 }
 0x399   : > { %3166 = vmatpush.bf16.msra.mxu0 %v4497_v16  ;;  %4528 = vmatpush.bf16.msra.mxu2 %v4497_v16  ;;  %v3443_v16 = vmul.f32 1.5650846, %v3375_v2 }
 0x39a   : > { %3311 = vmatpush.bf16.msra.mxu1 %v4481_v47  ;;  %4536 = vmatpush.bf16.msra.mxu3 %v4481_v47 }
 0x39c   : > { %3167 = vmatmul.bf16.vlgmr.msra.gmra.mxu0 %v4489_v22  ;;  %3187 = vmatmul.bf16.vlgmr.msra.gmra.mxu2 %v4493_v55  ;;  %v3450_v22 = vmul.f32 1.5650846, %v3382_v29  ;;  %v3399_v55 = vld [vmem:[#allocation2 + $0x10] sm:$0xff] }
 0x39d   : > { %3312 = vmatmul.bf16.vlgmr.msra.gmra.mxu1 %v4473_v53  ;;  %3332 = vmatmul.bf16.vlgmr.msra.gmra.mxu3 %v4477_v44 }
 0x3ac   : > { %3172 = vmatmul.bf16.gmra.mxu0 %v4490_v18  ;;  %3192 = vmatmul.bf16.gmra.mxu2 %v4494_v8  ;;  %v3383_v8 = vld [vmem:[%s5134_s1 + $0x50] sm:$0xff] }
 0x3ad   : > { %3317 = vmatmul.bf16.gmra.mxu1 %v4474_v38  ;;  %3337 = vmatmul.bf16.gmra.mxu3 %v4478_v17 }
 0x3bc   : > { %3177 = vmatmul.bf16.gmra.mxu0 %v4491_v40  ;;  %3197 = vmatmul.bf16.gmra.mxu2 %v4495_v51 }
 0x3bd   : > { %3322 = vmatmul.bf16.gmra.mxu1 %v4475_v46  ;;  %3342 = vmatmul.bf16.gmra.mxu3 %v4479_v9  ;;  %v3419_v46 = vadd.f32 %v7118_v59, %v3399_v55 }
 0x3cc   : > { %3182 = vmatmul.bf16.gmra.mxu0 %v4492_v33  ;;  %3202 = vmatmul.bf16.gmra.mxu2 %v4496_v61  ;;  %v3451_v61 = vmul.f32 1.5650846, %v3383_v8 }
 0x3cd   : > { %3327 = vmatmul.bf16.gmra.mxu1 %v4476_v57  ;;  %3347 = vmatmul.bf16.gmra.mxu3 %v4480_v56 }
 0x419   : > { %v3168_v39 = vpop.f32.mrf.mxu0 }
 0x41a   : > { %v3313_v11 = vpop.f32.mrf.mxu1 }
 0x41b   : > { %v3314_v43 = vadd.f32 %v3313_v11, %v3168_v39  ;;  %v3392_v39 = vld [vmem:[#allocation2 + $0x18] sm:$0xff] }
 0x41d   : > { %v3357_v26 = vadd.f32 %v7123_v13, %v3314_v43 }
 0x41f   : > { %v3188_v20 = vpop.f32.mrf.mxu2  ;;  %v3425_v1 = vadd.f32 %v3409_v7, %v3357_v26  ;;  %v3384_v7 = vld [vmem:[%s5134_s1 + $0x58] sm:$0xff] }
 0x420   : > { %v3333_v50 = vpop.f32.mrf.mxu3 }
 0x421   : > { %v3334_v41 = vadd.f32 %v3333_v50, %v3188_v20  ;;  %v3170_v10 = vpop.f32.mrf.mxu0  ;;  %v7129_v63 = vadd.f32 %v3441_v32, %v3425_v1  ;;  %v3420_v20 = vadd.f32 %v7118_v59, %v3400_v34  ;;  %v3412_v1 = vadd.f32 %v7118_v59, %v3392_v39 }
 0x422   : > { %v3315_v62 = vpop.f32.mrf.mxu1 }
 0x423   : > { %v3365_v14 = vadd.f32 %v7123_v13, %v3334_v41  ;;  %v3316_v54 = vadd.f32 %v3315_v62, %v3170_v10  ;;  %3473 = vadd.xlane.f32.xlu0 %v7129_v63  ;;  %v3452_v10 = vmul.f32 1.5650846, %v3384_v7 }
 0x425   : > { %v3358_v6 = vadd.f32 %v7123_v13, %v3316_v54  ;;  %v3433_v45 = vadd.f32 %v3417_v27, %v3365_v14  ;;  %v3393_v27 = vld [vmem:[#allocation2 + $0x50] sm:$0xff]  ;;  %v3444_v14 = vmul.f32 1.5650846, %v3376_v12  ;;  %v3401_v54 = vld [vmem:[#allocation2 + $0x60] sm:$0xff] }
 0x427   : > { %v3190_v19 = vpop.f32.mrf.mxu2  ;;  %v7137_v25 = vadd.f32 %v3449_v21, %v3433_v45  ;;  %v3426_v49 = vadd.f32 %v3410_v23, %v3358_v6  ;;  %v3377_v45 = vld [vmem:[%s5134_s1 + $0x20] sm:$0xff] }
 0x428   : > { %v3335_v3 = vpop.f32.mrf.mxu3 }
 0x429   : > { %v3336_v5 = vadd.f32 %v3335_v3, %v3190_v19  ;;  %3489 = vadd.xlane.f32.xlu2 %v7137_v25  ;;  %v3173_v42 = vpop.f32.mrf.mxu0  ;;  %v7140_v48 = vadd.f32 %v3442_v30, %v3426_v49  ;;  %v3413_v30 = vadd.f32 %v7118_v59, %v3393_v27  ;;  %v3385_v19 = vld [vmem:[%s5134_s1 + $0x60] sm:$0xff] }
 0x42a   : > { %v3318_v0 = vpop.f32.mrf.mxu1 }
 0x42b   : > { %v3366_v36 = vadd.f32 %v7123_v13, %v3336_v5  ;;  %v3319_v15 = vadd.f32 %v3318_v0, %v3173_v42  ;;  %3475 = vadd.xlane.f32.xlu0 %v7140_v48  ;;  %v3421_v5 = vadd.f32 %v7118_v59, %v3401_v54 }
 0x42d   : > { %v3359_v52 = vadd.f32 %v7123_v13, %v3319_v15  ;;  %v3434_v47 = vadd.f32 %v3418_v31, %v3366_v36  ;;  %v3445_v31 = vmul.f32 1.5650846, %v3377_v45  ;;  %v3453_v36 = vmul.f32 1.5650846, %v3385_v19  ;;  %v3394_v15 = vld [vmem:[#allocation2 + $0x68] sm:$0xff] }
 0x42f   : > { %v3193_v53 = vpop.f32.mrf.mxu2  ;;  %v3427_v44 = vadd.f32 %v3411_v4, %v3359_v52  ;;  %v7152_v51 = vadd.f32 %v3450_v22, %v3434_v47  ;;  %v3402_v52 = vld [vmem:[#allocation2 + $0x70] sm:$0xff] }
 0x430   : > { %v3338_v18 = vpop.f32.mrf.mxu3 }
 0x431   : > { %v3339_v38 = vadd.f32 %v3338_v18, %v3193_v53  ;;  %v3175_v17 = vpop.f32.mrf.mxu0  ;;  %v7150_v40 = vadd.f32 %v3443_v16, %v3427_v44  ;;  %v3378_v53 = vld [vmem:[%s5134_s1 + $0x28] sm:$0xff]  ;;  %v3414_v44 = vadd.f32 %v7118_v59, %v3394_v15 }
 0x432   : > { %v3320_v9 = vpop.f32.mrf.mxu1  ;;  %v3386_v18 = vld [vmem:[%s5134_s1 + $0x68] sm:$0xff] }
 0x433   : > { %v3367_v33 = vadd.f32 %v7123_v13, %v3339_v38  ;;  %3477 = vadd.xlane.f32.xlu1 %v7150_v40  ;;  %3491 = vadd.xlane.f32.xlu0 %v7152_v51  ;;  %v3321_v57 = vadd.f32 %v3320_v9, %v3175_v17  ;;  %v3395_v38 = vld [vmem:[#allocation2 + $0x8] sm:$0xff]  ;;  %v3422_v9 = vadd.f32 %v7118_v59, %v3402_v52 }
 0x435   : > { %v3435_v56 = vadd.f32 %v3419_v46, %v3367_v33  ;;  %v3360_v26 = vadd.f32 %v7123_v13, %v3321_v57  ;;  %v3454_v57 = vmul.f32 1.5650846, %v3386_v18 }
 0x437   : > { %v3195_v11 = vpop.f32.mrf.mxu2  ;;  %v7158_v24 = vadd.f32 %v3451_v61, %v3435_v56  ;;  %v3428_v58 = vadd.f32 %v3412_v1, %v3360_v26  ;;  %v3446_v61 = vmul.f32 1.5650846, %v3378_v53  ;;  %v3379_v56 = vld [vmem:[%s5134_s1 + $0x30] sm:$0xff] }
 0x438   : > { %v3340_v43 = vpop.f32.mrf.mxu3 }
 0x439   : > { %v3341_v32 = vadd.f32 %v3340_v43, %v3195_v11  ;;  %v3178_v60 = vpop.f32.mrf.mxu0  ;;  %v7174_v28 = vadd.f32 %v3444_v14, %v3428_v58  ;;  %v3415_v43 = vadd.f32 %v7118_v59, %v3395_v38 }
 0x43a   : > { %v3323_v50 = vpop.f32.mrf.mxu1 }
 0x43b   : > { %v3368_v35 = vadd.f32 %v7123_v13, %v3341_v32  ;;  %v3324_v41 = vadd.f32 %v3323_v50, %v3178_v60  ;;  %3493 = vadd.xlane.f32.xlu1 %v7158_v24  ;;  %v3447_v32 = vmul.f32 1.5650846, %v3379_v56  ;;  %v3403_v60 = vld [vmem:[#allocation2 + $0x78] sm:$0xff] }
 0x43c   : > { %v3423_v14 = vadd.f32 %v7118_v59, %v3403_v60 }
 0x43d   : > { %v3436_v62 = vadd.f32 %v3420_v20, %v3368_v35  ;;  %v3361_v21 = vadd.f32 %v7123_v13, %v3324_v41  ;;  %v3387_v41 = vld [vmem:[%s5134_s1 + $0x70] sm:$0xff] }
 0x43f   : > { %v3198_v23 = vpop.f32.mrf.mxu2  ;;  %v7168_v6 = vadd.f32 %v3452_v10, %v3436_v62  ;;  %v3429_v29 = vadd.f32 %v3413_v30, %v3361_v21  ;;  %v3396_v10 = vld [vmem:[#allocation2 + $0x48] sm:$0xff]  ;;  %v3380_v21 = vld [vmem:[%s5134_s1 + $0x38] sm:$0xff]  ;;  %v3455_v30 = vmul.f32 1.5650846, %v3387_v41 }
 0x440   : > { %v3343_v37 = vpop.f32.mrf.mxu3 }
 0x441   : > { %v3344_v49 = vadd.f32 %v3343_v37, %v3198_v23  ;;  %3495 = vadd.xlane.f32.xlu2 %v7168_v6  ;;  %v3180_v3 = vpop.f32.mrf.mxu0  ;;  %v7180_v22 = vadd.f32 %v3445_v31, %v3429_v29  ;;  %v3416_v37 = vadd.f32 %v7118_v59, %v3396_v10  ;;  %v3388_v29 = vld [vmem:[%s5134_s1 + $0x78] sm:$0xff] }
 0x442   : > { %v3325_v42 = vpop.f32.mrf.mxu1 }
 0x443   : > { %v3369_v0 = vadd.f32 %v7123_v13, %v3344_v49  ;;  %v3326_v2 = vadd.f32 %v3325_v42, %v3180_v3  ;;  %3479 = vadd.xlane.f32.xlu1 %v7174_v28  ;;  %v3448_v3 = vmul.f32 1.5650846, %v3380_v21 }
 0x445   : > { %v3437_v4 = vadd.f32 %v3421_v5, %v3369_v0  ;;  %v3362_v16 = vadd.f32 %v7123_v13, %v3326_v2  ;;  %v3404_v5 = vld [vmem:[#allocation2 + $0x28] sm:$0xff] }
 0x447   : > { %v3200_v47 = vpop.f32.mrf.mxu2  ;;  %v7182_v55 = vadd.f32 %v3453_v36, %v3437_v4  ;;  %v3430_v11 = vadd.f32 %v3414_v44, %v3362_v16  ;;  %v3424_v4 = vadd.f32 %v7118_v59, %v3404_v5  ;;  %v3456_v16 = vmul.f32 1.5650846, %v3388_v29 }
 0x448   : > { %v3345_v8 = vpop.f32.mrf.mxu3  ;;  %v4882_v44 = vmov 128.0  }
 0x449   : > { %v3346_v17 = vadd.f32 %v3345_v8, %v3200_v47  ;;  %3481 = vadd.xlane.f32.xlu2 %v7180_v22  ;;  %3497 = vadd.xlane.f32.xlu0 %v7182_v55  ;;  %v3183_v46 = vpop.f32.mrf.mxu0  ;;  %v7194_v1 = vadd.f32 %v3446_v61, %v3430_v11  ;;  %4759 = vrcp.f32 %v4882_v44 }
 0x44a   : > { %v3328_v33 = vpop.f32.mrf.mxu1 }
 0x44b   : > { %v3370_v34 = vadd.f32 %v7123_v13, %v3346_v17  ;;  %v3329_v39 = vadd.f32 %v3328_v33, %v3183_v46 }
 0x44d   : > { %v3363_v7 = vadd.f32 %v7123_v13, %v3329_v39  ;;  %v3438_v26 = vadd.f32 %v3422_v9, %v3370_v34 }
 0x44f   : > { %v3203_v20 = vpop.f32.mrf.mxu2  ;;  %v7196_v50 = vadd.f32 %v3454_v57, %v3438_v26  ;;  %v3431_v12 = vadd.f32 %v3415_v43, %v3363_v7  ;;  %v4760_v18 = vpop.eup %4759 }
 0x450   : > { %v3348_v35 = vpop.f32.mrf.mxu3  ;;  %v3506_v8 = vmul.f32 128.0, %v4760_v18  ;;  %vm3510_vm0 = vweird.f32 %v4760_v18 }
 0x451   : > { %v3349_v27 = vadd.f32 %v3348_v35, %v3203_v20  ;;  %3483 = vadd.xlane.f32.xlu2 %v7194_v1  ;;  %3499 = vadd.xlane.f32.xlu1 %v7196_v50  ;;  %v3185_v62 = vpop.f32.mrf.mxu0  ;;  %v7201_v58 = vadd.f32 %v3447_v32, %v3431_v12 }
 0x452   : > { %v3330_v54 = vpop.f32.mrf.mxu1  ;;  %v3507_v38 = vsub.f32 1.0, %v3506_v8 }
 0x453   : > { %v3371_v23 = vadd.f32 %v7123_v13, %v3349_v27  ;;  %v3331_v45 = vadd.f32 %v3330_v54, %v3185_v62  ;;  %3485 = vadd.xlane.f32.xlu0 %v7201_v58 }
 0x454   : > { %v3508_v17 = vmul.f32 %v4760_v18, %v3507_v38 }
 0x455   : > { %v3364_v19 = vadd.f32 %v7123_v13, %v3331_v45  ;;  %v3439_v49 = vadd.f32 %v3423_v14, %v3371_v23 }
 0x456   : > { %v3509_v46 = vadd.f32 %v4760_v18, %v3508_v17 }
 0x457   : > { %v3205_v42 = vpop.f32.mrf.mxu2  ;;  %v7209_v31 = vadd.f32 %v3455_v30, %v3439_v49  ;;  %v3432_v0 = vadd.f32 %v3416_v37, %v3364_v19 }
 0x458   : > { %v3350_v2 = vpop.f32.mrf.mxu3  ;;  %v7221_v9 = vsel %vm3510_vm0, %v4760_v18, %v3509_v46 }
 0x459   : > { %v3351_v36 = vadd.f32 %v3350_v2, %v3205_v42  ;;  %3501 = vadd.xlane.f32.xlu2 %v7209_v31  ;;  %v7213_v15 = vadd.f32 %v3448_v3, %v3432_v0 }
 0x45b   : > { %v3372_v52 = vadd.f32 %v7123_v13, %v3351_v36  ;;  %3487 = vadd.xlane.f32.xlu1 %v7213_v15 }
 0x45d   : > { %v3440_v47 = vadd.f32 %v3424_v4, %v3372_v52 }
 0x45f   : > { %v7218_v53 = vadd.f32 %v3456_v16, %v3440_v47 }
 0x461   : > { %3503 = vadd.xlane.f32.xlu0 %v7218_v53 }
 0x496   : > { %v3474_v59 = vpop.xlane.xlu0 %3473 }
 0x497   : > { %v3512_v13 = vmul.f32 %v7221_v9, %v3474_v59 }
 0x499   : > { %v7225_v33 = vsub.f32 %v7129_v63, %v3512_v13 }
 0x49b   : > { %v3544_v61 = vmul.f32 %v7225_v33, %v7225_v33 }
 0x49c   : > { %v3490_v57 = vpop.xlane.xlu2 %3489 }
 0x49d   : > { %v3520_v56 = vmul.f32 %v7221_v9, %v3490_v57  ;;  %3560 = vadd.xlane.f32.xlu1 %v3544_v61 }
 0x49e   : > { %v3476_v34 = vpop.xlane.xlu0 %3475 }
 0x49f   : > { %v7231_v39 = vsub.f32 %v7137_v25, %v3520_v56  ;;  %v3513_v11 = vmul.f32 %v7221_v9, %v3476_v34 }
 0x4a1   : > { %v7235_v43 = vsub.f32 %v7140_v48, %v3513_v11  ;;  %v3552_v63 = vmul.f32 %v7231_v39, %v7231_v39 }
 0x4a3   : > { %3576 = vadd.xlane.f32.xlu0 %v3552_v63  ;;  %v3545_v7 = vmul.f32 %v7235_v43, %v7235_v43 }
 0x4a5   : > { %3562 = vadd.xlane.f32.xlu2 %v3545_v7 }
 0x4a6   : > { %v3478_v26 = vpop.xlane.xlu1 %3477  ;;  %v3492_v32 = vpop.xlane.xlu0 %3491 }
 0x4a7   : > { %v3514_v60 = vmul.f32 %v7221_v9, %v3478_v26  ;;  %v3521_v25 = vmul.f32 %v7221_v9, %v3492_v32 }
 0x4a9   : > { %v7244_v20 = vsub.f32 %v7150_v40, %v3514_v60  ;;  %v7247_v48 = vsub.f32 %v7152_v51, %v3521_v25 }
 0x4ab   : > { %v3546_v12 = vmul.f32 %v7244_v20, %v7244_v20  ;;  %v3553_v35 = vmul.f32 %v7247_v48, %v7247_v48 }
 0x4ad   : > { %3564 = vadd.xlane.f32.xlu0 %v3546_v12  ;;  %3578 = vadd.xlane.f32.xlu1 %v3553_v35 }
 0x4ae   : > { %v3494_v41 = vpop.xlane.xlu1 %3493 }
 0x4af   : > { %v3522_v10 = vmul.f32 %v7221_v9, %v3494_v41 }
 0x4b1   : > { %v7255_v27 = vsub.f32 %v7158_v24, %v3522_v10 }
 0x4b3   : > { %v3554_v40 = vmul.f32 %v7255_v27, %v7255_v27 }
 0x4b4   : > { %v3496_v62 = vpop.xlane.xlu2 %3495 }
 0x4b5   : > { %v3523_v51 = vmul.f32 %v7221_v9, %v3496_v62  ;;  %3580 = vadd.xlane.f32.xlu2 %v3554_v40 }
 0x4b6   : > { %v3480_v14 = vpop.xlane.xlu1 %3479 }
 0x4b7   : > { %v7261_v54 = vsub.f32 %v7168_v6, %v3523_v51  ;;  %v3515_v21 = vmul.f32 %v7221_v9, %v3480_v14 }
 0x4b9   : > { %v7265_v23 = vsub.f32 %v7174_v28, %v3515_v21  ;;  %v3555_v24 = vmul.f32 %v7261_v54, %v7261_v54 }
 0x4bb   : > { %3582 = vadd.xlane.f32.xlu0 %v3555_v24  ;;  %v3547_v45 = vmul.f32 %v7265_v23, %v7265_v23 }
 0x4bc   : > { %v3482_v30 = vpop.xlane.xlu2 %3481  ;;  %v3498_v37 = vpop.xlane.xlu0 %3497 }
 0x4bd   : > { %v3516_v19 = vmul.f32 %v7221_v9, %v3482_v30  ;;  %v3524_v49 = vmul.f32 %v7221_v9, %v3498_v37  ;;  %3566 = vadd.xlane.f32.xlu1 %v3547_v45 }
 0x4bf   : > { %v7274_v6 = vsub.f32 %v7180_v22, %v3516_v19  ;;  %v7277_v28 = vsub.f32 %v7182_v55, %v3524_v49  ;;  %v7331_v49 = vld [vmem:[%s7811_s15] ss:$0 sm:$0xff] }
 0x4c1   : > { %v3548_v3 = vmul.f32 %v7274_v6, %v7274_v6  ;;  %v3556_v5 = vmul.f32 %v7277_v28, %v7277_v28 }
 0x4c3   : > { %3568 = vadd.xlane.f32.xlu2 %v3548_v3 }
 0x4c4   : > { %v3484_v42 = vpop.xlane.xlu2 %3483  ;;  %v3500_v2 = vpop.xlane.xlu1 %3499 }
 0x4c5   : > { %v3517_v0 = vmul.f32 %v7221_v9, %v3484_v42  ;;  %3584 = vadd.xlane.f32.xlu1 %v3556_v5  ;;  %v3525_v38 = vmul.f32 %v7221_v9, %v3500_v2 }
 0x4c6   : > { %v3486_v29 = vpop.xlane.xlu0 %3485 }
 0x4c7   : > { %v7285_v36 = vsub.f32 %v7194_v1, %v3517_v0  ;;  %v3518_v22 = vmul.f32 %v7221_v9, %v3486_v29  ;;  %v7338_v0 = vld [vmem:[%s7812_s2] ss:$0 sm:$0xff] }
 0x4c9   : > { %v7289_v55 = vsub.f32 %v7201_v58, %v3518_v22  ;;  %v3549_v4 = vmul.f32 %v7285_v36, %v7285_v36 }
 0x4cb   : > { %3570 = vadd.xlane.f32.xlu0 %v3549_v4  ;;  %v3550_v52 = vmul.f32 %v7289_v55, %v7289_v55 }
 0x4cc   : > { %v3502_v16 = vpop.xlane.xlu2 %3501 }
 0x4cd   : > { %v3526_v47 = vmul.f32 %v7221_v9, %v3502_v16  ;;  %3572 = vadd.xlane.f32.xlu1 %v3550_v52 }
 0x4ce   : > { %v3488_v44 = vpop.xlane.xlu1 %3487 }
 0x4cf   : > { %v7297_v1 = vsub.f32 %v7209_v31, %v3526_v47  ;;  %v3519_v18 = vmul.f32 %v7221_v9, %v3488_v44  ;;  %v7310_v31 = vsub.f32 %v7196_v50, %v3525_v38 }
 0x4d1   : > { %v7301_v58 = vsub.f32 %v7213_v15, %v3519_v18  ;;  %v3558_v8 = vmul.f32 %v7297_v1, %v7297_v1  ;;  %v3557_v61 = vmul.f32 %v7310_v31, %v7310_v31 }
 0x4d3   : > { %3588 = vadd.xlane.f32.xlu0 %v3558_v8  ;;  %v3551_v17 = vmul.f32 %v7301_v58, %v7301_v58 }
 0x4d4   : > { %v3504_v46 = vpop.xlane.xlu0 %3503 }
 0x4d5   : > { %v3527_v59 = vmul.f32 %v7221_v9, %v3504_v46  ;;  %3574 = vadd.xlane.f32.xlu2 %v3551_v17 }
 0x4d7   : > { %v7313_v13 = vsub.f32 %v7218_v53, %v3527_v59 }
 0x4d9   : > { %v3559_v15 = vmul.f32 %v7313_v13, %v7313_v13 }
 0x4db   : > { %3590 = vadd.xlane.f32.xlu1 %v3559_v15 }
 0x4dd   : > { %3586 = vadd.xlane.f32.xlu2 %v3557_v61 }
 0x510   : > { %v3561_v57 = vpop.xlane.xlu1 %3560 }
 0x511   : > { %v3592_v56 = vmul.f32 %v3561_v57, %v7221_v9 }
 0x513   : > { %v3608_v34 = vadd.f32 1e-05, %v3592_v56 }
 0x515   : > { %4761 = vrsqrt.f32 %v3608_v34  ;;  %vm3630_vm2 = vweird.f32 %v3608_v34 }
 0x516   : > { %v3577_v11 = vpop.xlane.xlu0 %3576 }
 0x517   : > { %v3600_v50 = vmul.f32 %v3577_v11, %v7221_v9 }
 0x518   : > { %v3563_v63 = vpop.xlane.xlu2 %3562 }
 0x519   : > { %v3616_v7 = vadd.f32 1e-05, %v3600_v50  ;;  %v3593_v53 = vmul.f32 %v3563_v63, %v7221_v9 }
 0x51b   : > { %v4762_v26 = vpop.eup %4761  ;;  %4763 = vrsqrt.f32 %v3616_v7  ;;  %v3609_v32 = vadd.f32 1e-05, %v3593_v53  ;;  %vm3710_vm5 = vweird.f32 %v3616_v7 }
 0x51c   : > { %v3625_v60 = vmul.f32 %v4762_v26, %v3608_v34  ;;  %vm3631_vm1 = vweird.f32 %v4762_v26 }
 0x51d   : > { %4765 = vrsqrt.f32 %v3609_v32  ;;  %vm3632_vm3 = vmor %vm3630_vm2, %vm3631_vm1  ;;  %vm3640_vm8 = vweird.f32 %v3609_v32 }
 0x51e   : > { %v3626_v25 = vmul.f32 %v4762_v26, %v3625_v60 }
 0x520   : > { %v3627_v12 = vmul.f32 0.5, %v3626_v25  ;;  %v3579_v35 = vpop.xlane.xlu1 %3578  ;;  %v3565_v41 = vpop.xlane.xlu0 %3564 }
 0x521   : > { %v4764_v10 = vpop.eup %4763  ;;  %v3601_v40 = vmul.f32 %v3579_v35, %v7221_v9  ;;  %v3594_v62 = vmul.f32 %v3565_v41, %v7221_v9 }
 0x522   : > { %v3628_v51 = vsub.f32 1.5, %v3627_v12  ;;  %v3705_v14 = vmul.f32 %v4764_v10, %v3616_v7  ;;  %vm3711_vm4 = vweird.f32 %v4764_v10 }
 0x523   : > { %v4766_v21 = vpop.eup %4765  ;;  %v7324_v24 = vadd.f32 1e-05, %v3601_v40  ;;  %v7326_v45 = vadd.f32 1e-05, %v3594_v62  ;;  %vm3712_vm7 = vmor %vm3710_vm5, %vm3711_vm4 }
 0x524   : > { %v3629_v30 = vmul.f32 %v4762_v26, %v3628_v51  ;;  %v3706_v37 = vmul.f32 %v4764_v10, %v3705_v14  ;;  %v3635_v19 = vmul.f32 %v4766_v21, %v3609_v32  ;;  %vm3641_vm6 = vweird.f32 %v4766_v21 }
 0x525   : > { %4767 = vrsqrt.f32 %v7324_v24  ;;  %vm3642_vm9 = vmor %vm3640_vm8, %vm3641_vm6  ;;  %vm3720_vm12 = vweird.f32 %v7324_v24  ;;  %vm3650_vm14 = vweird.f32 %v7326_v45 }
 0x526   : > { %v3633_v3 = vsel %vm3632_vm3, %v4762_v26, %v3629_v30  ;;  %v3707_v5 = vmul.f32 0.5, %v3706_v37  ;;  %v3636_v42 = vmul.f32 %v4766_v21, %v3635_v19  ;;  %4769 = vrsqrt.f32 %v7326_v45 }
 0x527   : > { %v3784_v2 = vmul.f32 %v3633_v3, %v7225_v33 }
 0x528   : > { %v3708_v29 = vsub.f32 1.5, %v3707_v5  ;;  %v3637_v22 = vmul.f32 0.5, %v3636_v42  ;;  %v3581_v4 = vpop.xlane.xlu2 %3580 }
 0x529   : > { %v3804_v52 = vmul.f32 %v7331_v49, %v3784_v2  ;;  %v3602_v16 = vmul.f32 %v3581_v4, %v7221_v9 }
 0x52a   : > { %v3709_v47 = vmul.f32 %v4764_v10, %v3708_v29  ;;  %v3638_v44 = vsub.f32 1.5, %v3637_v22 }
 0x52b   : > { %v4768_v18 = vpop.eup %4767  ;;  %v3824_v8 = vadd.f32 %v7338_v0, %v3804_v52  ;;  %v7344_v38 = vadd.f32 1e-05, %v3602_v16 }
 0x52c   : > { %v4770_v33 = vpop.eup %4769  ;;  %v3713_v17 = vsel %vm3712_vm7, %v4764_v10, %v3709_v47  ;;  %v3639_v46 = vmul.f32 %v4766_v21, %v3638_v44  ;;  %v3715_v59 = vmul.f32 %v4768_v18, %v7324_v24  ;;  %vm3721_vm10 = vweird.f32 %v4768_v18 }
 0x52d   : > { %3840 = vst [vmem:[%s5139_s26] sm:$0xff] %v3824_v8  ;;  %v3792_v15 = vmul.f32 %v3713_v17, %v7231_v39  ;;  %v3645_v61 = vmul.f32 %v4770_v33, %v7326_v45  ;;  %4771 = vrsqrt.f32 %v7344_v38  ;;  %vm3651_vm11 = vweird.f32 %v4770_v33  ;;  %vm3722_vm13 = vmor %vm3720_vm12, %vm3721_vm10 }
 0x52e   : > { %v3643_v57 = vsel %vm3642_vm9, %v4766_v21, %v3639_v46  ;;  %v3716_v56 = vmul.f32 %v4768_v18, %v3715_v59  ;;  %v3583_v34 = vpop.xlane.xlu0 %3582  ;;  %vm3652_vm15 = vmor %vm3650_vm14, %vm3651_vm11  ;;  %vm3730_vm1 = vweird.f32 %v7344_v38 }
 0x52f   : > { %v3812_v11 = vmul.f32 %v7331_v49, %v3792_v15  ;;  %v3785_v50 = vmul.f32 %v3643_v57, %v7235_v43  ;;  %v3646_v63 = vmul.f32 %v4770_v33, %v3645_v61  ;;  %v3603_v7 = vmul.f32 %v3583_v34, %v7221_v9 }
 0x530   : > { %v3717_v53 = vmul.f32 0.5, %v3716_v56  ;;  %v3567_v26 = vpop.xlane.xlu1 %3566 }
 0x531   : > { %v3832_v39 = vadd.f32 %v7338_v0, %v3812_v11  ;;  %v3805_v32 = vmul.f32 %v7331_v49, %v3785_v50  ;;  %v3647_v60 = vmul.f32 0.5, %v3646_v63  ;;  %v7356_v25 = vadd.f32 1e-05, %v3603_v7 }
 0x532   : > { %v3718_v12 = vsub.f32 1.5, %v3717_v53  ;;  %v3595_v35 = vmul.f32 %v3567_v26, %v7221_v9 }
 0x533   : > { %v4772_v41 = vpop.eup %4771  ;;  %3848 = vst [vmem:[%s5139_s26 + $0x40] sm:$0xff] %v3832_v39  ;;  %v3825_v43 = vadd.f32 %v7338_v0, %v3805_v32  ;;  %v3648_v10 = vsub.f32 1.5, %v3647_v60  ;;  %4773 = vrsqrt.f32 %v7356_v25  ;;  %vm3740_vm4 = vweird.f32 %v7356_v25 }
 0x534   : > { %v3719_v40 = vmul.f32 %v4768_v18, %v3718_v12  ;;  %v3725_v62 = vmul.f32 %v4772_v41, %v7344_v38  ;;  %v7364_v51 = vadd.f32 1e-05, %v3595_v35  ;;  %vm3731_vm0 = vweird.f32 %v4772_v41 }
 0x535   : > { %3841 = vst [vmem:[%s5139_s26 + $0x8] sm:$0xff] %v3825_v43  ;;  %v3649_v14 = vmul.f32 %v4770_v33, %v3648_v10  ;;  %vm3732_vm2 = vmor %vm3730_vm1, %vm3731_vm0 }
 0x536   : > { %v3723_v21 = vsel %vm3722_vm13, %v4768_v18, %v3719_v40  ;;  %v3726_v30 = vmul.f32 %v4772_v41, %v3725_v62  ;;  %4775 = vrsqrt.f32 %v7364_v51  ;;  %v3569_v37 = vpop.xlane.xlu2 %3568  ;;  %vm3660_vm7 = vweird.f32 %v7364_v51 }
 0x537   : > { %v3793_v19 = vmul.f32 %v3723_v21, %v7247_v48  ;;  %v3653_v3 = vsel %vm3652_vm15, %v4770_v33, %v3649_v14  ;;  %v3596_v24 = vmul.f32 %v3569_v37, %v7221_v9 }
 0x538   : > { %v3786_v5 = vmul.f32 %v3653_v3, %v7244_v20  ;;  %v3727_v42 = vmul.f32 0.5, %v3726_v30  ;;  %v3585_v2 = vpop.xlane.xlu1 %3584 }
 0x539   : > { %v4774_v29 = vpop.eup %4773  ;;  %v3813_v22 = vmul.f32 %v7331_v49, %v3793_v19  ;;  %v7373_v45 = vadd.f32 1e-05, %v3596_v24  ;;  %v3604_v4 = vmul.f32 %v3585_v2, %v7221_v9 }
 0x53a   : > { %v3806_v52 = vmul.f32 %v7331_v49, %v3786_v5  ;;  %v3728_v16 = vsub.f32 1.5, %v3727_v42  ;;  %v3735_v48 = vmul.f32 %v4774_v29, %v7356_v25  ;;  %vm3741_vm3 = vweird.f32 %v4774_v29 }
 0x53b   : > { %v3833_v47 = vadd.f32 %v7338_v0, %v3813_v22  ;;  %4777 = vrsqrt.f32 %v7373_v45  ;;  %v7380_v20 = vadd.f32 1e-05, %v3604_v4  ;;  %vm3742_vm5 = vmor %vm3740_vm4, %vm3741_vm3  ;;  %vm3670_vm10 = vweird.f32 %v7373_v45 }
 0x53c   : > { %v4776_v44 = vpop.eup %4775  ;;  %v3826_v18 = vadd.f32 %v7338_v0, %v3806_v52  ;;  %v3729_v8 = vmul.f32 %v4772_v41, %v3728_v16  ;;  %v3736_v33 = vmul.f32 %v4774_v29, %v3735_v48 }
 0x53d   : > { %3849 = vst [vmem:[%s5139_s26 + $0x48] sm:$0xff] %v3833_v47  ;;  %v3655_v17 = vmul.f32 %v4776_v44, %v7364_v51  ;;  %4779 = vrsqrt.f32 %v7380_v20  ;;  %vm3661_vm6 = vweird.f32 %v4776_v44  ;;  %vm3750_vm13 = vweird.f32 %v7380_v20 }
 0x53e   : > { %3842 = vst [vmem:[%s5139_s26 + $0x10] sm:$0xff] %v3826_v18  ;;  %v3733_v46 = vsel %vm3732_vm2, %v4772_v41, %v3729_v8  ;;  %v3737_v59 = vmul.f32 0.5, %v3736_v33  ;;  %v3571_v15 = vpop.xlane.xlu0 %3570  ;;  %vm3662_vm8 = vmor %vm3660_vm7, %vm3661_vm6 }
 0x53f   : > { %v3794_v61 = vmul.f32 %v3733_v46, %v7255_v27  ;;  %v3656_v57 = vmul.f32 %v4776_v44, %v3655_v17  ;;  %v3597_v56 = vmul.f32 %v3571_v15, %v7221_v9 }
 0x540   : > { %v3738_v34 = vsub.f32 1.5, %v3737_v59  ;;  %v3573_v11 = vpop.xlane.xlu1 %3572 }
 0x541   : > { %v4778_v38 = vpop.eup %4777  ;;  %v3814_v50 = vmul.f32 %v7331_v49, %v3794_v61  ;;  %v3657_v63 = vmul.f32 0.5, %v3656_v57  ;;  %v7391_v7 = vadd.f32 1e-05, %v3597_v56  ;;  %v3598_v53 = vmul.f32 %v3573_v11, %v7221_v9 }
 0x542   : > { %v3739_v26 = vmul.f32 %v4774_v29, %v3738_v34  ;;  %v3665_v27 = vmul.f32 %v4778_v38, %v7373_v45  ;;  %vm3671_vm9 = vweird.f32 %v4778_v38 }
 0x543   : > { %v4780_v39 = vpop.eup %4779  ;;  %v3834_v32 = vadd.f32 %v7338_v0, %v3814_v50  ;;  %v3658_v60 = vsub.f32 1.5, %v3657_v63  ;;  %4781 = vrsqrt.f32 %v7391_v7  ;;  %v7402_v25 = vadd.f32 1e-05, %v3598_v53  ;;  %vm3672_vm12 = vmor %vm3670_vm10, %vm3671_vm9 }
 0x544   : > { %v3743_v12 = vsel %vm3742_vm5, %v4774_v29, %v3739_v26  ;;  %v3666_v35 = vmul.f32 %v4778_v38, %v3665_v27  ;;  %v3745_v41 = vmul.f32 %v4780_v39, %v7380_v20  ;;  %vm3751_vm11 = vweird.f32 %v4780_v39 }
 0x545   : > { %3850 = vst [vmem:[%s5139_s26 + $0x50] sm:$0xff] %v3834_v32  ;;  %v3795_v43 = vmul.f32 %v3743_v12, %v7261_v54  ;;  %v3659_v10 = vmul.f32 %v4776_v44, %v3658_v60  ;;  %4783 = vrsqrt.f32 %v7402_v25  ;;  %vm3752_vm14 = vmor %vm3750_vm13, %vm3751_vm11  ;;  %vm3680_vm0 = vweird.f32 %v7391_v7 }
 0x546   : > { %v3667_v40 = vmul.f32 0.5, %v3666_v35  ;;  %v3746_v62 = vmul.f32 %v4780_v39, %v3745_v41  ;;  %v3589_v14 = vpop.xlane.xlu0 %3588  ;;  %vm3690_vm3 = vweird.f32 %v7402_v25 }
 0x547   : > { %v3815_v21 = vmul.f32 %v7331_v49, %v3795_v43  ;;  %v3663_v30 = vsel %vm3662_vm8, %v4776_v44, %v3659_v10  ;;  %v3606_v3 = vmul.f32 %v3589_v14, %v7221_v9 }
 0x548   : > { %v3787_v37 = vmul.f32 %v3663_v30, %v7265_v23  ;;  %v3668_v19 = vsub.f32 1.5, %v3667_v40  ;;  %v3747_v54 = vmul.f32 0.5, %v3746_v62  ;;  %v3575_v51 = vpop.xlane.xlu2 %3574 }
 0x549   : > { %v4782_v24 = vpop.eup %4781  ;;  %v3835_v5 = vadd.f32 %v7338_v0, %v3815_v21  ;;  %v3599_v42 = vmul.f32 %v3575_v51, %v7221_v9  ;;  %v7416_v4 = vadd.f32 1e-05, %v3606_v3 }
 0x54a   : > { %v3807_v2 = vmul.f32 %v7331_v49, %v3787_v37  ;;  %v3669_v29 = vmul.f32 %v4778_v38, %v3668_v19  ;;  %v3748_v22 = vsub.f32 1.5, %v3747_v54  ;;  %v3675_v23 = vmul.f32 %v4782_v24, %v7391_v7 }
 0x54b   : > { %3851 = vst [vmem:[%s5139_s26 + $0x58] sm:$0xff] %v3835_v5  ;;  %v7418_v52 = vadd.f32 1e-05, %v3599_v42  ;;  %v4784_v44 = vpop.eup %4783  ;;  %4785 = vrsqrt.f32 %v7416_v4  ;;  %vm3681_vm15 = vweird.f32 %v4782_v24  ;;  %vm3770_vm6 = vweird.f32 %v7416_v4 }
 0x54c   : > { %v3827_v45 = vadd.f32 %v7338_v0, %v3807_v2  ;;  %v3673_v16 = vsel %vm3672_vm12, %v4778_v38, %v3669_v29  ;;  %v3749_v48 = vmul.f32 %v4780_v39, %v3748_v22  ;;  %v3676_v47 = vmul.f32 %v4782_v24, %v3675_v23  ;;  %vm3682_vm1 = vmor %vm3680_vm0, %vm3681_vm15 }
 0x54d   : > { %v3788_v18 = vmul.f32 %v3673_v16, %v7274_v6  ;;  %v3685_v20 = vmul.f32 %v4784_v44, %v7402_v25  ;;  %4787 = vrsqrt.f32 %v7418_v52  ;;  %vm3691_vm2 = vweird.f32 %v4784_v44 }
 0x54e   : > { %3843 = vst [vmem:[%s5139_s26 + $0x18] sm:$0xff] %v3827_v45  ;;  %v3753_v8 = vsel %vm3752_vm14, %v4780_v39, %v3749_v48  ;;  %v3677_v33 = vmul.f32 0.5, %v3676_v47  ;;  %v3591_v17 = vpop.xlane.xlu1 %3590  ;;  %vm3692_vm4 = vmor %vm3690_vm3, %vm3691_vm2  ;;  %vm3700_vm9 = vweird.f32 %v7418_v52 }
 0x54f   : > { %v3808_v46 = vmul.f32 %v7331_v49, %v3788_v18  ;;  %v3796_v59 = vmul.f32 %v3753_v8, %v7277_v28  ;;  %v3607_v15 = vmul.f32 %v3591_v17, %v7221_v9  ;;  %v3686_v61 = vmul.f32 %v4784_v44, %v3685_v20 }
 0x550   : > { %v3678_v6 = vsub.f32 1.5, %v3677_v33  ;;  %v3587_v57 = vpop.xlane.xlu2 %3586 }
 0x551   : > { %v3828_v56 = vadd.f32 %v7338_v0, %v3808_v46  ;;  %v3816_v34 = vmul.f32 %v7331_v49, %v3796_v59  ;;  %v7432_v11 = vadd.f32 1e-05, %v3607_v15  ;;  %v3605_v38 = vmul.f32 %v3587_v57, %v7221_v9  ;;  %v4786_v63 = vpop.eup %4785 }
 0x552   : > { %v3679_v50 = vmul.f32 %v4782_v24, %v3678_v6  ;;  %v3687_v28 = vmul.f32 0.5, %v3686_v61  ;;  %v3765_v32 = vmul.f32 %v4786_v63, %v7416_v4  ;;  %vm3771_vm5 = vweird.f32 %v4786_v63 }
 0x553   : > { %3844 = vst [vmem:[%s5139_s26 + $0x20] sm:$0xff] %v3828_v56  ;;  %v3836_v53 = vadd.f32 %v7338_v0, %v3816_v34  ;;  %4789 = vrsqrt.f32 %v7432_v11  ;;  %v7439_v26 = vadd.f32 1e-05, %v3605_v38  ;;  %v4788_v60 = vpop.eup %4787  ;;  %vm3772_vm8 = vmor %vm3770_vm6, %vm3771_vm5  ;;  %vm3780_vm12 = vweird.f32 %v7432_v11 }
 0x554   : > { %v3683_v27 = vsel %vm3682_vm1, %v4782_v24, %v3679_v50  ;;  %v3688_v39 = vsub.f32 1.5, %v3687_v28  ;;  %v3766_v12 = vmul.f32 %v4786_v63, %v3765_v32  ;;  %v3695_v35 = vmul.f32 %v4788_v60, %v7418_v52 }
 0x555   : > { %3852 = vst [vmem:[%s5139_s26 + $0x60] sm:$0xff] %v3836_v53  ;;  %v3789_v9 = vmul.f32 %v3683_v27, %v7285_v36  ;;  %4791 = vrsqrt.f32 %v7439_v26  ;;  %vm3701_vm7 = vweird.f32 %v4788_v60  ;;  %vm3760_vm15 = vweird.f32 %v7439_v26 }
 0x556   : > { %v3689_v7 = vmul.f32 %v4784_v44, %v3688_v39  ;;  %v3767_v10 = vmul.f32 0.5, %v3766_v12  ;;  %v3696_v40 = vmul.f32 %v4788_v60, %v3695_v35  ;;  %vm3702_vm10 = vmor %vm3700_vm9, %vm3701_vm7 }
 0x557   : > { %v3809_v41 = vmul.f32 %v7331_v49, %v3789_v9 }
 0x558   : > { %v3693_v43 = vsel %vm3692_vm4, %v4784_v44, %v3689_v7  ;;  %v3768_v21 = vsub.f32 1.5, %v3767_v10  ;;  %v3697_v30 = vmul.f32 0.5, %v3696_v40 }
 0x559   : > { %v4790_v62 = vpop.eup %4789  ;;  %v3829_v14 = vadd.f32 %v7338_v0, %v3809_v41  ;;  %v3790_v36 = vmul.f32 %v3693_v43, %v7289_v55 }
 0x55a   : > { %v3775_v25 = vmul.f32 %v4790_v62, %v7432_v11  ;;  %v3769_v54 = vmul.f32 %v4786_v63, %v3768_v21  ;;  %v3698_v3 = vsub.f32 1.5, %v3697_v30  ;;  %vm3781_vm11 = vweird.f32 %v4790_v62 }
 0x55b   : > { %v4792_v37 = vpop.eup %4791  ;;  %3845 = vst [vmem:[%s5139_s26 + $0x28] sm:$0xff] %v3829_v14  ;;  %v3810_v19 = vmul.f32 %v7331_v49, %v3790_v36  ;;  %vm3782_vm14 = vmor %vm3780_vm12, %vm3781_vm11 }
 0x55c   : > { %v3776_v51 = vmul.f32 %v4790_v62, %v3775_v25  ;;  %v3755_v24 = vmul.f32 %v4792_v37, %v7439_v26  ;;  %v3773_v5 = vsel %vm3772_vm8, %v4786_v63, %v3769_v54  ;;  %v3699_v42 = vmul.f32 %v4788_v60, %v3698_v3 }
 0x55d   : > { %v3830_v55 = vadd.f32 %v7338_v0, %v3810_v19  ;;  %v3798_v22 = vmul.f32 %v3773_v5, %v7297_v1  ;;  %vm3761_vm13 = vweird.f32 %v4792_v37 }
 0x55e   : > { %v3777_v2 = vmul.f32 0.5, %v3776_v51  ;;  %v3756_v29 = vmul.f32 %v4792_v37, %v3755_v24  ;;  %v3703_v23 = vsel %vm3702_vm10, %v4788_v60, %v3699_v42  ;;  %vm3762_vm0 = vmor %vm3760_vm15, %vm3761_vm13 }
 0x55f   : > { %3846 = vst [vmem:[%s5139_s26 + $0x30] sm:$0xff] %v3830_v55  ;;  %v3818_v16 = vmul.f32 %v7331_v49, %v3798_v22  ;;  %v3791_v48 = vmul.f32 %v3703_v23, %v7301_v58 }
 0x560   : > { %v3778_v4 = vsub.f32 1.5, %v3777_v2  ;;  %v3757_v45 = vmul.f32 0.5, %v3756_v29 }
 0x561   : > { %v3838_v44 = vadd.f32 %v7338_v0, %v3818_v16  ;;  %v3811_v1 = vmul.f32 %v7331_v49, %v3791_v48 }
 0x562   : > { %v3779_v47 = vmul.f32 %v4790_v62, %v3778_v4  ;;  %v3758_v52 = vsub.f32 1.5, %v3757_v45 }
 0x563   : > { %3854 = vst [vmem:[%s5139_s26 + $0x70] sm:$0xff] %v3838_v44  ;;  %v3831_v58 = vadd.f32 %v7338_v0, %v3811_v1 }
 0x564   : > { %v3783_v18 = vsel %vm3782_vm14, %v4790_v62, %v3779_v47  ;;  %v3759_v8 = vmul.f32 %v4792_v37, %v3758_v52 }
 0x565   : > { %v3799_v33 = vmul.f32 %v3783_v18, %v7313_v13  ;;  %3847 = vst [vmem:[%s5139_s26 + $0x38] sm:$0xff] %v3831_v58 }
 0x566   : > { %v3763_v20 = vsel %vm3762_vm0, %v4792_v37, %v3759_v8 }
 0x567   : > { %v3819_v17 = vmul.f32 %v7331_v49, %v3799_v33  ;;  %v3797_v46 = vmul.f32 %v3763_v20, %v7310_v31 }
 0x569   : > { %v3839_v59 = vadd.f32 %v7338_v0, %v3819_v17  ;;  %v3817_v15 = vmul.f32 %v7331_v49, %v3797_v46 }
 0x56b   : > { %3855 = vst [vmem:[%s5139_s26 + $0x78] sm:$0xff] %v3839_v59  ;;  %v3837_v6 = vadd.f32 %v7338_v0, %v3817_v15 }
 0x56d   : > { %3853 = vst [vmem:[%s5139_s26 + $0x68] sm:$0xff] %v3837_v6 }
 0x56e PF: > { %s22_s13 = sadd.s32 1, %s4879_s13   ;;  %s7813_s25 = sld [smem:[#allocation8_spill]] }
 0x56f   : > { %p19_p6 = scmp.ge.s32.totalorder %s22_s13, 10   ;;  %s7814_s10 = sld [smem:[#allocation6_spill]] }
 0x570   : > { %s7815_s17 = sld [smem:[#allocation7_spill]]  ;;  %s7817_s21 = smov %s4843_s22 }
 0x571   : > { %s7816_s0 = sld [smem:[#allocation9_spill]]  ;;  %s7819_s23 = smov %s4851_s24 }
 0x572   : > { %s7820_s24 = smov %s5043_s9  ;;  %s7822_s26 = smov %s4871_s29 }
 0x573   : > { %s7823_s27 = smov %s4875_s30  ;;  %21 = sbr.rel (!%p19_p6) target bundleno = 17 (0x11), region = 258 }
 0x574   : > { %s7818_s22 = smov %s7813_s25  ;;  %s7821_s25 = smov %s4867_s28 }
 0x575   : > { %s7824_s28 = smov %s7814_s10 }
 0x576   : > { %s7825_s29 = smov %s7815_s17 }
 0x577   : > { %s7826_s30 = smov %s7816_s0 }

// kernel: glm_forward.13
= control target key start
LH: loop header
LB: loop body
LE: loop exit
PB: predicated region body
PF: predicated region fallthrough
CT: control target
= control target key end

     0   :  { %8 = vsyncpa [#allocation4], 0  ;;  %s1892_s0 = inlined_call_operand.vmem [shape: f32[2,256,128], index: 0, kind: input, shape index: {}]   ;;  %s1893_s1 = inlined_call_operand.vmem [shape: bf16[128,1024], index: 1, kind: input, shape index: {}]   ;;  %s1894_s2 = inlined_call_operand.vmem [shape: f32[1,1024], index: 2, kind: input, shape index: {}]   ;;  %s1895_s3 = inlined_call_operand.hbm [shape: f32[2,256,1024], index: 3, kind: output, shape index: {}]  }
   0x1   :  { %10 = vsyncpa [#allocation4 + $0x1], 0  ;;  %s1397_s12 = smov 0   ;;  %s1399_s13 = smov 0  }
   0x2   :  { %s1401_s14 = smov 0   ;;  %s1403_s15 = smov 0  }
   0x3   :  { %s1405_s16 = smov 0   ;;  %s1407_s17 = smov 0  }
   0x4   :  { %s1409_s18 = smov 0   ;;  %s1411_s19 = smov 0  }
   0x5   :  { %s1413_s20 = smov 0   ;;  %s1415_s21 = smov 0  }
   0x6   :  { %s1417_s22 = smov 0   ;;  %s1419_s23 = smov 0  }
   0x7 LB: > { %s956_s24 = sadd.s32 4294967295, %s1372_s23   ;;  %s957_s25 = sadd.s32 4294967294, %s1372_s23   ;;  %s1372_s23 = sphi %s1419_s23, %s16_s23   ;;  %s1368_s22 = sphi %s1417_s22, %s1913_s22   ;;  %s1364_s21 = sphi %s1415_s21, %s1912_s21   ;;  %s1360_s20 = sphi %s1413_s20, %s1911_s20   ;;  %s1356_s19 = sphi %s1411_s19, %s1910_s19   ;;  %s1352_s18 = sphi %s1409_s18, %s1909_s18   ;;  %s1348_s17 = sphi %s1407_s17, %s1908_s17   ;;  %s1344_s16 = sphi %s1405_s16, %s1907_s16   ;;  %s1340_s15 = sphi %s1403_s15, %s1906_s15   ;;  %s1336_s14 = sphi %s1401_s14, %s1905_s14   ;;  %s1332_s13 = sphi %s1399_s13, %s1904_s13   ;;  %s1328_s12 = sphi %s1397_s12, %s1903_s12  }
   0x8   : > { %s28_s26 = sadd.s32 1, %s1360_s20  ;;  %s31_s27 = sadd.s32 1, %s1364_s21 }
   0x9   : > { %p29_p0 = scmp.ge.s32.totalorder %s28_s26, 2  ;;  %s35_s28 = sadd.s32 1, %s1368_s22 }
   0xa   : > { %p77_p1 = scmp.ne.s32.totalorder %s1344_s16, %s1340_s15  ;;  %p78_p2 = scmp.eq.s32.totalorder %s1372_s23, 0 }
   0xb   : > { %s1915_s26 = smov (%p29_p0, %s28_s26), 0  ;;  %s1917_s27 = smov (!%p29_p0, %s31_s27), %s1364_s21 }
   0xc   : > { %s67_s29 = ssub.s32 %s1360_s20, %s1915_s26  ;;  %p33_p3 = scmp.ge.s32.totalorder %s1917_s27, 2 }
   0xd   : > { %p68_p4 = scmp.eq.s32.totalorder %s67_s29, 0  ;;  %s70_s30 = sadd.s32 1, %s1344_s16 }
   0xe   : > { %p1471_p5 = por %p78_p2, %p77_p1  ;;  %s1919_s27 = smov (%p33_p3, %s1917_s27), 0 }
   0xf   : > { %1898 = sst [smem:[#allocation6_spill]] %s1919_s27  ;;  %s1921_s28 = smov (!%p33_p3, %s35_s28), %s1368_s22 }
  0x10   : > { %s1479_s5 = scalar_select %p68_p4, %s1344_s16, %s70_s30  }
  0x11   : > { %p37_p6 = scmp.ge.s32.totalorder %s1921_s28, 2  ;;  %s120_s6 = ssub.s32 %s1364_s21, %s1919_s27 }
  0x12   : > { %p136_p7 = scmp.ne.s32.totalorder %s1336_s14, %s1332_s13  ;;  %p137_p8 = scmp.eq.s32.totalorder %s956_s24, 7 }
  0x13   : > { %s1923_s28 = smov (%p37_p6, %s1921_s28), 0  ;;  %p142_p10 = scmp.ne.s32.totalorder %s1332_s13, %s1328_s12 }
  0x14   : > { %p1487_p9 = por %p137_p8, %p136_p7  ;;  %s119_s8 = ssub.s32 %s1368_s22, %s1923_s28 }
  0x15   : > { %p143_p11 = scmp.eq.s32.totalorder %s957_s25, 7  ;;  %s121_s9 = sor.u32 %s120_s6, %s119_s8 }
  0x16   : > { %s126_s10 = sadd.s32 1, %s1336_s14  ;;  %s123_s11 = sor.u32 %s121_s9, %s67_s29 }
  0x17   : > { %p1496_p12 = por %p143_p11, %p142_p10  ;;  %p124_p13 = scmp.eq.s32.totalorder %s123_s11, 0 }
  0x18   : > { %p959_p0 = scmp.ge.s32.totalorder %s1372_s23, 8 }
  0x19   : > { %s1501_s27 = scalar_select %p124_p13, %s1336_s14, %s126_s10  }
  0x1a   : > { %159 = sbr.rel (%p959_p0) target bundleno = 67 (0x43), region = 16 }
  0x1f   : > { %175 = sbr.rel (!%p1471_p5) target bundleno = 67 (0x43), region = 24  ;;  %s177_s24 = sand.u32 (%p1471_p5), 1, %s1344_s16  }
  0x20   : > { %s1106_s25 = sshll.u32 (%p1471_p5), %s1360_s20, 4  ;;  %s960_s6 = sshll.u32 (%p1471_p5), %s177_s24, 8 }
  0x21   : > { %s1511_s9 = scalar_lea.vmem (%p1471_p5), %s1893_s1, %s1106_s25  ;;  %s1516_s4 = scalar_lea.vmem (%p1471_p5), [#allocation2], %s960_s6 }
  0x22   : > { %v195_v0 = vld [vmem:[%s1511_s9] sm:$0xff] (%p1471_p5)  ;;  %v197_v1 = vld [vmem:[%s1511_s9 + $0x8] sm:$0xff] (%p1471_p5) }
  0x23   : > { %v199_v2 = vld [vmem:[%s1511_s9 + $0x20] sm:$0xff] (%p1471_p5)  ;;  %196 = vst [vmem:[%s1516_s4] sm:$0xff] (%p1471_p5), %v195_v0  ;;  %v201_v3 = vld [vmem:[%s1511_s9 + $0x28] sm:$0xff] (%p1471_p5) }
  0x24   : > { %198 = vst [vmem:[%s1516_s4 + $0x8] sm:$0xff] %v197_v1  ;;  %v203_v4 = vld [vmem:[%s1511_s9 + $0x40] sm:$0xff]  ;;  %v205_v5 = vld [vmem:[%s1511_s9 + $0x48] sm:$0xff] }
  0x25   : > { %200 = vst [vmem:[%s1516_s4 + $0x10] sm:$0xff] %v199_v2  ;;  %v207_v6 = vld [vmem:[%s1511_s9 + $0x60] sm:$0xff]  ;;  %v209_v7 = vld [vmem:[%s1511_s9 + $0x68] sm:$0xff] }
  0x26   : > { %202 = vst [vmem:[%s1516_s4 + $0x18] sm:$0xff] %v201_v3  ;;  %v211_v8 = vld [vmem:[%s1511_s9 + $0x80] sm:$0xff]  ;;  %v213_v9 = vld [vmem:[%s1511_s9 + $0x88] sm:$0xff] }
  0x27   : > { %204 = vst [vmem:[%s1516_s4 + $0x20] sm:$0xff] %v203_v4  ;;  %v215_v10 = vld [vmem:[%s1511_s9 + $0xa0] sm:$0xff]  ;;  %v217_v11 = vld [vmem:[%s1511_s9 + $0xa8] sm:$0xff] }
  0x28   : > { %206 = vst [vmem:[%s1516_s4 + $0x28] sm:$0xff] %v205_v5  ;;  %v219_v12 = vld [vmem:[%s1511_s9 + $0xc0] sm:$0xff]  ;;  %v221_v13 = vld [vmem:[%s1511_s9 + $0xc8] sm:$0xff] }
  0x29   : > { %208 = vst [vmem:[%s1516_s4 + $0x30] sm:$0xff] %v207_v6  ;;  %v223_v14 = vld [vmem:[%s1511_s9 + $0xe0] sm:$0xff]  ;;  %v225_v15 = vld [vmem:[%s1511_s9 + $0xe8] sm:$0xff] }
  0x2a   : > { %210 = vst [vmem:[%s1516_s4 + $0x38] sm:$0xff] %v209_v7  ;;  %v227_v16 = vld [vmem:[%s1511_s9 + $0x100] sm:$0xff]  ;;  %v229_v17 = vld [vmem:[%s1511_s9 + $0x108] sm:$0xff] }
  0x2b   : > { %212 = vst [vmem:[%s1516_s4 + $0x40] sm:$0xff] %v211_v8  ;;  %v231_v18 = vld [vmem:[%s1511_s9 + $0x120] sm:$0xff]  ;;  %v233_v19 = vld [vmem:[%s1511_s9 + $0x128] sm:$0xff] }
  0x2c   : > { %214 = vst [vmem:[%s1516_s4 + $0x48] sm:$0xff] %v213_v9  ;;  %v235_v20 = vld [vmem:[%s1511_s9 + $0x140] sm:$0xff]  ;;  %v237_v21 = vld [vmem:[%s1511_s9 + $0x148] sm:$0xff] }
  0x2d   : > { %216 = vst [vmem:[%s1516_s4 + $0x50] sm:$0xff] %v215_v10  ;;  %v239_v22 = vld [vmem:[%s1511_s9 + $0x160] sm:$0xff]  ;;  %v241_v23 = vld [vmem:[%s1511_s9 + $0x168] sm:$0xff] }
  0x2e   : > { %218 = vst [vmem:[%s1516_s4 + $0x58] sm:$0xff] %v217_v11  ;;  %v243_v24 = vld [vmem:[%s1511_s9 + $0x180] sm:$0xff]  ;;  %v245_v25 = vld [vmem:[%s1511_s9 + $0x188] sm:$0xff] }
  0x2f   : > { %220 = vst [vmem:[%s1516_s4 + $0x60] sm:$0xff] %v219_v12  ;;  %v247_v26 = vld [vmem:[%s1511_s9 + $0x1a0] sm:$0xff]  ;;  %v249_v27 = vld [vmem:[%s1511_s9 + $0x1a8] sm:$0xff] }
  0x30   : > { %222 = vst [vmem:[%s1516_s4 + $0x68] sm:$0xff] %v221_v13  ;;  %v251_v28 = vld [vmem:[%s1511_s9 + $0x1c0] sm:$0xff]  ;;  %v253_v29 = vld [vmem:[%s1511_s9 + $0x1c8] sm:$0xff] }
  0x31   : > { %224 = vst [vmem:[%s1516_s4 + $0x70] sm:$0xff] %v223_v14  ;;  %v255_v30 = vld [vmem:[%s1511_s9 + $0x1e0] sm:$0xff]  ;;  %v257_v31 = vld [vmem:[%s1511_s9 + $0x1e8] sm:$0xff] }
  0x32   : > { %226 = vst [vmem:[%s1516_s4 + $0x78] sm:$0xff] %v225_v15 }
  0x33   : > { %228 = vst [vmem:[%s1516_s4 + $0x80] sm:$0xff] %v227_v16 }
  0x34   : > { %230 = vst [vmem:[%s1516_s4 + $0x88] sm:$0xff] %v229_v17 }
  0x35   : > { %232 = vst [vmem:[%s1516_s4 + $0x90] sm:$0xff] %v231_v18 }
  0x36   : > { %234 = vst [vmem:[%s1516_s4 + $0x98] sm:$0xff] %v233_v19 }
  0x37   : > { %236 = vst [vmem:[%s1516_s4 + $0xa0] sm:$0xff] %v235_v20 }
  0x38   : > { %238 = vst [vmem:[%s1516_s4 + $0xa8] sm:$0xff] %v237_v21 }
  0x39   : > { %240 = vst [vmem:[%s1516_s4 + $0xb0] sm:$0xff] %v239_v22 }
  0x3a   : > { %242 = vst [vmem:[%s1516_s4 + $0xb8] sm:$0xff] %v241_v23 }
  0x3b   : > { %244 = vst [vmem:[%s1516_s4 + $0xc0] sm:$0xff] %v243_v24 }
  0x3c   : > { %246 = vst [vmem:[%s1516_s4 + $0xc8] sm:$0xff] %v245_v25 }
  0x3d   : > { %248 = vst [vmem:[%s1516_s4 + $0xd0] sm:$0xff] %v247_v26 }
  0x3e   : > { %250 = vst [vmem:[%s1516_s4 + $0xd8] sm:$0xff] %v249_v27 }
  0x3f   : > { %252 = vst [vmem:[%s1516_s4 + $0xe0] sm:$0xff] %v251_v28 }
  0x40   : > { %254 = vst [vmem:[%s1516_s4 + $0xe8] sm:$0xff] %v253_v29 }
  0x41   : > { %256 = vst [vmem:[%s1516_s4 + $0xf0] sm:$0xff] %v255_v30 }
  0x42   : > { %258 = vst [vmem:[%s1516_s4 + $0xf8] sm:$0xff] %v257_v31 }
  0x43 PF: > { %p963_p1 = scmp.ge.s32.totalorder %s1372_s23, 1  ;;  %p271_p2 = scmp.lt.s32.totalorder %s1372_s23, 9 }
  0x45   : > { %p272_p3 = pnand %p963_p1, %p271_p2 }
  0x46   : > { %s278_s10 = sand.u32 (!%p272_p3), 1, %s1340_s15   ;;  %s966_s15 = sshll.u32 (!%p272_p3), %s1352_s18, 4 }
  0x47   : > { %275 = sbr.rel (%p272_p3) target bundleno = 371 (0x173), region = 51  ;;  %s964_s11 = sshll.u32 (!%p272_p3), %s278_s10, 8 }
  0x48   : > { %s1582_s24 = scalar_lea.vmem (!%p272_p3), [#allocation2], %s964_s11  ;;  %p315_p4 = scmp.lt.s32.totalorder (!%p272_p3), %s1356_s19, 1 }
  0x49   : > { %p1636_p5 = scmp.lt.s32.totalorder (!%p272_p3), %s966_s15, 31  ;;  %s1139_s4 = sshll.u32 (!%p272_p3), %s1352_s18, 7 }
  0x4c   : > { %v1084_v32 = vld [vmem:[%s1582_s24 + $0xe0] sm:$0xf]  ;;  %v1137_v33 = vld [vmem:[%s1582_s24 + $0xec] sm:$0xf0]  ;;  %v1135_v34 = vld [vmem:[%s1582_s24 + $0xe4] sm:$0xf] }
  0x4d   : > { %v1085_v35 = vor.u32 %v1137_v33, %v1084_v32  ;;  %v1086_v36 = vld [vmem:[%s1582_s24 + $0xf0] sm:$0xf0]  ;;  %v1092_v37 = vld [vmem:[%s1582_s24 + $0xe8] sm:$0xf]  ;;  %v1138_v38 = vld [vmem:[%s1582_s24 + $0xf4] sm:$0xf0] }
  0x4e   : > { %v1089_v39 = vor.u32 %v1135_v34, %v1086_v36  ;;  %v1093_v40 = vor.u32 %v1138_v38, %v1092_v37  ;;  %v1136_v41 = vld [vmem:[%s1582_s24 + $0xec] sm:$0xf]  ;;  %v1094_v42 = vld [vmem:[%s1582_s24 + $0xf8] sm:$0xf0]  ;;  %v1068_v43 = vld [vmem:[%s1582_s24 + $0xc0] sm:$0xf] }
  0x4f   : > { %558 = vmatpush.bf16.msra.mxu0 %v1085_v35  ;;  %v1097_v44 = vor.u32 %v1136_v41, %v1094_v42  ;;  %v1133_v45 = vld [vmem:[%s1582_s24 + $0xcc] sm:$0xf0]  ;;  %v1131_v46 = vld [vmem:[%s1582_s24 + $0xc4] sm:$0xf]  ;;  %v1070_v47 = vld [vmem:[%s1582_s24 + $0xd0] sm:$0xf0] }
  0x50   : > { %607 = vmatpush.bf16.msra.mxu1 %v1089_v39  ;;  %656 = vmatpush.bf16.msra.mxu2 %v1093_v40  ;;  %v1069_v48 = vor.u32 %v1133_v45, %v1068_v43  ;;  %v1073_v49 = vor.u32 %v1131_v46, %v1070_v47  ;;  %v1076_v50 = vld [vmem:[%s1582_s24 + $0xc8] sm:$0xf]  ;;  %v1134_v51 = vld [vmem:[%s1582_s24 + $0xd4] sm:$0xf0]  ;;  %v1132_v52 = vld [vmem:[%s1582_s24 + $0xcc] sm:$0xf] }
  0x51   : > { %705 = vmatpush.bf16.msra.mxu3 %v1097_v44  ;;  %v1077_v53 = vor.u32 %v1134_v51, %v1076_v50  ;;  %v1078_v54 = vld [vmem:[%s1582_s24 + $0xd8] sm:$0xf0]  ;;  %v1052_v55 = vld [vmem:[%s1582_s24 + $0xa0] sm:$0xf]  ;;  %v1129_v56 = vld [vmem:[%s1582_s24 + $0xac] sm:$0xf0] }
  0x52   : > { %v1081_v57 = vor.u32 %v1132_v52, %v1078_v54  ;;  %v1127_v58 = vld [vmem:[%s1582_s24 + $0xa4] sm:$0xf]  ;;  %v1054_v59 = vld [vmem:[%s1582_s24 + $0xb0] sm:$0xf0]  ;;  %v1060_v60 = vld [vmem:[%s1582_s24 + $0xa8] sm:$0xf]  ;;  %v1053_v61 = vor.u32 %v1129_v56, %v1052_v55 }
  0x53   : > { %559 = vmatpush.bf16.msra.mxu0 %v1069_v48  ;;  %v1130_v62 = vld [vmem:[%s1582_s24 + $0xb4] sm:$0xf0]  ;;  %v1128_v63 = vld [vmem:[%s1582_s24 + $0xac] sm:$0xf]  ;;  %v1062_v0 = vld [vmem:[%s1582_s24 + $0xb8] sm:$0xf0]  ;;  %v1057_v1 = vor.u32 %v1127_v58, %v1054_v59 }
  0x54   : > { %608 = vmatpush.bf16.msra.mxu1 %v1073_v49  ;;  %657 = vmatpush.bf16.msra.mxu2 %v1077_v53  ;;  %v1061_v2 = vor.u32 %v1130_v62, %v1060_v60  ;;  %v1036_v3 = vld [vmem:[%s1582_s24 + $0x80] sm:$0xf]  ;;  %v1125_v4 = vld [vmem:[%s1582_s24 + $0x8c] sm:$0xf0]  ;;  %v1123_v5 = vld [vmem:[%s1582_s24 + $0x84] sm:$0xf]  ;;  %v1065_v6 = vor.u32 %v1128_v63, %v1062_v0 }
  0x55   : > { %706 = vmatpush.bf16.msra.mxu3 %v1081_v57  ;;  %v1038_v7 = vld [vmem:[%s1582_s24 + $0x90] sm:$0xf0]  ;;  %v1044_v8 = vld [vmem:[%s1582_s24 + $0x88] sm:$0xf]  ;;  %v1126_v9 = vld [vmem:[%s1582_s24 + $0x94] sm:$0xf0]  ;;  %v1037_v12 = vor.u32 %v1125_v4, %v1036_v3 }
  0x56   : > { %v1124_v10 = vld [vmem:[%s1582_s24 + $0x8c] sm:$0xf]  ;;  %v1046_v11 = vld [vmem:[%s1582_s24 + $0x98] sm:$0xf0]  ;;  %v1041_v13 = vor.u32 %v1123_v5, %v1038_v7  ;;  %v1045_v14 = vor.u32 %v1126_v9, %v1044_v8  ;;  %v1020_v15 = vld [vmem:[%s1582_s24 + $0x60] sm:$0xf] }
  0x57   : > { %560 = vmatpush.bf16.msra.mxu0 %v1053_v61  ;;  %v1121_v16 = vld [vmem:[%s1582_s24 + $0x6c] sm:$0xf0]  ;;  %v1119_v17 = vld [vmem:[%s1582_s24 + $0x64] sm:$0xf]  ;;  %v1049_v18 = vor.u32 %v1124_v10, %v1046_v11  ;;  %v1022_v19 = vld [vmem:[%s1582_s24 + $0x70] sm:$0xf0] }
  0x58   : > { %609 = vmatpush.bf16.msra.mxu1 %v1057_v1  ;;  %658 = vmatpush.bf16.msra.mxu2 %v1061_v2  ;;  %v1028_v20 = vld [vmem:[%s1582_s24 + $0x68] sm:$0xf]  ;;  %v1122_v21 = vld [vmem:[%s1582_s24 + $0x74] sm:$0xf0]  ;;  %v1120_v22 = vld [vmem:[%s1582_s24 + $0x6c] sm:$0xf]  ;;  %v1021_v24 = vor.u32 %v1121_v16, %v1020_v15  ;;  %v1025_v25 = vor.u32 %v1119_v17, %v1022_v19 }
  0x59   : > { %707 = vmatpush.bf16.msra.mxu3 %v1065_v6  ;;  %v1030_v23 = vld [vmem:[%s1582_s24 + $0x78] sm:$0xf0]  ;;  %v1029_v26 = vor.u32 %v1122_v21, %v1028_v20  ;;  %v1004_v27 = vld [vmem:[%s1582_s24 + $0x40] sm:$0xf]  ;;  %v1117_v28 = vld [vmem:[%s1582_s24 + $0x4c] sm:$0xf0] }
  0x5a   : > { %v1115_v29 = vld [vmem:[%s1582_s24 + $0x44] sm:$0xf]  ;;  %v1033_v30 = vor.u32 %v1120_v22, %v1030_v23  ;;  %v1006_v31 = vld [vmem:[%s1582_s24 + $0x50] sm:$0xf0]  ;;  %v1012_v32 = vld [vmem:[%s1582_s24 + $0x48] sm:$0xf]  ;;  %v1005_v36 = vor.u32 %v1117_v28, %v1004_v27 }
  0x5b   : > { %561 = vmatpush.bf16.msra.mxu0 %v1037_v12  ;;  %v1118_v33 = vld [vmem:[%s1582_s24 + $0x54] sm:$0xf0]  ;;  %v1116_v34 = vld [vmem:[%s1582_s24 + $0x4c] sm:$0xf]  ;;  %v1014_v35 = vld [vmem:[%s1582_s24 + $0x58] sm:$0xf0]  ;;  %v1009_v38 = vor.u32 %v1115_v29, %v1006_v31 }
  0x5c   : > { %610 = vmatpush.bf16.msra.mxu1 %v1041_v13  ;;  %659 = vmatpush.bf16.msra.mxu2 %v1045_v14  ;;  %v988_v37 = vld [vmem:[%s1582_s24 + $0x20] sm:$0xf]  ;;  %v1013_v39 = vor.u32 %v1118_v33, %v1012_v32  ;;  %v1113_v40 = vld [vmem:[%s1582_s24 + $0x2c] sm:$0xf0]  ;;  %v1111_v41 = vld [vmem:[%s1582_s24 + $0x24] sm:$0xf]  ;;  %v1017_v43 = vor.u32 %v1116_v34, %v1014_v35 }
  0x5d   : > { %708 = vmatpush.bf16.msra.mxu3 %v1049_v18  ;;  %v990_v42 = vld [vmem:[%s1582_s24 + $0x30] sm:$0xf0]  ;;  %v996_v44 = vld [vmem:[%s1582_s24 + $0x28] sm:$0xf]  ;;  %v1114_v45 = vld [vmem:[%s1582_s24 + $0x34] sm:$0xf0]  ;;  %v989_v48 = vor.u32 %v1113_v40, %v988_v37 }
  0x5e   : > { %s316_s6 = scalar_select %p315_p4, %s1356_s19, 1  ;;  %v1112_v46 = vld [vmem:[%s1582_s24 + $0x2c] sm:$0xf]  ;;  %v998_v47 = vld [vmem:[%s1582_s24 + $0x38] sm:$0xf0]  ;;  %v993_v50 = vor.u32 %v1111_v41, %v990_v42  ;;  %v997_v51 = vor.u32 %v1114_v45, %v996_v44 }
  0x5f   : > { %562 = vmatpush.bf16.msra.mxu0 %v1021_v24  ;;  %s1925_s15 = smov (!%p1636_p5, %s966_s15), 31  ;;  %v972_v49 = vld [vmem:[%s1582_s24] sm:$0xf]  ;;  %v1109_v52 = vld [vmem:[%s1582_s24 + $0xc] sm:$0xf0]  ;;  %v1001_v55 = vor.u32 %v1112_v46, %v998_v47 }
  0x60   : > { %611 = vmatpush.bf16.msra.mxu1 %v1025_v25  ;;  %660 = vmatpush.bf16.msra.mxu2 %v1029_v26  ;;  %s967_s8 = sshll.u32 %s316_s6, 5  ;;  %v1107_v53 = vld [vmem:[%s1582_s24 + $0x4] sm:$0xf]  ;;  %v974_v54 = vld [vmem:[%s1582_s24 + $0x10] sm:$0xf0]  ;;  %v973_v60 = vor.u32 %v1109_v52, %v972_v49 }
  0x61   : > { %709 = vmatpush.bf16.msra.mxu3 %v1033_v30  ;;  %s320_s29 = sadd.s32 %s967_s8, %s1925_s15  ;;  %v980_v56 = vld [vmem:[%s1582_s24 + $0x8] sm:$0xf]  ;;  %v1110_v57 = vld [vmem:[%s1582_s24 + $0x14] sm:$0xf0]  ;;  %v1108_v58 = vld [vmem:[%s1582_s24 + $0xc] sm:$0xf]  ;;  %v977_v63 = vor.u32 %v1107_v53, %v974_v54 }
  0x62   : > { %s968_s9 = sshll.u32 %s320_s29, 3  ;;  %v982_v59 = vld [vmem:[%s1582_s24 + $0x18] sm:$0xf0]  ;;  %v981_v0 = vor.u32 %v1110_v57, %v980_v56  ;;  %s1685_s24 = sshll.u32 %s1348_s17, 2 }
  0x63   : > { %563 = vmatpush.bf16.msra.mxu0 %v1005_v36  ;;  %s1666_s11 = scalar_lea.vmem %s1892_s0, %s968_s9  ;;  %v985_v1 = vor.u32 %v1108_v58, %v982_v59  ;;  %p326_p6 = scmp.lt.s32.totalorder %s1685_s24, 7 }
  0x64   : > { %612 = vmatpush.bf16.msra.mxu1 %v1009_v38  ;;  %661 = vmatpush.bf16.msra.mxu2 %v1013_v39  ;;  %v332_v61 = vld [vmem:[%s1666_s11] sm:$0xff]  ;;  %v333_v62 = vld [vmem:[%s1666_s11 + $0x8] sm:$0xff]  ;;  %v334_v3 = vld [vmem:[%s1666_s11 + $0x10] sm:$0xff]  ;;  %s311_s29 = sand.u32 1, %s1332_s13   ;;  %s831_s10 = sadd.s32 %s1139_s4, %s1685_s24 }
  0x65   : > { %710 = vmatpush.bf16.msra.mxu3 %v1017_v43  ;;  %v348_v2 = vpack.c.bf16 %v333_v62, %v332_v61  ;;  %v335_v4 = vld [vmem:[%s1666_s11 + $0x18] sm:$0xff]  ;;  %v336_v6 = vld [vmem:[%s1666_s11 + $0x20] sm:$0xff]  ;;  %v337_v7 = vld [vmem:[%s1666_s11 + $0x28] sm:$0xff]  ;;  %s327_s15 = scalar_select %p326_p6, %s1685_s24, 7 }
  0x66   : > { %v349_v5 = vpack.c.bf16 %v335_v4, %v334_v3  ;;  %v350_v8 = vpack.c.bf16 %v337_v7, %v336_v6  ;;  %v338_v9 = vld [vmem:[%s1666_s11 + $0x30] sm:$0xff]  ;;  %v339_v10 = vld [vmem:[%s1666_s11 + $0x38] sm:$0xff]  ;;  %v340_v12 = vld [vmem:[%s1666_s11 + $0x40] sm:$0xff]  ;;  %s965_s9 = sshll.u32 %s311_s29, 9 }
  0x67   : > { %564 = vmatpush.bf16.msra.mxu0 %v989_v48  ;;  %v351_v11 = vpack.c.bf16 %v339_v10, %v338_v9  ;;  %v341_v13 = vld [vmem:[%s1666_s11 + $0x48] sm:$0xff]  ;;  %v342_v15 = vld [vmem:[%s1666_s11 + $0x50] sm:$0xff]  ;;  %v343_v16 = vld [vmem:[%s1666_s11 + $0x58] sm:$0xff]  ;;  %s328_s8 = scalar_lea.vmem %s1894_s2, %s327_s15  ;;  %s1701_s17 = scalar_lea.vmem [#allocation3], %s965_s9 }
  0x68   : > { %613 = vmatpush.bf16.msra.mxu1 %v993_v50  ;;  %662 = vmatpush.bf16.msra.mxu2 %v997_v51  ;;  %v352_v14 = vpack.c.bf16 %v341_v13, %v340_v12  ;;  %v353_v17 = vpack.c.bf16 %v343_v16, %v342_v15  ;;  %v344_v18 = vld [vmem:[%s1666_s11 + $0x60] sm:$0xff]  ;;  %v345_v19 = vld [vmem:[%s1666_s11 + $0x68] sm:$0xff]  ;;  %v346_v21 = vld [vmem:[%s1666_s11 + $0x70] sm:$0xff]  ;;  %s836_s6 = sshll.u32 %s1701_s17, 4  ;;  %s819_s9 = scalar_lea.sflag [#allocation4], %s311_s29  ;;  %s837_s6 = int_to_ptr.vmem [resolvable:$true] %s836_s6 }
  0x69   : > { %711 = vmatpush.bf16.msra.mxu3 %v1001_v55  ;;  %v354_v20 = vpack.c.bf16 %v345_v19, %v344_v18  ;;  %v347_v22 = vld [vmem:[%s1666_s11 + $0x78] sm:$0xff]  ;;  %v388_v24 = vld [vmem:[%s328_s8] sm:$0xf]  ;;  %s1102_s11 = sshll.u32 %s1356_s19, 8 }
  0x6a   : > { %v355_v23 = vpack.c.bf16 %v347_v22, %v346_v21  ;;  %v1695_v25 = vperm.slane %v388_v24, 0  ;;  %v1697_v26 = vperm.slane %v388_v24, 1  ;;  %v1705_v31 = vperm.slane %v388_v24, 2  ;;  %s833_s18 = sadd.s32 %s1102_s11, %s831_s10 }
  0x6b   : > { %565 = vmatpush.bf16.msra.mxu0 %v973_v60  ;;  %v1707_v32 = vperm.slane %v388_v24, 3  ;;  %s1103_s15 = sshll.u32 %s833_s18, 3 }
  0x6c   : > { %614 = vmatpush.bf16.msra.mxu1 %v977_v63  ;;  %663 = vmatpush.bf16.msra.mxu2 %v981_v0  ;;  %s835_s25 = scalar_lea.hbm %s1895_s3, %s1103_s15  ;;  %s1266_s15 = scalar_lea.hbm %s1895_s3, 4096 }
  0x6d   : > { %712 = vmatpush.bf16.msra.mxu3 %v985_v1  ;;  %s838_s8 = sshll.u32 %s835_s25, 4  ;;  %s839_s8 = int_to_ptr.hbm [resolvable:$true] %s838_s8 }
  0x6e   : > { %566 = vmatmul.bf16.vlgmr.msra.gmra.mxu0 %v348_v2  ;;  %s1260_s4 = sshra.s32 %s839_s8, 4  ;;  %s1261_s4 = int_to_ptr.hbm [resolvable:$true] %s1260_s4 }
  0x6f   : > { %615 = vmatmul.bf16.vlgmr.msra.gmra.mxu1 %v348_v2  ;;  %664 = vmatmul.bf16.vlgmr.msra.gmra.mxu2 %v348_v2  ;;  %s1262_s10 = scalar_lea.hbm %s1261_s4, 512  ;;  %p1267_p11 = scmp.lt.s32.totalorder %s1261_s4, %s1895_s3 }
  0x70   : > { %713 = vmatmul.bf16.vlgmr.msra.gmra.mxu3 %v348_v2  ;;  %p1263_p7 = scmp.ne.s32.totalorder %s1261_s4, %s1262_s10  ;;  %p1268_p13 = scmp.lt.s32.totalorder %s1266_s15, %s1262_s10 }
  0x72   : > { %p1264_p8 = pnand %p1263_p7, %p1487_p9  ;;  %p1269_p0 = por %p1268_p13, %p1267_p11 }
  0x74   : > { %p1265_p10 = pneg %p1264_p8 }
  0x76   : > { %p1270_p1 = pnand %p1269_p0, %p1265_p10 }
  0x7e   : > { %571 = vmatmul.bf16.gmra.mxu0 %v349_v5 }
  0x7f   : > { %620 = vmatmul.bf16.gmra.mxu1 %v349_v5  ;;  %669 = vmatmul.bf16.gmra.mxu2 %v349_v5 }
  0x80   : > { %718 = vmatmul.bf16.gmra.mxu3 %v349_v5 }
  0x8e   : > { %576 = vmatmul.bf16.gmra.mxu0 %v350_v8 }
  0x8f   : > { %625 = vmatmul.bf16.gmra.mxu1 %v350_v8  ;;  %674 = vmatmul.bf16.gmra.mxu2 %v350_v8 }
  0x90   : > { %723 = vmatmul.bf16.gmra.mxu3 %v350_v8 }
  0x9e   : > { %581 = vmatmul.bf16.gmra.mxu0 %v351_v11 }
  0x9f   : > { %630 = vmatmul.bf16.gmra.mxu1 %v351_v11  ;;  %679 = vmatmul.bf16.gmra.mxu2 %v351_v11 }
  0xa0   : > { %728 = vmatmul.bf16.gmra.mxu3 %v351_v11 }
  0xae   : > { %586 = vmatmul.bf16.gmra.mxu0 %v352_v14 }
  0xaf   : > { %635 = vmatmul.bf16.gmra.mxu1 %v352_v14  ;;  %684 = vmatmul.bf16.gmra.mxu2 %v352_v14 }
  0xb0   : > { %733 = vmatmul.bf16.gmra.mxu3 %v352_v14 }
  0xbe   : > { %591 = vmatmul.bf16.gmra.mxu0 %v353_v17 }
  0xbf   : > { %640 = vmatmul.bf16.gmra.mxu1 %v353_v17  ;;  %689 = vmatmul.bf16.gmra.mxu2 %v353_v17 }
  0xc0   : > { %738 = vmatmul.bf16.gmra.mxu3 %v353_v17 }
  0xce   : > { %596 = vmatmul.bf16.gmra.mxu0 %v354_v20 }
  0xcf   : > { %645 = vmatmul.bf16.gmra.mxu1 %v354_v20  ;;  %694 = vmatmul.bf16.gmra.mxu2 %v354_v20 }
  0xd0   : > { %743 = vmatmul.bf16.gmra.mxu3 %v354_v20 }
  0xde   : > { %601 = vmatmul.bf16.gmra.mxu0 %v355_v23 }
  0xdf   : > { %650 = vmatmul.bf16.gmra.mxu1 %v355_v23  ;;  %699 = vmatmul.bf16.gmra.mxu2 %v355_v23 }
  0xe0   : > { %748 = vmatmul.bf16.gmra.mxu3 %v355_v23 }
  0xeb   : > { %v567_v27 = vpop.f32.mrf.mxu0 }
  0xec   : > { %v568_v28 = vadd.f32 %v567_v27, %v1695_v25  ;;  %v616_v29 = vpop.f32.mrf.mxu1 }
  0xed   : > { %v617_v30 = vadd.f32 %v616_v29, %v1697_v26 }
  0xee   : > { %754 = vst [vmem:[%s1701_s17] sm:$0xff] %v568_v28 }
  0xef   : > { %755 = vst [vmem:[%s1701_s17 + $0x8] sm:$0xff] %v617_v30 }
  0xf2   : > { %v665_v33 = vpop.f32.mrf.mxu2 }
  0xf3   : > { %v666_v34 = vadd.f32 %v665_v33, %v1705_v31  ;;  %v714_v35 = vpop.f32.mrf.mxu3  ;;  %v569_v36 = vpop.f32.mrf.mxu0 }
  0xf4   : > { %v715_v37 = vadd.f32 %v714_v35, %v1707_v32  ;;  %v570_v38 = vadd.f32 %v569_v36, %v1695_v25  ;;  %v618_v39 = vpop.f32.mrf.mxu1 }
  0xf5   : > { %756 = vst [vmem:[%s1701_s17 + $0x10] sm:$0xff] %v666_v34  ;;  %v619_v40 = vadd.f32 %v618_v39, %v1697_v26 }
  0xf6   : > { %757 = vst [vmem:[%s1701_s17 + $0x18] sm:$0xff] %v715_v37 }
  0xf7   : > { %758 = vst [vmem:[%s1701_s17 + $0x20] sm:$0xff] %v570_v38 }
  0xf8   : > { %759 = vst [vmem:[%s1701_s17 + $0x28] sm:$0xff] %v619_v40 }
  0xfa   : > { %v667_v41 = vpop.f32.mrf.mxu2 }
  0xfb   : > { %v668_v42 = vadd.f32 %v667_v41, %v1705_v31  ;;  %v716_v43 = vpop.f32.mrf.mxu3  ;;  %v572_v44 = vpop.f32.mrf.mxu0 }
  0xfc   : > { %v717_v45 = vadd.f32 %v716_v43, %v1707_v32  ;;  %v573_v46 = vadd.f32 %v572_v44, %v1695_v25  ;;  %v621_v47 = vpop.f32.mrf.mxu1 }
  0xfd   : > { %760 = vst [vmem:[%s1701_s17 + $0x30] sm:$0xff] %v668_v42  ;;  %v622_v48 = vadd.f32 %v621_v47, %v1697_v26 }
  0xfe   : > { %761 = vst [vmem:[%s1701_s17 + $0x38] sm:$0xff] %v717_v45 }
  0xff   : > { %762 = vst [vmem:[%s1701_s17 + $0x40] sm:$0xff] %v573_v46 }
 0x100   : > { %763 = vst [vmem:[%s1701_s17 + $0x48] sm:$0xff] %v622_v48 }
 0x102   : > { %v670_v49 = vpop.f32.mrf.mxu2 }
 0x103   : > { %v671_v50 = vadd.f32 %v670_v49, %v1705_v31  ;;  %v719_v51 = vpop.f32.mrf.mxu3  ;;  %v574_v52 = vpop.f32.mrf.mxu0 }
 0x104   : > { %v720_v53 = vadd.f32 %v719_v51, %v1707_v32  ;;  %v575_v54 = vadd.f32 %v574_v52, %v1695_v25  ;;  %v623_v55 = vpop.f32.mrf.mxu1 }
 0x105   : > { %764 = vst [vmem:[%s1701_s17 + $0x50] sm:$0xff] %v671_v50  ;;  %v624_v56 = vadd.f32 %v623_v55, %v1697_v26 }
 0x106   : > { %765 = vst [vmem:[%s1701_s17 + $0x58] sm:$0xff] %v720_v53 }
 0x107   : > { %766 = vst [vmem:[%s1701_s17 + $0x60] sm:$0xff] %v575_v54 }
 0x108   : > { %767 = vst [vmem:[%s1701_s17 + $0x68] sm:$0xff] %v624_v56 }
 0x10a   : > { %v672_v57 = vpop.f32.mrf.mxu2 }
 0x10b   : > { %v673_v58 = vadd.f32 %v672_v57, %v1705_v31  ;;  %v721_v59 = vpop.f32.mrf.mxu3  ;;  %v577_v60 = vpop.f32.mrf.mxu0 }
 0x10c   : > { %v722_v61 = vadd.f32 %v721_v59, %v1707_v32  ;;  %v578_v62 = vadd.f32 %v577_v60, %v1695_v25  ;;  %v626_v63 = vpop.f32.mrf.mxu1 }
 0x10d   : > { %768 = vst [vmem:[%s1701_s17 + $0x70] sm:$0xff] %v673_v58  ;;  %v627_v0 = vadd.f32 %v626_v63, %v1697_v26 }
 0x10e   : > { %769 = vst [vmem:[%s1701_s17 + $0x78] sm:$0xff] %v722_v61 }
 0x10f   : > { %770 = vst [vmem:[%s1701_s17 + $0x80] sm:$0xff] %v578_v62 }
 0x110   : > { %771 = vst [vmem:[%s1701_s17 + $0x88] sm:$0xff] %v627_v0 }
 0x112   : > { %v675_v1 = vpop.f32.mrf.mxu2 }
 0x113   : > { %v676_v2 = vadd.f32 %v675_v1, %v1705_v31  ;;  %v724_v3 = vpop.f32.mrf.mxu3  ;;  %v579_v4 = vpop.f32.mrf.mxu0 }
 0x114   : > { %v725_v5 = vadd.f32 %v724_v3, %v1707_v32  ;;  %v580_v6 = vadd.f32 %v579_v4, %v1695_v25  ;;  %v628_v7 = vpop.f32.mrf.mxu1 }
 0x115   : > { %772 = vst [vmem:[%s1701_s17 + $0x90] sm:$0xff] %v676_v2  ;;  %v629_v8 = vadd.f32 %v628_v7, %v1697_v26 }
 0x116   : > { %773 = vst [vmem:[%s1701_s17 + $0x98] sm:$0xff] %v725_v5 }
 0x117   : > { %774 = vst [vmem:[%s1701_s17 + $0xa0] sm:$0xff] %v580_v6 }
 0x118   : > { %775 = vst [vmem:[%s1701_s17 + $0xa8] sm:$0xff] %v629_v8 }
 0x11a   : > { %v677_v9 = vpop.f32.mrf.mxu2 }
 0x11b   : > { %v678_v10 = vadd.f32 %v677_v9, %v1705_v31  ;;  %v726_v11 = vpop.f32.mrf.mxu3  ;;  %v582_v12 = vpop.f32.mrf.mxu0 }
 0x11c   : > { %v727_v13 = vadd.f32 %v726_v11, %v1707_v32  ;;  %v583_v14 = vadd.f32 %v582_v12, %v1695_v25  ;;  %v631_v15 = vpop.f32.mrf.mxu1 }
 0x11d   : > { %776 = vst [vmem:[%s1701_s17 + $0xb0] sm:$0xff] %v678_v10  ;;  %v632_v16 = vadd.f32 %v631_v15, %v1697_v26 }
 0x11e   : > { %777 = vst [vmem:[%s1701_s17 + $0xb8] sm:$0xff] %v727_v13 }
 0x11f   : > { %778 = vst [vmem:[%s1701_s17 + $0xc0] sm:$0xff] %v583_v14 }
 0x120   : > { %779 = vst [vmem:[%s1701_s17 + $0xc8] sm:$0xff] %v632_v16 }
 0x122   : > { %v680_v17 = vpop.f32.mrf.mxu2 }
 0x123   : > { %v681_v18 = vadd.f32 %v680_v17, %v1705_v31  ;;  %v729_v19 = vpop.f32.mrf.mxu3  ;;  %v584_v20 = vpop.f32.mrf.mxu0 }
 0x124   : > { %v730_v21 = vadd.f32 %v729_v19, %v1707_v32  ;;  %v585_v22 = vadd.f32 %v584_v20, %v1695_v25  ;;  %v633_v23 = vpop.f32.mrf.mxu1 }
 0x125   : > { %780 = vst [vmem:[%s1701_s17 + $0xd0] sm:$0xff] %v681_v18  ;;  %v634_v24 = vadd.f32 %v633_v23, %v1697_v26 }
 0x126   : > { %781 = vst [vmem:[%s1701_s17 + $0xd8] sm:$0xff] %v730_v21 }
 0x127   : > { %782 = vst [vmem:[%s1701_s17 + $0xe0] sm:$0xff] %v585_v22 }
 0x128   : > { %783 = vst [vmem:[%s1701_s17 + $0xe8] sm:$0xff] %v634_v24 }
 0x12a   : > { %v682_v27 = vpop.f32.mrf.mxu2 }
 0x12b   : > { %v683_v28 = vadd.f32 %v682_v27, %v1705_v31  ;;  %v731_v29 = vpop.f32.mrf.mxu3  ;;  %v587_v30 = vpop.f32.mrf.mxu0 }
 0x12c   : > { %v732_v33 = vadd.f32 %v731_v29, %v1707_v32  ;;  %v588_v34 = vadd.f32 %v587_v30, %v1695_v25  ;;  %v636_v35 = vpop.f32.mrf.mxu1 }
 0x12d   : > { %784 = vst [vmem:[%s1701_s17 + $0xf0] sm:$0xff] %v683_v28  ;;  %v637_v36 = vadd.f32 %v636_v35, %v1697_v26 }
 0x12e   : > { %785 = vst [vmem:[%s1701_s17 + $0xf8] sm:$0xff] %v732_v33 }
 0x12f   : > { %786 = vst [vmem:[%s1701_s17 + $0x100] sm:$0xff] %v588_v34 }
 0x130   : > { %787 = vst [vmem:[%s1701_s17 + $0x108] sm:$0xff] %v637_v36 }
 0x132   : > { %v685_v37 = vpop.f32.mrf.mxu2 }
 0x133   : > { %v686_v38 = vadd.f32 %v685_v37, %v1705_v31  ;;  %v734_v39 = vpop.f32.mrf.mxu3  ;;  %v589_v40 = vpop.f32.mrf.mxu0 }
 0x134   : > { %v735_v41 = vadd.f32 %v734_v39, %v1707_v32  ;;  %v590_v42 = vadd.f32 %v589_v40, %v1695_v25  ;;  %v638_v43 = vpop.f32.mrf.mxu1 }
 0x135   : > { %788 = vst [vmem:[%s1701_s17 + $0x110] sm:$0xff] %v686_v38  ;;  %v639_v44 = vadd.f32 %v638_v43, %v1697_v26 }
 0x136   : > { %789 = vst [vmem:[%s1701_s17 + $0x118] sm:$0xff] %v735_v41 }
 0x137   : > { %790 = vst [vmem:[%s1701_s17 + $0x120] sm:$0xff] %v590_v42 }
 0x138   : > { %791 = vst [vmem:[%s1701_s17 + $0x128] sm:$0xff] %v639_v44 }
 0x13a   : > { %v687_v45 = vpop.f32.mrf.mxu2 }
 0x13b   : > { %v688_v46 = vadd.f32 %v687_v45, %v1705_v31  ;;  %v736_v47 = vpop.f32.mrf.mxu3  ;;  %v592_v48 = vpop.f32.mrf.mxu0 }
 0x13c   : > { %v737_v49 = vadd.f32 %v736_v47, %v1707_v32  ;;  %v593_v50 = vadd.f32 %v592_v48, %v1695_v25  ;;  %v641_v51 = vpop.f32.mrf.mxu1 }
 0x13d   : > { %792 = vst [vmem:[%s1701_s17 + $0x130] sm:$0xff] %v688_v46  ;;  %v642_v52 = vadd.f32 %v641_v51, %v1697_v26 }
 0x13e   : > { %793 = vst [vmem:[%s1701_s17 + $0x138] sm:$0xff] %v737_v49 }
 0x13f   : > { %794 = vst [vmem:[%s1701_s17 + $0x140] sm:$0xff] %v593_v50 }
 0x140   : > { %795 = vst [vmem:[%s1701_s17 + $0x148] sm:$0xff] %v642_v52 }
 0x142   : > { %v690_v53 = vpop.f32.mrf.mxu2 }
 0x143   : > { %v691_v54 = vadd.f32 %v690_v53, %v1705_v31  ;;  %v739_v55 = vpop.f32.mrf.mxu3  ;;  %v594_v56 = vpop.f32.mrf.mxu0 }
 0x144   : > { %v740_v57 = vadd.f32 %v739_v55, %v1707_v32  ;;  %v595_v58 = vadd.f32 %v594_v56, %v1695_v25  ;;  %v643_v59 = vpop.f32.mrf.mxu1 }
 0x145   : > { %796 = vst [vmem:[%s1701_s17 + $0x150] sm:$0xff] %v691_v54  ;;  %v644_v60 = vadd.f32 %v643_v59, %v1697_v26 }
 0x146   : > { %797 = vst [vmem:[%s1701_s17 + $0x158] sm:$0xff] %v740_v57 }
 0x147   : > { %798 = vst [vmem:[%s1701_s17 + $0x160] sm:$0xff] %v595_v58 }
 0x148   : > { %799 = vst [vmem:[%s1701_s17 + $0x168] sm:$0xff] %v644_v60 }
 0x14a   : > { %v692_v61 = vpop.f32.mrf.mxu2 }
 0x14b   : > { %v693_v62 = vadd.f32 %v692_v61, %v1705_v31  ;;  %v741_v63 = vpop.f32.mrf.mxu3  ;;  %v597_v0 = vpop.f32.mrf.mxu0 }
 0x14c   : > { %v742_v1 = vadd.f32 %v741_v63, %v1707_v32  ;;  %v598_v2 = vadd.f32 %v597_v0, %v1695_v25  ;;  %v646_v3 = vpop.f32.mrf.mxu1 }
 0x14d   : > { %800 = vst [vmem:[%s1701_s17 + $0x170] sm:$0xff] %v693_v62  ;;  %v647_v4 = vadd.f32 %v646_v3, %v1697_v26 }
 0x14e   : > { %801 = vst [vmem:[%s1701_s17 + $0x178] sm:$0xff] %v742_v1 }
 0x14f   : > { %802 = vst [vmem:[%s1701_s17 + $0x180] sm:$0xff] %v598_v2 }
 0x150   : > { %803 = vst [vmem:[%s1701_s17 + $0x188] sm:$0xff] %v647_v4 }
 0x152   : > { %v695_v5 = vpop.f32.mrf.mxu2 }
 0x153   : > { %v696_v6 = vadd.f32 %v695_v5, %v1705_v31  ;;  %v744_v7 = vpop.f32.mrf.mxu3  ;;  %v599_v8 = vpop.f32.mrf.mxu0 }
 0x154   : > { %v745_v9 = vadd.f32 %v744_v7, %v1707_v32  ;;  %v600_v10 = vadd.f32 %v599_v8, %v1695_v25  ;;  %v648_v11 = vpop.f32.mrf.mxu1 }
 0x155   : > { %804 = vst [vmem:[%s1701_s17 + $0x190] sm:$0xff] %v696_v6  ;;  %v649_v12 = vadd.f32 %v648_v11, %v1697_v26 }
 0x156   : > { %805 = vst [vmem:[%s1701_s17 + $0x198] sm:$0xff] %v745_v9 }
 0x157   : > { %806 = vst [vmem:[%s1701_s17 + $0x1a0] sm:$0xff] %v600_v10 }
 0x158   : > { %807 = vst [vmem:[%s1701_s17 + $0x1a8] sm:$0xff] %v649_v12 }
 0x15a   : > { %v697_v13 = vpop.f32.mrf.mxu2 }
 0x15b   : > { %v698_v14 = vadd.f32 %v697_v13, %v1705_v31  ;;  %v746_v15 = vpop.f32.mrf.mxu3  ;;  %v602_v16 = vpop.f32.mrf.mxu0 }
 0x15c   : > { %v747_v17 = vadd.f32 %v746_v15, %v1707_v32  ;;  %v603_v18 = vadd.f32 %v602_v16, %v1695_v25  ;;  %v651_v19 = vpop.f32.mrf.mxu1 }
 0x15d   : > { %808 = vst [vmem:[%s1701_s17 + $0x1b0] sm:$0xff] %v698_v14  ;;  %v652_v20 = vadd.f32 %v651_v19, %v1697_v26 }
 0x15e   : > { %809 = vst [vmem:[%s1701_s17 + $0x1b8] sm:$0xff] %v747_v17 }
 0x15f   : > { %810 = vst [vmem:[%s1701_s17 + $0x1c0] sm:$0xff] %v603_v18 }
 0x160   : > { %811 = vst [vmem:[%s1701_s17 + $0x1c8] sm:$0xff] %v652_v20 }
 0x162   : > { %v700_v21 = vpop.f32.mrf.mxu2 }
 0x163   : > { %v701_v22 = vadd.f32 %v700_v21, %v1705_v31  ;;  %v749_v23 = vpop.f32.mrf.mxu3  ;;  %v604_v24 = vpop.f32.mrf.mxu0 }
 0x164   : > { %v750_v27 = vadd.f32 %v749_v23, %v1707_v32  ;;  %v605_v28 = vadd.f32 %v604_v24, %v1695_v25  ;;  %v653_v29 = vpop.f32.mrf.mxu1 }
 0x165   : > { %812 = vst [vmem:[%s1701_s17 + $0x1d0] sm:$0xff] %v701_v22  ;;  %v654_v30 = vadd.f32 %v653_v29, %v1697_v26 }
 0x166   : > { %813 = vst [vmem:[%s1701_s17 + $0x1d8] sm:$0xff] %v750_v27 }
 0x167   : > { %814 = vst [vmem:[%s1701_s17 + $0x1e0] sm:$0xff] %v605_v28 }
 0x168   : > { %815 = vst [vmem:[%s1701_s17 + $0x1e8] sm:$0xff] %v654_v30 }
 0x16a   : > { %v702_v33 = vpop.f32.mrf.mxu2 }
 0x16b   : > { %v703_v25 = vadd.f32 %v702_v33, %v1705_v31  ;;  %v751_v34 = vpop.f32.mrf.mxu3 }
 0x16c   : > { %v752_v35 = vadd.f32 %v751_v34, %v1707_v32 }
 0x16d   : > { %816 = vst [vmem:[%s1701_s17 + $0x1f0] sm:$0xff] %v703_v25 }
 0x16e   : > { %817 = vst [vmem:[%s1701_s17 + $0x1f8] sm:$0xff] %v752_v35 }
 0x16f   : > { %1273 = shalt.err (!%p1270_p1)
}
 0x170   : > { %s1374_s29 = smov 512   ;;  %s1375_s17 = smov 1024  }
 0x171   : > { %s1376_s25 = smov 32  }
 0x172   : > { %1140 = dma.vmem_to_hbm [thread:$0]  (%p1487_p9), %s837_s6, 8192, %s839_s8, %s819_s9, %s1374_s29, %s1375_s17, %s1376_s25  }
 0x173 PF: > { %p1146_p2 = scmp.ge.s32.totalorder %s1372_s23, 2  ;;  %s853_s11 = sand.u32 1, %s1328_s12  }
 0x174   : > { %s854_s4 = scalar_lea.sflag [#allocation4], %s853_s11 }
 0x175   : > { %p1143_p3 = pnand %p1146_p2, %p1496_p12 }
 0x177   : > { %p1144_p4 = pneg %p1143_p3 }
 0x179   : > { %1323 = dma.done.wait (%p1144_p4), %s854_s4, 8192  }
 0x17a   : > { %1325 = vsyncadd (%p1144_p4), %s854_s4, 4294959104  ;;  %s16_s23 = sadd.s32 1, %s1372_s23   ;;  %s1902_s7 = sld [smem:[#allocation6_spill]] }
 0x17b   : > { %p13_p5 = scmp.ge.s32.totalorder %s16_s23, 10   ;;  %s1903_s12 = smov %s1332_s13 }
 0x17c   : > { %s1904_s13 = smov %s1336_s14  ;;  %s1905_s14 = smov %s1501_s27 }
 0x17d   : > { %s1906_s15 = smov %s1344_s16  ;;  %s1907_s16 = smov %s1479_s5 }
 0x17e   : > { %s1908_s17 = smov %s1360_s20  ;;  %s1909_s18 = smov %s1364_s21 }
 0x17f   : > { %s1910_s19 = smov %s1368_s22  ;;  %s1911_s20 = smov %s1915_s26 }
 0x180   : > { %s1912_s21 = smov %s1902_s7  ;;  %s1913_s22 = smov %s1923_s28 }
 0x181   :  { %15 = sbr.rel (!%p13_p5) target bundleno = 7 (0x7), region = 101 }
 0x186   :  { %860 = vsyncpa [#allocation4], 1 }
 0x187   :  { %862 = vsyncpa [#allocation4 + $0x1], 1 }

</bundles_post_ra>
